<compile_context>
chip_gen: v7x
topology: tpu7x:2x2x1
jax: 0.10.0
libtpu: 0.0.40
codegen_flags: <defaults>
</compile_context>

<pallas_src>
import jax
import jax.numpy as jnp
from jax.experimental import pallas as pl
from jax.experimental.pallas import tpu as pltpu

LEAKY_SLOPE = 0.2
BN_EPS = 1e-5
_LANE = 128
_VMEM_LIMIT_BYTES = 32 * 1024 * 1024


def _resblock_kernel(x_ref, w_ref, g_ref, b_ref, o_ref, acc_ref, col_ref):
    """One grid step == one ConvBlock (3x3 reflect-pad conv -> BN batch stats -> LeakyReLU).

    x_ref  : (N, H, W, Cp)         f32   channel-padded input (constant block -> resident)
    w_ref  : (1, 3, 3*Cp, Cp)      bf16  this step's conv weight, (kj, cin) folded into K
    g_ref  : (1, 1, Cp)            f32   this step's BN gamma
    b_ref  : (1, 1, Cp)            f32   this step's BN beta
    o_ref  : (N, H, W, Cp)         f32   output (written on the last step only)
    acc_ref: (N*H*W, Cp)           f32   conv accumulator AND running activation (shared)
    col_ref: (N, H+2, W, 3*Cp)     bf16  reflect-padded, kj-folded activation scratch
    """
    s = pl.program_id(0)
    n, h, w, cp = x_ref.shape
    m = n * h * w
    k3 = 3 * cp

    def assemble(xv):
        # Reflect-pad in W (value space, f32 -> proven-cheap slices), fold the 3 horizontal
        # taps into the channel axis, cast once to bf16, then store with H-reflect rows.
        # Edges/corners come from the input value itself (no RAW chain on col_ref).
        xw = jnp.concatenate(
            [xv[:, :, 1:2, :], xv, xv[:, :, w - 2:w - 1, :]], axis=2)       # (n, h, w+2, cp)
        tri = jnp.concatenate(
            [xw[:, :, 0:w, :], xw[:, :, 1:w + 1, :], xw[:, :, 2:w + 2, :]],
            axis=3).astype(jnp.bfloat16)                                    # (n, h, w, 3cp)
        col_ref[:, 1:h + 1, :, :] = tri                                     # interior rows
        col_ref[:, 0:1, :, :] = tri[:, 1:2, :, :]                           # top reflect
        col_ref[:, h + 1:h + 2, :, :] = tri[:, h - 2:h - 1, :, :]           # bottom reflect

    @pl.when(s == 0)
    def _():
        assemble(x_ref[...])                       # first ConvBlock reads the residual input

    @pl.when(s > 0)
    def _():
        assemble(acc_ref[...].reshape(n, h, w, cp))    # later block reads previous activation

    # ---- 3x3 conv: 3 matmuls of K = 3*Cp (kj taps folded), bf16 x bf16 -> f32 acc ----
    for ki in range(3):
        patch = col_ref[:, ki:ki + h, :, :].reshape(m, k3)       # aligned slab, no w/w+2 mix
        contrib = jnp.dot(patch, w_ref[0, ki],
                          preferred_element_type=jnp.float32)    # (m, cp) f32
        if ki == 0:
            acc_ref[...] = contrib        # overwrites the now-dead previous activation
        else:
            acc_ref[...] += contrib

    # ---- BatchNorm2d (training-mode biased batch stats, two-pass variance) + LeakyReLU ----
    acc = acc_ref[...]                                           # (m, cp) f32
    inv_m = jnp.float32(1.0 / m)
    mean = jnp.sum(acc, axis=0, keepdims=True) * inv_m           # (1, cp)
    cent = acc - mean
    var = jnp.sum(cent * cent, axis=0, keepdims=True) * inv_m    # (1, cp)
    gain = jax.lax.rsqrt(var + BN_EPS) * g_ref[0]                # (1, cp)
    z = cent * gain + b_ref[0]
    y = jnp.where(z > 0, z, LEAKY_SLOPE * z)                     # (m, cp) f32
    acc_ref[...] = y                                             # running activation

    # ---- residual add on the last step ----
    @pl.when(s == pl.num_programs(0) - 1)
    def _():
        o_ref[...] = x_ref[...] + y.reshape(n, h, w, cp)
    # TODO(synk): BatchNorm2d running_mean/running_var buffer updates (training-mode side
    # effect) are not replicated; they do not affect the forward output.


def _vmem_bytes_estimate(n, h, w, cp):
    act = n * h * w * cp
    col = n * (h + 2) * w * 3 * cp
    fixed = (2 * act * 4                    # x block (pipeline double buffer)
             + 2 * act * 4                  # out block
             + 2 * 3 * 3 * cp * cp * 2      # folded bf16 weights (double buffered)
             + 4 * 2 * cp * 4)              # gamma / beta blocks
    scratch = act * 4 + col * 2             # acc_ref (f32) + col_ref (bf16)
    temps = act * 4 * 4 + act * 3 * 2 * 2   # pad/tri assembly temps + bf16 patch values
    return fixed + scratch + temps


def _fold_weight(w_hwio, c, cp):
    """(3,3,C,C) HWIO -> (3, 3*Cp, Cp): (kj, cin) folded into the contraction axis."""
    wp = jnp.pad(w_hwio, ((0, 0), (0, 0), (0, cp - c), (0, cp - c)))   # (3, 3, Cp, Cp)
    return wp.reshape(3, 3 * cp, cp)


def resblock_forward(x_nchw, params):
    """x_nchw: (N, C, H, W) f32. params: w1/w2 (3,3,C,C) HWIO, g1/b1/g2/b2 (1,C)."""
    n, c, h, w = x_nchw.shape
    assert h >= 2 and w >= 2, "reflect padding of 1 requires spatial dims >= 2"
    cp = ((c + _LANE - 1) // _LANE) * _LANE
    m = n * h * w

    est = _vmem_bytes_estimate(n, h, w, cp)
    assert est <= _VMEM_LIMIT_BYTES, (
        f"untiled activation needs ~{est} B of VMEM (> {_VMEM_LIMIT_BYTES}); spatial tiling "
        "with a two-phase BatchNorm (stats pass + normalize pass) is required — see TODO")

    # TODO(synk): keeping the model NHWC end-to-end (and, for C<<128, packing W or H*W into
    # lanes instead of zero-padding C to 128) would remove these HBM transposes/pads and the
    # 32x zero-work inflation from the hot path.
    x = jnp.transpose(x_nchw, (0, 2, 3, 1))                      # NHWC
    x_p = jnp.pad(x, ((0, 0), (0, 0), (0, 0), (0, cp - c)))

    def pad_v(v):    # (1,C) -> (1,Cp)
        return jnp.pad(jnp.reshape(v, (1, c)), ((0, 0), (0, cp - c)))

    w_all = jnp.stack([_fold_weight(params["w1"], c, cp),
                       _fold_weight(params["w2"], c, cp)]).astype(jnp.bfloat16)  # (2,3,3Cp,Cp)
    g_all = jnp.stack([pad_v(params["g1"]), pad_v(params["g2"])])                # (2,1,Cp)
    b_all = jnp.stack([pad_v(params["b1"]), pad_v(params["b2"])])                # (2,1,Cp)

    grid_spec = pltpu.PrefetchScalarGridSpec(
        num_scalar_prefetch=0,
        grid=(2,),                                # step 0: ConvBlock1, step 1: ConvBlock2
        in_specs=[
            pl.BlockSpec((n, h, w, cp), lambda s: (0, 0, 0, 0)),
            pl.BlockSpec((1, 3, 3 * cp, cp), lambda s: (s, 0, 0, 0)),
            pl.BlockSpec((1, 1, cp), lambda s: (s, 0, 0)),
            pl.BlockSpec((1, 1, cp), lambda s: (s, 0, 0)),
        ],
        out_specs=pl.BlockSpec((n, h, w, cp), lambda s: (0, 0, 0, 0)),
        scratch_shapes=[
            pltpu.VMEM((m, cp), jnp.float32),                     # conv acc / running act
            pltpu.VMEM((n, h + 2, w, 3 * cp), jnp.bfloat16),      # reflect-padded, kj-folded
        ],
    )
    # TODO(synk): pipeline_mode=pl.Buffered(1) on the constant-index x/out/g/b specs would
    # reclaim their second pipeline buffer (VMEM headroom on v7x); left at default here.
    out = pl.pallas_call(
        _resblock_kernel,
        out_shape=jax.ShapeDtypeStruct((n, h, w, cp), jnp.float32),
        grid_spec=grid_spec,
        compiler_params=pltpu.CompilerParams(
            dimension_semantics=("arbitrary",),   # the two conv blocks are sequential
            vmem_limit_bytes=_VMEM_LIMIT_BYTES,
        ),
    )(x_p, w_all, g_all, b_all)
    # TODO(synk): spatial/batch tiling (and a v7x dual-TensorCore "parallel" grid axis) needs
    # the two-phase stats/normalize pipeline because training-mode BatchNorm couples every
    # (n,h,w) position; not implemented here.
    return jnp.transpose(out[..., :c], (0, 3, 1, 2))             # back to NCHW


# ----------------------- pure-JAX reference for validation -----------------------
def _ref_convblock(x_nhwc, w_hwio, gamma, beta):
    xp = jnp.pad(x_nhwc, ((0, 0), (1, 1), (1, 1), (0, 0)), mode="reflect")
    # Mirror the kernel's intentional precision choice: bf16 MXU inputs, f32 accumulate.
    y = jax.lax.conv_general_dilated(
        xp.astype(jnp.bfloat16), w_hwio.astype(jnp.bfloat16),
        window_strides=(1, 1), padding="VALID",
        dimension_numbers=("NHWC", "HWIO", "NHWC"),
        preferred_element_type=jnp.float32,
    )
    mean = jnp.mean(y, axis=(0, 1, 2), keepdims=True)
    var = jnp.mean((y - mean) ** 2, axis=(0, 1, 2), keepdims=True)
    z = (y - mean) * jax.lax.rsqrt(var + BN_EPS) * gamma.reshape(1, 1, 1, -1) \
        + beta.reshape(1, 1, 1, -1)
    return jnp.where(z > 0, z, LEAKY_SLOPE * z)


def _ref_resblock(x_nchw, params):
    x = jnp.transpose(x_nchw, (0, 2, 3, 1))
    y = _ref_convblock(x, params["w1"], params["g1"], params["b1"])
    y = _ref_convblock(y, params["w2"], params["g2"], params["b2"])
    return jnp.transpose(x + y, (0, 3, 1, 2))


if __name__ == "__main__":
    N, C, H, W = 2, 4, 16, 16
    key = jax.random.PRNGKey(0)
    k_x, k_w1, k_w2, k_g1, k_b1, k_g2, k_b2 = jax.random.split(key, 7)

    x = jax.random.normal(k_x, (N, C, H, W), dtype=jnp.float32)
    params = {
        # HWIO conv weights (PyTorch would be OIHW; synthetic deterministic init)
        "w1": 0.1 * jax.random.normal(k_w1, (3, 3, C, C), dtype=jnp.float32),
        "w2": 0.1 * jax.random.normal(k_w2, (3, 3, C, C), dtype=jnp.float32),
        # BatchNorm affine params
        "g1": 1.0 + 0.1 * jax.random.normal(k_g1, (1, C), dtype=jnp.float32),
        "b1": 0.1 * jax.random.normal(k_b1, (1, C), dtype=jnp.float32),
        "g2": 1.0 + 0.1 * jax.random.normal(k_g2, (1, C), dtype=jnp.float32),
        "b2": 0.1 * jax.random.normal(k_b2, (1, C), dtype=jnp.float32),
    }

    out = jax.block_until_ready(resblock_forward(x, params))
    assert out.shape == (N, C, H, W), out.shape

    ref = jax.block_until_ready(_ref_resblock(x, params))
    assert jnp.allclose(out, ref, atol=5e-3, rtol=5e-3), \
        float(jnp.max(jnp.abs(out - ref)))

    print("KERNEL_OK")
</pallas_src>

<mosaic_0001>
module attributes {stable_mosaic.version = 11 : i64} {
  func.func @_resblock_kernel(%arg0: i32, %arg1: memref<2x16x16x128xf32, #tpu.memory_space<vmem>>, %arg2: memref<1x3x384x128xbf16, #tpu.memory_space<vmem>>, %arg3: memref<1x1x128xf32, #tpu.memory_space<vmem>>, %arg4: memref<1x1x128xf32, #tpu.memory_space<vmem>>, %arg5: memref<2x16x16x128xf32, #tpu.memory_space<vmem>>, %arg6: memref<512x128xf32, #tpu.memory_space<vmem>>, %arg7: memref<2x18x16x384xbf16, #tpu.memory_space<vmem>>) attributes {dimension_semantics = [#tpu.dimension_semantics<arbitrary>], iteration_bounds = array<i64: 2>, scalar_prefetch = 0 : i64, scratch_operands = 2 : i64, tpu.core_type = #tpu.core_type<tc>, window_params = [{pipeline_mode = #tpu.pipeline_mode<synchronous>, transform_indices = @transform_0, window_bounds = array<i64: 2, 16, 16, 128>}, {transform_indices = @transform_1, window_bounds = array<i64: 1, 3, 384, 128>}, {transform_indices = @transform_2, window_bounds = array<i64: 1, 1, 128>}, {transform_indices = @transform_3, window_bounds = array<i64: 1, 1, 128>}, {pipeline_mode = #tpu.pipeline_mode<synchronous>, transform_indices = @transform_4, window_bounds = array<i64: 2, 16, 16, 128>}]} {
    %c0_i32 = arith.constant 0 : i32
    %0 = arith.cmpi eq, %arg0, %c0_i32 : i32
    %1 = arith.extui %0 : i1 to i32
    %c0_i32_0 = arith.constant 0 : i32
    %2 = arith.cmpi ne, %1, %c0_i32_0 : i32
    scf.if %2 {
      %c0_54 = arith.constant 0 : index
      %c0_55 = arith.constant 0 : index
      %c0_56 = arith.constant 0 : index
      %c0_57 = arith.constant 0 : index
      %61 = vector.load %arg1[%c0_54, %c0_55, %c0_56, %c0_57] : memref<2x16x16x128xf32, #tpu.memory_space<vmem>>, vector<2x16x16x128xf32>
      %62 = vector.extract_strided_slice %61 {offsets = [0, 0, 1, 0], sizes = [2, 16, 1, 128], strides = [1, 1, 1, 1]} : vector<2x16x16x128xf32> to vector<2x16x1x128xf32>
      %63 = vector.extract_strided_slice %61 {offsets = [0, 0, 14, 0], sizes = [2, 16, 1, 128], strides = [1, 1, 1, 1]} : vector<2x16x16x128xf32> to vector<2x16x1x128xf32>
      %64 = tpu.concatenate %62, %61, %63 in 2 : vector<2x16x1x128xf32>, vector<2x16x16x128xf32>, vector<2x16x1x128xf32> -> vector<2x16x18x128xf32>
      %65 = vector.extract_strided_slice %64 {offsets = [0, 0, 0, 0], sizes = [2, 16, 16, 128], strides = [1, 1, 1, 1]} : vector<2x16x18x128xf32> to vector<2x16x16x128xf32>
      %66 = vector.extract_strided_slice %64 {offsets = [0, 0, 1, 0], sizes = [2, 16, 16, 128], strides = [1, 1, 1, 1]} : vector<2x16x18x128xf32> to vector<2x16x16x128xf32>
      %67 = vector.extract_strided_slice %64 {offsets = [0, 0, 2, 0], sizes = [2, 16, 16, 128], strides = [1, 1, 1, 1]} : vector<2x16x18x128xf32> to vector<2x16x16x128xf32>
      %68 = tpu.concatenate %65, %66, %67 in 3 : vector<2x16x16x128xf32>, vector<2x16x16x128xf32>, vector<2x16x16x128xf32> -> vector<2x16x16x384xf32>
      %69 = arith.truncf %68 : vector<2x16x16x384xf32> to vector<2x16x16x384xbf16>
      %c0_58 = arith.constant 0 : index
      %c1_59 = arith.constant 1 : index
      %c0_60 = arith.constant 0 : index
      %c0_61 = arith.constant 0 : index
      %70 = vector.load %arg7[%c0_58, %c1_59, %c0_60, %c0_61] : memref<2x18x16x384xbf16, #tpu.memory_space<vmem>>, vector<2x16x16x384xbf16>
      tpu.vector_store %arg7[%c0_58, %c1_59, %c0_60, %c0_61], %69 {strides = array<i32>} : memref<2x18x16x384xbf16, #tpu.memory_space<vmem>>, vector<2x16x16x384xbf16>,
      %71 = vector.extract_strided_slice %69 {offsets = [0, 1, 0, 0], sizes = [2, 1, 16, 384], strides = [1, 1, 1, 1]} : vector<2x16x16x384xbf16> to vector<2x1x16x384xbf16>
      %c0_62 = arith.constant 0 : index
      %c0_63 = arith.constant 0 : index
      %c0_64 = arith.constant 0 : index
      %c0_65 = arith.constant 0 : index
      %72 = vector.load %arg7[%c0_62, %c0_63, %c0_64, %c0_65] : memref<2x18x16x384xbf16, #tpu.memory_space<vmem>>, vector<2x1x16x384xbf16>
      tpu.vector_store %arg7[%c0_62, %c0_63, %c0_64, %c0_65], %71 {strides = array<i32>} : memref<2x18x16x384xbf16, #tpu.memory_space<vmem>>, vector<2x1x16x384xbf16>,
      %73 = vector.extract_strided_slice %69 {offsets = [0, 14, 0, 0], sizes = [2, 1, 16, 384], strides = [1, 1, 1, 1]} : vector<2x16x16x384xbf16> to vector<2x1x16x384xbf16>
      %c0_66 = arith.constant 0 : index
      %c17 = arith.constant 17 : index
      %c0_67 = arith.constant 0 : index
      %c0_68 = arith.constant 0 : index
      %74 = vector.load %arg7[%c0_66, %c17, %c0_67, %c0_68] : memref<2x18x16x384xbf16, #tpu.memory_space<vmem>>, vector<2x1x16x384xbf16>
      tpu.vector_store %arg7[%c0_66, %c17, %c0_67, %c0_68], %73 {strides = array<i32>} : memref<2x18x16x384xbf16, #tpu.memory_space<vmem>>, vector<2x1x16x384xbf16>,
    } else {
    }
    %c0_i32_1 = arith.constant 0 : i32
    %3 = arith.cmpi sgt, %arg0, %c0_i32_1 : i32
    %4 = arith.extui %3 : i1 to i32
    %c0_i32_2 = arith.constant 0 : i32
    %5 = arith.cmpi ne, %4, %c0_i32_2 : i32
    scf.if %5 {
      %c0_54 = arith.constant 0 : index
      %c0_55 = arith.constant 0 : index
      %61 = vector.load %arg6[%c0_54, %c0_55] : memref<512x128xf32, #tpu.memory_space<vmem>>, vector<512x128xf32>
      %62 = vector.shape_cast %61 : vector<512x128xf32> to vector<2x16x16x128xf32>
      %63 = vector.extract_strided_slice %62 {offsets = [0, 0, 1, 0], sizes = [2, 16, 1, 128], strides = [1, 1, 1, 1]} : vector<2x16x16x128xf32> to vector<2x16x1x128xf32>
      %64 = vector.extract_strided_slice %62 {offsets = [0, 0, 14, 0], sizes = [2, 16, 1, 128], strides = [1, 1, 1, 1]} : vector<2x16x16x128xf32> to vector<2x16x1x128xf32>
      %65 = tpu.concatenate %63, %62, %64 in 2 : vector<2x16x1x128xf32>, vector<2x16x16x128xf32>, vector<2x16x1x128xf32> -> vector<2x16x18x128xf32>
      %66 = vector.extract_strided_slice %65 {offsets = [0, 0, 0, 0], sizes = [2, 16, 16, 128], strides = [1, 1, 1, 1]} : vector<2x16x18x128xf32> to vector<2x16x16x128xf32>
      %67 = vector.extract_strided_slice %65 {offsets = [0, 0, 1, 0], sizes = [2, 16, 16, 128], strides = [1, 1, 1, 1]} : vector<2x16x18x128xf32> to vector<2x16x16x128xf32>
      %68 = vector.extract_strided_slice %65 {offsets = [0, 0, 2, 0], sizes = [2, 16, 16, 128], strides = [1, 1, 1, 1]} : vector<2x16x18x128xf32> to vector<2x16x16x128xf32>
      %69 = tpu.concatenate %66, %67, %68 in 3 : vector<2x16x16x128xf32>, vector<2x16x16x128xf32>, vector<2x16x16x128xf32> -> vector<2x16x16x384xf32>
      %70 = arith.truncf %69 : vector<2x16x16x384xf32> to vector<2x16x16x384xbf16>
      %c0_56 = arith.constant 0 : index
      %c1_57 = arith.constant 1 : index
      %c0_58 = arith.constant 0 : index
      %c0_59 = arith.constant 0 : index
      %71 = vector.load %arg7[%c0_56, %c1_57, %c0_58, %c0_59] : memref<2x18x16x384xbf16, #tpu.memory_space<vmem>>, vector<2x16x16x384xbf16>
      tpu.vector_store %arg7[%c0_56, %c1_57, %c0_58, %c0_59], %70 {strides = array<i32>} : memref<2x18x16x384xbf16, #tpu.memory_space<vmem>>, vector<2x16x16x384xbf16>,
      %72 = vector.extract_strided_slice %70 {offsets = [0, 1, 0, 0], sizes = [2, 1, 16, 384], strides = [1, 1, 1, 1]} : vector<2x16x16x384xbf16> to vector<2x1x16x384xbf16>
      %c0_60 = arith.constant 0 : index
      %c0_61 = arith.constant 0 : index
      %c0_62 = arith.constant 0 : index
      %c0_63 = arith.constant 0 : index
      %73 = vector.load %arg7[%c0_60, %c0_61, %c0_62, %c0_63] : memref<2x18x16x384xbf16, #tpu.memory_space<vmem>>, vector<2x1x16x384xbf16>
      tpu.vector_store %arg7[%c0_60, %c0_61, %c0_62, %c0_63], %72 {strides = array<i32>} : memref<2x18x16x384xbf16, #tpu.memory_space<vmem>>, vector<2x1x16x384xbf16>,
      %74 = vector.extract_strided_slice %70 {offsets = [0, 14, 0, 0], sizes = [2, 1, 16, 384], strides = [1, 1, 1, 1]} : vector<2x16x16x384xbf16> to vector<2x1x16x384xbf16>
      %c0_64 = arith.constant 0 : index
      %c17 = arith.constant 17 : index
      %c0_65 = arith.constant 0 : index
      %c0_66 = arith.constant 0 : index
      %75 = vector.load %arg7[%c0_64, %c17, %c0_65, %c0_66] : memref<2x18x16x384xbf16, #tpu.memory_space<vmem>>, vector<2x1x16x384xbf16>
      tpu.vector_store %arg7[%c0_64, %c17, %c0_65, %c0_66], %74 {strides = array<i32>} : memref<2x18x16x384xbf16, #tpu.memory_space<vmem>>, vector<2x1x16x384xbf16>,
    } else {
    }
    %c0 = arith.constant 0 : index
    %c0_3 = arith.constant 0 : index
    %c0_4 = arith.constant 0 : index
    %c0_5 = arith.constant 0 : index
    %6 = vector.load %arg7[%c0, %c0_3, %c0_4, %c0_5] : memref<2x18x16x384xbf16, #tpu.memory_space<vmem>>, vector<2x16x16x384xbf16>
    %7 = vector.shape_cast %6 : vector<2x16x16x384xbf16> to vector<512x384xbf16>
    %c0_6 = arith.constant 0 : index
    %c0_7 = arith.constant 0 : index
    %c0_8 = arith.constant 0 : index
    %c0_9 = arith.constant 0 : index
    %8 = vector.load %arg2[%c0_6, %c0_7, %c0_8, %c0_9] : memref<1x3x384x128xbf16, #tpu.memory_space<vmem>>, vector<1x1x384x128xbf16>
    %9 = vector.shape_cast %8 : vector<1x1x384x128xbf16> to vector<384x128xbf16>
    %cst = arith.constant dense<0.000000e+00> : vector<512x128xf32>
    %10 = tpu.matmul %7, %9, %cst {dimension_numbers = #tpu.dot_dimension_numbers<[1], [0], [0], [1], [0, 0, 1, 1], [], []>} : vector<512x384xbf16>, vector<384x128xbf16>, vector<512x128xf32> -> vector<512x128xf32>
    %c0_10 = arith.constant 0 : index
    %c0_11 = arith.constant 0 : index
    %11 = vector.load %arg6[%c0_10, %c0_11] : memref<512x128xf32, #tpu.memory_space<vmem>>, vector<512x128xf32>
    tpu.vector_store %arg6[%c0_10, %c0_11], %10 {strides = array<i32>} : memref<512x128xf32, #tpu.memory_space<vmem>>, vector<512x128xf32>,
    %c0_12 = arith.constant 0 : index
    %c1 = arith.constant 1 : index
    %c0_13 = arith.constant 0 : index
    %c0_14 = arith.constant 0 : index
    %12 = vector.load %arg7[%c0_12, %c1, %c0_13, %c0_14] : memref<2x18x16x384xbf16, #tpu.memory_space<vmem>>, vector<2x16x16x384xbf16>
    %13 = vector.shape_cast %12 : vector<2x16x16x384xbf16> to vector<512x384xbf16>
    %c0_15 = arith.constant 0 : index
    %c1_16 = arith.constant 1 : index
    %c0_17 = arith.constant 0 : index
    %c0_18 = arith.constant 0 : index
    %14 = vector.load %arg2[%c0_15, %c1_16, %c0_17, %c0_18] : memref<1x3x384x128xbf16, #tpu.memory_space<vmem>>, vector<1x1x384x128xbf16>
    %15 = vector.shape_cast %14 : vector<1x1x384x128xbf16> to vector<384x128xbf16>
    %cst_19 = arith.constant dense<0.000000e+00> : vector<512x128xf32>
    %16 = tpu.matmul %13, %15, %cst_19 {dimension_numbers = #tpu.dot_dimension_numbers<[1], [0], [0], [1], [0, 0, 1, 1], [], []>} : vector<512x384xbf16>, vector<384x128xbf16>, vector<512x128xf32> -> vector<512x128xf32>
    %c0_20 = arith.constant 0 : index
    %c0_21 = arith.constant 0 : index
    %17 = vector.load %arg6[%c0_20, %c0_21] : memref<512x128xf32, #tpu.memory_space<vmem>>, vector<512x128xf32>
    %18 = arith.addf %17, %16 : vector<512x128xf32>
    %c0_22 = arith.constant 0 : index
    %c0_23 = arith.constant 0 : index
    %19 = vector.load %arg6[%c0_22, %c0_23] : memref<512x128xf32, #tpu.memory_space<vmem>>, vector<512x128xf32>
    tpu.vector_store %arg6[%c0_22, %c0_23], %18 {strides = array<i32>} : memref<512x128xf32, #tpu.memory_space<vmem>>, vector<512x128xf32>,
    %c0_24 = arith.constant 0 : index
    %c2 = arith.constant 2 : index
    %c0_25 = arith.constant 0 : index
    %c0_26 = arith.constant 0 : index
    %20 = vector.load %arg7[%c0_24, %c2, %c0_25, %c0_26] : memref<2x18x16x384xbf16, #tpu.memory_space<vmem>>, vector<2x16x16x384xbf16>
    %21 = vector.shape_cast %20 : vector<2x16x16x384xbf16> to vector<512x384xbf16>
    %c0_27 = arith.constant 0 : index
    %c2_28 = arith.constant 2 : index
    %c0_29 = arith.constant 0 : index
    %c0_30 = arith.constant 0 : index
    %22 = vector.load %arg2[%c0_27, %c2_28, %c0_29, %c0_30] : memref<1x3x384x128xbf16, #tpu.memory_space<vmem>>, vector<1x1x384x128xbf16>
    %23 = vector.shape_cast %22 : vector<1x1x384x128xbf16> to vector<384x128xbf16>
    %cst_31 = arith.constant dense<0.000000e+00> : vector<512x128xf32>
    %24 = tpu.matmul %21, %23, %cst_31 {dimension_numbers = #tpu.dot_dimension_numbers<[1], [0], [0], [1], [0, 0, 1, 1], [], []>} : vector<512x384xbf16>, vector<384x128xbf16>, vector<512x128xf32> -> vector<512x128xf32>
    %c0_32 = arith.constant 0 : index
    %c0_33 = arith.constant 0 : index
    %25 = vector.load %arg6[%c0_32, %c0_33] : memref<512x128xf32, #tpu.memory_space<vmem>>, vector<512x128xf32>
    %26 = arith.addf %25, %24 : vector<512x128xf32>
    %c0_34 = arith.constant 0 : index
    %c0_35 = arith.constant 0 : index
    %27 = vector.load %arg6[%c0_34, %c0_35] : memref<512x128xf32, #tpu.memory_space<vmem>>, vector<512x128xf32>
    tpu.vector_store %arg6[%c0_34, %c0_35], %26 {strides = array<i32>} : memref<512x128xf32, #tpu.memory_space<vmem>>, vector<512x128xf32>,
    %c0_36 = arith.constant 0 : index
    %c0_37 = arith.constant 0 : index
    %28 = vector.load %arg6[%c0_36, %c0_37] : memref<512x128xf32, #tpu.memory_space<vmem>>, vector<512x128xf32>
    %cst_38 = arith.constant dense<0.000000e+00> : vector<128xf32>
    %29 = vector.multi_reduction <add>, %28, %cst_38 [0] : vector<512x128xf32> to vector<128xf32>
    %30 = vector.shape_cast %29 : vector<128xf32> to vector<1x128xf32>
    %cst_39 = arith.constant 0.001953125 : f32
    %31 = vector.broadcast %cst_39 : f32 to vector<1x128xf32>
    %32 = arith.mulf %30, %31 : vector<1x128xf32>
    %33 = vector.broadcast %32 : vector<1x128xf32> to vector<512x128xf32>
    %34 = arith.subf %28, %33 : vector<512x128xf32>
    %35 = arith.mulf %34, %34 : vector<512x128xf32>
    %cst_40 = arith.constant dense<0.000000e+00> : vector<128xf32>
    %36 = vector.multi_reduction <add>, %35, %cst_40 [0] : vector<512x128xf32> to vector<128xf32>
    %37 = vector.shape_cast %36 : vector<128xf32> to vector<1x128xf32>
    %cst_41 = arith.constant 0.001953125 : f32
    %38 = vector.broadcast %cst_41 : f32 to vector<1x128xf32>
    %39 = arith.mulf %37, %38 : vector<1x128xf32>
    %cst_42 = arith.constant 9.99999974E-6 : f32
    %40 = vector.broadcast %cst_42 : f32 to vector<1x128xf32>
    %41 = arith.addf %39, %40 : vector<1x128xf32>
    %42 = math.rsqrt %41 : vector<1x128xf32>
    %c0_43 = arith.constant 0 : index
    %c0_44 = arith.constant 0 : index
    %c0_45 = arith.constant 0 : index
    %43 = vector.load %arg3[%c0_43, %c0_44, %c0_45] : memref<1x1x128xf32, #tpu.memory_space<vmem>>, vector<1x1x128xf32>
    %44 = vector.shape_cast %43 : vector<1x1x128xf32> to vector<1x128xf32>
    %45 = arith.mulf %42, %44 : vector<1x128xf32>
    %46 = vector.broadcast %45 : vector<1x128xf32> to vector<512x128xf32>
    %47 = arith.mulf %34, %46 : vector<512x128xf32>
    %c0_46 = arith.constant 0 : index
    %c0_47 = arith.constant 0 : index
    %c0_48 = arith.constant 0 : index
    %48 = vector.load %arg4[%c0_46, %c0_47, %c0_48] : memref<1x1x128xf32, #tpu.memory_space<vmem>>, vector<1x1x128xf32>
    %49 = vector.shape_cast %48 : vector<1x1x128xf32> to vector<1x128xf32>
    %50 = vector.broadcast %49 : vector<1x128xf32> to vector<512x128xf32>
    %51 = arith.addf %47, %50 : vector<512x128xf32>
    %cst_49 = arith.constant 0.000000e+00 : f32
    %52 = vector.broadcast %cst_49 : f32 to vector<512x128xf32>
    %53 = arith.cmpf ogt, %51, %52 : vector<512x128xf32>
    %cst_50 = arith.constant 2.000000e-01 : f32
    %54 = vector.broadcast %cst_50 : f32 to vector<512x128xf32>
    %55 = arith.mulf %54, %51 : vector<512x128xf32>
    %56 = arith.select %53, %51, %55 : vector<512x128xi1>, vector<512x128xf32>
    %c0_51 = arith.constant 0 : index
    %c0_52 = arith.constant 0 : index
    %57 = vector.load %arg6[%c0_51, %c0_52] : memref<512x128xf32, #tpu.memory_space<vmem>>, vector<512x128xf32>
    tpu.vector_store %arg6[%c0_51, %c0_52], %56 {strides = array<i32>} : memref<512x128xf32, #tpu.memory_space<vmem>>, vector<512x128xf32>,
    %c1_i32 = arith.constant 1 : i32
    %58 = arith.cmpi eq, %arg0, %c1_i32 : i32
    %59 = arith.extui %58 : i1 to i32
    %c0_i32_53 = arith.constant 0 : i32
    %60 = arith.cmpi ne, %59, %c0_i32_53 : i32
    scf.if %60 {
      %c0_54 = arith.constant 0 : index
      %c0_55 = arith.constant 0 : index
      %c0_56 = arith.constant 0 : index
      %c0_57 = arith.constant 0 : index
      %61 = vector.load %arg1[%c0_54, %c0_55, %c0_56, %c0_57] : memref<2x16x16x128xf32, #tpu.memory_space<vmem>>, vector<2x16x16x128xf32>
      %62 = vector.shape_cast %56 : vector<512x128xf32> to vector<2x16x16x128xf32>
      %63 = arith.addf %61, %62 : vector<2x16x16x128xf32>
      %c0_58 = arith.constant 0 : index
      %c0_59 = arith.constant 0 : index
      %c0_60 = arith.constant 0 : index
      %c0_61 = arith.constant 0 : index
      %64 = vector.load %arg5[%c0_58, %c0_59, %c0_60, %c0_61] : memref<2x16x16x128xf32, #tpu.memory_space<vmem>>, vector<2x16x16x128xf32>
      tpu.vector_store %arg5[%c0_58, %c0_59, %c0_60, %c0_61], %63 {strides = array<i32>} : memref<2x16x16x128xf32, #tpu.memory_space<vmem>>, vector<2x16x16x128xf32>,
    } else {
    }
    return
  }
  func.func @transform_0(%arg0: i32) -> (i32, i32, i32, i32) {
    %c0_i32 = arith.constant 0 : i32
    %c0_i32_0 = arith.constant 0 : i32
    %c0_i32_1 = arith.constant 0 : i32
    %c0_i32_2 = arith.constant 0 : i32
    %c0_i32_3 = arith.constant 0 : i32
    return %c0_i32, %c0_i32_0, %c0_i32_1, %c0_i32_2 : i32, i32, i32, i32
  }
  func.func @transform_1(%arg0: i32) -> (i32, i32, i32, i32) {
    %c0_i32 = arith.constant 0 : i32
    %c0_i32_0 = arith.constant 0 : i32
    %c0_i32_1 = arith.constant 0 : i32
    %c0_i32_2 = arith.constant 0 : i32
    return %arg0, %c0_i32, %c0_i32_0, %c0_i32_1 : i32, i32, i32, i32
  }
  func.func @transform_2(%arg0: i32) -> (i32, i32, i32) {
    %c0_i32 = arith.constant 0 : i32
    %c0_i32_0 = arith.constant 0 : i32
    %c0_i32_1 = arith.constant 0 : i32
    return %arg0, %c0_i32, %c0_i32_0 : i32, i32, i32
  }
  func.func @transform_3(%arg0: i32) -> (i32, i32, i32) {
    %c0_i32 = arith.constant 0 : i32
    %c0_i32_0 = arith.constant 0 : i32
    %c0_i32_1 = arith.constant 0 : i32
    return %arg0, %c0_i32, %c0_i32_0 : i32, i32, i32
  }
  func.func @transform_4(%arg0: i32) -> (i32, i32, i32, i32) {
    %c0_i32 = arith.constant 0 : i32
    %c0_i32_0 = arith.constant 0 : i32
    %c0_i32_1 = arith.constant 0 : i32
    %c0_i32_2 = arith.constant 0 : i32
    %c0_i32_3 = arith.constant 0 : i32
    return %c0_i32, %c0_i32_0, %c0_i32_1, %c0_i32_2 : i32, i32, i32, i32
  }
}

</mosaic_0001>

<bundles_post_ra>
// kernel: tpu_custom_call.1
= control target key start
LH: loop header
LB: loop body
LE: loop exit
PB: predicated region body
PF: predicated region fallthrough
CT: control target
= control target key end

     0   :  { %9 = vsyncpa [#allocation5], 0  ;;  %s11312_s0 = inlined_call_operand.hbm [shape: f32[2,16,16,128], index: 0, kind: input, shape index: {}]   ;;  %s11313_s1 = inlined_call_operand.hbm [shape: bf16[2,3,384,128], index: 1, kind: input, shape index: {}]   ;;  %s11314_s2 = inlined_call_operand.vmem [shape: f32[2,1,128], index: 2, kind: input, shape index: {}]   ;;  %s11315_s3 = inlined_call_operand.vmem [shape: f32[2,1,128], index: 3, kind: input, shape index: {}]   ;;  %s11316_s4 = inlined_call_operand.hbm [shape: f32[2,16,16,128], index: 4, kind: output, shape index: {}]  }
   0x1   :  { %10 = vsyncpa [#allocation8], 0 }
   0x2   :  { %12 = vsyncpa [#allocation8 + $0x1], 0 }
   0x3   :  { %13 = vsyncpa [#allocation6], 0  ;;  %s7651_s15 = smov 0   ;;  %s7653_s16 = smov 0  }
   0x4   :  { %s7655_s17 = smov 0   ;;  %s7657_s18 = smov 0  }
   0x5 LB: > { %s7670_s19 = sadd.s32 4294967295, %s7614_s18   ;;  %p60_p0 = scmp.ne.s32.totalorder %s7606_s16, %s7602_s15  ;;  %s7614_s18 = sphi %s7657_s18, %s11937_s18   ;;  %s7610_s17 = sphi %s7655_s17, %s11936_s17   ;;  %s7606_s16 = sphi %s7653_s16, %s11935_s16   ;;  %s7602_s15 = sphi %s7651_s15, %s11934_s15  }
   0x6   : > { %p11317_p1 = scmp.eq.s32.totalorder %s7670_s19, 0  ;;  %p6789_p2 = scmp.ge.s32.totalorder %s7614_s18, 1 }
   0x7   : > { %p144_p3 = scmp.lt.s32.totalorder %s7614_s18, 3  ;;  %s7616_s22 = smov [#allocation4]  }
   0x8   : > { %p7679_p5 = por %p11317_p1, %p60_p0  ;;  %s156_s23 = sshll.u32 %s7616_s22, 4  ;;  %s157_s23 = int_to_ptr.vmem [resolvable:$true] %s156_s23 }
   0x9   : > { %p7683_p6 = pnand %p6789_p2, %p144_p3  ;;  %s7696_s25 = sadd.s32 1, %s7614_s18  }
   0xa   : > { %s11411_s20 = scalar_select %p7679_p5, 1, 0 }
   0xb   : > { %s11412_s21 = scalar_select %p7683_p6, 1, 0 }
   0xc   : > { %p7360_p7 = pneg %p7683_p6  ;;  %s47_s26 = sadd.s32 1, %s7610_s17 }
   0xd   : > { %s44_s27 = ssub.s32 %s7614_s18, %s7696_s25  ;;  %s7488_s30 = scalar_lea.hbm %s11312_s0, 8192 }
   0xe   : > { %p7691_p8 = pnand %p7360_p7, %p11317_p1  ;;  %p7489_p9 = scmp.ne.s32.totalorder %s11312_s0, %s7488_s30 }
   0xf   : > { %p7495_p13 = scmp.lt.u32.totalorder %s7488_s30, %s11312_s0 }
  0x10   : > { %p7490_p10 = pneg %p7691_p8 }
  0x12   : > { %p7491_p11 = pnand %p7490_p10, %p7489_p9 }
  0x14   : > { %p7492_p12 = pneg %p7491_p11 }
  0x16   : > { %p7497_p0 = pnand %p7495_p13, %p7492_p12 }
  0x18   : > { %7500 = shalt.err (!%p7497_p0)
}
  0x19   : > { %s7501_s9 = scalar_lea.vmem %s157_s23, 8192  ;;  %p7509_p4 = scmp.lt.s32.totalorder %s157_s23, %s157_s23 }
  0x1a   : > { %p7502_p2 = scmp.ne.s32.totalorder %s157_s23, %s7501_s9  ;;  %p7510_p1 = scmp.lt.s32.totalorder %s7501_s9, %s7501_s9 }
  0x1c   : > { %p7504_p3 = pnand %p7502_p2, %p7490_p10  ;;  %p7511_p5 = por %p7510_p1, %p7509_p4 }
  0x1e   : > { %p7505_p7 = pneg %p7504_p3 }
  0x20   : > { %p7512_p6 = pnand %p7511_p5, %p7505_p7 }
  0x22   : > { %7515 = shalt.err (!%p7512_p6)
}
  0x23   : > { %s7617_s10 = smov 128   ;;  %s7618_s11 = smov 8  }
  0x24   : > { %7363 = dma.hbm_to_vmem [thread:$0]  (!%p7691_p8), %s11312_s0, 8192, %s157_s23, [#allocation5], %s7617_s10, %s7617_s10, %s7618_s11  }
  0x25   : > { %p45_p9 = scmp.eq.s32.totalorder %s44_s27, 0  ;;  %p54_p10 = scmp.ne.s32.totalorder %s7610_s17, %s7606_s16 }
  0x26   : > { %p55_p1 = scmp.eq.s32.totalorder %s7614_s18, 0  ;;  %p7369_p4 = scmp.lt.s32.totalorder %s7614_s18, 2 }
  0x27   : > { %s7722_s14 = scalar_select %p45_p9, %s7610_s17, %s47_s26  }
  0x28   : > { %p56_p5 = por %p55_p1, %p54_p10  ;;  %s170_s15 = sand.u32 1, %s7610_s17  }
  0x29   : > { %s7347_s22 = smul.u32 576, %s170_s15  ;;  %s7521_s8 = scalar_lea.hbm %s11313_s1, 18432 }
  0x2a   : > { %s7348_s28 = smul.u32 9216, %s7614_s18  ;;  %p7726_p6 = pnand %p7369_p4, %p56_p5 }
  0x2b   : > { %s174_s26 = scalar_lea.vmem [#allocation7], %s7347_s22  ;;  %s7737_s18 = scalar_lea.sflag [#allocation8], %s170_s15 }
  0x2c   : > { %s7733_s23 = scalar_lea.hbm %s11313_s1, %s7348_s28  ;;  %s181_s27 = sshll.u32 %s174_s26, 4  ;;  %s7735_s27 = int_to_ptr.vmem [resolvable:$true] %s181_s27 }
  0x2d   : > { %s7516_s5 = scalar_lea.hbm %s7733_s23, 9216  ;;  %p7518_p11 = pneg %p7726_p6 }
  0x2e   : > { %p7517_p8 = scmp.ne.s32.totalorder %s7733_s23, %s7516_s5  ;;  %p7522_p0 = scmp.lt.u32.totalorder %s7733_s23, %s11313_s1 }
  0x2f   : > { %p7523_p2 = scmp.lt.u32.totalorder %s7521_s8, %s7516_s5  ;;  %p7525_p7 = scmp.lt.u32.totalorder %s7516_s5, %s7733_s23 }
  0x30   : > { %p7519_p12 = pnand %p7518_p11, %p7517_p8 }
  0x31   : > { %p7524_p3 = por %p7523_p2, %p7522_p0 }
  0x32   : > { %p7520_p13 = pneg %p7519_p12 }
  0x33   : > { %p7526_p9 = por %p7525_p7, %p7524_p3 }
  0x35   : > { %p7527_p10 = pnand %p7526_p9, %p7520_p13 }
  0x37   : > { %7530 = shalt.err (!%p7527_p10)
}
  0x38   : > { %s7531_s11 = scalar_lea.vmem %s7735_s27, 9216  ;;  %s7619_s12 = smov [#allocation7]  }
  0x39   : > { %p7532_p1 = scmp.ne.s32.totalorder %s7735_s27, %s7531_s11  ;;  %s7536_s13 = sshll.u32 %s7619_s12, 4  ;;  %s7537_s13 = int_to_ptr.vmem [resolvable:$false] %s7536_s13 }
  0x3a   : > { %s7538_s15 = scalar_lea.vmem %s7537_s13, 18432  ;;  %p7539_p8 = scmp.lt.s32.totalorder %s7735_s27, %s7537_s13 }
  0x3b   : > { %p7534_p4 = pnand %p7532_p1, %p7518_p11  ;;  %p7540_p12 = scmp.lt.s32.totalorder %s7538_s15, %s7531_s11 }
  0x3d   : > { %p7535_p5 = pneg %p7534_p4  ;;  %p7541_p0 = por %p7540_p12, %p7539_p8 }
  0x3f   : > { %p7542_p2 = pnand %p7541_p0, %p7535_p5 }
  0x41   : > { %7545 = shalt.err (!%p7542_p2)
}
  0x42   : > { %s7620_s22 = smov 64   ;;  %s7621_s28 = smov 4  }
  0x43   : > { %7367 = dma.hbm_to_vmem [thread:$0]  (!%p7726_p6), %s7733_s23, 9216, %s7735_s27, %s7737_s18, %s7620_s22, %s7620_s22, %s7621_s28  }
  0x44   : > { %p11415_p11 = scmp.ne.s32.totalorder %s11412_s21, 0 }
  0x46   : > { %205 = sbr.rel (%p11415_p11) target bundleno = 1607 (0x647), region = 36 }
  0x4d   : > { %p11416_p13 = scmp.eq.s32.totalorder %s7670_s19, 0 }
  0x4f   : > { %7589 = dma.done.wait (%p11416_p13), [#allocation5], 8192   ;;  %p11417_p3 = pmov %p11416_p13 }
  0x50   : > { %s211_s30 = sand.u32 1, %s7606_s16   ;;  %p11418_p7 = scmp.ne.s32.totalorder %s11411_s20, 0 }
  0x51   : > { %7591 = vsyncadd (%p11417_p3), [#allocation5], 4294959104  ;;  %s7349_s24 = smul.u32 576, %s211_s30  ;;  %s212_s26 = scalar_lea.sflag [#allocation8], %s211_s30 }
  0x53   : > { %s7772_s5 = scalar_lea.vmem [#allocation7], %s7349_s24 }
  0x54   : > { %7593 = dma.done.wait (%p11418_p7), %s212_s26, 9216  }
  0x55   : > { %7595 = vsyncadd (%p11418_p7), %s212_s26, 4294958080  ;;  %p241_p6 = scmp.lt.s32.totalorder %s7670_s19, 1  ;;  %p11419_p9 = scmp.ne.s32.totalorder %s7670_s19, 0 }
  0x56   : > { %v252_v0 = vld [vmem:[#allocation4] sm:$0xff] (!%p11419_p9)  ;;  %v253_v1 = vld [vmem:[#allocation4 + $0x8] sm:$0xff] (!%p11419_p9)  ;;  %vm444_vm0 = vcmask (!%p11419_p9), 1040384   ;;  %vm829_vm1 = vcmask (!%p11419_p9), 1046528   ;;  %vm1054_vm2 = vcmask (!%p11419_p9), 1045504   ;;  %v254_v2 = vld [vmem:[#allocation4 + $0x10] sm:$0xff] (!%p11419_p9) }
  0x57   : > { %s7780_s21 = scalar_select %p241_p6, %s7670_s19, 1 }
  0x58   : > { %251 = sbr.rel (%p11419_p9) target bundleno = 253 (0xfd), region = 48  ;;  %v348_v3 = vrot.slane (!%p11419_p9), %v252_v0, 1  ;;  %v445_v4 = vrot.slane (!%p11419_p9), %v252_v0, 7  ;;  %v446_v5 = vrot.slane (!%p11419_p9), %v253_v1, 7  ;;  %v637_v6 = vrot.slane (!%p11419_p9), %v253_v1, 5  ;;  %v255_v7 = vld [vmem:[#allocation4 + $0x18] sm:$0xff] (!%p11419_p9) }
  0x59   : > { %s243_s27 = scalar_lea.vmem %s11314_s2, %s7780_s21  ;;  %s246_s7 = scalar_lea.vmem %s11315_s3, %s7780_s21  ;;  %v256_v8 = vld [vmem:[#allocation4 + $0x20] sm:$0xff] (!%p11419_p9)  ;;  %v349_v9 = vrot.slane (!%p11419_p9), %v254_v2, 1  ;;  %v448_v10 = vrot.slane (!%p11419_p9), %v254_v2, 7  ;;  %v449_v11 = vrot.slane (!%p11419_p9), %v255_v7, 7  ;;  %v638_v12 = vrot.slane (!%p11419_p9), %v255_v7, 5  ;;  %v257_v29 = vld [vmem:[#allocation4 + $0x28] sm:$0xff] (!%p11419_p9) }
  0x5a   : > { %v447_v13 = vsel (!%p11419_p9), %vm444_vm0, %v445_v4, %v446_v5  ;;  %v701_v14 = vsel (!%p11419_p9), %vm444_vm0, %v348_v3, %v445_v4  ;;  %v733_v15 = vsel (!%p11419_p9), %vm444_vm0, %v446_v5, %v637_v6  ;;  %v350_v16 = vrot.slane (!%p11419_p9), %v256_v8, 1  ;;  %v258_v38 = vld [vmem:[#allocation4 + $0x30] sm:$0xff] (!%p11419_p9)  ;;  %v259_v49 = vld [vmem:[#allocation4 + $0x38] sm:$0xff] (!%p11419_p9)  ;;  %v260_v60 = vld [vmem:[#allocation4 + $0x40] sm:$0xff] (!%p11419_p9) }
  0x5b   : > { %v830_v17 = vrot.slane (!%p11419_p9), %v701_v14, 1  ;;  %v831_v18 = vrot.slane (!%p11419_p9), %v447_v13, 1  ;;  %v1055_v19 = vrot.slane (!%p11419_p9), %v701_v14, 2  ;;  %v1056_v20 = vrot.slane (!%p11419_p9), %v447_v13, 2  ;;  %v261_v7 = vld [vmem:[#allocation4 + $0x48] sm:$0xff] (!%p11419_p9) }
  0x5c   : > { %v1279_v21 = vpack.c.bf16 (!%p11419_p9), %v447_v13, %v701_v14  ;;  %v833_v22 = vrot.slane (!%p11419_p9), %v733_v15, 1  ;;  %v1058_v23 = vrot.slane (!%p11419_p9), %v733_v15, 2  ;;  %v450_v24 = vsel (!%p11419_p9), %vm444_vm0, %v448_v10, %v449_v11 }
  0x5d   : > { %v832_v25 = vsel (!%p11419_p9), %vm829_vm1, %v830_v17, %v831_v18  ;;  %v1057_v26 = vsel (!%p11419_p9), %vm1054_vm2, %v1055_v19, %v1056_v20  ;;  %v702_v27 = vsel (!%p11419_p9), %vm444_vm0, %v349_v9, %v448_v10  ;;  %v836_v28 = vrot.slane (!%p11419_p9), %v450_v24, 1 }
  0x5e   : > { %1376 = vst [vmem:[#allocation3 + $0x18] sm:$0xff] (!%p11419_p9), %v1279_v21  ;;  %v834_v30 = vsel (!%p11419_p9), %vm829_vm1, %v831_v18, %v833_v22  ;;  %v1059_v31 = vsel (!%p11419_p9), %vm1054_vm2, %v1056_v20, %v1058_v23  ;;  %v835_v32 = vrot.slane (!%p11419_p9), %v702_v27, 1  ;;  %v1060_v33 = vrot.slane (!%p11419_p9), %v702_v27, 2  ;;  %v262_v18 = vld [vmem:[#allocation4 + $0x50] sm:$0xff] (!%p11419_p9) }
  0x5f   : > { %v1280_v34 = vpack.c.bf16 %v834_v30, %v832_v25  ;;  %v1281_v35 = vpack.c.bf16 %v1059_v31, %v1057_v26  ;;  %v1061_v36 = vrot.slane %v450_v24, 2  ;;  %v1282_v37 = vpack.c.bf16 %v450_v24, %v702_v27 }
  0x60   : > { %v734_v39 = vsel %vm444_vm0, %v449_v11, %v638_v12  ;;  %v837_v40 = vsel %vm829_vm1, %v835_v32, %v836_v28  ;;  %v451_v41 = vrot.slane %v256_v8, 7  ;;  %v452_v42 = vrot.slane %v257_v29, 7 }
  0x61   : > { %1377 = vst [vmem:[#allocation3 + $0x20] sm:$0xff] %v1280_v34  ;;  %1378 = vst [vmem:[#allocation3 + $0x28] sm:$0xff] %v1281_v35  ;;  %v838_v43 = vrot.slane %v734_v39, 1  ;;  %v1062_v44 = vsel %vm1054_vm2, %v1060_v33, %v1061_v36  ;;  %v1063_v45 = vrot.slane %v734_v39, 2  ;;  %v639_v46 = vrot.slane %v257_v29, 5  ;;  %v263_v29 = vld [vmem:[#allocation4 + $0x58] sm:$0xff] }
  0x62   : > { %1379 = vst [vmem:[#allocation3 + $0x30] sm:$0xff] %v1282_v37  ;;  %1472 = vst [vmem:[#allocation3] sm:$0xff] %v1282_v37  ;;  %v453_v47 = vsel %vm444_vm0, %v451_v41, %v452_v42  ;;  %v703_v48 = vsel %vm444_vm0, %v350_v16, %v451_v41  ;;  %v351_v50 = vrot.slane %v258_v38, 1  ;;  %v454_v51 = vrot.slane %v258_v38, 7 }
  0x63   : > { %v839_v52 = vsel %vm829_vm1, %v836_v28, %v838_v43  ;;  %v1064_v53 = vsel %vm1054_vm2, %v1061_v36, %v1063_v45  ;;  %v840_v54 = vrot.slane %v703_v48, 1  ;;  %v841_v55 = vrot.slane %v453_v47, 1 }
  0x64   : > { %v1283_v56 = vpack.c.bf16 %v839_v52, %v837_v40  ;;  %v1284_v57 = vpack.c.bf16 %v1064_v53, %v1062_v44  ;;  %v1065_v58 = vrot.slane %v703_v48, 2  ;;  %v1066_v59 = vrot.slane %v453_v47, 2  ;;  %v264_v40 = vld [vmem:[#allocation4 + $0x60] sm:$0xff] }
  0x65   : > { %v1285_v61 = vpack.c.bf16 %v453_v47, %v703_v48  ;;  %v735_v62 = vsel %vm444_vm0, %v452_v42, %v639_v46  ;;  %v842_v63 = vsel %vm829_vm1, %v840_v54, %v841_v55  ;;  %v455_v0 = vrot.slane %v259_v49, 7 }
  0x66   : > { %1380 = vst [vmem:[#allocation3 + $0x38] sm:$0xff] %v1283_v56  ;;  %1473 = vst [vmem:[#allocation3 + $0x8] sm:$0xff] %v1283_v56  ;;  %v843_v1 = vrot.slane %v735_v62, 1  ;;  %v1067_v2 = vsel %vm1054_vm2, %v1065_v58, %v1066_v59  ;;  %v1068_v3 = vrot.slane %v735_v62, 2  ;;  %v640_v4 = vrot.slane %v259_v49, 5  ;;  %v266_v62 = vld [vmem:[#allocation4 + $0x70] sm:$0xff] }
  0x67   : > { %1381 = vst [vmem:[#allocation3 + $0x40] sm:$0xff] %v1284_v57  ;;  %1474 = vst [vmem:[#allocation3 + $0x10] sm:$0xff] %v1284_v57  ;;  %v456_v5 = vsel %vm444_vm0, %v454_v51, %v455_v0  ;;  %v704_v6 = vsel %vm444_vm0, %v351_v50, %v454_v51  ;;  %v352_v8 = vrot.slane %v260_v60, 1  ;;  %v457_v9 = vrot.slane %v260_v60, 7  ;;  %v265_v51 = vld [vmem:[#allocation4 + $0x68] sm:$0xff] }
  0x68   : > { %1382 = vst [vmem:[#allocation3 + $0x48] sm:$0xff] %v1285_v61  ;;  %v844_v10 = vsel %vm829_vm1, %v841_v55, %v843_v1  ;;  %v1069_v11 = vsel %vm1054_vm2, %v1066_v59, %v1068_v3  ;;  %v845_v12 = vrot.slane %v704_v6, 1  ;;  %v846_v13 = vrot.slane %v456_v5, 1 }
  0x69   : > { %v1286_v14 = vpack.c.bf16 %v844_v10, %v842_v63  ;;  %v1287_v15 = vpack.c.bf16 %v1069_v11, %v1067_v2  ;;  %v1070_v16 = vrot.slane %v704_v6, 2  ;;  %v1071_v17 = vrot.slane %v456_v5, 2 }
  0x6a   : > { %v1288_v19 = vpack.c.bf16 %v456_v5, %v704_v6  ;;  %v736_v20 = vsel %vm444_vm0, %v455_v0, %v640_v4  ;;  %v847_v21 = vsel %vm829_vm1, %v845_v12, %v846_v13  ;;  %v458_v22 = vrot.slane %v261_v7, 7 }
  0x6b   : > { %1383 = vst [vmem:[#allocation3 + $0x50] sm:$0xff] %v1286_v14  ;;  %1384 = vst [vmem:[#allocation3 + $0x58] sm:$0xff] %v1287_v15  ;;  %v848_v23 = vrot.slane %v736_v20, 1  ;;  %v1072_v24 = vsel %vm1054_vm2, %v1070_v16, %v1071_v17  ;;  %v1073_v25 = vrot.slane %v736_v20, 2  ;;  %v641_v26 = vrot.slane %v261_v7, 5  ;;  %v268_v20 = vld [vmem:[#allocation4 + $0x80] sm:$0xff] }
  0x6c   : > { %1385 = vst [vmem:[#allocation3 + $0x60] sm:$0xff] %v1288_v19  ;;  %v459_v27 = vsel %vm444_vm0, %v457_v9, %v458_v22  ;;  %v705_v28 = vsel %vm444_vm0, %v352_v8, %v457_v9  ;;  %v353_v30 = vrot.slane %v262_v18, 1  ;;  %v460_v31 = vrot.slane %v262_v18, 7  ;;  %v267_v9 = vld [vmem:[#allocation4 + $0x78] sm:$0xff] }
  0x6d   : > { %v849_v32 = vsel %vm829_vm1, %v846_v13, %v848_v23  ;;  %v1074_v33 = vsel %vm1054_vm2, %v1071_v17, %v1073_v25  ;;  %v850_v34 = vrot.slane %v705_v28, 1  ;;  %v851_v35 = vrot.slane %v459_v27, 1 }
  0x6e   : > { %v1289_v36 = vpack.c.bf16 %v849_v32, %v847_v21  ;;  %v1290_v37 = vpack.c.bf16 %v1074_v33, %v1072_v24  ;;  %v1075_v38 = vrot.slane %v705_v28, 2  ;;  %v1076_v39 = vrot.slane %v459_v27, 2 }
  0x6f   : > { %v1291_v41 = vpack.c.bf16 %v459_v27, %v705_v28  ;;  %v737_v42 = vsel %vm444_vm0, %v458_v22, %v641_v26  ;;  %v852_v43 = vsel %vm829_vm1, %v850_v34, %v851_v35  ;;  %v461_v44 = vrot.slane %v263_v29, 7 }
  0x70   : > { %1386 = vst [vmem:[#allocation3 + $0x68] sm:$0xff] %v1289_v36  ;;  %1387 = vst [vmem:[#allocation3 + $0x70] sm:$0xff] %v1290_v37  ;;  %v853_v45 = vrot.slane %v737_v42, 1  ;;  %v1077_v46 = vsel %vm1054_vm2, %v1075_v38, %v1076_v39  ;;  %v1078_v47 = vrot.slane %v737_v42, 2  ;;  %v642_v48 = vrot.slane %v263_v29, 5  ;;  %v270_v42 = vld [vmem:[#allocation4 + $0x90] sm:$0xff] }
  0x71   : > { %1388 = vst [vmem:[#allocation3 + $0x78] sm:$0xff] %v1291_v41  ;;  %v462_v49 = vsel %vm444_vm0, %v460_v31, %v461_v44  ;;  %v706_v50 = vsel %vm444_vm0, %v353_v30, %v460_v31  ;;  %v354_v52 = vrot.slane %v264_v40, 1  ;;  %v463_v53 = vrot.slane %v264_v40, 7  ;;  %v269_v31 = vld [vmem:[#allocation4 + $0x88] sm:$0xff] }
  0x72   : > { %v854_v54 = vsel %vm829_vm1, %v851_v35, %v853_v45  ;;  %v1079_v55 = vsel %vm1054_vm2, %v1076_v39, %v1078_v47  ;;  %v855_v56 = vrot.slane %v706_v50, 1  ;;  %v856_v57 = vrot.slane %v462_v49, 1 }
  0x73   : > { %v1292_v58 = vpack.c.bf16 %v854_v54, %v852_v43  ;;  %v1293_v59 = vpack.c.bf16 %v1079_v55, %v1077_v46  ;;  %v1080_v60 = vrot.slane %v706_v50, 2  ;;  %v1081_v61 = vrot.slane %v462_v49, 2 }
  0x74   : > { %v1294_v63 = vpack.c.bf16 %v462_v49, %v706_v50  ;;  %v738_v0 = vsel %vm444_vm0, %v461_v44, %v642_v48  ;;  %v857_v1 = vsel %vm829_vm1, %v855_v56, %v856_v57  ;;  %v464_v2 = vrot.slane %v265_v51, 7 }
  0x75   : > { %1389 = vst [vmem:[#allocation3 + $0x80] sm:$0xff] %v1292_v58  ;;  %1390 = vst [vmem:[#allocation3 + $0x88] sm:$0xff] %v1293_v59  ;;  %v858_v3 = vrot.slane %v738_v0, 1  ;;  %v1082_v4 = vsel %vm1054_vm2, %v1080_v60, %v1081_v61  ;;  %v1083_v5 = vrot.slane %v738_v0, 2  ;;  %v643_v6 = vrot.slane %v265_v51, 5  ;;  %v272_v0 = vld [vmem:[#allocation4 + $0xa0] sm:$0xff] }
  0x76   : > { %1391 = vst [vmem:[#allocation3 + $0x90] sm:$0xff] %v1294_v63  ;;  %v465_v7 = vsel %vm444_vm0, %v463_v53, %v464_v2  ;;  %v707_v8 = vsel %vm444_vm0, %v354_v52, %v463_v53  ;;  %v355_v10 = vrot.slane %v266_v62, 1  ;;  %v466_v11 = vrot.slane %v266_v62, 7  ;;  %v271_v53 = vld [vmem:[#allocation4 + $0x98] sm:$0xff] }
  0x77   : > { %v859_v12 = vsel %vm829_vm1, %v856_v57, %v858_v3  ;;  %v1084_v13 = vsel %vm1054_vm2, %v1081_v61, %v1083_v5  ;;  %v860_v14 = vrot.slane %v707_v8, 1  ;;  %v861_v15 = vrot.slane %v465_v7, 1 }
  0x78   : > { %v1295_v16 = vpack.c.bf16 %v859_v12, %v857_v1  ;;  %v1296_v17 = vpack.c.bf16 %v1084_v13, %v1082_v4  ;;  %v1085_v18 = vrot.slane %v707_v8, 2  ;;  %v1086_v19 = vrot.slane %v465_v7, 2 }
  0x79   : > { %v1297_v21 = vpack.c.bf16 %v465_v7, %v707_v8  ;;  %v739_v22 = vsel %vm444_vm0, %v464_v2, %v643_v6  ;;  %v862_v23 = vsel %vm829_vm1, %v860_v14, %v861_v15  ;;  %v467_v24 = vrot.slane %v267_v9, 7 }
  0x7a   : > { %1392 = vst [vmem:[#allocation3 + $0x98] sm:$0xff] %v1295_v16  ;;  %1393 = vst [vmem:[#allocation3 + $0xa0] sm:$0xff] %v1296_v17  ;;  %v863_v25 = vrot.slane %v739_v22, 1  ;;  %v1087_v26 = vsel %vm1054_vm2, %v1085_v18, %v1086_v19  ;;  %v1088_v27 = vrot.slane %v739_v22, 2  ;;  %v644_v28 = vrot.slane %v267_v9, 5  ;;  %v274_v22 = vld [vmem:[#allocation4 + $0xb0] sm:$0xff] }
  0x7b   : > { %1394 = vst [vmem:[#allocation3 + $0xa8] sm:$0xff] %v1297_v21  ;;  %v468_v29 = vsel %vm444_vm0, %v466_v11, %v467_v24  ;;  %v708_v30 = vsel %vm444_vm0, %v355_v10, %v466_v11  ;;  %v356_v32 = vrot.slane %v268_v20, 1  ;;  %v469_v33 = vrot.slane %v268_v20, 7  ;;  %v273_v11 = vld [vmem:[#allocation4 + $0xa8] sm:$0xff] }
  0x7c   : > { %v864_v34 = vsel %vm829_vm1, %v861_v15, %v863_v25  ;;  %v1089_v35 = vsel %vm1054_vm2, %v1086_v19, %v1088_v27  ;;  %v865_v36 = vrot.slane %v708_v30, 1  ;;  %v866_v37 = vrot.slane %v468_v29, 1 }
  0x7d   : > { %v1298_v38 = vpack.c.bf16 %v864_v34, %v862_v23  ;;  %v1299_v39 = vpack.c.bf16 %v1089_v35, %v1087_v26  ;;  %v1090_v40 = vrot.slane %v708_v30, 2  ;;  %v1091_v41 = vrot.slane %v468_v29, 2 }
  0x7e   : > { %v1300_v43 = vpack.c.bf16 %v468_v29, %v708_v30  ;;  %v740_v44 = vsel %vm444_vm0, %v467_v24, %v644_v28  ;;  %v867_v45 = vsel %vm829_vm1, %v865_v36, %v866_v37  ;;  %v470_v46 = vrot.slane %v269_v31, 7 }
  0x7f   : > { %1395 = vst [vmem:[#allocation3 + $0xb0] sm:$0xff] %v1298_v38  ;;  %1396 = vst [vmem:[#allocation3 + $0xb8] sm:$0xff] %v1299_v39  ;;  %v868_v47 = vrot.slane %v740_v44, 1  ;;  %v1092_v48 = vsel %vm1054_vm2, %v1090_v40, %v1091_v41  ;;  %v1093_v49 = vrot.slane %v740_v44, 2  ;;  %v645_v50 = vrot.slane %v269_v31, 5  ;;  %v276_v44 = vld [vmem:[#allocation4 + $0xc0] sm:$0xff] }
  0x80   : > { %1397 = vst [vmem:[#allocation3 + $0xc0] sm:$0xff] %v1300_v43  ;;  %v471_v51 = vsel %vm444_vm0, %v469_v33, %v470_v46  ;;  %v709_v52 = vsel %vm444_vm0, %v356_v32, %v469_v33  ;;  %v357_v54 = vrot.slane %v270_v42, 1  ;;  %v472_v55 = vrot.slane %v270_v42, 7  ;;  %v275_v33 = vld [vmem:[#allocation4 + $0xb8] sm:$0xff] }
  0x81   : > { %v869_v56 = vsel %vm829_vm1, %v866_v37, %v868_v47  ;;  %v1094_v57 = vsel %vm1054_vm2, %v1091_v41, %v1093_v49  ;;  %v870_v58 = vrot.slane %v709_v52, 1  ;;  %v871_v59 = vrot.slane %v471_v51, 1 }
  0x82   : > { %v1301_v60 = vpack.c.bf16 %v869_v56, %v867_v45  ;;  %v1302_v61 = vpack.c.bf16 %v1094_v57, %v1092_v48  ;;  %v1095_v62 = vrot.slane %v709_v52, 2  ;;  %v1096_v63 = vrot.slane %v471_v51, 2 }
  0x83   : > { %v1303_v1 = vpack.c.bf16 %v471_v51, %v709_v52  ;;  %v741_v2 = vsel %vm444_vm0, %v470_v46, %v645_v50  ;;  %v872_v3 = vsel %vm829_vm1, %v870_v58, %v871_v59  ;;  %v473_v4 = vrot.slane %v271_v53, 7 }
  0x84   : > { %1398 = vst [vmem:[#allocation3 + $0xc8] sm:$0xff] %v1301_v60  ;;  %1399 = vst [vmem:[#allocation3 + $0xd0] sm:$0xff] %v1302_v61  ;;  %v873_v5 = vrot.slane %v741_v2, 1  ;;  %v1097_v6 = vsel %vm1054_vm2, %v1095_v62, %v1096_v63  ;;  %v1098_v7 = vrot.slane %v741_v2, 2  ;;  %v646_v8 = vrot.slane %v271_v53, 5  ;;  %v278_v2 = vld [vmem:[#allocation4 + $0xd0] sm:$0xff] }
  0x85   : > { %1400 = vst [vmem:[#allocation3 + $0xd8] sm:$0xff] %v1303_v1  ;;  %v474_v9 = vsel %vm444_vm0, %v472_v55, %v473_v4  ;;  %v710_v10 = vsel %vm444_vm0, %v357_v54, %v472_v55  ;;  %v358_v12 = vrot.slane %v272_v0, 1  ;;  %v475_v13 = vrot.slane %v272_v0, 7  ;;  %v277_v55 = vld [vmem:[#allocation4 + $0xc8] sm:$0xff] }
  0x86   : > { %v874_v14 = vsel %vm829_vm1, %v871_v59, %v873_v5  ;;  %v1099_v15 = vsel %vm1054_vm2, %v1096_v63, %v1098_v7  ;;  %v875_v16 = vrot.slane %v710_v10, 1  ;;  %v876_v17 = vrot.slane %v474_v9, 1 }
  0x87   : > { %v1304_v18 = vpack.c.bf16 %v874_v14, %v872_v3  ;;  %v1305_v19 = vpack.c.bf16 %v1099_v15, %v1097_v6  ;;  %v1100_v20 = vrot.slane %v710_v10, 2  ;;  %v1101_v21 = vrot.slane %v474_v9, 2 }
  0x88   : > { %v1306_v23 = vpack.c.bf16 %v474_v9, %v710_v10  ;;  %v742_v24 = vsel %vm444_vm0, %v473_v4, %v646_v8  ;;  %v877_v25 = vsel %vm829_vm1, %v875_v16, %v876_v17  ;;  %v476_v26 = vrot.slane %v273_v11, 7 }
  0x89   : > { %1401 = vst [vmem:[#allocation3 + $0xe0] sm:$0xff] %v1304_v18  ;;  %1402 = vst [vmem:[#allocation3 + $0xe8] sm:$0xff] %v1305_v19  ;;  %v878_v27 = vrot.slane %v742_v24, 1  ;;  %v1102_v28 = vsel %vm1054_vm2, %v1100_v20, %v1101_v21  ;;  %v1103_v29 = vrot.slane %v742_v24, 2  ;;  %v647_v30 = vrot.slane %v273_v11, 5  ;;  %v280_v24 = vld [vmem:[#allocation4 + $0xe0] sm:$0xff] }
  0x8a   : > { %1403 = vst [vmem:[#allocation3 + $0xf0] sm:$0xff] %v1306_v23  ;;  %v477_v31 = vsel %vm444_vm0, %v475_v13, %v476_v26  ;;  %v711_v32 = vsel %vm444_vm0, %v358_v12, %v475_v13  ;;  %v359_v34 = vrot.slane %v274_v22, 1  ;;  %v478_v35 = vrot.slane %v274_v22, 7  ;;  %v279_v13 = vld [vmem:[#allocation4 + $0xd8] sm:$0xff] }
  0x8b   : > { %v879_v36 = vsel %vm829_vm1, %v876_v17, %v878_v27  ;;  %v1104_v37 = vsel %vm1054_vm2, %v1101_v21, %v1103_v29  ;;  %v880_v38 = vrot.slane %v711_v32, 1  ;;  %v881_v39 = vrot.slane %v477_v31, 1 }
  0x8c   : > { %v1307_v40 = vpack.c.bf16 %v879_v36, %v877_v25  ;;  %v1308_v41 = vpack.c.bf16 %v1104_v37, %v1102_v28  ;;  %v1105_v42 = vrot.slane %v711_v32, 2  ;;  %v1106_v43 = vrot.slane %v477_v31, 2 }
  0x8d   : > { %v1309_v45 = vpack.c.bf16 %v477_v31, %v711_v32  ;;  %v743_v46 = vsel %vm444_vm0, %v476_v26, %v647_v30  ;;  %v882_v47 = vsel %vm829_vm1, %v880_v38, %v881_v39  ;;  %v479_v48 = vrot.slane %v275_v33, 7 }
  0x8e   : > { %1404 = vst [vmem:[#allocation3 + $0xf8] sm:$0xff] %v1307_v40  ;;  %1405 = vst [vmem:[#allocation3 + $0x100] sm:$0xff] %v1308_v41  ;;  %v883_v49 = vrot.slane %v743_v46, 1  ;;  %v1107_v50 = vsel %vm1054_vm2, %v1105_v42, %v1106_v43  ;;  %v1108_v51 = vrot.slane %v743_v46, 2  ;;  %v648_v52 = vrot.slane %v275_v33, 5  ;;  %v282_v46 = vld [vmem:[#allocation4 + $0xf0] sm:$0xff] }
  0x8f   : > { %1406 = vst [vmem:[#allocation3 + $0x108] sm:$0xff] %v1309_v45  ;;  %v480_v53 = vsel %vm444_vm0, %v478_v35, %v479_v48  ;;  %v712_v54 = vsel %vm444_vm0, %v359_v34, %v478_v35  ;;  %v360_v56 = vrot.slane %v276_v44, 1  ;;  %v481_v57 = vrot.slane %v276_v44, 7  ;;  %v281_v35 = vld [vmem:[#allocation4 + $0xe8] sm:$0xff] }
  0x90   : > { %v884_v58 = vsel %vm829_vm1, %v881_v39, %v883_v49  ;;  %v1109_v59 = vsel %vm1054_vm2, %v1106_v43, %v1108_v51  ;;  %v885_v60 = vrot.slane %v712_v54, 1  ;;  %v886_v61 = vrot.slane %v480_v53, 1 }
  0x91   : > { %v1310_v62 = vpack.c.bf16 %v884_v58, %v882_v47  ;;  %v1311_v63 = vpack.c.bf16 %v1109_v59, %v1107_v50  ;;  %v1110_v0 = vrot.slane %v712_v54, 2  ;;  %v1111_v1 = vrot.slane %v480_v53, 2 }
  0x92   : > { %v1312_v3 = vpack.c.bf16 %v480_v53, %v712_v54  ;;  %v744_v4 = vsel %vm444_vm0, %v479_v48, %v648_v52  ;;  %v887_v5 = vsel %vm829_vm1, %v885_v60, %v886_v61  ;;  %v482_v6 = vrot.slane %v277_v55, 7 }
  0x93   : > { %1407 = vst [vmem:[#allocation3 + $0x110] sm:$0xff] %v1310_v62  ;;  %1408 = vst [vmem:[#allocation3 + $0x118] sm:$0xff] %v1311_v63  ;;  %v888_v7 = vrot.slane %v744_v4, 1  ;;  %v1112_v8 = vsel %vm1054_vm2, %v1110_v0, %v1111_v1  ;;  %v1113_v9 = vrot.slane %v744_v4, 2  ;;  %v649_v10 = vrot.slane %v277_v55, 5  ;;  %v284_v4 = vld [vmem:[#allocation4 + $0x100] sm:$0xff] }
  0x94   : > { %1409 = vst [vmem:[#allocation3 + $0x120] sm:$0xff] %v1312_v3  ;;  %v483_v11 = vsel %vm444_vm0, %v481_v57, %v482_v6  ;;  %v713_v12 = vsel %vm444_vm0, %v360_v56, %v481_v57  ;;  %v361_v14 = vrot.slane %v278_v2, 1  ;;  %v484_v15 = vrot.slane %v278_v2, 7  ;;  %v283_v57 = vld [vmem:[#allocation4 + $0xf8] sm:$0xff] }
  0x95   : > { %v889_v16 = vsel %vm829_vm1, %v886_v61, %v888_v7  ;;  %v1114_v17 = vsel %vm1054_vm2, %v1111_v1, %v1113_v9  ;;  %v890_v18 = vrot.slane %v713_v12, 1  ;;  %v891_v19 = vrot.slane %v483_v11, 1 }
  0x96   : > { %v1313_v20 = vpack.c.bf16 %v889_v16, %v887_v5  ;;  %v1314_v21 = vpack.c.bf16 %v1114_v17, %v1112_v8  ;;  %v1115_v22 = vrot.slane %v713_v12, 2  ;;  %v1116_v23 = vrot.slane %v483_v11, 2 }
  0x97   : > { %v1315_v25 = vpack.c.bf16 %v483_v11, %v713_v12  ;;  %v745_v26 = vsel %vm444_vm0, %v482_v6, %v649_v10  ;;  %v892_v27 = vsel %vm829_vm1, %v890_v18, %v891_v19  ;;  %v485_v28 = vrot.slane %v279_v13, 7 }
  0x98   : > { %1410 = vst [vmem:[#allocation3 + $0x128] sm:$0xff] %v1313_v20  ;;  %1411 = vst [vmem:[#allocation3 + $0x130] sm:$0xff] %v1314_v21  ;;  %v893_v29 = vrot.slane %v745_v26, 1  ;;  %v1117_v30 = vsel %vm1054_vm2, %v1115_v22, %v1116_v23  ;;  %v1118_v31 = vrot.slane %v745_v26, 2  ;;  %v650_v32 = vrot.slane %v279_v13, 5  ;;  %v286_v26 = vld [vmem:[#allocation4 + $0x110] sm:$0xff] }
  0x99   : > { %1412 = vst [vmem:[#allocation3 + $0x138] sm:$0xff] %v1315_v25  ;;  %v486_v33 = vsel %vm444_vm0, %v484_v15, %v485_v28  ;;  %v714_v34 = vsel %vm444_vm0, %v361_v14, %v484_v15  ;;  %v362_v36 = vrot.slane %v280_v24, 1  ;;  %v487_v37 = vrot.slane %v280_v24, 7  ;;  %v285_v15 = vld [vmem:[#allocation4 + $0x108] sm:$0xff] }
  0x9a   : > { %v894_v38 = vsel %vm829_vm1, %v891_v19, %v893_v29  ;;  %v1119_v39 = vsel %vm1054_vm2, %v1116_v23, %v1118_v31  ;;  %v895_v40 = vrot.slane %v714_v34, 1  ;;  %v896_v41 = vrot.slane %v486_v33, 1 }
  0x9b   : > { %v1316_v42 = vpack.c.bf16 %v894_v38, %v892_v27  ;;  %v1317_v43 = vpack.c.bf16 %v1119_v39, %v1117_v30  ;;  %v1120_v44 = vrot.slane %v714_v34, 2  ;;  %v1121_v45 = vrot.slane %v486_v33, 2 }
  0x9c   : > { %v1318_v47 = vpack.c.bf16 %v486_v33, %v714_v34  ;;  %v746_v48 = vsel %vm444_vm0, %v485_v28, %v650_v32  ;;  %v897_v49 = vsel %vm829_vm1, %v895_v40, %v896_v41  ;;  %v488_v50 = vrot.slane %v281_v35, 7 }
  0x9d   : > { %1413 = vst [vmem:[#allocation3 + $0x140] sm:$0xff] %v1316_v42  ;;  %1414 = vst [vmem:[#allocation3 + $0x148] sm:$0xff] %v1317_v43  ;;  %v898_v51 = vrot.slane %v746_v48, 1  ;;  %v1122_v52 = vsel %vm1054_vm2, %v1120_v44, %v1121_v45  ;;  %v1123_v53 = vrot.slane %v746_v48, 2  ;;  %v651_v54 = vrot.slane %v281_v35, 5  ;;  %v288_v48 = vld [vmem:[#allocation4 + $0x120] sm:$0xff] }
  0x9e   : > { %1415 = vst [vmem:[#allocation3 + $0x150] sm:$0xff] %v1318_v47  ;;  %v489_v55 = vsel %vm444_vm0, %v487_v37, %v488_v50  ;;  %v715_v56 = vsel %vm444_vm0, %v362_v36, %v487_v37  ;;  %v363_v58 = vrot.slane %v282_v46, 1  ;;  %v490_v59 = vrot.slane %v282_v46, 7  ;;  %v287_v37 = vld [vmem:[#allocation4 + $0x118] sm:$0xff] }
  0x9f   : > { %v899_v60 = vsel %vm829_vm1, %v896_v41, %v898_v51  ;;  %v1124_v61 = vsel %vm1054_vm2, %v1121_v45, %v1123_v53  ;;  %v900_v62 = vrot.slane %v715_v56, 1  ;;  %v901_v63 = vrot.slane %v489_v55, 1 }
  0xa0   : > { %v1319_v0 = vpack.c.bf16 %v899_v60, %v897_v49  ;;  %v1320_v1 = vpack.c.bf16 %v1124_v61, %v1122_v52  ;;  %v1125_v2 = vrot.slane %v715_v56, 2  ;;  %v1126_v3 = vrot.slane %v489_v55, 2 }
  0xa1   : > { %v1321_v5 = vpack.c.bf16 %v489_v55, %v715_v56  ;;  %v747_v6 = vsel %vm444_vm0, %v488_v50, %v651_v54  ;;  %v902_v7 = vsel %vm829_vm1, %v900_v62, %v901_v63  ;;  %v491_v8 = vrot.slane %v283_v57, 7 }
  0xa2   : > { %1416 = vst [vmem:[#allocation3 + $0x158] sm:$0xff] %v1319_v0  ;;  %1417 = vst [vmem:[#allocation3 + $0x160] sm:$0xff] %v1320_v1  ;;  %v903_v9 = vrot.slane %v747_v6, 1  ;;  %v1127_v10 = vsel %vm1054_vm2, %v1125_v2, %v1126_v3  ;;  %v1128_v11 = vrot.slane %v747_v6, 2  ;;  %v652_v12 = vrot.slane %v283_v57, 5  ;;  %v290_v6 = vld [vmem:[#allocation4 + $0x130] sm:$0xff] }
  0xa3   : > { %1418 = vst [vmem:[#allocation3 + $0x168] sm:$0xff] %v1321_v5  ;;  %1479 = vst [vmem:[#allocation3 + $0x198] sm:$0xff] %v1321_v5  ;;  %v492_v13 = vsel %vm444_vm0, %v490_v59, %v491_v8  ;;  %v716_v14 = vsel %vm444_vm0, %v363_v58, %v490_v59  ;;  %v364_v16 = vrot.slane %v284_v4, 1  ;;  %v493_v17 = vrot.slane %v284_v4, 7  ;;  %v289_v59 = vld [vmem:[#allocation4 + $0x128] sm:$0xff] }
  0xa4   : > { %v904_v18 = vsel %vm829_vm1, %v901_v63, %v903_v9  ;;  %v1129_v19 = vsel %vm1054_vm2, %v1126_v3, %v1128_v11  ;;  %v905_v20 = vrot.slane %v716_v14, 1  ;;  %v906_v21 = vrot.slane %v492_v13, 1 }
  0xa5   : > { %v1322_v22 = vpack.c.bf16 %v904_v18, %v902_v7  ;;  %v1323_v23 = vpack.c.bf16 %v1129_v19, %v1127_v10  ;;  %v1130_v24 = vrot.slane %v716_v14, 2  ;;  %v1131_v25 = vrot.slane %v492_v13, 2 }
  0xa6   : > { %v1324_v27 = vpack.c.bf16 %v492_v13, %v716_v14  ;;  %v748_v28 = vsel %vm444_vm0, %v491_v8, %v652_v12  ;;  %v907_v29 = vsel %vm829_vm1, %v905_v20, %v906_v21  ;;  %v494_v30 = vrot.slane %v285_v15, 7 }
  0xa7   : > { %1419 = vst [vmem:[#allocation3 + $0x170] sm:$0xff] %v1322_v22  ;;  %1480 = vst [vmem:[#allocation3 + $0x1a0] sm:$0xff] %v1322_v22  ;;  %v908_v31 = vrot.slane %v748_v28, 1  ;;  %v1132_v32 = vsel %vm1054_vm2, %v1130_v24, %v1131_v25  ;;  %v1133_v33 = vrot.slane %v748_v28, 2  ;;  %v653_v34 = vrot.slane %v285_v15, 5  ;;  %v292_v28 = vld [vmem:[#allocation4 + $0x140] sm:$0xff] }
  0xa8   : > { %1420 = vst [vmem:[#allocation3 + $0x178] sm:$0xff] %v1323_v23  ;;  %1481 = vst [vmem:[#allocation3 + $0x1a8] sm:$0xff] %v1323_v23  ;;  %v495_v35 = vsel %vm444_vm0, %v493_v17, %v494_v30  ;;  %v717_v36 = vsel %vm444_vm0, %v364_v16, %v493_v17  ;;  %v365_v38 = vrot.slane %v286_v26, 1  ;;  %v496_v39 = vrot.slane %v286_v26, 7  ;;  %v291_v17 = vld [vmem:[#allocation4 + $0x138] sm:$0xff] }
  0xa9   : > { %1421 = vst [vmem:[#allocation3 + $0x180] sm:$0xff] %v1324_v27  ;;  %v909_v40 = vsel %vm829_vm1, %v906_v21, %v908_v31  ;;  %v1134_v41 = vsel %vm1054_vm2, %v1131_v25, %v1133_v33  ;;  %v910_v42 = vrot.slane %v717_v36, 1  ;;  %v911_v43 = vrot.slane %v495_v35, 1 }
  0xaa   : > { %v1325_v44 = vpack.c.bf16 %v909_v40, %v907_v29  ;;  %v1326_v45 = vpack.c.bf16 %v1134_v41, %v1132_v32  ;;  %v1135_v46 = vrot.slane %v717_v36, 2  ;;  %v1136_v47 = vrot.slane %v495_v35, 2 }
  0xab   : > { %v1327_v49 = vpack.c.bf16 %v495_v35, %v717_v36  ;;  %v749_v50 = vsel %vm444_vm0, %v494_v30, %v653_v34  ;;  %v912_v51 = vsel %vm829_vm1, %v910_v42, %v911_v43  ;;  %v497_v52 = vrot.slane %v287_v37, 7 }
  0xac   : > { %1422 = vst [vmem:[#allocation3 + $0x188] sm:$0xff] %v1325_v44  ;;  %1423 = vst [vmem:[#allocation3 + $0x190] sm:$0xff] %v1326_v45  ;;  %v913_v53 = vrot.slane %v749_v50, 1  ;;  %v1137_v54 = vsel %vm1054_vm2, %v1135_v46, %v1136_v47  ;;  %v1138_v55 = vrot.slane %v749_v50, 2  ;;  %v654_v56 = vrot.slane %v287_v37, 5  ;;  %v294_v50 = vld [vmem:[#allocation4 + $0x150] sm:$0xff] }
  0xad   : > { %1424 = vst [vmem:[#allocation3 + $0x1c8] sm:$0xff] %v1327_v49  ;;  %v498_v57 = vsel %vm444_vm0, %v496_v39, %v497_v52  ;;  %v718_v58 = vsel %vm444_vm0, %v365_v38, %v496_v39  ;;  %v366_v60 = vrot.slane %v288_v48, 1  ;;  %v499_v61 = vrot.slane %v288_v48, 7  ;;  %v293_v39 = vld [vmem:[#allocation4 + $0x148] sm:$0xff] }
  0xae   : > { %v914_v62 = vsel %vm829_vm1, %v911_v43, %v913_v53  ;;  %v1139_v63 = vsel %vm1054_vm2, %v1136_v47, %v1138_v55  ;;  %v915_v0 = vrot.slane %v718_v58, 1  ;;  %v916_v1 = vrot.slane %v498_v57, 1 }
  0xaf   : > { %v1328_v2 = vpack.c.bf16 %v914_v62, %v912_v51  ;;  %v1329_v3 = vpack.c.bf16 %v1139_v63, %v1137_v54  ;;  %v1140_v4 = vrot.slane %v718_v58, 2  ;;  %v1141_v5 = vrot.slane %v498_v57, 2 }
  0xb0   : > { %v1330_v7 = vpack.c.bf16 %v498_v57, %v718_v58  ;;  %v750_v8 = vsel %vm444_vm0, %v497_v52, %v654_v56  ;;  %v917_v9 = vsel %vm829_vm1, %v915_v0, %v916_v1  ;;  %v500_v10 = vrot.slane %v289_v59, 7 }
  0xb1   : > { %1425 = vst [vmem:[#allocation3 + $0x1d0] sm:$0xff] %v1328_v2  ;;  %1426 = vst [vmem:[#allocation3 + $0x1d8] sm:$0xff] %v1329_v3  ;;  %v918_v11 = vrot.slane %v750_v8, 1  ;;  %v1142_v12 = vsel %vm1054_vm2, %v1140_v4, %v1141_v5  ;;  %v1143_v13 = vrot.slane %v750_v8, 2  ;;  %v655_v14 = vrot.slane %v289_v59, 5  ;;  %v296_v8 = vld [vmem:[#allocation4 + $0x160] sm:$0xff] }
  0xb2   : > { %1427 = vst [vmem:[#allocation3 + $0x1e0] sm:$0xff] %v1330_v7  ;;  %1475 = vst [vmem:[#allocation3 + $0x1b0] sm:$0xff] %v1330_v7  ;;  %v501_v15 = vsel %vm444_vm0, %v499_v61, %v500_v10  ;;  %v719_v16 = vsel %vm444_vm0, %v366_v60, %v499_v61  ;;  %v367_v18 = vrot.slane %v290_v6, 1  ;;  %v502_v19 = vrot.slane %v290_v6, 7  ;;  %v295_v61 = vld [vmem:[#allocation4 + $0x158] sm:$0xff] }
  0xb3   : > { %v919_v20 = vsel %vm829_vm1, %v916_v1, %v918_v11  ;;  %v1144_v21 = vsel %vm1054_vm2, %v1141_v5, %v1143_v13  ;;  %v920_v22 = vrot.slane %v719_v16, 1  ;;  %v921_v23 = vrot.slane %v501_v15, 1 }
  0xb4   : > { %v1331_v24 = vpack.c.bf16 %v919_v20, %v917_v9  ;;  %v1332_v25 = vpack.c.bf16 %v1144_v21, %v1142_v12  ;;  %v1145_v26 = vrot.slane %v719_v16, 2  ;;  %v1146_v27 = vrot.slane %v501_v15, 2 }
  0xb5   : > { %v1333_v29 = vpack.c.bf16 %v501_v15, %v719_v16  ;;  %v751_v30 = vsel %vm444_vm0, %v500_v10, %v655_v14  ;;  %v922_v31 = vsel %vm829_vm1, %v920_v22, %v921_v23  ;;  %v503_v32 = vrot.slane %v291_v17, 7 }
  0xb6   : > { %1428 = vst [vmem:[#allocation3 + $0x1e8] sm:$0xff] %v1331_v24  ;;  %1476 = vst [vmem:[#allocation3 + $0x1b8] sm:$0xff] %v1331_v24  ;;  %v923_v33 = vrot.slane %v751_v30, 1  ;;  %v1147_v34 = vsel %vm1054_vm2, %v1145_v26, %v1146_v27  ;;  %v1148_v35 = vrot.slane %v751_v30, 2  ;;  %v656_v36 = vrot.slane %v291_v17, 5  ;;  %v298_v30 = vld [vmem:[#allocation4 + $0x170] sm:$0xff] }
  0xb7   : > { %1429 = vst [vmem:[#allocation3 + $0x1f0] sm:$0xff] %v1332_v25  ;;  %1477 = vst [vmem:[#allocation3 + $0x1c0] sm:$0xff] %v1332_v25  ;;  %v504_v37 = vsel %vm444_vm0, %v502_v19, %v503_v32  ;;  %v720_v38 = vsel %vm444_vm0, %v367_v18, %v502_v19  ;;  %v368_v40 = vrot.slane %v292_v28, 1  ;;  %v505_v41 = vrot.slane %v292_v28, 7  ;;  %v297_v19 = vld [vmem:[#allocation4 + $0x168] sm:$0xff] }
  0xb8   : > { %1430 = vst [vmem:[#allocation3 + $0x1f8] sm:$0xff] %v1333_v29  ;;  %v924_v42 = vsel %vm829_vm1, %v921_v23, %v923_v33  ;;  %v1149_v43 = vsel %vm1054_vm2, %v1146_v27, %v1148_v35  ;;  %v925_v44 = vrot.slane %v720_v38, 1  ;;  %v926_v45 = vrot.slane %v504_v37, 1 }
  0xb9   : > { %v1334_v46 = vpack.c.bf16 %v924_v42, %v922_v31  ;;  %v1335_v47 = vpack.c.bf16 %v1149_v43, %v1147_v34  ;;  %v1150_v48 = vrot.slane %v720_v38, 2  ;;  %v1151_v49 = vrot.slane %v504_v37, 2 }
  0xba   : > { %v1336_v51 = vpack.c.bf16 %v504_v37, %v720_v38  ;;  %v752_v52 = vsel %vm444_vm0, %v503_v32, %v656_v36  ;;  %v927_v53 = vsel %vm829_vm1, %v925_v44, %v926_v45  ;;  %v506_v54 = vrot.slane %v293_v39, 7 }
  0xbb   : > { %1431 = vst [vmem:[#allocation3 + $0x200] sm:$0xff] %v1334_v46  ;;  %1432 = vst [vmem:[#allocation3 + $0x208] sm:$0xff] %v1335_v47  ;;  %v928_v55 = vrot.slane %v752_v52, 1  ;;  %v1152_v56 = vsel %vm1054_vm2, %v1150_v48, %v1151_v49  ;;  %v1153_v57 = vrot.slane %v752_v52, 2  ;;  %v657_v58 = vrot.slane %v293_v39, 5  ;;  %v300_v52 = vld [vmem:[#allocation4 + $0x180] sm:$0xff] }
  0xbc   : > { %1433 = vst [vmem:[#allocation3 + $0x210] sm:$0xff] %v1336_v51  ;;  %v507_v59 = vsel %vm444_vm0, %v505_v41, %v506_v54  ;;  %v721_v60 = vsel %vm444_vm0, %v368_v40, %v505_v41  ;;  %v369_v62 = vrot.slane %v294_v50, 1  ;;  %v508_v63 = vrot.slane %v294_v50, 7  ;;  %v299_v41 = vld [vmem:[#allocation4 + $0x178] sm:$0xff] }
  0xbd   : > { %v929_v0 = vsel %vm829_vm1, %v926_v45, %v928_v55  ;;  %v1154_v1 = vsel %vm1054_vm2, %v1151_v49, %v1153_v57  ;;  %v930_v2 = vrot.slane %v721_v60, 1  ;;  %v931_v3 = vrot.slane %v507_v59, 1 }
  0xbe   : > { %v1337_v4 = vpack.c.bf16 %v929_v0, %v927_v53  ;;  %v1338_v5 = vpack.c.bf16 %v1154_v1, %v1152_v56  ;;  %v1155_v6 = vrot.slane %v721_v60, 2  ;;  %v1156_v7 = vrot.slane %v507_v59, 2 }
  0xbf   : > { %v1339_v9 = vpack.c.bf16 %v507_v59, %v721_v60  ;;  %v753_v10 = vsel %vm444_vm0, %v506_v54, %v657_v58  ;;  %v932_v11 = vsel %vm829_vm1, %v930_v2, %v931_v3  ;;  %v509_v12 = vrot.slane %v295_v61, 7 }
  0xc0   : > { %1434 = vst [vmem:[#allocation3 + $0x218] sm:$0xff] %v1337_v4  ;;  %1435 = vst [vmem:[#allocation3 + $0x220] sm:$0xff] %v1338_v5  ;;  %v933_v13 = vrot.slane %v753_v10, 1  ;;  %v1157_v14 = vsel %vm1054_vm2, %v1155_v6, %v1156_v7  ;;  %v1158_v15 = vrot.slane %v753_v10, 2  ;;  %v658_v16 = vrot.slane %v295_v61, 5  ;;  %v302_v10 = vld [vmem:[#allocation4 + $0x190] sm:$0xff] }
  0xc1   : > { %1436 = vst [vmem:[#allocation3 + $0x228] sm:$0xff] %v1339_v9  ;;  %v510_v17 = vsel %vm444_vm0, %v508_v63, %v509_v12  ;;  %v722_v18 = vsel %vm444_vm0, %v369_v62, %v508_v63  ;;  %v370_v20 = vrot.slane %v296_v8, 1  ;;  %v511_v21 = vrot.slane %v296_v8, 7  ;;  %v301_v63 = vld [vmem:[#allocation4 + $0x188] sm:$0xff] }
  0xc2   : > { %v934_v22 = vsel %vm829_vm1, %v931_v3, %v933_v13  ;;  %v1159_v23 = vsel %vm1054_vm2, %v1156_v7, %v1158_v15  ;;  %v935_v24 = vrot.slane %v722_v18, 1  ;;  %v936_v25 = vrot.slane %v510_v17, 1 }
  0xc3   : > { %v1340_v26 = vpack.c.bf16 %v934_v22, %v932_v11  ;;  %v1341_v27 = vpack.c.bf16 %v1159_v23, %v1157_v14  ;;  %v1160_v28 = vrot.slane %v722_v18, 2  ;;  %v1161_v29 = vrot.slane %v510_v17, 2 }
  0xc4   : > { %v1342_v31 = vpack.c.bf16 %v510_v17, %v722_v18  ;;  %v754_v32 = vsel %vm444_vm0, %v509_v12, %v658_v16  ;;  %v937_v33 = vsel %vm829_vm1, %v935_v24, %v936_v25  ;;  %v512_v34 = vrot.slane %v297_v19, 7 }
  0xc5   : > { %1437 = vst [vmem:[#allocation3 + $0x230] sm:$0xff] %v1340_v26  ;;  %1438 = vst [vmem:[#allocation3 + $0x238] sm:$0xff] %v1341_v27  ;;  %v938_v35 = vrot.slane %v754_v32, 1  ;;  %v1162_v36 = vsel %vm1054_vm2, %v1160_v28, %v1161_v29  ;;  %v1163_v37 = vrot.slane %v754_v32, 2  ;;  %v659_v38 = vrot.slane %v297_v19, 5  ;;  %v304_v32 = vld [vmem:[#allocation4 + $0x1a0] sm:$0xff] }
  0xc6   : > { %1439 = vst [vmem:[#allocation3 + $0x240] sm:$0xff] %v1342_v31  ;;  %v513_v39 = vsel %vm444_vm0, %v511_v21, %v512_v34  ;;  %v723_v40 = vsel %vm444_vm0, %v370_v20, %v511_v21  ;;  %v371_v42 = vrot.slane %v298_v30, 1  ;;  %v514_v43 = vrot.slane %v298_v30, 7  ;;  %v303_v21 = vld [vmem:[#allocation4 + $0x198] sm:$0xff] }
  0xc7   : > { %v939_v44 = vsel %vm829_vm1, %v936_v25, %v938_v35  ;;  %v1164_v45 = vsel %vm1054_vm2, %v1161_v29, %v1163_v37  ;;  %v940_v46 = vrot.slane %v723_v40, 1  ;;  %v941_v47 = vrot.slane %v513_v39, 1 }
  0xc8   : > { %v1343_v48 = vpack.c.bf16 %v939_v44, %v937_v33  ;;  %v1344_v49 = vpack.c.bf16 %v1164_v45, %v1162_v36  ;;  %v1165_v50 = vrot.slane %v723_v40, 2  ;;  %v1166_v51 = vrot.slane %v513_v39, 2 }
  0xc9   : > { %v1345_v53 = vpack.c.bf16 %v513_v39, %v723_v40  ;;  %v755_v54 = vsel %vm444_vm0, %v512_v34, %v659_v38  ;;  %v942_v55 = vsel %vm829_vm1, %v940_v46, %v941_v47  ;;  %v515_v56 = vrot.slane %v299_v41, 7 }
  0xca   : > { %1440 = vst [vmem:[#allocation3 + $0x248] sm:$0xff] %v1343_v48  ;;  %1441 = vst [vmem:[#allocation3 + $0x250] sm:$0xff] %v1344_v49  ;;  %v943_v57 = vrot.slane %v755_v54, 1  ;;  %v1167_v58 = vsel %vm1054_vm2, %v1165_v50, %v1166_v51  ;;  %v1168_v59 = vrot.slane %v755_v54, 2  ;;  %v660_v60 = vrot.slane %v299_v41, 5  ;;  %v306_v54 = vld [vmem:[#allocation4 + $0x1b0] sm:$0xff] }
  0xcb   : > { %1442 = vst [vmem:[#allocation3 + $0x258] sm:$0xff] %v1345_v53  ;;  %v516_v61 = vsel %vm444_vm0, %v514_v43, %v515_v56  ;;  %v724_v62 = vsel %vm444_vm0, %v371_v42, %v514_v43  ;;  %v372_v0 = vrot.slane %v300_v52, 1  ;;  %v517_v1 = vrot.slane %v300_v52, 7  ;;  %v305_v43 = vld [vmem:[#allocation4 + $0x1a8] sm:$0xff] }
  0xcc   : > { %v944_v2 = vsel %vm829_vm1, %v941_v47, %v943_v57  ;;  %v1169_v3 = vsel %vm1054_vm2, %v1166_v51, %v1168_v59  ;;  %v945_v4 = vrot.slane %v724_v62, 1  ;;  %v946_v5 = vrot.slane %v516_v61, 1 }
  0xcd   : > { %v1346_v6 = vpack.c.bf16 %v944_v2, %v942_v55  ;;  %v1347_v7 = vpack.c.bf16 %v1169_v3, %v1167_v58  ;;  %v1170_v8 = vrot.slane %v724_v62, 2  ;;  %v1171_v9 = vrot.slane %v516_v61, 2 }
  0xce   : > { %v1348_v11 = vpack.c.bf16 %v516_v61, %v724_v62  ;;  %v756_v12 = vsel %vm444_vm0, %v515_v56, %v660_v60  ;;  %v947_v13 = vsel %vm829_vm1, %v945_v4, %v946_v5  ;;  %v518_v14 = vrot.slane %v301_v63, 7 }
  0xcf   : > { %1443 = vst [vmem:[#allocation3 + $0x260] sm:$0xff] %v1346_v6  ;;  %1444 = vst [vmem:[#allocation3 + $0x268] sm:$0xff] %v1347_v7  ;;  %v948_v15 = vrot.slane %v756_v12, 1  ;;  %v1172_v16 = vsel %vm1054_vm2, %v1170_v8, %v1171_v9  ;;  %v1173_v17 = vrot.slane %v756_v12, 2  ;;  %v661_v18 = vrot.slane %v301_v63, 5  ;;  %v308_v12 = vld [vmem:[#allocation4 + $0x1c0] sm:$0xff] }
  0xd0   : > { %1445 = vst [vmem:[#allocation3 + $0x270] sm:$0xff] %v1348_v11  ;;  %v519_v19 = vsel %vm444_vm0, %v517_v1, %v518_v14  ;;  %v725_v20 = vsel %vm444_vm0, %v372_v0, %v517_v1  ;;  %v373_v22 = vrot.slane %v302_v10, 1  ;;  %v520_v23 = vrot.slane %v302_v10, 7  ;;  %v307_v1 = vld [vmem:[#allocation4 + $0x1b8] sm:$0xff] }
  0xd1   : > { %v949_v24 = vsel %vm829_vm1, %v946_v5, %v948_v15  ;;  %v1174_v25 = vsel %vm1054_vm2, %v1171_v9, %v1173_v17  ;;  %v950_v26 = vrot.slane %v725_v20, 1  ;;  %v951_v27 = vrot.slane %v519_v19, 1 }
  0xd2   : > { %v1349_v28 = vpack.c.bf16 %v949_v24, %v947_v13  ;;  %v1350_v29 = vpack.c.bf16 %v1174_v25, %v1172_v16  ;;  %v1175_v30 = vrot.slane %v725_v20, 2  ;;  %v1176_v31 = vrot.slane %v519_v19, 2 }
  0xd3   : > { %v1351_v33 = vpack.c.bf16 %v519_v19, %v725_v20  ;;  %v757_v34 = vsel %vm444_vm0, %v518_v14, %v661_v18  ;;  %v952_v35 = vsel %vm829_vm1, %v950_v26, %v951_v27  ;;  %v521_v36 = vrot.slane %v303_v21, 7 }
  0xd4   : > { %1446 = vst [vmem:[#allocation3 + $0x278] sm:$0xff] %v1349_v28  ;;  %1447 = vst [vmem:[#allocation3 + $0x280] sm:$0xff] %v1350_v29  ;;  %v953_v37 = vrot.slane %v757_v34, 1  ;;  %v1177_v38 = vsel %vm1054_vm2, %v1175_v30, %v1176_v31  ;;  %v1178_v39 = vrot.slane %v757_v34, 2  ;;  %v662_v40 = vrot.slane %v303_v21, 5  ;;  %v310_v34 = vld [vmem:[#allocation4 + $0x1d0] sm:$0xff] }
  0xd5   : > { %1448 = vst [vmem:[#allocation3 + $0x288] sm:$0xff] %v1351_v33  ;;  %v522_v41 = vsel %vm444_vm0, %v520_v23, %v521_v36  ;;  %v726_v42 = vsel %vm444_vm0, %v373_v22, %v520_v23  ;;  %v374_v44 = vrot.slane %v304_v32, 1  ;;  %v523_v45 = vrot.slane %v304_v32, 7  ;;  %v309_v23 = vld [vmem:[#allocation4 + $0x1c8] sm:$0xff] }
  0xd6   : > { %v954_v46 = vsel %vm829_vm1, %v951_v27, %v953_v37  ;;  %v1179_v47 = vsel %vm1054_vm2, %v1176_v31, %v1178_v39  ;;  %v955_v48 = vrot.slane %v726_v42, 1  ;;  %v956_v49 = vrot.slane %v522_v41, 1 }
  0xd7   : > { %v1352_v50 = vpack.c.bf16 %v954_v46, %v952_v35  ;;  %v1353_v51 = vpack.c.bf16 %v1179_v47, %v1177_v38  ;;  %v1180_v52 = vrot.slane %v726_v42, 2  ;;  %v1181_v53 = vrot.slane %v522_v41, 2 }
  0xd8   : > { %v1354_v55 = vpack.c.bf16 %v522_v41, %v726_v42  ;;  %v758_v56 = vsel %vm444_vm0, %v521_v36, %v662_v40  ;;  %v957_v57 = vsel %vm829_vm1, %v955_v48, %v956_v49  ;;  %v524_v58 = vrot.slane %v305_v43, 7 }
  0xd9   : > { %1449 = vst [vmem:[#allocation3 + $0x290] sm:$0xff] %v1352_v50  ;;  %1450 = vst [vmem:[#allocation3 + $0x298] sm:$0xff] %v1353_v51  ;;  %v958_v59 = vrot.slane %v758_v56, 1  ;;  %v1182_v60 = vsel %vm1054_vm2, %v1180_v52, %v1181_v53  ;;  %v1183_v61 = vrot.slane %v758_v56, 2  ;;  %v663_v62 = vrot.slane %v305_v43, 5  ;;  %v312_v56 = vld [vmem:[#allocation4 + $0x1e0] sm:$0xff] }
  0xda   : > { %1451 = vst [vmem:[#allocation3 + $0x2a0] sm:$0xff] %v1354_v55  ;;  %v525_v63 = vsel %vm444_vm0, %v523_v45, %v524_v58  ;;  %v727_v0 = vsel %vm444_vm0, %v374_v44, %v523_v45  ;;  %v375_v2 = vrot.slane %v306_v54, 1  ;;  %v526_v3 = vrot.slane %v306_v54, 7  ;;  %v311_v45 = vld [vmem:[#allocation4 + $0x1d8] sm:$0xff] }
  0xdb   : > { %v959_v4 = vsel %vm829_vm1, %v956_v49, %v958_v59  ;;  %v1184_v5 = vsel %vm1054_vm2, %v1181_v53, %v1183_v61  ;;  %v960_v6 = vrot.slane %v727_v0, 1  ;;  %v961_v7 = vrot.slane %v525_v63, 1 }
  0xdc   : > { %v1355_v8 = vpack.c.bf16 %v959_v4, %v957_v57  ;;  %v1356_v9 = vpack.c.bf16 %v1184_v5, %v1182_v60  ;;  %v1185_v10 = vrot.slane %v727_v0, 2  ;;  %v1186_v11 = vrot.slane %v525_v63, 2 }
  0xdd   : > { %v1357_v13 = vpack.c.bf16 %v525_v63, %v727_v0  ;;  %v759_v14 = vsel %vm444_vm0, %v524_v58, %v663_v62  ;;  %v962_v15 = vsel %vm829_vm1, %v960_v6, %v961_v7  ;;  %v527_v16 = vrot.slane %v307_v1, 7 }
  0xde   : > { %1452 = vst [vmem:[#allocation3 + $0x2a8] sm:$0xff] %v1355_v8  ;;  %1453 = vst [vmem:[#allocation3 + $0x2b0] sm:$0xff] %v1356_v9  ;;  %v963_v17 = vrot.slane %v759_v14, 1  ;;  %v1187_v18 = vsel %vm1054_vm2, %v1185_v10, %v1186_v11  ;;  %v1188_v19 = vrot.slane %v759_v14, 2  ;;  %v664_v20 = vrot.slane %v307_v1, 5  ;;  %v314_v14 = vld [vmem:[#allocation4 + $0x1f0] sm:$0xff] }
  0xdf   : > { %1454 = vst [vmem:[#allocation3 + $0x2b8] sm:$0xff] %v1357_v13  ;;  %v528_v21 = vsel %vm444_vm0, %v526_v3, %v527_v16  ;;  %v728_v22 = vsel %vm444_vm0, %v375_v2, %v526_v3  ;;  %v376_v24 = vrot.slane %v308_v12, 1  ;;  %v529_v25 = vrot.slane %v308_v12, 7  ;;  %v313_v3 = vld [vmem:[#allocation4 + $0x1e8] sm:$0xff] }
  0xe0   : > { %v964_v26 = vsel %vm829_vm1, %v961_v7, %v963_v17  ;;  %v1189_v27 = vsel %vm1054_vm2, %v1186_v11, %v1188_v19  ;;  %v965_v28 = vrot.slane %v728_v22, 1  ;;  %v966_v29 = vrot.slane %v528_v21, 1 }
  0xe1   : > { %v1358_v30 = vpack.c.bf16 %v964_v26, %v962_v15  ;;  %v1359_v31 = vpack.c.bf16 %v1189_v27, %v1187_v18  ;;  %v1190_v32 = vrot.slane %v728_v22, 2  ;;  %v1191_v33 = vrot.slane %v528_v21, 2 }
  0xe2   : > { %v1360_v35 = vpack.c.bf16 %v528_v21, %v728_v22  ;;  %v760_v36 = vsel %vm444_vm0, %v527_v16, %v664_v20  ;;  %v967_v37 = vsel %vm829_vm1, %v965_v28, %v966_v29  ;;  %v530_v38 = vrot.slane %v309_v23, 7 }
  0xe3   : > { %1455 = vst [vmem:[#allocation3 + $0x2c0] sm:$0xff] %v1358_v30  ;;  %1456 = vst [vmem:[#allocation3 + $0x2c8] sm:$0xff] %v1359_v31  ;;  %v968_v39 = vrot.slane %v760_v36, 1  ;;  %v1192_v40 = vsel %vm1054_vm2, %v1190_v32, %v1191_v33  ;;  %v1193_v41 = vrot.slane %v760_v36, 2  ;;  %v665_v42 = vrot.slane %v309_v23, 5 }
  0xe4   : > { %1457 = vst [vmem:[#allocation3 + $0x2d0] sm:$0xff] %v1360_v35  ;;  %v531_v43 = vsel %vm444_vm0, %v529_v25, %v530_v38  ;;  %v729_v44 = vsel %vm444_vm0, %v376_v24, %v529_v25  ;;  %v377_v46 = vrot.slane %v310_v34, 1  ;;  %v532_v47 = vrot.slane %v310_v34, 7  ;;  %v315_v25 = vld [vmem:[#allocation4 + $0x1f8] sm:$0xff] }
  0xe5   : > { %v969_v48 = vsel %vm829_vm1, %v966_v29, %v968_v39  ;;  %v1194_v49 = vsel %vm1054_vm2, %v1191_v33, %v1193_v41  ;;  %v970_v50 = vrot.slane %v729_v44, 1  ;;  %v971_v51 = vrot.slane %v531_v43, 1 }
  0xe6   : > { %v1361_v52 = vpack.c.bf16 %v969_v48, %v967_v37  ;;  %v1362_v53 = vpack.c.bf16 %v1194_v49, %v1192_v40  ;;  %v1195_v54 = vrot.slane %v729_v44, 2  ;;  %v1196_v55 = vrot.slane %v531_v43, 2 }
  0xe7   : > { %v1363_v57 = vpack.c.bf16 %v531_v43, %v729_v44  ;;  %v761_v58 = vsel %vm444_vm0, %v530_v38, %v665_v42  ;;  %v972_v59 = vsel %vm829_vm1, %v970_v50, %v971_v51  ;;  %v533_v60 = vrot.slane %v311_v45, 7 }
  0xe8   : > { %1458 = vst [vmem:[#allocation3 + $0x2d8] sm:$0xff] %v1361_v52  ;;  %1459 = vst [vmem:[#allocation3 + $0x2e0] sm:$0xff] %v1362_v53  ;;  %v973_v61 = vrot.slane %v761_v58, 1  ;;  %v1197_v62 = vsel %vm1054_vm2, %v1195_v54, %v1196_v55  ;;  %v1198_v63 = vrot.slane %v761_v58, 2  ;;  %v666_v0 = vrot.slane %v311_v45, 5 }
  0xe9   : > { %1460 = vst [vmem:[#allocation3 + $0x2e8] sm:$0xff] %v1363_v57  ;;  %v534_v1 = vsel %vm444_vm0, %v532_v47, %v533_v60  ;;  %v730_v2 = vsel %vm444_vm0, %v377_v46, %v532_v47  ;;  %v378_v4 = vrot.slane %v312_v56, 1  ;;  %v535_v5 = vrot.slane %v312_v56, 7 }
  0xea   : > { %v974_v6 = vsel %vm829_vm1, %v971_v51, %v973_v61  ;;  %v1199_v7 = vsel %vm1054_vm2, %v1196_v55, %v1198_v63  ;;  %v975_v8 = vrot.slane %v730_v2, 1  ;;  %v976_v9 = vrot.slane %v534_v1, 1 }
  0xeb   : > { %v1364_v10 = vpack.c.bf16 %v974_v6, %v972_v59  ;;  %v1365_v11 = vpack.c.bf16 %v1199_v7, %v1197_v62  ;;  %v1200_v12 = vrot.slane %v730_v2, 2  ;;  %v1201_v13 = vrot.slane %v534_v1, 2 }
  0xec   : > { %v1366_v15 = vpack.c.bf16 %v534_v1, %v730_v2  ;;  %v762_v16 = vsel %vm444_vm0, %v533_v60, %v666_v0  ;;  %v977_v17 = vsel %vm829_vm1, %v975_v8, %v976_v9  ;;  %v536_v18 = vrot.slane %v313_v3, 7 }
  0xed   : > { %1461 = vst [vmem:[#allocation3 + $0x2f0] sm:$0xff] %v1364_v10  ;;  %1462 = vst [vmem:[#allocation3 + $0x2f8] sm:$0xff] %v1365_v11  ;;  %v978_v19 = vrot.slane %v762_v16, 1  ;;  %v1202_v20 = vsel %vm1054_vm2, %v1200_v12, %v1201_v13  ;;  %v1203_v21 = vrot.slane %v762_v16, 2  ;;  %v667_v22 = vrot.slane %v313_v3, 5 }
  0xee   : > { %1463 = vst [vmem:[#allocation3 + $0x300] sm:$0xff] %v1366_v15  ;;  %v537_v23 = vsel %vm444_vm0, %v535_v5, %v536_v18  ;;  %v731_v24 = vsel %vm444_vm0, %v378_v4, %v535_v5  ;;  %v379_v26 = vrot.slane %v314_v14, 1  ;;  %v538_v27 = vrot.slane %v314_v14, 7 }
  0xef   : > { %v979_v28 = vsel %vm829_vm1, %v976_v9, %v978_v19  ;;  %v1204_v29 = vsel %vm1054_vm2, %v1201_v13, %v1203_v21  ;;  %v980_v30 = vrot.slane %v731_v24, 1  ;;  %v981_v31 = vrot.slane %v537_v23, 1 }
  0xf0   : > { %v1367_v32 = vpack.c.bf16 %v979_v28, %v977_v17  ;;  %v1368_v33 = vpack.c.bf16 %v1204_v29, %v1202_v20  ;;  %v1205_v34 = vrot.slane %v731_v24, 2  ;;  %v1206_v35 = vrot.slane %v537_v23, 2 }
  0xf1   : > { %v1369_v36 = vpack.c.bf16 %v537_v23, %v731_v24  ;;  %v763_v37 = vsel %vm444_vm0, %v536_v18, %v667_v22  ;;  %v982_v38 = vsel %vm829_vm1, %v980_v30, %v981_v31  ;;  %v539_v39 = vrot.slane %v315_v25, 7 }
  0xf2   : > { %1464 = vst [vmem:[#allocation3 + $0x308] sm:$0xff] %v1367_v32  ;;  %1465 = vst [vmem:[#allocation3 + $0x310] sm:$0xff] %v1368_v33  ;;  %v983_v40 = vrot.slane %v763_v37, 1  ;;  %v1207_v41 = vsel %vm1054_vm2, %v1205_v34, %v1206_v35  ;;  %v1208_v42 = vrot.slane %v763_v37, 2  ;;  %v668_v43 = vrot.slane %v315_v25, 5 }
  0xf3   : > { %1466 = vst [vmem:[#allocation3 + $0x318] sm:$0xff] %v1369_v36  ;;  %1482 = vst [vmem:[#allocation3 + $0x348] sm:$0xff] %v1369_v36  ;;  %v540_v44 = vsel %vm444_vm0, %v538_v27, %v539_v39  ;;  %v732_v45 = vsel %vm444_vm0, %v379_v26, %v538_v27 }
  0xf4   : > { %v984_v46 = vsel %vm829_vm1, %v981_v31, %v983_v40  ;;  %v1209_v47 = vsel %vm1054_vm2, %v1206_v35, %v1208_v42  ;;  %v985_v48 = vrot.slane %v732_v45, 1  ;;  %v986_v49 = vrot.slane %v540_v44, 1 }
  0xf5   : > { %v1370_v50 = vpack.c.bf16 %v984_v46, %v982_v38  ;;  %v1371_v51 = vpack.c.bf16 %v1209_v47, %v1207_v41  ;;  %v1210_v52 = vrot.slane %v732_v45, 2  ;;  %v1211_v53 = vrot.slane %v540_v44, 2 }
  0xf6   : > { %v1372_v54 = vpack.c.bf16 %v540_v44, %v732_v45  ;;  %v764_v55 = vsel %vm444_vm0, %v539_v39, %v668_v43  ;;  %v987_v56 = vsel %vm829_vm1, %v985_v48, %v986_v49 }
  0xf7   : > { %1467 = vst [vmem:[#allocation3 + $0x320] sm:$0xff] %v1370_v50  ;;  %1483 = vst [vmem:[#allocation3 + $0x350] sm:$0xff] %v1370_v50  ;;  %v988_v57 = vrot.slane %v764_v55, 1  ;;  %v1212_v58 = vsel %vm1054_vm2, %v1210_v52, %v1211_v53  ;;  %v1213_v59 = vrot.slane %v764_v55, 2 }
  0xf8   : > { %1468 = vst [vmem:[#allocation3 + $0x328] sm:$0xff] %v1371_v51  ;;  %1484 = vst [vmem:[#allocation3 + $0x358] sm:$0xff] %v1371_v51 }
  0xf9   : > { %1469 = vst [vmem:[#allocation3 + $0x330] sm:$0xff] %v1372_v54  ;;  %v989_v60 = vsel %vm829_vm1, %v986_v49, %v988_v57  ;;  %v1214_v61 = vsel %vm1054_vm2, %v1211_v53, %v1213_v59 }
  0xfa   : > { %v1373_v62 = vpack.c.bf16 %v989_v60, %v987_v56  ;;  %v1374_v63 = vpack.c.bf16 %v1214_v61, %v1212_v58 }
  0xfc   : > { %1470 = vst [vmem:[#allocation3 + $0x338] sm:$0xff] %v1373_v62  ;;  %1471 = vst [vmem:[#allocation3 + $0x340] sm:$0xff] %v1374_v63 }
  0xfd PF: > { %p6796_p10 = scmp.le.s32.totalorder %s7670_s19, 0 }
  0xfe   : > { %v1489_v0 = vld [vmem:[#allocation2] sm:$0xff] (!%p6796_p10)  ;;  %v1490_v1 = vld [vmem:[#allocation2 + $0x8] sm:$0xff] (!%p6796_p10)  ;;  %vm1681_vm3 = vcmask (!%p6796_p10), 1040384   ;;  %vm2066_vm4 = vcmask (!%p6796_p10), 1046528   ;;  %vm2291_vm5 = vcmask (!%p6796_p10), 1045504   ;;  %v1491_v2 = vld [vmem:[#allocation2 + $0x10] sm:$0xff] (!%p6796_p10) }
  0xff   : > { %1488 = sbr.rel (%p6796_p10) target bundleno = 420 (0x1a4), region = 52  ;;  %v1585_v3 = vrot.slane (!%p6796_p10), %v1489_v0, 1  ;;  %v1682_v4 = vrot.slane (!%p6796_p10), %v1489_v0, 7  ;;  %v1683_v5 = vrot.slane (!%p6796_p10), %v1490_v1, 7  ;;  %v1874_v6 = vrot.slane (!%p6796_p10), %v1490_v1, 5  ;;  %v1492_v7 = vld [vmem:[#allocation2 + $0x18] sm:$0xff] (!%p6796_p10) }
 0x100   : > { %v1493_v8 = vld [vmem:[#allocation2 + $0x20] sm:$0xff] (!%p6796_p10)  ;;  %v1586_v9 = vrot.slane (!%p6796_p10), %v1491_v2, 1  ;;  %v1685_v10 = vrot.slane (!%p6796_p10), %v1491_v2, 7  ;;  %v1686_v11 = vrot.slane (!%p6796_p10), %v1492_v7, 7  ;;  %v1875_v12 = vrot.slane (!%p6796_p10), %v1492_v7, 5  ;;  %v1494_v29 = vld [vmem:[#allocation2 + $0x28] sm:$0xff] (!%p6796_p10) }
 0x101   : > { %v1684_v13 = vsel (!%p6796_p10), %vm1681_vm3, %v1682_v4, %v1683_v5  ;;  %v1938_v14 = vsel (!%p6796_p10), %vm1681_vm3, %v1585_v3, %v1682_v4  ;;  %v1970_v15 = vsel (!%p6796_p10), %vm1681_vm3, %v1683_v5, %v1874_v6  ;;  %v1587_v16 = vrot.slane (!%p6796_p10), %v1493_v8, 1  ;;  %v1495_v38 = vld [vmem:[#allocation2 + $0x30] sm:$0xff] (!%p6796_p10)  ;;  %v1496_v49 = vld [vmem:[#allocation2 + $0x38] sm:$0xff] (!%p6796_p10)  ;;  %v1497_v60 = vld [vmem:[#allocation2 + $0x40] sm:$0xff] (!%p6796_p10) }
 0x102   : > { %v2067_v17 = vrot.slane (!%p6796_p10), %v1938_v14, 1  ;;  %v2068_v18 = vrot.slane (!%p6796_p10), %v1684_v13, 1  ;;  %v2292_v19 = vrot.slane (!%p6796_p10), %v1938_v14, 2  ;;  %v2293_v20 = vrot.slane (!%p6796_p10), %v1684_v13, 2  ;;  %v1498_v7 = vld [vmem:[#allocation2 + $0x48] sm:$0xff] (!%p6796_p10) }
 0x103   : > { %v2516_v21 = vpack.c.bf16 (!%p6796_p10), %v1684_v13, %v1938_v14  ;;  %v2070_v22 = vrot.slane (!%p6796_p10), %v1970_v15, 1  ;;  %v2295_v23 = vrot.slane (!%p6796_p10), %v1970_v15, 2  ;;  %v1687_v24 = vsel (!%p6796_p10), %vm1681_vm3, %v1685_v10, %v1686_v11 }
 0x104   : > { %v2069_v25 = vsel (!%p6796_p10), %vm2066_vm4, %v2067_v17, %v2068_v18  ;;  %v2294_v26 = vsel (!%p6796_p10), %vm2291_vm5, %v2292_v19, %v2293_v20  ;;  %v1939_v27 = vsel (!%p6796_p10), %vm1681_vm3, %v1586_v9, %v1685_v10  ;;  %v2073_v28 = vrot.slane (!%p6796_p10), %v1687_v24, 1 }
 0x105   : > { %2613 = vst [vmem:[#allocation3 + $0x18] sm:$0xff] (!%p6796_p10), %v2516_v21  ;;  %v2071_v30 = vsel (!%p6796_p10), %vm2066_vm4, %v2068_v18, %v2070_v22  ;;  %v2296_v31 = vsel (!%p6796_p10), %vm2291_vm5, %v2293_v20, %v2295_v23  ;;  %v2072_v32 = vrot.slane (!%p6796_p10), %v1939_v27, 1  ;;  %v2297_v33 = vrot.slane (!%p6796_p10), %v1939_v27, 2  ;;  %v1499_v18 = vld [vmem:[#allocation2 + $0x50] sm:$0xff] (!%p6796_p10) }
 0x106   : > { %v2517_v34 = vpack.c.bf16 %v2071_v30, %v2069_v25  ;;  %v2518_v35 = vpack.c.bf16 %v2296_v31, %v2294_v26  ;;  %v2298_v36 = vrot.slane %v1687_v24, 2  ;;  %v2519_v37 = vpack.c.bf16 %v1687_v24, %v1939_v27 }
 0x107   : > { %v1971_v39 = vsel %vm1681_vm3, %v1686_v11, %v1875_v12  ;;  %v2074_v40 = vsel %vm2066_vm4, %v2072_v32, %v2073_v28  ;;  %v1688_v41 = vrot.slane %v1493_v8, 7  ;;  %v1689_v42 = vrot.slane %v1494_v29, 7 }
 0x108   : > { %2614 = vst [vmem:[#allocation3 + $0x20] sm:$0xff] %v2517_v34  ;;  %2615 = vst [vmem:[#allocation3 + $0x28] sm:$0xff] %v2518_v35  ;;  %v2075_v43 = vrot.slane %v1971_v39, 1  ;;  %v2299_v44 = vsel %vm2291_vm5, %v2297_v33, %v2298_v36  ;;  %v2300_v45 = vrot.slane %v1971_v39, 2  ;;  %v1876_v46 = vrot.slane %v1494_v29, 5  ;;  %v1500_v29 = vld [vmem:[#allocation2 + $0x58] sm:$0xff] }
 0x109   : > { %2616 = vst [vmem:[#allocation3 + $0x30] sm:$0xff] %v2519_v37  ;;  %2709 = vst [vmem:[#allocation3] sm:$0xff] %v2519_v37  ;;  %v1690_v47 = vsel %vm1681_vm3, %v1688_v41, %v1689_v42  ;;  %v1940_v48 = vsel %vm1681_vm3, %v1587_v16, %v1688_v41  ;;  %v1588_v50 = vrot.slane %v1495_v38, 1  ;;  %v1691_v51 = vrot.slane %v1495_v38, 7 }
 0x10a   : > { %v2076_v52 = vsel %vm2066_vm4, %v2073_v28, %v2075_v43  ;;  %v2301_v53 = vsel %vm2291_vm5, %v2298_v36, %v2300_v45  ;;  %v2077_v54 = vrot.slane %v1940_v48, 1  ;;  %v2078_v55 = vrot.slane %v1690_v47, 1 }
 0x10b   : > { %v2520_v56 = vpack.c.bf16 %v2076_v52, %v2074_v40  ;;  %v2521_v57 = vpack.c.bf16 %v2301_v53, %v2299_v44  ;;  %v2302_v58 = vrot.slane %v1940_v48, 2  ;;  %v2303_v59 = vrot.slane %v1690_v47, 2  ;;  %v1501_v40 = vld [vmem:[#allocation2 + $0x60] sm:$0xff] }
 0x10c   : > { %v2522_v61 = vpack.c.bf16 %v1690_v47, %v1940_v48  ;;  %v1972_v62 = vsel %vm1681_vm3, %v1689_v42, %v1876_v46  ;;  %v2079_v63 = vsel %vm2066_vm4, %v2077_v54, %v2078_v55  ;;  %v1692_v0 = vrot.slane %v1496_v49, 7 }
 0x10d   : > { %2617 = vst [vmem:[#allocation3 + $0x38] sm:$0xff] %v2520_v56  ;;  %2710 = vst [vmem:[#allocation3 + $0x8] sm:$0xff] %v2520_v56  ;;  %v2080_v1 = vrot.slane %v1972_v62, 1  ;;  %v2304_v2 = vsel %vm2291_vm5, %v2302_v58, %v2303_v59  ;;  %v2305_v3 = vrot.slane %v1972_v62, 2  ;;  %v1877_v4 = vrot.slane %v1496_v49, 5  ;;  %v1503_v62 = vld [vmem:[#allocation2 + $0x70] sm:$0xff] }
 0x10e   : > { %2618 = vst [vmem:[#allocation3 + $0x40] sm:$0xff] %v2521_v57  ;;  %2711 = vst [vmem:[#allocation3 + $0x10] sm:$0xff] %v2521_v57  ;;  %v1693_v5 = vsel %vm1681_vm3, %v1691_v51, %v1692_v0  ;;  %v1941_v6 = vsel %vm1681_vm3, %v1588_v50, %v1691_v51  ;;  %v1589_v8 = vrot.slane %v1497_v60, 1  ;;  %v1694_v9 = vrot.slane %v1497_v60, 7  ;;  %v1502_v51 = vld [vmem:[#allocation2 + $0x68] sm:$0xff] }
 0x10f   : > { %2619 = vst [vmem:[#allocation3 + $0x48] sm:$0xff] %v2522_v61  ;;  %v2081_v10 = vsel %vm2066_vm4, %v2078_v55, %v2080_v1  ;;  %v2306_v11 = vsel %vm2291_vm5, %v2303_v59, %v2305_v3  ;;  %v2082_v12 = vrot.slane %v1941_v6, 1  ;;  %v2083_v13 = vrot.slane %v1693_v5, 1 }
 0x110   : > { %v2523_v14 = vpack.c.bf16 %v2081_v10, %v2079_v63  ;;  %v2524_v15 = vpack.c.bf16 %v2306_v11, %v2304_v2  ;;  %v2307_v16 = vrot.slane %v1941_v6, 2  ;;  %v2308_v17 = vrot.slane %v1693_v5, 2 }
 0x111   : > { %v2525_v19 = vpack.c.bf16 %v1693_v5, %v1941_v6  ;;  %v1973_v20 = vsel %vm1681_vm3, %v1692_v0, %v1877_v4  ;;  %v2084_v21 = vsel %vm2066_vm4, %v2082_v12, %v2083_v13  ;;  %v1695_v22 = vrot.slane %v1498_v7, 7 }
 0x112   : > { %2620 = vst [vmem:[#allocation3 + $0x50] sm:$0xff] %v2523_v14  ;;  %2621 = vst [vmem:[#allocation3 + $0x58] sm:$0xff] %v2524_v15  ;;  %v2085_v23 = vrot.slane %v1973_v20, 1  ;;  %v2309_v24 = vsel %vm2291_vm5, %v2307_v16, %v2308_v17  ;;  %v2310_v25 = vrot.slane %v1973_v20, 2  ;;  %v1878_v26 = vrot.slane %v1498_v7, 5  ;;  %v1505_v20 = vld [vmem:[#allocation2 + $0x80] sm:$0xff] }
 0x113   : > { %2622 = vst [vmem:[#allocation3 + $0x60] sm:$0xff] %v2525_v19  ;;  %v1696_v27 = vsel %vm1681_vm3, %v1694_v9, %v1695_v22  ;;  %v1942_v28 = vsel %vm1681_vm3, %v1589_v8, %v1694_v9  ;;  %v1590_v30 = vrot.slane %v1499_v18, 1  ;;  %v1697_v31 = vrot.slane %v1499_v18, 7  ;;  %v1504_v9 = vld [vmem:[#allocation2 + $0x78] sm:$0xff] }
 0x114   : > { %v2086_v32 = vsel %vm2066_vm4, %v2083_v13, %v2085_v23  ;;  %v2311_v33 = vsel %vm2291_vm5, %v2308_v17, %v2310_v25  ;;  %v2087_v34 = vrot.slane %v1942_v28, 1  ;;  %v2088_v35 = vrot.slane %v1696_v27, 1 }
 0x115   : > { %v2526_v36 = vpack.c.bf16 %v2086_v32, %v2084_v21  ;;  %v2527_v37 = vpack.c.bf16 %v2311_v33, %v2309_v24  ;;  %v2312_v38 = vrot.slane %v1942_v28, 2  ;;  %v2313_v39 = vrot.slane %v1696_v27, 2 }
 0x116   : > { %v2528_v41 = vpack.c.bf16 %v1696_v27, %v1942_v28  ;;  %v1974_v42 = vsel %vm1681_vm3, %v1695_v22, %v1878_v26  ;;  %v2089_v43 = vsel %vm2066_vm4, %v2087_v34, %v2088_v35  ;;  %v1698_v44 = vrot.slane %v1500_v29, 7 }
 0x117   : > { %2623 = vst [vmem:[#allocation3 + $0x68] sm:$0xff] %v2526_v36  ;;  %2624 = vst [vmem:[#allocation3 + $0x70] sm:$0xff] %v2527_v37  ;;  %v2090_v45 = vrot.slane %v1974_v42, 1  ;;  %v2314_v46 = vsel %vm2291_vm5, %v2312_v38, %v2313_v39  ;;  %v2315_v47 = vrot.slane %v1974_v42, 2  ;;  %v1879_v48 = vrot.slane %v1500_v29, 5  ;;  %v1507_v42 = vld [vmem:[#allocation2 + $0x90] sm:$0xff] }
 0x118   : > { %2625 = vst [vmem:[#allocation3 + $0x78] sm:$0xff] %v2528_v41  ;;  %v1699_v49 = vsel %vm1681_vm3, %v1697_v31, %v1698_v44  ;;  %v1943_v50 = vsel %vm1681_vm3, %v1590_v30, %v1697_v31  ;;  %v1591_v52 = vrot.slane %v1501_v40, 1  ;;  %v1700_v53 = vrot.slane %v1501_v40, 7  ;;  %v1506_v31 = vld [vmem:[#allocation2 + $0x88] sm:$0xff] }
 0x119   : > { %v2091_v54 = vsel %vm2066_vm4, %v2088_v35, %v2090_v45  ;;  %v2316_v55 = vsel %vm2291_vm5, %v2313_v39, %v2315_v47  ;;  %v2092_v56 = vrot.slane %v1943_v50, 1  ;;  %v2093_v57 = vrot.slane %v1699_v49, 1 }
 0x11a   : > { %v2529_v58 = vpack.c.bf16 %v2091_v54, %v2089_v43  ;;  %v2530_v59 = vpack.c.bf16 %v2316_v55, %v2314_v46  ;;  %v2317_v60 = vrot.slane %v1943_v50, 2  ;;  %v2318_v61 = vrot.slane %v1699_v49, 2 }
 0x11b   : > { %v2531_v63 = vpack.c.bf16 %v1699_v49, %v1943_v50  ;;  %v1975_v0 = vsel %vm1681_vm3, %v1698_v44, %v1879_v48  ;;  %v2094_v1 = vsel %vm2066_vm4, %v2092_v56, %v2093_v57  ;;  %v1701_v2 = vrot.slane %v1502_v51, 7 }
 0x11c   : > { %2626 = vst [vmem:[#allocation3 + $0x80] sm:$0xff] %v2529_v58  ;;  %2627 = vst [vmem:[#allocation3 + $0x88] sm:$0xff] %v2530_v59  ;;  %v2095_v3 = vrot.slane %v1975_v0, 1  ;;  %v2319_v4 = vsel %vm2291_vm5, %v2317_v60, %v2318_v61  ;;  %v2320_v5 = vrot.slane %v1975_v0, 2  ;;  %v1880_v6 = vrot.slane %v1502_v51, 5  ;;  %v1509_v0 = vld [vmem:[#allocation2 + $0xa0] sm:$0xff] }
 0x11d   : > { %2628 = vst [vmem:[#allocation3 + $0x90] sm:$0xff] %v2531_v63  ;;  %v1702_v7 = vsel %vm1681_vm3, %v1700_v53, %v1701_v2  ;;  %v1944_v8 = vsel %vm1681_vm3, %v1591_v52, %v1700_v53  ;;  %v1592_v10 = vrot.slane %v1503_v62, 1  ;;  %v1703_v11 = vrot.slane %v1503_v62, 7  ;;  %v1508_v53 = vld [vmem:[#allocation2 + $0x98] sm:$0xff] }
 0x11e   : > { %v2096_v12 = vsel %vm2066_vm4, %v2093_v57, %v2095_v3  ;;  %v2321_v13 = vsel %vm2291_vm5, %v2318_v61, %v2320_v5  ;;  %v2097_v14 = vrot.slane %v1944_v8, 1  ;;  %v2098_v15 = vrot.slane %v1702_v7, 1 }
 0x11f   : > { %v2532_v16 = vpack.c.bf16 %v2096_v12, %v2094_v1  ;;  %v2533_v17 = vpack.c.bf16 %v2321_v13, %v2319_v4  ;;  %v2322_v18 = vrot.slane %v1944_v8, 2  ;;  %v2323_v19 = vrot.slane %v1702_v7, 2 }
 0x120   : > { %v2534_v21 = vpack.c.bf16 %v1702_v7, %v1944_v8  ;;  %v1976_v22 = vsel %vm1681_vm3, %v1701_v2, %v1880_v6  ;;  %v2099_v23 = vsel %vm2066_vm4, %v2097_v14, %v2098_v15  ;;  %v1704_v24 = vrot.slane %v1504_v9, 7 }
 0x121   : > { %2629 = vst [vmem:[#allocation3 + $0x98] sm:$0xff] %v2532_v16  ;;  %2630 = vst [vmem:[#allocation3 + $0xa0] sm:$0xff] %v2533_v17  ;;  %v2100_v25 = vrot.slane %v1976_v22, 1  ;;  %v2324_v26 = vsel %vm2291_vm5, %v2322_v18, %v2323_v19  ;;  %v2325_v27 = vrot.slane %v1976_v22, 2  ;;  %v1881_v28 = vrot.slane %v1504_v9, 5  ;;  %v1511_v22 = vld [vmem:[#allocation2 + $0xb0] sm:$0xff] }
 0x122   : > { %2631 = vst [vmem:[#allocation3 + $0xa8] sm:$0xff] %v2534_v21  ;;  %v1705_v29 = vsel %vm1681_vm3, %v1703_v11, %v1704_v24  ;;  %v1945_v30 = vsel %vm1681_vm3, %v1592_v10, %v1703_v11  ;;  %v1593_v32 = vrot.slane %v1505_v20, 1  ;;  %v1706_v33 = vrot.slane %v1505_v20, 7  ;;  %v1510_v11 = vld [vmem:[#allocation2 + $0xa8] sm:$0xff] }
 0x123   : > { %v2101_v34 = vsel %vm2066_vm4, %v2098_v15, %v2100_v25  ;;  %v2326_v35 = vsel %vm2291_vm5, %v2323_v19, %v2325_v27  ;;  %v2102_v36 = vrot.slane %v1945_v30, 1  ;;  %v2103_v37 = vrot.slane %v1705_v29, 1 }
 0x124   : > { %v2535_v38 = vpack.c.bf16 %v2101_v34, %v2099_v23  ;;  %v2536_v39 = vpack.c.bf16 %v2326_v35, %v2324_v26  ;;  %v2327_v40 = vrot.slane %v1945_v30, 2  ;;  %v2328_v41 = vrot.slane %v1705_v29, 2 }
 0x125   : > { %v2537_v43 = vpack.c.bf16 %v1705_v29, %v1945_v30  ;;  %v1977_v44 = vsel %vm1681_vm3, %v1704_v24, %v1881_v28  ;;  %v2104_v45 = vsel %vm2066_vm4, %v2102_v36, %v2103_v37  ;;  %v1707_v46 = vrot.slane %v1506_v31, 7 }
 0x126   : > { %2632 = vst [vmem:[#allocation3 + $0xb0] sm:$0xff] %v2535_v38  ;;  %2633 = vst [vmem:[#allocation3 + $0xb8] sm:$0xff] %v2536_v39  ;;  %v2105_v47 = vrot.slane %v1977_v44, 1  ;;  %v2329_v48 = vsel %vm2291_vm5, %v2327_v40, %v2328_v41  ;;  %v2330_v49 = vrot.slane %v1977_v44, 2  ;;  %v1882_v50 = vrot.slane %v1506_v31, 5  ;;  %v1513_v44 = vld [vmem:[#allocation2 + $0xc0] sm:$0xff] }
 0x127   : > { %2634 = vst [vmem:[#allocation3 + $0xc0] sm:$0xff] %v2537_v43  ;;  %v1708_v51 = vsel %vm1681_vm3, %v1706_v33, %v1707_v46  ;;  %v1946_v52 = vsel %vm1681_vm3, %v1593_v32, %v1706_v33  ;;  %v1594_v54 = vrot.slane %v1507_v42, 1  ;;  %v1709_v55 = vrot.slane %v1507_v42, 7  ;;  %v1512_v33 = vld [vmem:[#allocation2 + $0xb8] sm:$0xff] }
 0x128   : > { %v2106_v56 = vsel %vm2066_vm4, %v2103_v37, %v2105_v47  ;;  %v2331_v57 = vsel %vm2291_vm5, %v2328_v41, %v2330_v49  ;;  %v2107_v58 = vrot.slane %v1946_v52, 1  ;;  %v2108_v59 = vrot.slane %v1708_v51, 1 }
 0x129   : > { %v2538_v60 = vpack.c.bf16 %v2106_v56, %v2104_v45  ;;  %v2539_v61 = vpack.c.bf16 %v2331_v57, %v2329_v48  ;;  %v2332_v62 = vrot.slane %v1946_v52, 2  ;;  %v2333_v63 = vrot.slane %v1708_v51, 2 }
 0x12a   : > { %v2540_v1 = vpack.c.bf16 %v1708_v51, %v1946_v52  ;;  %v1978_v2 = vsel %vm1681_vm3, %v1707_v46, %v1882_v50  ;;  %v2109_v3 = vsel %vm2066_vm4, %v2107_v58, %v2108_v59  ;;  %v1710_v4 = vrot.slane %v1508_v53, 7 }
 0x12b   : > { %2635 = vst [vmem:[#allocation3 + $0xc8] sm:$0xff] %v2538_v60  ;;  %2636 = vst [vmem:[#allocation3 + $0xd0] sm:$0xff] %v2539_v61  ;;  %v2110_v5 = vrot.slane %v1978_v2, 1  ;;  %v2334_v6 = vsel %vm2291_vm5, %v2332_v62, %v2333_v63  ;;  %v2335_v7 = vrot.slane %v1978_v2, 2  ;;  %v1883_v8 = vrot.slane %v1508_v53, 5  ;;  %v1515_v2 = vld [vmem:[#allocation2 + $0xd0] sm:$0xff] }
 0x12c   : > { %2637 = vst [vmem:[#allocation3 + $0xd8] sm:$0xff] %v2540_v1  ;;  %v1711_v9 = vsel %vm1681_vm3, %v1709_v55, %v1710_v4  ;;  %v1947_v10 = vsel %vm1681_vm3, %v1594_v54, %v1709_v55  ;;  %v1595_v12 = vrot.slane %v1509_v0, 1  ;;  %v1712_v13 = vrot.slane %v1509_v0, 7  ;;  %v1514_v55 = vld [vmem:[#allocation2 + $0xc8] sm:$0xff] }
 0x12d   : > { %v2111_v14 = vsel %vm2066_vm4, %v2108_v59, %v2110_v5  ;;  %v2336_v15 = vsel %vm2291_vm5, %v2333_v63, %v2335_v7  ;;  %v2112_v16 = vrot.slane %v1947_v10, 1  ;;  %v2113_v17 = vrot.slane %v1711_v9, 1 }
 0x12e   : > { %v2541_v18 = vpack.c.bf16 %v2111_v14, %v2109_v3  ;;  %v2542_v19 = vpack.c.bf16 %v2336_v15, %v2334_v6  ;;  %v2337_v20 = vrot.slane %v1947_v10, 2  ;;  %v2338_v21 = vrot.slane %v1711_v9, 2 }
 0x12f   : > { %v2543_v23 = vpack.c.bf16 %v1711_v9, %v1947_v10  ;;  %v1979_v24 = vsel %vm1681_vm3, %v1710_v4, %v1883_v8  ;;  %v2114_v25 = vsel %vm2066_vm4, %v2112_v16, %v2113_v17  ;;  %v1713_v26 = vrot.slane %v1510_v11, 7 }
 0x130   : > { %2638 = vst [vmem:[#allocation3 + $0xe0] sm:$0xff] %v2541_v18  ;;  %2639 = vst [vmem:[#allocation3 + $0xe8] sm:$0xff] %v2542_v19  ;;  %v2115_v27 = vrot.slane %v1979_v24, 1  ;;  %v2339_v28 = vsel %vm2291_vm5, %v2337_v20, %v2338_v21  ;;  %v2340_v29 = vrot.slane %v1979_v24, 2  ;;  %v1884_v30 = vrot.slane %v1510_v11, 5  ;;  %v1517_v24 = vld [vmem:[#allocation2 + $0xe0] sm:$0xff] }
 0x131   : > { %2640 = vst [vmem:[#allocation3 + $0xf0] sm:$0xff] %v2543_v23  ;;  %v1714_v31 = vsel %vm1681_vm3, %v1712_v13, %v1713_v26  ;;  %v1948_v32 = vsel %vm1681_vm3, %v1595_v12, %v1712_v13  ;;  %v1596_v34 = vrot.slane %v1511_v22, 1  ;;  %v1715_v35 = vrot.slane %v1511_v22, 7  ;;  %v1516_v13 = vld [vmem:[#allocation2 + $0xd8] sm:$0xff] }
 0x132   : > { %v2116_v36 = vsel %vm2066_vm4, %v2113_v17, %v2115_v27  ;;  %v2341_v37 = vsel %vm2291_vm5, %v2338_v21, %v2340_v29  ;;  %v2117_v38 = vrot.slane %v1948_v32, 1  ;;  %v2118_v39 = vrot.slane %v1714_v31, 1 }
 0x133   : > { %v2544_v40 = vpack.c.bf16 %v2116_v36, %v2114_v25  ;;  %v2545_v41 = vpack.c.bf16 %v2341_v37, %v2339_v28  ;;  %v2342_v42 = vrot.slane %v1948_v32, 2  ;;  %v2343_v43 = vrot.slane %v1714_v31, 2 }
 0x134   : > { %v2546_v45 = vpack.c.bf16 %v1714_v31, %v1948_v32  ;;  %v1980_v46 = vsel %vm1681_vm3, %v1713_v26, %v1884_v30  ;;  %v2119_v47 = vsel %vm2066_vm4, %v2117_v38, %v2118_v39  ;;  %v1716_v48 = vrot.slane %v1512_v33, 7 }
 0x135   : > { %2641 = vst [vmem:[#allocation3 + $0xf8] sm:$0xff] %v2544_v40  ;;  %2642 = vst [vmem:[#allocation3 + $0x100] sm:$0xff] %v2545_v41  ;;  %v2120_v49 = vrot.slane %v1980_v46, 1  ;;  %v2344_v50 = vsel %vm2291_vm5, %v2342_v42, %v2343_v43  ;;  %v2345_v51 = vrot.slane %v1980_v46, 2  ;;  %v1885_v52 = vrot.slane %v1512_v33, 5  ;;  %v1519_v46 = vld [vmem:[#allocation2 + $0xf0] sm:$0xff] }
 0x136   : > { %2643 = vst [vmem:[#allocation3 + $0x108] sm:$0xff] %v2546_v45  ;;  %v1717_v53 = vsel %vm1681_vm3, %v1715_v35, %v1716_v48  ;;  %v1949_v54 = vsel %vm1681_vm3, %v1596_v34, %v1715_v35  ;;  %v1597_v56 = vrot.slane %v1513_v44, 1  ;;  %v1718_v57 = vrot.slane %v1513_v44, 7  ;;  %v1518_v35 = vld [vmem:[#allocation2 + $0xe8] sm:$0xff] }
 0x137   : > { %v2121_v58 = vsel %vm2066_vm4, %v2118_v39, %v2120_v49  ;;  %v2346_v59 = vsel %vm2291_vm5, %v2343_v43, %v2345_v51  ;;  %v2122_v60 = vrot.slane %v1949_v54, 1  ;;  %v2123_v61 = vrot.slane %v1717_v53, 1 }
 0x138   : > { %v2547_v62 = vpack.c.bf16 %v2121_v58, %v2119_v47  ;;  %v2548_v63 = vpack.c.bf16 %v2346_v59, %v2344_v50  ;;  %v2347_v0 = vrot.slane %v1949_v54, 2  ;;  %v2348_v1 = vrot.slane %v1717_v53, 2 }
 0x139   : > { %v2549_v3 = vpack.c.bf16 %v1717_v53, %v1949_v54  ;;  %v1981_v4 = vsel %vm1681_vm3, %v1716_v48, %v1885_v52  ;;  %v2124_v5 = vsel %vm2066_vm4, %v2122_v60, %v2123_v61  ;;  %v1719_v6 = vrot.slane %v1514_v55, 7 }
 0x13a   : > { %2644 = vst [vmem:[#allocation3 + $0x110] sm:$0xff] %v2547_v62  ;;  %2645 = vst [vmem:[#allocation3 + $0x118] sm:$0xff] %v2548_v63  ;;  %v2125_v7 = vrot.slane %v1981_v4, 1  ;;  %v2349_v8 = vsel %vm2291_vm5, %v2347_v0, %v2348_v1  ;;  %v2350_v9 = vrot.slane %v1981_v4, 2  ;;  %v1886_v10 = vrot.slane %v1514_v55, 5  ;;  %v1521_v4 = vld [vmem:[#allocation2 + $0x100] sm:$0xff] }
 0x13b   : > { %2646 = vst [vmem:[#allocation3 + $0x120] sm:$0xff] %v2549_v3  ;;  %v1720_v11 = vsel %vm1681_vm3, %v1718_v57, %v1719_v6  ;;  %v1950_v12 = vsel %vm1681_vm3, %v1597_v56, %v1718_v57  ;;  %v1598_v14 = vrot.slane %v1515_v2, 1  ;;  %v1721_v15 = vrot.slane %v1515_v2, 7  ;;  %v1520_v57 = vld [vmem:[#allocation2 + $0xf8] sm:$0xff] }
 0x13c   : > { %v2126_v16 = vsel %vm2066_vm4, %v2123_v61, %v2125_v7  ;;  %v2351_v17 = vsel %vm2291_vm5, %v2348_v1, %v2350_v9  ;;  %v2127_v18 = vrot.slane %v1950_v12, 1  ;;  %v2128_v19 = vrot.slane %v1720_v11, 1 }
 0x13d   : > { %v2550_v20 = vpack.c.bf16 %v2126_v16, %v2124_v5  ;;  %v2551_v21 = vpack.c.bf16 %v2351_v17, %v2349_v8  ;;  %v2352_v22 = vrot.slane %v1950_v12, 2  ;;  %v2353_v23 = vrot.slane %v1720_v11, 2 }
 0x13e   : > { %v2552_v25 = vpack.c.bf16 %v1720_v11, %v1950_v12  ;;  %v1982_v26 = vsel %vm1681_vm3, %v1719_v6, %v1886_v10  ;;  %v2129_v27 = vsel %vm2066_vm4, %v2127_v18, %v2128_v19  ;;  %v1722_v28 = vrot.slane %v1516_v13, 7 }
 0x13f   : > { %2647 = vst [vmem:[#allocation3 + $0x128] sm:$0xff] %v2550_v20  ;;  %2648 = vst [vmem:[#allocation3 + $0x130] sm:$0xff] %v2551_v21  ;;  %v2130_v29 = vrot.slane %v1982_v26, 1  ;;  %v2354_v30 = vsel %vm2291_vm5, %v2352_v22, %v2353_v23  ;;  %v2355_v31 = vrot.slane %v1982_v26, 2  ;;  %v1887_v32 = vrot.slane %v1516_v13, 5  ;;  %v1523_v26 = vld [vmem:[#allocation2 + $0x110] sm:$0xff] }
 0x140   : > { %2649 = vst [vmem:[#allocation3 + $0x138] sm:$0xff] %v2552_v25  ;;  %v1723_v33 = vsel %vm1681_vm3, %v1721_v15, %v1722_v28  ;;  %v1951_v34 = vsel %vm1681_vm3, %v1598_v14, %v1721_v15  ;;  %v1599_v36 = vrot.slane %v1517_v24, 1  ;;  %v1724_v37 = vrot.slane %v1517_v24, 7  ;;  %v1522_v15 = vld [vmem:[#allocation2 + $0x108] sm:$0xff] }
 0x141   : > { %v2131_v38 = vsel %vm2066_vm4, %v2128_v19, %v2130_v29  ;;  %v2356_v39 = vsel %vm2291_vm5, %v2353_v23, %v2355_v31  ;;  %v2132_v40 = vrot.slane %v1951_v34, 1  ;;  %v2133_v41 = vrot.slane %v1723_v33, 1 }
 0x142   : > { %v2553_v42 = vpack.c.bf16 %v2131_v38, %v2129_v27  ;;  %v2554_v43 = vpack.c.bf16 %v2356_v39, %v2354_v30  ;;  %v2357_v44 = vrot.slane %v1951_v34, 2  ;;  %v2358_v45 = vrot.slane %v1723_v33, 2 }
 0x143   : > { %v2555_v47 = vpack.c.bf16 %v1723_v33, %v1951_v34  ;;  %v1983_v48 = vsel %vm1681_vm3, %v1722_v28, %v1887_v32  ;;  %v2134_v49 = vsel %vm2066_vm4, %v2132_v40, %v2133_v41  ;;  %v1725_v50 = vrot.slane %v1518_v35, 7 }
 0x144   : > { %2650 = vst [vmem:[#allocation3 + $0x140] sm:$0xff] %v2553_v42  ;;  %2651 = vst [vmem:[#allocation3 + $0x148] sm:$0xff] %v2554_v43  ;;  %v2135_v51 = vrot.slane %v1983_v48, 1  ;;  %v2359_v52 = vsel %vm2291_vm5, %v2357_v44, %v2358_v45  ;;  %v2360_v53 = vrot.slane %v1983_v48, 2  ;;  %v1888_v54 = vrot.slane %v1518_v35, 5  ;;  %v1525_v48 = vld [vmem:[#allocation2 + $0x120] sm:$0xff] }
 0x145   : > { %2652 = vst [vmem:[#allocation3 + $0x150] sm:$0xff] %v2555_v47  ;;  %v1726_v55 = vsel %vm1681_vm3, %v1724_v37, %v1725_v50  ;;  %v1952_v56 = vsel %vm1681_vm3, %v1599_v36, %v1724_v37  ;;  %v1600_v58 = vrot.slane %v1519_v46, 1  ;;  %v1727_v59 = vrot.slane %v1519_v46, 7  ;;  %v1524_v37 = vld [vmem:[#allocation2 + $0x118] sm:$0xff] }
 0x146   : > { %v2136_v60 = vsel %vm2066_vm4, %v2133_v41, %v2135_v51  ;;  %v2361_v61 = vsel %vm2291_vm5, %v2358_v45, %v2360_v53  ;;  %v2137_v62 = vrot.slane %v1952_v56, 1  ;;  %v2138_v63 = vrot.slane %v1726_v55, 1 }
 0x147   : > { %v2556_v0 = vpack.c.bf16 %v2136_v60, %v2134_v49  ;;  %v2557_v1 = vpack.c.bf16 %v2361_v61, %v2359_v52  ;;  %v2362_v2 = vrot.slane %v1952_v56, 2  ;;  %v2363_v3 = vrot.slane %v1726_v55, 2 }
 0x148   : > { %v2558_v5 = vpack.c.bf16 %v1726_v55, %v1952_v56  ;;  %v1984_v6 = vsel %vm1681_vm3, %v1725_v50, %v1888_v54  ;;  %v2139_v7 = vsel %vm2066_vm4, %v2137_v62, %v2138_v63  ;;  %v1728_v8 = vrot.slane %v1520_v57, 7 }
 0x149   : > { %2653 = vst [vmem:[#allocation3 + $0x158] sm:$0xff] %v2556_v0  ;;  %2654 = vst [vmem:[#allocation3 + $0x160] sm:$0xff] %v2557_v1  ;;  %v2140_v9 = vrot.slane %v1984_v6, 1  ;;  %v2364_v10 = vsel %vm2291_vm5, %v2362_v2, %v2363_v3  ;;  %v2365_v11 = vrot.slane %v1984_v6, 2  ;;  %v1889_v12 = vrot.slane %v1520_v57, 5  ;;  %v1527_v6 = vld [vmem:[#allocation2 + $0x130] sm:$0xff] }
 0x14a   : > { %2655 = vst [vmem:[#allocation3 + $0x168] sm:$0xff] %v2558_v5  ;;  %2716 = vst [vmem:[#allocation3 + $0x198] sm:$0xff] %v2558_v5  ;;  %v1729_v13 = vsel %vm1681_vm3, %v1727_v59, %v1728_v8  ;;  %v1953_v14 = vsel %vm1681_vm3, %v1600_v58, %v1727_v59  ;;  %v1601_v16 = vrot.slane %v1521_v4, 1  ;;  %v1730_v17 = vrot.slane %v1521_v4, 7  ;;  %v1526_v59 = vld [vmem:[#allocation2 + $0x128] sm:$0xff] }
 0x14b   : > { %v2141_v18 = vsel %vm2066_vm4, %v2138_v63, %v2140_v9  ;;  %v2366_v19 = vsel %vm2291_vm5, %v2363_v3, %v2365_v11  ;;  %v2142_v20 = vrot.slane %v1953_v14, 1  ;;  %v2143_v21 = vrot.slane %v1729_v13, 1 }
 0x14c   : > { %v2559_v22 = vpack.c.bf16 %v2141_v18, %v2139_v7  ;;  %v2560_v23 = vpack.c.bf16 %v2366_v19, %v2364_v10  ;;  %v2367_v24 = vrot.slane %v1953_v14, 2  ;;  %v2368_v25 = vrot.slane %v1729_v13, 2 }
 0x14d   : > { %v2561_v27 = vpack.c.bf16 %v1729_v13, %v1953_v14  ;;  %v1985_v28 = vsel %vm1681_vm3, %v1728_v8, %v1889_v12  ;;  %v2144_v29 = vsel %vm2066_vm4, %v2142_v20, %v2143_v21  ;;  %v1731_v30 = vrot.slane %v1522_v15, 7 }
 0x14e   : > { %2656 = vst [vmem:[#allocation3 + $0x170] sm:$0xff] %v2559_v22  ;;  %2717 = vst [vmem:[#allocation3 + $0x1a0] sm:$0xff] %v2559_v22  ;;  %v2145_v31 = vrot.slane %v1985_v28, 1  ;;  %v2369_v32 = vsel %vm2291_vm5, %v2367_v24, %v2368_v25  ;;  %v2370_v33 = vrot.slane %v1985_v28, 2  ;;  %v1890_v34 = vrot.slane %v1522_v15, 5  ;;  %v1529_v28 = vld [vmem:[#allocation2 + $0x140] sm:$0xff] }
 0x14f   : > { %2657 = vst [vmem:[#allocation3 + $0x178] sm:$0xff] %v2560_v23  ;;  %2718 = vst [vmem:[#allocation3 + $0x1a8] sm:$0xff] %v2560_v23  ;;  %v1732_v35 = vsel %vm1681_vm3, %v1730_v17, %v1731_v30  ;;  %v1954_v36 = vsel %vm1681_vm3, %v1601_v16, %v1730_v17  ;;  %v1602_v38 = vrot.slane %v1523_v26, 1  ;;  %v1733_v39 = vrot.slane %v1523_v26, 7  ;;  %v1528_v17 = vld [vmem:[#allocation2 + $0x138] sm:$0xff] }
 0x150   : > { %2658 = vst [vmem:[#allocation3 + $0x180] sm:$0xff] %v2561_v27  ;;  %v2146_v40 = vsel %vm2066_vm4, %v2143_v21, %v2145_v31  ;;  %v2371_v41 = vsel %vm2291_vm5, %v2368_v25, %v2370_v33  ;;  %v2147_v42 = vrot.slane %v1954_v36, 1  ;;  %v2148_v43 = vrot.slane %v1732_v35, 1 }
 0x151   : > { %v2562_v44 = vpack.c.bf16 %v2146_v40, %v2144_v29  ;;  %v2563_v45 = vpack.c.bf16 %v2371_v41, %v2369_v32  ;;  %v2372_v46 = vrot.slane %v1954_v36, 2  ;;  %v2373_v47 = vrot.slane %v1732_v35, 2 }
 0x152   : > { %v2564_v49 = vpack.c.bf16 %v1732_v35, %v1954_v36  ;;  %v1986_v50 = vsel %vm1681_vm3, %v1731_v30, %v1890_v34  ;;  %v2149_v51 = vsel %vm2066_vm4, %v2147_v42, %v2148_v43  ;;  %v1734_v52 = vrot.slane %v1524_v37, 7 }
 0x153   : > { %2659 = vst [vmem:[#allocation3 + $0x188] sm:$0xff] %v2562_v44  ;;  %2660 = vst [vmem:[#allocation3 + $0x190] sm:$0xff] %v2563_v45  ;;  %v2150_v53 = vrot.slane %v1986_v50, 1  ;;  %v2374_v54 = vsel %vm2291_vm5, %v2372_v46, %v2373_v47  ;;  %v2375_v55 = vrot.slane %v1986_v50, 2  ;;  %v1891_v56 = vrot.slane %v1524_v37, 5  ;;  %v1531_v50 = vld [vmem:[#allocation2 + $0x150] sm:$0xff] }
 0x154   : > { %2661 = vst [vmem:[#allocation3 + $0x1c8] sm:$0xff] %v2564_v49  ;;  %v1735_v57 = vsel %vm1681_vm3, %v1733_v39, %v1734_v52  ;;  %v1955_v58 = vsel %vm1681_vm3, %v1602_v38, %v1733_v39  ;;  %v1603_v60 = vrot.slane %v1525_v48, 1  ;;  %v1736_v61 = vrot.slane %v1525_v48, 7  ;;  %v1530_v39 = vld [vmem:[#allocation2 + $0x148] sm:$0xff] }
 0x155   : > { %v2151_v62 = vsel %vm2066_vm4, %v2148_v43, %v2150_v53  ;;  %v2376_v63 = vsel %vm2291_vm5, %v2373_v47, %v2375_v55  ;;  %v2152_v0 = vrot.slane %v1955_v58, 1  ;;  %v2153_v1 = vrot.slane %v1735_v57, 1 }
 0x156   : > { %v2565_v2 = vpack.c.bf16 %v2151_v62, %v2149_v51  ;;  %v2566_v3 = vpack.c.bf16 %v2376_v63, %v2374_v54  ;;  %v2377_v4 = vrot.slane %v1955_v58, 2  ;;  %v2378_v5 = vrot.slane %v1735_v57, 2 }
 0x157   : > { %v2567_v7 = vpack.c.bf16 %v1735_v57, %v1955_v58  ;;  %v1987_v8 = vsel %vm1681_vm3, %v1734_v52, %v1891_v56  ;;  %v2154_v9 = vsel %vm2066_vm4, %v2152_v0, %v2153_v1  ;;  %v1737_v10 = vrot.slane %v1526_v59, 7 }
 0x158   : > { %2662 = vst [vmem:[#allocation3 + $0x1d0] sm:$0xff] %v2565_v2  ;;  %2663 = vst [vmem:[#allocation3 + $0x1d8] sm:$0xff] %v2566_v3  ;;  %v2155_v11 = vrot.slane %v1987_v8, 1  ;;  %v2379_v12 = vsel %vm2291_vm5, %v2377_v4, %v2378_v5  ;;  %v2380_v13 = vrot.slane %v1987_v8, 2  ;;  %v1892_v14 = vrot.slane %v1526_v59, 5  ;;  %v1533_v8 = vld [vmem:[#allocation2 + $0x160] sm:$0xff] }
 0x159   : > { %2664 = vst [vmem:[#allocation3 + $0x1e0] sm:$0xff] %v2567_v7  ;;  %2712 = vst [vmem:[#allocation3 + $0x1b0] sm:$0xff] %v2567_v7  ;;  %v1738_v15 = vsel %vm1681_vm3, %v1736_v61, %v1737_v10  ;;  %v1956_v16 = vsel %vm1681_vm3, %v1603_v60, %v1736_v61  ;;  %v1604_v18 = vrot.slane %v1527_v6, 1  ;;  %v1739_v19 = vrot.slane %v1527_v6, 7  ;;  %v1532_v61 = vld [vmem:[#allocation2 + $0x158] sm:$0xff] }
 0x15a   : > { %v2156_v20 = vsel %vm2066_vm4, %v2153_v1, %v2155_v11  ;;  %v2381_v21 = vsel %vm2291_vm5, %v2378_v5, %v2380_v13  ;;  %v2157_v22 = vrot.slane %v1956_v16, 1  ;;  %v2158_v23 = vrot.slane %v1738_v15, 1 }
 0x15b   : > { %v2568_v24 = vpack.c.bf16 %v2156_v20, %v2154_v9  ;;  %v2569_v25 = vpack.c.bf16 %v2381_v21, %v2379_v12  ;;  %v2382_v26 = vrot.slane %v1956_v16, 2  ;;  %v2383_v27 = vrot.slane %v1738_v15, 2 }
 0x15c   : > { %v2570_v29 = vpack.c.bf16 %v1738_v15, %v1956_v16  ;;  %v1988_v30 = vsel %vm1681_vm3, %v1737_v10, %v1892_v14  ;;  %v2159_v31 = vsel %vm2066_vm4, %v2157_v22, %v2158_v23  ;;  %v1740_v32 = vrot.slane %v1528_v17, 7 }
 0x15d   : > { %2665 = vst [vmem:[#allocation3 + $0x1e8] sm:$0xff] %v2568_v24  ;;  %2713 = vst [vmem:[#allocation3 + $0x1b8] sm:$0xff] %v2568_v24  ;;  %v2160_v33 = vrot.slane %v1988_v30, 1  ;;  %v2384_v34 = vsel %vm2291_vm5, %v2382_v26, %v2383_v27  ;;  %v2385_v35 = vrot.slane %v1988_v30, 2  ;;  %v1893_v36 = vrot.slane %v1528_v17, 5  ;;  %v1535_v30 = vld [vmem:[#allocation2 + $0x170] sm:$0xff] }
 0x15e   : > { %2666 = vst [vmem:[#allocation3 + $0x1f0] sm:$0xff] %v2569_v25  ;;  %2714 = vst [vmem:[#allocation3 + $0x1c0] sm:$0xff] %v2569_v25  ;;  %v1741_v37 = vsel %vm1681_vm3, %v1739_v19, %v1740_v32  ;;  %v1957_v38 = vsel %vm1681_vm3, %v1604_v18, %v1739_v19  ;;  %v1605_v40 = vrot.slane %v1529_v28, 1  ;;  %v1742_v41 = vrot.slane %v1529_v28, 7  ;;  %v1534_v19 = vld [vmem:[#allocation2 + $0x168] sm:$0xff] }
 0x15f   : > { %2667 = vst [vmem:[#allocation3 + $0x1f8] sm:$0xff] %v2570_v29  ;;  %v2161_v42 = vsel %vm2066_vm4, %v2158_v23, %v2160_v33  ;;  %v2386_v43 = vsel %vm2291_vm5, %v2383_v27, %v2385_v35  ;;  %v2162_v44 = vrot.slane %v1957_v38, 1  ;;  %v2163_v45 = vrot.slane %v1741_v37, 1 }
 0x160   : > { %v2571_v46 = vpack.c.bf16 %v2161_v42, %v2159_v31  ;;  %v2572_v47 = vpack.c.bf16 %v2386_v43, %v2384_v34  ;;  %v2387_v48 = vrot.slane %v1957_v38, 2  ;;  %v2388_v49 = vrot.slane %v1741_v37, 2 }
 0x161   : > { %v2573_v51 = vpack.c.bf16 %v1741_v37, %v1957_v38  ;;  %v1989_v52 = vsel %vm1681_vm3, %v1740_v32, %v1893_v36  ;;  %v2164_v53 = vsel %vm2066_vm4, %v2162_v44, %v2163_v45  ;;  %v1743_v54 = vrot.slane %v1530_v39, 7 }
 0x162   : > { %2668 = vst [vmem:[#allocation3 + $0x200] sm:$0xff] %v2571_v46  ;;  %2669 = vst [vmem:[#allocation3 + $0x208] sm:$0xff] %v2572_v47  ;;  %v2165_v55 = vrot.slane %v1989_v52, 1  ;;  %v2389_v56 = vsel %vm2291_vm5, %v2387_v48, %v2388_v49  ;;  %v2390_v57 = vrot.slane %v1989_v52, 2  ;;  %v1894_v58 = vrot.slane %v1530_v39, 5  ;;  %v1537_v52 = vld [vmem:[#allocation2 + $0x180] sm:$0xff] }
 0x163   : > { %2670 = vst [vmem:[#allocation3 + $0x210] sm:$0xff] %v2573_v51  ;;  %v1744_v59 = vsel %vm1681_vm3, %v1742_v41, %v1743_v54  ;;  %v1958_v60 = vsel %vm1681_vm3, %v1605_v40, %v1742_v41  ;;  %v1606_v62 = vrot.slane %v1531_v50, 1  ;;  %v1745_v63 = vrot.slane %v1531_v50, 7  ;;  %v1536_v41 = vld [vmem:[#allocation2 + $0x178] sm:$0xff] }
 0x164   : > { %v2166_v0 = vsel %vm2066_vm4, %v2163_v45, %v2165_v55  ;;  %v2391_v1 = vsel %vm2291_vm5, %v2388_v49, %v2390_v57  ;;  %v2167_v2 = vrot.slane %v1958_v60, 1  ;;  %v2168_v3 = vrot.slane %v1744_v59, 1 }
 0x165   : > { %v2574_v4 = vpack.c.bf16 %v2166_v0, %v2164_v53  ;;  %v2575_v5 = vpack.c.bf16 %v2391_v1, %v2389_v56  ;;  %v2392_v6 = vrot.slane %v1958_v60, 2  ;;  %v2393_v7 = vrot.slane %v1744_v59, 2 }
 0x166   : > { %v2576_v9 = vpack.c.bf16 %v1744_v59, %v1958_v60  ;;  %v1990_v10 = vsel %vm1681_vm3, %v1743_v54, %v1894_v58  ;;  %v2169_v11 = vsel %vm2066_vm4, %v2167_v2, %v2168_v3  ;;  %v1746_v12 = vrot.slane %v1532_v61, 7 }
 0x167   : > { %2671 = vst [vmem:[#allocation3 + $0x218] sm:$0xff] %v2574_v4  ;;  %2672 = vst [vmem:[#allocation3 + $0x220] sm:$0xff] %v2575_v5  ;;  %v2170_v13 = vrot.slane %v1990_v10, 1  ;;  %v2394_v14 = vsel %vm2291_vm5, %v2392_v6, %v2393_v7  ;;  %v2395_v15 = vrot.slane %v1990_v10, 2  ;;  %v1895_v16 = vrot.slane %v1532_v61, 5  ;;  %v1539_v10 = vld [vmem:[#allocation2 + $0x190] sm:$0xff] }
 0x168   : > { %2673 = vst [vmem:[#allocation3 + $0x228] sm:$0xff] %v2576_v9  ;;  %v1747_v17 = vsel %vm1681_vm3, %v1745_v63, %v1746_v12  ;;  %v1959_v18 = vsel %vm1681_vm3, %v1606_v62, %v1745_v63  ;;  %v1607_v20 = vrot.slane %v1533_v8, 1  ;;  %v1748_v21 = vrot.slane %v1533_v8, 7  ;;  %v1538_v63 = vld [vmem:[#allocation2 + $0x188] sm:$0xff] }
 0x169   : > { %v2171_v22 = vsel %vm2066_vm4, %v2168_v3, %v2170_v13  ;;  %v2396_v23 = vsel %vm2291_vm5, %v2393_v7, %v2395_v15  ;;  %v2172_v24 = vrot.slane %v1959_v18, 1  ;;  %v2173_v25 = vrot.slane %v1747_v17, 1 }
 0x16a   : > { %v2577_v26 = vpack.c.bf16 %v2171_v22, %v2169_v11  ;;  %v2578_v27 = vpack.c.bf16 %v2396_v23, %v2394_v14  ;;  %v2397_v28 = vrot.slane %v1959_v18, 2  ;;  %v2398_v29 = vrot.slane %v1747_v17, 2 }
 0x16b   : > { %v2579_v31 = vpack.c.bf16 %v1747_v17, %v1959_v18  ;;  %v1991_v32 = vsel %vm1681_vm3, %v1746_v12, %v1895_v16  ;;  %v2174_v33 = vsel %vm2066_vm4, %v2172_v24, %v2173_v25  ;;  %v1749_v34 = vrot.slane %v1534_v19, 7 }
 0x16c   : > { %2674 = vst [vmem:[#allocation3 + $0x230] sm:$0xff] %v2577_v26  ;;  %2675 = vst [vmem:[#allocation3 + $0x238] sm:$0xff] %v2578_v27  ;;  %v2175_v35 = vrot.slane %v1991_v32, 1  ;;  %v2399_v36 = vsel %vm2291_vm5, %v2397_v28, %v2398_v29  ;;  %v2400_v37 = vrot.slane %v1991_v32, 2  ;;  %v1896_v38 = vrot.slane %v1534_v19, 5  ;;  %v1541_v32 = vld [vmem:[#allocation2 + $0x1a0] sm:$0xff] }
 0x16d   : > { %2676 = vst [vmem:[#allocation3 + $0x240] sm:$0xff] %v2579_v31  ;;  %v1750_v39 = vsel %vm1681_vm3, %v1748_v21, %v1749_v34  ;;  %v1960_v40 = vsel %vm1681_vm3, %v1607_v20, %v1748_v21  ;;  %v1608_v42 = vrot.slane %v1535_v30, 1  ;;  %v1751_v43 = vrot.slane %v1535_v30, 7  ;;  %v1540_v21 = vld [vmem:[#allocation2 + $0x198] sm:$0xff] }
 0x16e   : > { %v2176_v44 = vsel %vm2066_vm4, %v2173_v25, %v2175_v35  ;;  %v2401_v45 = vsel %vm2291_vm5, %v2398_v29, %v2400_v37  ;;  %v2177_v46 = vrot.slane %v1960_v40, 1  ;;  %v2178_v47 = vrot.slane %v1750_v39, 1 }
 0x16f   : > { %v2580_v48 = vpack.c.bf16 %v2176_v44, %v2174_v33  ;;  %v2581_v49 = vpack.c.bf16 %v2401_v45, %v2399_v36  ;;  %v2402_v50 = vrot.slane %v1960_v40, 2  ;;  %v2403_v51 = vrot.slane %v1750_v39, 2 }
 0x170   : > { %v2582_v53 = vpack.c.bf16 %v1750_v39, %v1960_v40  ;;  %v1992_v54 = vsel %vm1681_vm3, %v1749_v34, %v1896_v38  ;;  %v2179_v55 = vsel %vm2066_vm4, %v2177_v46, %v2178_v47  ;;  %v1752_v56 = vrot.slane %v1536_v41, 7 }
 0x171   : > { %2677 = vst [vmem:[#allocation3 + $0x248] sm:$0xff] %v2580_v48  ;;  %2678 = vst [vmem:[#allocation3 + $0x250] sm:$0xff] %v2581_v49  ;;  %v2180_v57 = vrot.slane %v1992_v54, 1  ;;  %v2404_v58 = vsel %vm2291_vm5, %v2402_v50, %v2403_v51  ;;  %v2405_v59 = vrot.slane %v1992_v54, 2  ;;  %v1897_v60 = vrot.slane %v1536_v41, 5  ;;  %v1543_v54 = vld [vmem:[#allocation2 + $0x1b0] sm:$0xff] }
 0x172   : > { %2679 = vst [vmem:[#allocation3 + $0x258] sm:$0xff] %v2582_v53  ;;  %v1753_v61 = vsel %vm1681_vm3, %v1751_v43, %v1752_v56  ;;  %v1961_v62 = vsel %vm1681_vm3, %v1608_v42, %v1751_v43  ;;  %v1609_v0 = vrot.slane %v1537_v52, 1  ;;  %v1754_v1 = vrot.slane %v1537_v52, 7  ;;  %v1542_v43 = vld [vmem:[#allocation2 + $0x1a8] sm:$0xff] }
 0x173   : > { %v2181_v2 = vsel %vm2066_vm4, %v2178_v47, %v2180_v57  ;;  %v2406_v3 = vsel %vm2291_vm5, %v2403_v51, %v2405_v59  ;;  %v2182_v4 = vrot.slane %v1961_v62, 1  ;;  %v2183_v5 = vrot.slane %v1753_v61, 1 }
 0x174   : > { %v2583_v6 = vpack.c.bf16 %v2181_v2, %v2179_v55  ;;  %v2584_v7 = vpack.c.bf16 %v2406_v3, %v2404_v58  ;;  %v2407_v8 = vrot.slane %v1961_v62, 2  ;;  %v2408_v9 = vrot.slane %v1753_v61, 2 }
 0x175   : > { %v2585_v11 = vpack.c.bf16 %v1753_v61, %v1961_v62  ;;  %v1993_v12 = vsel %vm1681_vm3, %v1752_v56, %v1897_v60  ;;  %v2184_v13 = vsel %vm2066_vm4, %v2182_v4, %v2183_v5  ;;  %v1755_v14 = vrot.slane %v1538_v63, 7 }
 0x176   : > { %2680 = vst [vmem:[#allocation3 + $0x260] sm:$0xff] %v2583_v6  ;;  %2681 = vst [vmem:[#allocation3 + $0x268] sm:$0xff] %v2584_v7  ;;  %v2185_v15 = vrot.slane %v1993_v12, 1  ;;  %v2409_v16 = vsel %vm2291_vm5, %v2407_v8, %v2408_v9  ;;  %v2410_v17 = vrot.slane %v1993_v12, 2  ;;  %v1898_v18 = vrot.slane %v1538_v63, 5  ;;  %v1545_v12 = vld [vmem:[#allocation2 + $0x1c0] sm:$0xff] }
 0x177   : > { %2682 = vst [vmem:[#allocation3 + $0x270] sm:$0xff] %v2585_v11  ;;  %v1756_v19 = vsel %vm1681_vm3, %v1754_v1, %v1755_v14  ;;  %v1962_v20 = vsel %vm1681_vm3, %v1609_v0, %v1754_v1  ;;  %v1610_v22 = vrot.slane %v1539_v10, 1  ;;  %v1757_v23 = vrot.slane %v1539_v10, 7  ;;  %v1544_v1 = vld [vmem:[#allocation2 + $0x1b8] sm:$0xff] }
 0x178   : > { %v2186_v24 = vsel %vm2066_vm4, %v2183_v5, %v2185_v15  ;;  %v2411_v25 = vsel %vm2291_vm5, %v2408_v9, %v2410_v17  ;;  %v2187_v26 = vrot.slane %v1962_v20, 1  ;;  %v2188_v27 = vrot.slane %v1756_v19, 1 }
 0x179   : > { %v2586_v28 = vpack.c.bf16 %v2186_v24, %v2184_v13  ;;  %v2587_v29 = vpack.c.bf16 %v2411_v25, %v2409_v16  ;;  %v2412_v30 = vrot.slane %v1962_v20, 2  ;;  %v2413_v31 = vrot.slane %v1756_v19, 2 }
 0x17a   : > { %v2588_v33 = vpack.c.bf16 %v1756_v19, %v1962_v20  ;;  %v1994_v34 = vsel %vm1681_vm3, %v1755_v14, %v1898_v18  ;;  %v2189_v35 = vsel %vm2066_vm4, %v2187_v26, %v2188_v27  ;;  %v1758_v36 = vrot.slane %v1540_v21, 7 }
 0x17b   : > { %2683 = vst [vmem:[#allocation3 + $0x278] sm:$0xff] %v2586_v28  ;;  %2684 = vst [vmem:[#allocation3 + $0x280] sm:$0xff] %v2587_v29  ;;  %v2190_v37 = vrot.slane %v1994_v34, 1  ;;  %v2414_v38 = vsel %vm2291_vm5, %v2412_v30, %v2413_v31  ;;  %v2415_v39 = vrot.slane %v1994_v34, 2  ;;  %v1899_v40 = vrot.slane %v1540_v21, 5  ;;  %v1547_v34 = vld [vmem:[#allocation2 + $0x1d0] sm:$0xff] }
 0x17c   : > { %2685 = vst [vmem:[#allocation3 + $0x288] sm:$0xff] %v2588_v33  ;;  %v1759_v41 = vsel %vm1681_vm3, %v1757_v23, %v1758_v36  ;;  %v1963_v42 = vsel %vm1681_vm3, %v1610_v22, %v1757_v23  ;;  %v1611_v44 = vrot.slane %v1541_v32, 1  ;;  %v1760_v45 = vrot.slane %v1541_v32, 7  ;;  %v1546_v23 = vld [vmem:[#allocation2 + $0x1c8] sm:$0xff] }
 0x17d   : > { %v2191_v46 = vsel %vm2066_vm4, %v2188_v27, %v2190_v37  ;;  %v2416_v47 = vsel %vm2291_vm5, %v2413_v31, %v2415_v39  ;;  %v2192_v48 = vrot.slane %v1963_v42, 1  ;;  %v2193_v49 = vrot.slane %v1759_v41, 1 }
 0x17e   : > { %v2589_v50 = vpack.c.bf16 %v2191_v46, %v2189_v35  ;;  %v2590_v51 = vpack.c.bf16 %v2416_v47, %v2414_v38  ;;  %v2417_v52 = vrot.slane %v1963_v42, 2  ;;  %v2418_v53 = vrot.slane %v1759_v41, 2 }
 0x17f   : > { %v2591_v55 = vpack.c.bf16 %v1759_v41, %v1963_v42  ;;  %v1995_v56 = vsel %vm1681_vm3, %v1758_v36, %v1899_v40  ;;  %v2194_v57 = vsel %vm2066_vm4, %v2192_v48, %v2193_v49  ;;  %v1761_v58 = vrot.slane %v1542_v43, 7 }
 0x180   : > { %2686 = vst [vmem:[#allocation3 + $0x290] sm:$0xff] %v2589_v50  ;;  %2687 = vst [vmem:[#allocation3 + $0x298] sm:$0xff] %v2590_v51  ;;  %v2195_v59 = vrot.slane %v1995_v56, 1  ;;  %v2419_v60 = vsel %vm2291_vm5, %v2417_v52, %v2418_v53  ;;  %v2420_v61 = vrot.slane %v1995_v56, 2  ;;  %v1900_v62 = vrot.slane %v1542_v43, 5  ;;  %v1549_v56 = vld [vmem:[#allocation2 + $0x1e0] sm:$0xff] }
 0x181   : > { %2688 = vst [vmem:[#allocation3 + $0x2a0] sm:$0xff] %v2591_v55  ;;  %v1762_v63 = vsel %vm1681_vm3, %v1760_v45, %v1761_v58  ;;  %v1964_v0 = vsel %vm1681_vm3, %v1611_v44, %v1760_v45  ;;  %v1612_v2 = vrot.slane %v1543_v54, 1  ;;  %v1763_v3 = vrot.slane %v1543_v54, 7  ;;  %v1548_v45 = vld [vmem:[#allocation2 + $0x1d8] sm:$0xff] }
 0x182   : > { %v2196_v4 = vsel %vm2066_vm4, %v2193_v49, %v2195_v59  ;;  %v2421_v5 = vsel %vm2291_vm5, %v2418_v53, %v2420_v61  ;;  %v2197_v6 = vrot.slane %v1964_v0, 1  ;;  %v2198_v7 = vrot.slane %v1762_v63, 1 }
 0x183   : > { %v2592_v8 = vpack.c.bf16 %v2196_v4, %v2194_v57  ;;  %v2593_v9 = vpack.c.bf16 %v2421_v5, %v2419_v60  ;;  %v2422_v10 = vrot.slane %v1964_v0, 2  ;;  %v2423_v11 = vrot.slane %v1762_v63, 2 }
 0x184   : > { %v2594_v13 = vpack.c.bf16 %v1762_v63, %v1964_v0  ;;  %v1996_v14 = vsel %vm1681_vm3, %v1761_v58, %v1900_v62  ;;  %v2199_v15 = vsel %vm2066_vm4, %v2197_v6, %v2198_v7  ;;  %v1764_v16 = vrot.slane %v1544_v1, 7 }
 0x185   : > { %2689 = vst [vmem:[#allocation3 + $0x2a8] sm:$0xff] %v2592_v8  ;;  %2690 = vst [vmem:[#allocation3 + $0x2b0] sm:$0xff] %v2593_v9  ;;  %v2200_v17 = vrot.slane %v1996_v14, 1  ;;  %v2424_v18 = vsel %vm2291_vm5, %v2422_v10, %v2423_v11  ;;  %v2425_v19 = vrot.slane %v1996_v14, 2  ;;  %v1901_v20 = vrot.slane %v1544_v1, 5  ;;  %v1551_v14 = vld [vmem:[#allocation2 + $0x1f0] sm:$0xff] }
 0x186   : > { %2691 = vst [vmem:[#allocation3 + $0x2b8] sm:$0xff] %v2594_v13  ;;  %v1765_v21 = vsel %vm1681_vm3, %v1763_v3, %v1764_v16  ;;  %v1965_v22 = vsel %vm1681_vm3, %v1612_v2, %v1763_v3  ;;  %v1613_v24 = vrot.slane %v1545_v12, 1  ;;  %v1766_v25 = vrot.slane %v1545_v12, 7  ;;  %v1550_v3 = vld [vmem:[#allocation2 + $0x1e8] sm:$0xff] }
 0x187   : > { %v2201_v26 = vsel %vm2066_vm4, %v2198_v7, %v2200_v17  ;;  %v2426_v27 = vsel %vm2291_vm5, %v2423_v11, %v2425_v19  ;;  %v2202_v28 = vrot.slane %v1965_v22, 1  ;;  %v2203_v29 = vrot.slane %v1765_v21, 1 }
 0x188   : > { %v2595_v30 = vpack.c.bf16 %v2201_v26, %v2199_v15  ;;  %v2596_v31 = vpack.c.bf16 %v2426_v27, %v2424_v18  ;;  %v2427_v32 = vrot.slane %v1965_v22, 2  ;;  %v2428_v33 = vrot.slane %v1765_v21, 2 }
 0x189   : > { %v2597_v35 = vpack.c.bf16 %v1765_v21, %v1965_v22  ;;  %v1997_v36 = vsel %vm1681_vm3, %v1764_v16, %v1901_v20  ;;  %v2204_v37 = vsel %vm2066_vm4, %v2202_v28, %v2203_v29  ;;  %v1767_v38 = vrot.slane %v1546_v23, 7 }
 0x18a   : > { %2692 = vst [vmem:[#allocation3 + $0x2c0] sm:$0xff] %v2595_v30  ;;  %2693 = vst [vmem:[#allocation3 + $0x2c8] sm:$0xff] %v2596_v31  ;;  %v2205_v39 = vrot.slane %v1997_v36, 1  ;;  %v2429_v40 = vsel %vm2291_vm5, %v2427_v32, %v2428_v33  ;;  %v2430_v41 = vrot.slane %v1997_v36, 2  ;;  %v1902_v42 = vrot.slane %v1546_v23, 5 }
 0x18b   : > { %2694 = vst [vmem:[#allocation3 + $0x2d0] sm:$0xff] %v2597_v35  ;;  %v1768_v43 = vsel %vm1681_vm3, %v1766_v25, %v1767_v38  ;;  %v1966_v44 = vsel %vm1681_vm3, %v1613_v24, %v1766_v25  ;;  %v1614_v46 = vrot.slane %v1547_v34, 1  ;;  %v1769_v47 = vrot.slane %v1547_v34, 7  ;;  %v1552_v25 = vld [vmem:[#allocation2 + $0x1f8] sm:$0xff] }
 0x18c   : > { %v2206_v48 = vsel %vm2066_vm4, %v2203_v29, %v2205_v39  ;;  %v2431_v49 = vsel %vm2291_vm5, %v2428_v33, %v2430_v41  ;;  %v2207_v50 = vrot.slane %v1966_v44, 1  ;;  %v2208_v51 = vrot.slane %v1768_v43, 1 }
 0x18d   : > { %v2598_v52 = vpack.c.bf16 %v2206_v48, %v2204_v37  ;;  %v2599_v53 = vpack.c.bf16 %v2431_v49, %v2429_v40  ;;  %v2432_v54 = vrot.slane %v1966_v44, 2  ;;  %v2433_v55 = vrot.slane %v1768_v43, 2 }
 0x18e   : > { %v2600_v57 = vpack.c.bf16 %v1768_v43, %v1966_v44  ;;  %v1998_v58 = vsel %vm1681_vm3, %v1767_v38, %v1902_v42  ;;  %v2209_v59 = vsel %vm2066_vm4, %v2207_v50, %v2208_v51  ;;  %v1770_v60 = vrot.slane %v1548_v45, 7 }
 0x18f   : > { %2695 = vst [vmem:[#allocation3 + $0x2d8] sm:$0xff] %v2598_v52  ;;  %2696 = vst [vmem:[#allocation3 + $0x2e0] sm:$0xff] %v2599_v53  ;;  %v2210_v61 = vrot.slane %v1998_v58, 1  ;;  %v2434_v62 = vsel %vm2291_vm5, %v2432_v54, %v2433_v55  ;;  %v2435_v63 = vrot.slane %v1998_v58, 2  ;;  %v1903_v0 = vrot.slane %v1548_v45, 5 }
 0x190   : > { %2697 = vst [vmem:[#allocation3 + $0x2e8] sm:$0xff] %v2600_v57  ;;  %v1771_v1 = vsel %vm1681_vm3, %v1769_v47, %v1770_v60  ;;  %v1967_v2 = vsel %vm1681_vm3, %v1614_v46, %v1769_v47  ;;  %v1615_v4 = vrot.slane %v1549_v56, 1  ;;  %v1772_v5 = vrot.slane %v1549_v56, 7 }
 0x191   : > { %v2211_v6 = vsel %vm2066_vm4, %v2208_v51, %v2210_v61  ;;  %v2436_v7 = vsel %vm2291_vm5, %v2433_v55, %v2435_v63  ;;  %v2212_v8 = vrot.slane %v1967_v2, 1  ;;  %v2213_v9 = vrot.slane %v1771_v1, 1 }
 0x192   : > { %v2601_v10 = vpack.c.bf16 %v2211_v6, %v2209_v59  ;;  %v2602_v11 = vpack.c.bf16 %v2436_v7, %v2434_v62  ;;  %v2437_v12 = vrot.slane %v1967_v2, 2  ;;  %v2438_v13 = vrot.slane %v1771_v1, 2 }
 0x193   : > { %v2603_v15 = vpack.c.bf16 %v1771_v1, %v1967_v2  ;;  %v1999_v16 = vsel %vm1681_vm3, %v1770_v60, %v1903_v0  ;;  %v2214_v17 = vsel %vm2066_vm4, %v2212_v8, %v2213_v9  ;;  %v1773_v18 = vrot.slane %v1550_v3, 7 }
 0x194   : > { %2698 = vst [vmem:[#allocation3 + $0x2f0] sm:$0xff] %v2601_v10  ;;  %2699 = vst [vmem:[#allocation3 + $0x2f8] sm:$0xff] %v2602_v11  ;;  %v2215_v19 = vrot.slane %v1999_v16, 1  ;;  %v2439_v20 = vsel %vm2291_vm5, %v2437_v12, %v2438_v13  ;;  %v2440_v21 = vrot.slane %v1999_v16, 2  ;;  %v1904_v22 = vrot.slane %v1550_v3, 5 }
 0x195   : > { %2700 = vst [vmem:[#allocation3 + $0x300] sm:$0xff] %v2603_v15  ;;  %v1774_v23 = vsel %vm1681_vm3, %v1772_v5, %v1773_v18  ;;  %v1968_v24 = vsel %vm1681_vm3, %v1615_v4, %v1772_v5  ;;  %v1616_v26 = vrot.slane %v1551_v14, 1  ;;  %v1775_v27 = vrot.slane %v1551_v14, 7 }
 0x196   : > { %v2216_v28 = vsel %vm2066_vm4, %v2213_v9, %v2215_v19  ;;  %v2441_v29 = vsel %vm2291_vm5, %v2438_v13, %v2440_v21  ;;  %v2217_v30 = vrot.slane %v1968_v24, 1  ;;  %v2218_v31 = vrot.slane %v1774_v23, 1 }
 0x197   : > { %v2604_v32 = vpack.c.bf16 %v2216_v28, %v2214_v17  ;;  %v2605_v33 = vpack.c.bf16 %v2441_v29, %v2439_v20  ;;  %v2442_v34 = vrot.slane %v1968_v24, 2  ;;  %v2443_v35 = vrot.slane %v1774_v23, 2 }
 0x198   : > { %v2606_v36 = vpack.c.bf16 %v1774_v23, %v1968_v24  ;;  %v2000_v37 = vsel %vm1681_vm3, %v1773_v18, %v1904_v22  ;;  %v2219_v38 = vsel %vm2066_vm4, %v2217_v30, %v2218_v31  ;;  %v1776_v39 = vrot.slane %v1552_v25, 7 }
 0x199   : > { %2701 = vst [vmem:[#allocation3 + $0x308] sm:$0xff] %v2604_v32  ;;  %2702 = vst [vmem:[#allocation3 + $0x310] sm:$0xff] %v2605_v33  ;;  %v2220_v40 = vrot.slane %v2000_v37, 1  ;;  %v2444_v41 = vsel %vm2291_vm5, %v2442_v34, %v2443_v35  ;;  %v2445_v42 = vrot.slane %v2000_v37, 2  ;;  %v1905_v43 = vrot.slane %v1552_v25, 5 }
 0x19a   : > { %2703 = vst [vmem:[#allocation3 + $0x318] sm:$0xff] %v2606_v36  ;;  %2719 = vst [vmem:[#allocation3 + $0x348] sm:$0xff] %v2606_v36  ;;  %v1777_v44 = vsel %vm1681_vm3, %v1775_v27, %v1776_v39  ;;  %v1969_v45 = vsel %vm1681_vm3, %v1616_v26, %v1775_v27 }
 0x19b   : > { %v2221_v46 = vsel %vm2066_vm4, %v2218_v31, %v2220_v40  ;;  %v2446_v47 = vsel %vm2291_vm5, %v2443_v35, %v2445_v42  ;;  %v2222_v48 = vrot.slane %v1969_v45, 1  ;;  %v2223_v49 = vrot.slane %v1777_v44, 1 }
 0x19c   : > { %v2607_v50 = vpack.c.bf16 %v2221_v46, %v2219_v38  ;;  %v2608_v51 = vpack.c.bf16 %v2446_v47, %v2444_v41  ;;  %v2447_v52 = vrot.slane %v1969_v45, 2  ;;  %v2448_v53 = vrot.slane %v1777_v44, 2 }
 0x19d   : > { %v2609_v54 = vpack.c.bf16 %v1777_v44, %v1969_v45  ;;  %v2001_v55 = vsel %vm1681_vm3, %v1776_v39, %v1905_v43  ;;  %v2224_v56 = vsel %vm2066_vm4, %v2222_v48, %v2223_v49 }
 0x19e   : > { %2704 = vst [vmem:[#allocation3 + $0x320] sm:$0xff] %v2607_v50  ;;  %2720 = vst [vmem:[#allocation3 + $0x350] sm:$0xff] %v2607_v50  ;;  %v2225_v57 = vrot.slane %v2001_v55, 1  ;;  %v2449_v58 = vsel %vm2291_vm5, %v2447_v52, %v2448_v53  ;;  %v2450_v59 = vrot.slane %v2001_v55, 2 }
 0x19f   : > { %2705 = vst [vmem:[#allocation3 + $0x328] sm:$0xff] %v2608_v51  ;;  %2721 = vst [vmem:[#allocation3 + $0x358] sm:$0xff] %v2608_v51 }
 0x1a0   : > { %2706 = vst [vmem:[#allocation3 + $0x330] sm:$0xff] %v2609_v54  ;;  %v2226_v60 = vsel %vm2066_vm4, %v2223_v49, %v2225_v57  ;;  %v2451_v61 = vsel %vm2291_vm5, %v2448_v53, %v2450_v59 }
 0x1a1   : > { %v2610_v62 = vpack.c.bf16 %v2226_v60, %v2224_v56  ;;  %v2611_v63 = vpack.c.bf16 %v2451_v61, %v2449_v58 }
 0x1a3   : > { %2707 = vst [vmem:[#allocation3 + $0x338] sm:$0xff] %v2610_v62  ;;  %2708 = vst [vmem:[#allocation3 + $0x340] sm:$0xff] %v2611_v63 }
 0x1a4 PF: > { %v7414_v0 = vld [vmem:[%s7772_s5] sm:$0xff]   ;;  %v7622_v1 = vmov 0   ;;  %v7416_v3 = vld [vmem:[%s7772_s5 + $0x8] sm:$0xff]   ;;  %v8255_v5 = vld [vmem:[%s7772_s5 + $0x90] sm:$0xff]   ;;  %p6966_p1 = scmp.ne.s32.totalorder %s7670_s19, 1 }
 0x1a5   : > { %3010 = vmatprep.subr.bf16.mxu0 %v7622_v1  ;;  %v8244_v2 = vld [vmem:[%s7772_s5 + $0x80] sm:$0xff]   ;;  %v8250_v4 = vld [vmem:[%s7772_s5 + $0x88] sm:$0xff]   ;;  %v7418_v6 = vld [vmem:[%s7772_s5 + $0x10] sm:$0xff]  }
 0x1a6   : > { %3011 = vmatpush1.bf16.msra.mxu0 %v7414_v0  ;;  %7331 = vmatprep.subr.bf16.mxu1 %v8244_v2  ;;  %v8262_v7 = vld [vmem:[%s7772_s5 + $0x98] sm:$0xff]   ;;  %v8269_v9 = vld [vmem:[%s7772_s5 + $0xa0] sm:$0xff]   ;;  %v2760_v11 = vld [vmem:[#allocation3 + $0x130] sm:$0xff] }
 0x1a7   : > { %3012 = vmatprep.subr.bf16.mxu0 %v7622_v1  ;;  %7339 = vmatpush3.bf16.msra.mxu1 %v8244_v2  ;;  %v7420_v8 = vld [vmem:[%s7772_s5 + $0x18] sm:$0xff]   ;;  %v7422_v10 = vld [vmem:[%s7772_s5 + $0x20] sm:$0xff]   ;;  %v8276_v12 = vld [vmem:[%s7772_s5 + $0xa8] sm:$0xff]  }
 0x1a8   : > { %7332 = vmatprep.subr.bf16.mxu1 %v8250_v4  ;;  %7131 = vmatprep.mubr.bf16.mxu1 %v2760_v11  ;;  %v7424_v13 = vld [vmem:[%s7772_s5 + $0x28] sm:$0xff]   ;;  %v8283_v14 = vld [vmem:[%s7772_s5 + $0xb0] sm:$0xff]   ;;  %v8290_v16 = vld [vmem:[%s7772_s5 + $0xb8] sm:$0xff]  }
 0x1a9   : > { %v7426_v15 = vld [vmem:[%s7772_s5 + $0x30] sm:$0xff]   ;;  %v7428_v17 = vld [vmem:[%s7772_s5 + $0x38] sm:$0xff]   ;;  %v7430_v18 = vld [vmem:[%s7772_s5 + $0x40] sm:$0xff]  }
 0x1aa   : > { %3013 = vmatpush1.bf16.msra.mxu0 %v7416_v3  ;;  %v2763_v19 = vld [vmem:[#allocation3 + $0x148] sm:$0xff]  ;;  %v7432_v21 = vld [vmem:[%s7772_s5 + $0xc0] sm:$0xff]   ;;  %v7433_v25 = vld [vmem:[%s7772_s5 + $0x50] sm:$0xff]  }
 0x1ab   : > { %3014 = vmatprep.subr.bf16.mxu0 %v7622_v1  ;;  %7340 = vmatpush3.bf16.msra.mxu1 %v8250_v4  ;;  %v2723_v20 = vld [vmem:[#allocation3 + $0x8] sm:$0xff]  ;;  %v2766_v22 = vld [vmem:[#allocation3 + $0x160] sm:$0xff]  ;;  %v2769_v26 = vld [vmem:[#allocation3 + $0x178] sm:$0xff] }
 0x1ac   : > { %7333 = vmatprep.subr.bf16.mxu1 %v8255_v5  ;;  %3042 = vmatprep.mubr.bf16.mxu0 %v2723_v20  ;;  %v7431_v23 = vld [vmem:[%s7772_s5 + $0x48] sm:$0xff]   ;;  %v7436_v27 = vld [vmem:[%s7772_s5 + $0xd0] sm:$0xff]   ;;  %v2772_v28 = vld [vmem:[#allocation3 + $0x1c0] sm:$0xff] }
 0x1ad   : > { %v7434_v24 = vld [vmem:[%s7772_s5 + $0xc8] sm:$0xff]   ;;  %v7435_v29 = vld [vmem:[%s7772_s5 + $0x58] sm:$0xff]   ;;  %v7437_v31 = vld [vmem:[%s7772_s5 + $0x60] sm:$0xff]  }
 0x1ae   : > { %3015 = vmatpush1.bf16.msra.mxu0 %v7418_v6  ;;  %v7439_v30 = vld [vmem:[%s7772_s5 + $0xd8] sm:$0xff]   ;;  %v7441_v33 = vld [vmem:[%s7772_s5 + $0xe0] sm:$0xff]   ;;  %v2778_v34 = vld [vmem:[#allocation3 + $0x1f0] sm:$0xff] }
 0x1af   : > { %3016 = vmatprep.subr.bf16.mxu0 %v7622_v1  ;;  %7341 = vmatpush3.bf16.msra.mxu1 %v8255_v5  ;;  %v2775_v32 = vld [vmem:[#allocation3 + $0x1d8] sm:$0xff]  ;;  %v7438_v35 = vld [vmem:[%s7772_s5 + $0x68] sm:$0xff]   ;;  %v7440_v37 = vld [vmem:[%s7772_s5 + $0x70] sm:$0xff]  }
 0x1b0   : > { %7334 = vmatprep.subr.bf16.mxu1 %v8262_v7  ;;  %v7443_v36 = vld [vmem:[%s7772_s5 + $0xe8] sm:$0xff]   ;;  %v7444_v39 = vld [vmem:[%s7772_s5 + $0xf0] sm:$0xff]   ;;  %v2784_v40 = vld [vmem:[#allocation3 + $0x220] sm:$0xff] }
 0x1b1   : > { %v2781_v38 = vld [vmem:[#allocation3 + $0x208] sm:$0xff]  ;;  %v7442_v41 = vld [vmem:[%s7772_s5 + $0x78] sm:$0xff]   ;;  %v2722_v43 = vld [vmem:[#allocation3] sm:$0xff] }
 0x1b2   : > { %3017 = vmatpush1.bf16.msra.mxu0 %v7420_v8  ;;  %v7445_v42 = vld [vmem:[%s7772_s5 + $0xf8] sm:$0xff]   ;;  %v8329_v45 = vld [vmem:[#allocation3 + $0x20] sm:$0xff]  ;;  %v2790_v47 = vld [vmem:[#allocation3 + $0x250] sm:$0xff] }
 0x1b3   : > { %3018 = vmatprep.subr.bf16.mxu0 %v7622_v1  ;;  %7342 = vmatpush3.bf16.msra.mxu1 %v8262_v7  ;;  %v2787_v44 = vld [vmem:[#allocation3 + $0x238] sm:$0xff]  ;;  %v7446_v46 = vld [vmem:[%s7772_s5 + $0x100] sm:$0xff]   ;;  %v7447_v48 = vld [vmem:[%s7772_s5 + $0x108] sm:$0xff]  }
 0x1b4   : > { %7335 = vmatprep.subr.bf16.mxu1 %v8269_v9  ;;  %v8338_v49 = vld [vmem:[#allocation3 + $0x18] sm:$0xff]  ;;  %v2793_v51 = vld [vmem:[#allocation3 + $0x268] sm:$0xff]  ;;  %v7448_v52 = vld [vmem:[%s7772_s5 + $0x110] sm:$0xff]  }
 0x1b5   : > { %v8340_v50 = vld [vmem:[#allocation3 + $0x38] sm:$0xff]  ;;  %v2796_v53 = vld [vmem:[#allocation3 + $0x280] sm:$0xff]  ;;  %v8352_v55 = vld [vmem:[#allocation3 + $0x30] sm:$0xff] }
 0x1b6   : > { %3019 = vmatpush1.bf16.msra.mxu0 %v7422_v10  ;;  %v7449_v54 = vld [vmem:[%s7772_s5 + $0x118] sm:$0xff]   ;;  %v8354_v56 = vld [vmem:[#allocation3 + $0x50] sm:$0xff]  ;;  %v7450_v58 = vld [vmem:[%s7772_s5 + $0x120] sm:$0xff]  }
 0x1b7   : > { %3020 = vmatprep.subr.bf16.mxu0 %v7622_v1  ;;  %7343 = vmatpush3.bf16.msra.mxu1 %v8269_v9  ;;  %v2799_v57 = vld [vmem:[#allocation3 + $0x298] sm:$0xff]  ;;  %v2802_v59 = vld [vmem:[#allocation3 + $0x2b0] sm:$0xff]  ;;  %v7451_v60 = vld [vmem:[%s7772_s5 + $0x128] sm:$0xff]  }
 0x1b8   : > { %7336 = vmatprep.subr.bf16.mxu1 %v8276_v12  ;;  %v8367_v61 = vld [vmem:[#allocation3 + $0x48] sm:$0xff]  ;;  %v7452_v0 = vld [vmem:[%s7772_s5 + $0x130] sm:$0xff]   ;;  %v7453_v3 = vld [vmem:[%s7772_s5 + $0x138] sm:$0xff]  }
 0x1b9   : > { %v8370_v62 = vld [vmem:[#allocation3 + $0x68] sm:$0xff]  ;;  %v2811_v6 = vld [vmem:[#allocation3 + $0x2f8] sm:$0xff]  ;;  %v8384_v11 = vld [vmem:[#allocation3 + $0x90] sm:$0xff] }
 0x1ba   : > { %3021 = vmatpush1.bf16.msra.mxu0 %v7424_v13  ;;  %v2805_v63 = vld [vmem:[#allocation3 + $0x2c8] sm:$0xff]  ;;  %v2737_v8 = vld [vmem:[#allocation3 + $0x78] sm:$0xff]  ;;  %v7454_v13 = vld [vmem:[%s7772_s5 + $0x180] sm:$0xff]  }
 0x1bb   : > { %3022 = vmatprep.subr.bf16.mxu0 %v7622_v1  ;;  %7344 = vmatpush3.bf16.msra.mxu1 %v8276_v12  ;;  %v2817_v10 = vld [vmem:[#allocation3 + $0x328] sm:$0xff]  ;;  %v2750_v20 = vld [vmem:[#allocation3 + $0xe0] sm:$0xff] }
 0x1bc   : > { %7337 = vmatprep.subr.bf16.mxu1 %v8283_v14 }
 0x1be   : > { %3023 = vmatpush1.bf16.msra.mxu0 %v7426_v15  ;;  %v2743_v15 = vld [vmem:[#allocation3 + $0xa8] sm:$0xff] }
 0x1bf   : > { %3024 = vmatprep.subr.bf16.mxu0 %v7622_v1  ;;  %7345 = vmatpush3.bf16.msra.mxu1 %v8283_v14 }
 0x1c0   : > { %7338 = vmatprep.subr.bf16.mxu1 %v8290_v16 }
 0x1c2   : > { %3025 = vmatpush1.bf16.msra.mxu0 %v7428_v17  ;;  %v7456_v17 = vld [vmem:[%s7772_s5 + $0x190] sm:$0xff]  }
 0x1c3   : > { %3026 = vmatprep.subr.bf16.mxu0 %v7622_v1  ;;  %7346 = vmatpush3.bf16.msra.mxu1 %v8290_v16 }
 0x1c4   : > { %3942 = vmatprep.subr.bf16.mxu1 %v7622_v1 }
 0x1c6   : > { %3027 = vmatpush1.bf16.msra.mxu0 %v7430_v18  ;;  %7132 = vmatmul.mubr.bf16.vlgmr.msra.gmra.mrb[0].mxu1 %v2763_v19  ;;  %v7457_v18 = vld [vmem:[%s7772_s5 + $0x198] sm:$0xff]   ;;  %v2746_v19 = vld [vmem:[#allocation3 + $0xc0] sm:$0xff] }
 0x1c7   : > { %3028 = vmatprep.subr.bf16.mxu0 %v7622_v1  ;;  %3943 = vmatpush1.bf16.msra.mxu1 %v7432_v21  ;;  %v7458_v21 = vld [vmem:[%s7772_s5 + $0x1a0] sm:$0xff]  }
 0x1c8   : > { %7135 = vmatprep.mubr.bf16.mxu1 %v2766_v22  ;;  %3944 = vmatprep.subr.bf16.mxu1 %v7622_v1  ;;  %v7459_v22 = vld [vmem:[%s7772_s5 + $0x1a8] sm:$0xff]  }
 0x1ca   : > { %3029 = vmatpush1.bf16.msra.mxu0 %v7431_v23  ;;  %v2749_v23 = vld [vmem:[#allocation3 + $0xd8] sm:$0xff] }
 0x1cb   : > { %3030 = vmatprep.subr.bf16.mxu0 %v7622_v1  ;;  %3945 = vmatpush1.bf16.msra.mxu1 %v7434_v24  ;;  %v2753_v24 = vld [vmem:[#allocation3 + $0xf8] sm:$0xff] }
 0x1cc   : > { %3946 = vmatprep.subr.bf16.mxu1 %v7622_v1 }
 0x1ce   : > { %3031 = vmatpush1.bf16.msra.mxu0 %v7433_v25  ;;  %7136 = vmatmul.mubr.bf16.gmra.mrb[4].mxu1 %v2769_v26  ;;  %v7460_v25 = vld [vmem:[%s7772_s5 + $0x1b0] sm:$0xff]   ;;  %v7461_v26 = vld [vmem:[%s7772_s5 + $0x1b8] sm:$0xff]  }
 0x1cf   : > { %3032 = vmatprep.subr.bf16.mxu0 %v7622_v1  ;;  %7139 = vmatprep.mubr.bf16.mxu1 %v2772_v28  ;;  %v2756_v28 = vld [vmem:[#allocation3 + $0x110] sm:$0xff] }
 0x1d0   : > { %3947 = vmatpush1.bf16.msra.mxu1 %v7436_v27  ;;  %v2752_v27 = vld [vmem:[#allocation3 + $0xf0] sm:$0xff] }
 0x1d1   : > { %3948 = vmatprep.subr.bf16.mxu1 %v7622_v1 }
 0x1d2   : > { %3033 = vmatpush1.bf16.msra.mxu0 %v7435_v29  ;;  %v7462_v29 = vld [vmem:[%s7772_s5 + $0x1c0] sm:$0xff]  }
 0x1d3   : > { %3034 = vmatprep.subr.bf16.mxu0 %v7622_v1 }
 0x1d4   : > { %3949 = vmatpush1.bf16.msra.mxu1 %v7439_v30  ;;  %v7463_v30 = vld [vmem:[%s7772_s5 + $0x1c8] sm:$0xff]  }
 0x1d5   : > { %3950 = vmatprep.subr.bf16.mxu1 %v7622_v1 }
 0x1d6   : > { %3035 = vmatpush1.bf16.msra.mxu0 %v7437_v31  ;;  %7140 = vmatmul.mubr.bf16.gmra.mrb[8].mxu1 %v2775_v32  ;;  %v2755_v31 = vld [vmem:[#allocation3 + $0x108] sm:$0xff] }
 0x1d7   : > { %3036 = vmatprep.subr.bf16.mxu0 %v7622_v1  ;;  %7143 = vmatprep.mubr.bf16.mxu1 %v2778_v34  ;;  %v2759_v32 = vld [vmem:[#allocation3 + $0x128] sm:$0xff]  ;;  %v2758_v34 = vld [vmem:[#allocation3 + $0x120] sm:$0xff] }
 0x1d8   : > { %3951 = vmatpush1.bf16.msra.mxu1 %v7441_v33  ;;  %v7464_v33 = vld [vmem:[%s7772_s5 + $0x1d0] sm:$0xff]  }
 0x1d9   : > { %3952 = vmatprep.subr.bf16.mxu1 %v7622_v1 }
 0x1da   : > { %3037 = vmatpush1.bf16.msra.mxu0 %v7438_v35  ;;  %v2762_v35 = vld [vmem:[#allocation3 + $0x140] sm:$0xff] }
 0x1db   : > { %3038 = vmatprep.subr.bf16.mxu0 %v7622_v1 }
 0x1dc   : > { %3953 = vmatpush1.bf16.msra.mxu1 %v7443_v36  ;;  %v2761_v36 = vld [vmem:[#allocation3 + $0x138] sm:$0xff] }
 0x1dd   : > { %3954 = vmatprep.subr.bf16.mxu1 %v7622_v1 }
 0x1de   : > { %3039 = vmatpush1.bf16.msra.mxu0 %v7440_v37  ;;  %7144 = vmatmul.mubr.bf16.gmra.mrb[12].mxu1 %v2781_v38  ;;  %v2765_v37 = vld [vmem:[#allocation3 + $0x158] sm:$0xff] }
 0x1df   : > { %3040 = vmatprep.subr.bf16.mxu0 %v7622_v1  ;;  %7147 = vmatprep.mubr.bf16.mxu1 %v2784_v40  ;;  %v7465_v38 = vld [vmem:[%s7772_s5 + $0x1d8] sm:$0xff]   ;;  %v2768_v40 = vld [vmem:[#allocation3 + $0x170] sm:$0xff] }
 0x1e0   : > { %3955 = vmatpush1.bf16.msra.mxu1 %v7444_v39  ;;  %v2764_v39 = vld [vmem:[#allocation3 + $0x150] sm:$0xff] }
 0x1e1   : > { %3956 = vmatprep.subr.bf16.mxu1 %v7622_v1 }
 0x1e2   : > { %3041 = vmatpush1.bf16.msra.mxu0 %v7442_v41  ;;  %v2767_v41 = vld [vmem:[#allocation3 + $0x168] sm:$0xff] }
 0x1e3   : > { %7091 = vmatprep.subr.bf16.mxu0 %v8244_v2 }
 0x1e4   : > { %3957 = vmatpush1.bf16.msra.mxu1 %v7445_v42  ;;  %v2771_v42 = vld [vmem:[#allocation3 + $0x1b8] sm:$0xff] }
 0x1e5   : > { %3043 = vmatmul.mubr.bf16.vlgmr.msra.gmra.mrb[0].mxu0 %v2722_v43  ;;  %3958 = vmatprep.subr.bf16.mxu1 %v7622_v1  ;;  %v7466_v43 = vld [vmem:[%s7772_s5 + $0x1e0] sm:$0xff]  }
 0x1e6   : > { %7092 = vmatpush3.bf16.msra.mxu0 %v8244_v2  ;;  %3050 = vmatprep.mubr.bf16.mxu0 %v8329_v45  ;;  %v2808_v2 = vld [vmem:[#allocation3 + $0x2e0] sm:$0xff] }
 0x1e7   : > { %7148 = vmatmul.mubr.bf16.gmra.mrb[16].mxu1 %v2787_v44  ;;  %7093 = vmatprep.subr.bf16.mxu0 %v8250_v4  ;;  %v2770_v44 = vld [vmem:[#allocation3 + $0x1b0] sm:$0xff] }
 0x1e8   : > { %7151 = vmatprep.mubr.bf16.mxu1 %v2790_v47  ;;  %3959 = vmatpush1.bf16.msra.mxu1 %v7446_v46  ;;  %v8425_v46 = vld [vmem:[%s7772_s5 + $0x140] sm:$0xff]   ;;  %v2773_v47 = vld [vmem:[#allocation3 + $0x1c8] sm:$0xff] }
 0x1e9   : > { %3960 = vmatprep.subr.bf16.mxu1 %v7622_v1 }
 0x1ea   : > { %7094 = vmatpush3.bf16.msra.mxu0 %v8250_v4  ;;  %v2734_v4 = vld [vmem:[#allocation3 + $0x60] sm:$0xff] }
 0x1eb   : > { %7095 = vmatprep.subr.bf16.mxu0 %v8255_v5 }
 0x1ec   : > { %3961 = vmatpush1.bf16.msra.mxu1 %v7447_v48  ;;  %v2777_v48 = vld [vmem:[#allocation3 + $0x1e8] sm:$0xff] }
 0x1ed   : > { %3051 = vmatmul.mubr.bf16.gmra.mrb[4].mxu0 %v8338_v49  ;;  %3962 = vmatprep.subr.bf16.mxu1 %v7622_v1 }
 0x1ee   : > { %3058 = vmatprep.mubr.bf16.mxu0 %v8340_v50  ;;  %7096 = vmatpush3.bf16.msra.mxu0 %v8255_v5  ;;  %v2738_v5 = vld [vmem:[#allocation3 + $0x80] sm:$0xff] }
 0x1ef   : > { %7152 = vmatmul.mubr.bf16.gmra.mrb[20].mxu1 %v2793_v51  ;;  %7097 = vmatprep.subr.bf16.mxu0 %v8262_v7  ;;  %v2780_v51 = vld [vmem:[#allocation3 + $0x200] sm:$0xff] }
 0x1f0   : > { %7155 = vmatprep.mubr.bf16.mxu1 %v2796_v53  ;;  %3963 = vmatpush1.bf16.msra.mxu1 %v7448_v52  ;;  %v2779_v52 = vld [vmem:[#allocation3 + $0x1f8] sm:$0xff] }
 0x1f1   : > { %3964 = vmatprep.subr.bf16.mxu1 %v7622_v1  ;;  %v2783_v53 = vld [vmem:[#allocation3 + $0x218] sm:$0xff] }
 0x1f2   : > { %7098 = vmatpush3.bf16.msra.mxu0 %v8262_v7  ;;  %v2814_v7 = vld [vmem:[#allocation3 + $0x310] sm:$0xff] }
 0x1f3   : > { %7099 = vmatprep.subr.bf16.mxu0 %v8269_v9 }
 0x1f4   : > { %3965 = vmatpush1.bf16.msra.mxu1 %v7449_v54  ;;  %v7472_v54 = vld [vmem:[%s7772_s5 + $0x1f0] sm:$0xff]  }
 0x1f5   : > { %3059 = vmatmul.mubr.bf16.gmra.mrb[8].mxu0 %v8352_v55  ;;  %3966 = vmatprep.subr.bf16.mxu1 %v7622_v1 }
 0x1f6   : > { %3066 = vmatprep.mubr.bf16.mxu0 %v8354_v56  ;;  %7100 = vmatpush3.bf16.msra.mxu0 %v8269_v9  ;;  %v2741_v9 = vld [vmem:[#allocation3 + $0x98] sm:$0xff] }
 0x1f7   : > { %7156 = vmatmul.mubr.bf16.gmra.mrb[24].mxu1 %v2799_v57  ;;  %7101 = vmatprep.subr.bf16.mxu0 %v8276_v12  ;;  %v3699_v57 = vld [vmem:[#allocation3 + $0x188] sm:$0xff] }
 0x1f8   : > { %7159 = vmatprep.mubr.bf16.mxu1 %v2802_v59  ;;  %3967 = vmatpush1.bf16.msra.mxu1 %v7450_v58  ;;  %v2785_v58 = vld [vmem:[#allocation3 + $0x228] sm:$0xff] }
 0x1f9   : > { %3968 = vmatprep.subr.bf16.mxu1 %v7622_v1  ;;  %v2789_v59 = vld [vmem:[#allocation3 + $0x248] sm:$0xff] }
 0x1fa   : > { %7102 = vmatpush3.bf16.msra.mxu0 %v8276_v12  ;;  %v8386_v12 = vld [vmem:[#allocation3 + $0xb0] sm:$0xff] }
 0x1fb   : > { %7103 = vmatprep.subr.bf16.mxu0 %v8283_v14 }
 0x1fc   : > { %3969 = vmatpush1.bf16.msra.mxu1 %v7451_v60  ;;  %v7476_v60 = vld [vmem:[%s7772_s5 + $0x1f8] sm:$0xff]  }
 0x1fd   : > { %3067 = vmatmul.mubr.bf16.gmra.mrb[12].mxu0 %v8367_v61  ;;  %3970 = vmatprep.subr.bf16.mxu1 %v7622_v1 }
 0x1fe   : > { %3074 = vmatprep.mubr.bf16.mxu0 %v8370_v62  ;;  %7104 = vmatpush3.bf16.msra.mxu0 %v8283_v14  ;;  %v7455_v14 = vld [vmem:[%s7772_s5 + $0x188] sm:$0xff]  }
 0x1ff   : > { %7160 = vmatmul.mubr.bf16.gmra.mrb[28].mxu1 %v2805_v63  ;;  %7105 = vmatprep.subr.bf16.mxu0 %v8290_v16 }
 0x200   : > { %7163 = vmatprep.mubr.bf16.mxu1 %v2808_v2  ;;  %3971 = vmatpush1.bf16.msra.mxu1 %v7452_v0  ;;  %v8435_v0 = vld [vmem:[#allocation3 + $0x258] sm:$0xff] }
 0x201   : > { %3972 = vmatprep.subr.bf16.mxu1 %v7622_v1 }
 0x202   : > { %7106 = vmatpush3.bf16.msra.mxu0 %v8290_v16  ;;  %v2747_v16 = vld [vmem:[#allocation3 + $0xc8] sm:$0xff] }
 0x203   : > { %7171 = vmatprep.subr.bf16.mxu0 %v8425_v46 }
 0x204   : > { %3973 = vmatpush1.bf16.msra.mxu1 %v7453_v3  ;;  %v8439_v3 = vld [vmem:[#allocation3 + $0x278] sm:$0xff] }
 0x205   : > { %3075 = vmatmul.mubr.bf16.gmra.mrb[16].mxu0 %v2734_v4  ;;  %5002 = vmatprep.subr.bf16.mxu1 %v7622_v1 }
 0x206   : > { %3082 = vmatprep.mubr.bf16.mxu0 %v2738_v5 }
 0x207   : > { %7164 = vmatmul.mubr.bf16.gmra.mrb[32].mxu1 %v2811_v6 }
 0x208   : > { %7167 = vmatprep.mubr.bf16.mxu1 %v2814_v7  ;;  %v8449_v7 = vld [vmem:[#allocation3 + $0x270] sm:$0xff] }
 0x20d   : > { %3083 = vmatmul.mubr.bf16.gmra.mrb[20].mxu0 %v2737_v8 }
 0x20e   : > { %3090 = vmatprep.mubr.bf16.mxu0 %v2741_v9 }
 0x20f   : > { %7168 = vmatmul.mubr.bf16.gmra.mrb[36].mxu1 %v2817_v10 }
 0x210   : > { %3974 = vmatprep.mubr.bf16.mxu1 %v8329_v45  ;;  %v2774_v45 = vld [vmem:[#allocation3 + $0x1d0] sm:$0xff] }
 0x215   : > { %3091 = vmatmul.mubr.bf16.gmra.mrb[24].mxu0 %v8384_v11 }
 0x216   : > { %3098 = vmatprep.mubr.bf16.mxu0 %v8386_v12 }
 0x217   : > { %3975 = vmatmul.mubr.bf16.vlgmr.msra.gmra.mrb[40].mxu1 %v8338_v49  ;;  %v7469_v49 = vld [vmem:[%s7772_s5 + $0x1e8] sm:$0xff]  }
 0x218   : > { %5003 = vmatpush1.bf16.msra.mxu1 %v7454_v13  ;;  %3982 = vmatprep.mubr.bf16.mxu1 %v8340_v50  ;;  %v2776_v50 = vld [vmem:[#allocation3 + $0x1e0] sm:$0xff]  ;;  %v8463_v13 = vld [vmem:[#allocation3 + $0x288] sm:$0xff] }
 0x219   : > { %5004 = vmatprep.subr.bf16.mxu1 %v7622_v1 }
 0x21c   : > { %5005 = vmatpush1.bf16.msra.mxu1 %v7455_v14 }
 0x21d   : > { %3099 = vmatmul.mubr.bf16.gmra.mrb[28].mxu0 %v2743_v15  ;;  %5006 = vmatprep.subr.bf16.mxu1 %v7622_v1 }
 0x21e   : > { %3106 = vmatprep.mubr.bf16.mxu0 %v2747_v16 }
 0x21f   : > { %3983 = vmatmul.mubr.bf16.gmra.mrb[44].mxu1 %v8352_v55  ;;  %v2782_v55 = vld [vmem:[#allocation3 + $0x210] sm:$0xff] }
 0x220   : > { %3990 = vmatprep.mubr.bf16.mxu1 %v8354_v56  ;;  %5007 = vmatpush1.bf16.msra.mxu1 %v7456_v17  ;;  %v2786_v56 = vld [vmem:[#allocation3 + $0x230] sm:$0xff] }
 0x221   : > { %5008 = vmatprep.subr.bf16.mxu1 %v7622_v1 }
 0x224   : > { %5009 = vmatpush1.bf16.msra.mxu1 %v7457_v18 }
 0x225   : > { %3107 = vmatmul.mubr.bf16.gmra.mrb[32].mxu0 %v2746_v19  ;;  %5010 = vmatprep.subr.bf16.mxu1 %v7622_v1 }
 0x226   : > { %3114 = vmatprep.mubr.bf16.mxu0 %v2750_v20 }
 0x227   : > { %3991 = vmatmul.mubr.bf16.gmra.mrb[48].mxu1 %v8367_v61  ;;  %v3698_v61 = vld [vmem:[#allocation3 + $0x180] sm:$0xff] }
 0x228   : > { %3998 = vmatprep.mubr.bf16.mxu1 %v8370_v62  ;;  %5011 = vmatpush1.bf16.msra.mxu1 %v7458_v21  ;;  %v2788_v62 = vld [vmem:[#allocation3 + $0x240] sm:$0xff] }
 0x229   : > { %5012 = vmatprep.subr.bf16.mxu1 %v7622_v1  ;;  %v8481_v21 = vld [vmem:[#allocation3 + $0x2c0] sm:$0xff] }
 0x22c   : > { %5013 = vmatpush1.bf16.msra.mxu1 %v7459_v22 }
 0x22d   : > { %3115 = vmatmul.mubr.bf16.gmra.mrb[36].mxu0 %v2749_v23  ;;  %5014 = vmatprep.subr.bf16.mxu1 %v7622_v1 }
 0x22e   : > { %3122 = vmatprep.mubr.bf16.mxu0 %v2753_v24 }
 0x22f   : > { %3999 = vmatmul.mubr.bf16.gmra.mrb[52].mxu1 %v2734_v4 }
 0x230   : > { %4006 = vmatprep.mubr.bf16.mxu1 %v2738_v5  ;;  %5015 = vmatpush1.bf16.msra.mxu1 %v7460_v25 }
 0x231   : > { %5016 = vmatprep.subr.bf16.mxu1 %v7622_v1 }
 0x234   : > { %5017 = vmatpush1.bf16.msra.mxu1 %v7461_v26 }
 0x235   : > { %3123 = vmatmul.mubr.bf16.gmra.mrb[40].mxu0 %v2752_v27  ;;  %5018 = vmatprep.subr.bf16.mxu1 %v7622_v1 }
 0x236   : > { %3130 = vmatprep.mubr.bf16.mxu0 %v2756_v28 }
 0x237   : > { %4007 = vmatmul.mubr.bf16.gmra.mrb[56].mxu1 %v2737_v8 }
 0x238   : > { %4014 = vmatprep.mubr.bf16.mxu1 %v2741_v9  ;;  %5019 = vmatpush1.bf16.msra.mxu1 %v7462_v29  ;;  %v8453_v9 = vld [vmem:[#allocation3 + $0x290] sm:$0xff] }
 0x239   : > { %5020 = vmatprep.subr.bf16.mxu1 %v7622_v1 }
 0x23c   : > { %5021 = vmatpush1.bf16.msra.mxu1 %v7463_v30 }
 0x23d   : > { %3131 = vmatmul.mubr.bf16.gmra.mrb[44].mxu0 %v2755_v31  ;;  %5022 = vmatprep.subr.bf16.mxu1 %v7622_v1 }
 0x23e   : > { %3138 = vmatprep.mubr.bf16.mxu0 %v2759_v32 }
 0x23f   : > { %4015 = vmatmul.mubr.bf16.gmra.mrb[60].mxu1 %v8384_v11 }
 0x240   : > { %4022 = vmatprep.mubr.bf16.mxu1 %v8386_v12  ;;  %5023 = vmatpush1.bf16.msra.mxu1 %v7464_v33 }
 0x241   : > { %5024 = vmatprep.subr.bf16.mxu1 %v7622_v1 }
 0x244   : > { %5025 = vmatpush1.bf16.msra.mxu1 %v7465_v38  ;;  %v8513_v38 = vld [vmem:[#allocation3 + $0x2d0] sm:$0xff] }
 0x245   : > { %3139 = vmatmul.mubr.bf16.gmra.mrb[48].mxu0 %v2758_v34  ;;  %5026 = vmatprep.subr.bf16.mxu1 %v7622_v1 }
 0x246   : > { %3146 = vmatprep.mubr.bf16.mxu0 %v2762_v35 }
 0x247   : > { %4023 = vmatmul.mubr.bf16.gmra.mrb[64].mxu1 %v2743_v15  ;;  %v8467_v15 = vld [vmem:[#allocation3 + $0x2a8] sm:$0xff] }
 0x248   : > { %4030 = vmatprep.mubr.bf16.mxu1 %v2747_v16  ;;  %5027 = vmatpush1.bf16.msra.mxu1 %v7466_v43 }
 0x249   : > { %5028 = vmatprep.subr.bf16.mxu1 %v7622_v1 }
 0x24c   : > { %5029 = vmatpush1.bf16.msra.mxu1 %v7469_v49  ;;  %v8533_v49 = vld [vmem:[#allocation3 + $0x2e8] sm:$0xff] }
 0x24d   : > { %3147 = vmatmul.mubr.bf16.gmra.mrb[52].mxu0 %v2761_v36  ;;  %5030 = vmatprep.subr.bf16.mxu1 %v7622_v1 }
 0x24e   : > { %3154 = vmatprep.mubr.bf16.mxu0 %v2765_v37 }
 0x24f   : > { %4031 = vmatmul.mubr.bf16.gmra.mrb[68].mxu1 %v2746_v19  ;;  %v8477_v19 = vld [vmem:[#allocation3 + $0x2a0] sm:$0xff] }
 0x250   : > { %4038 = vmatprep.mubr.bf16.mxu1 %v2750_v20  ;;  %5031 = vmatpush1.bf16.msra.mxu1 %v7472_v54 }
 0x251   : > { %5032 = vmatprep.subr.bf16.mxu1 %v7622_v1  ;;  %v2792_v1 = vld [vmem:[#allocation3 + $0x260] sm:$0xff] }
 0x254   : > { %5033 = vmatpush1.bf16.msra.mxu1 %v7476_v60 }
 0x255   : > { %3155 = vmatmul.mubr.bf16.gmra.mrb[56].mxu0 %v2764_v39 }
 0x256   : > { %3162 = vmatprep.mubr.bf16.mxu0 %v2768_v40 }
 0x257   : > { %4039 = vmatmul.mubr.bf16.gmra.mrb[72].mxu1 %v2749_v23 }
 0x258   : > { %4046 = vmatprep.mubr.bf16.mxu1 %v2753_v24 }
 0x25d   : > { %3163 = vmatmul.mubr.bf16.gmra.mrb[60].mxu0 %v2767_v41 }
 0x25e   : > { %3170 = vmatprep.mubr.bf16.mxu0 %v2771_v42 }
 0x25f   : > { %4047 = vmatmul.mubr.bf16.gmra.mrb[76].mxu1 %v2752_v27 }
 0x260   : > { %4054 = vmatprep.mubr.bf16.mxu1 %v2756_v28  ;;  %v8495_v28 = vld [vmem:[#allocation3 + $0x2b8] sm:$0xff] }
 0x265   : > { %3171 = vmatmul.mubr.bf16.gmra.mrb[64].mxu0 %v2770_v44 }
 0x266   : > { %3178 = vmatprep.mubr.bf16.mxu0 %v2774_v45 }
 0x267   : > { %4055 = vmatmul.mubr.bf16.gmra.mrb[80].mxu1 %v2755_v31  ;;  %v8499_v31 = vld [vmem:[#allocation3 + $0x2d8] sm:$0xff] }
 0x268   : > { %4062 = vmatprep.mubr.bf16.mxu1 %v2759_v32 }
 0x26d   : > { %3179 = vmatmul.mubr.bf16.gmra.mrb[68].mxu0 %v2773_v47 }
 0x26e   : > { %3186 = vmatprep.mubr.bf16.mxu0 %v2777_v48 }
 0x26f   : > { %4063 = vmatmul.mubr.bf16.gmra.mrb[84].mxu1 %v2758_v34 }
 0x270   : > { %4070 = vmatprep.mubr.bf16.mxu1 %v2762_v35 }
 0x275   : > { %3187 = vmatmul.mubr.bf16.gmra.mrb[72].mxu0 %v2776_v50 }
 0x276   : > { %3194 = vmatprep.mubr.bf16.mxu0 %v2780_v51 }
 0x277   : > { %4071 = vmatmul.mubr.bf16.gmra.mrb[88].mxu1 %v2761_v36 }
 0x278   : > { %4078 = vmatprep.mubr.bf16.mxu1 %v2765_v37 }
 0x27d   : > { %3195 = vmatmul.mubr.bf16.gmra.mrb[76].mxu0 %v2779_v52 }
 0x27e   : > { %3202 = vmatprep.mubr.bf16.mxu0 %v2783_v53 }
 0x27f   : > { %4079 = vmatmul.mubr.bf16.gmra.mrb[92].mxu1 %v2764_v39 }
 0x280   : > { %4086 = vmatprep.mubr.bf16.mxu1 %v2768_v40 }
 0x285   : > { %3203 = vmatmul.mubr.bf16.gmra.mrb[80].mxu0 %v2782_v55 }
 0x286   : > { %3210 = vmatprep.mubr.bf16.mxu0 %v2786_v56 }
 0x287   : > { %4087 = vmatmul.mubr.bf16.gmra.mrb[96].mxu1 %v2767_v41  ;;  %v8517_v41 = vld [vmem:[#allocation3 + $0x2f0] sm:$0xff] }
 0x288   : > { %4094 = vmatprep.mubr.bf16.mxu1 %v3699_v57 }
 0x28d   : > { %3211 = vmatmul.mubr.bf16.gmra.mrb[84].mxu0 %v2785_v58 }
 0x28e   : > { %3218 = vmatprep.mubr.bf16.mxu0 %v2789_v59 }
 0x28f   : > { %4095 = vmatmul.mubr.bf16.gmra.mrb[100].mxu1 %v3698_v61 }
 0x290   : > { %4102 = vmatprep.mubr.bf16.mxu1 %v2774_v45 }
 0x295   : > { %3219 = vmatmul.mubr.bf16.gmra.mrb[88].mxu0 %v2788_v62 }
 0x296   : > { %3226 = vmatprep.mubr.bf16.mxu0 %v2792_v1 }
 0x297   : > { %4103 = vmatmul.mubr.bf16.gmra.mrb[104].mxu1 %v2773_v47 }
 0x298   : > { %4110 = vmatprep.mubr.bf16.mxu1 %v2777_v48 }
 0x299   : > { %v8433_v63 = vpop.f32.mrb[0].mxu1 }
 0x29a   : > { %v8437_v2 = vpop.f32.mrb[1].mxu1 }
 0x29b   : > { %v8441_v4 = vpop.f32.mrb[2].mxu1 }
 0x29c   : > { %v8444_v5 = vpop.f32.mrb[3].mxu1 }
 0x29d   : > { %3227 = vmatmul.mubr.bf16.gmra.mrb[92].mxu0 %v8435_v0 }
 0x29e   : > { %3234 = vmatprep.mubr.bf16.mxu0 %v8439_v3 }
 0x29f   : > { %4111 = vmatmul.mubr.bf16.gmra.mrb[108].mxu1 %v2776_v50 }
 0x2a0   : > { %4118 = vmatprep.mubr.bf16.mxu1 %v2780_v51 }
 0x2a1   : > { %v8447_v6 = vpop.f32.mrb[4].mxu1 }
 0x2a2   : > { %v8451_v8 = vpop.f32.mrb[5].mxu1 }
 0x2a3   : > { %v8455_v10 = vpop.f32.mrb[6].mxu1 }
 0x2a4   : > { %v8458_v11 = vpop.f32.mrb[7].mxu1 }
 0x2a5   : > { %3235 = vmatmul.mubr.bf16.gmra.mrb[96].mxu0 %v8449_v7 }
 0x2a6   : > { %3242 = vmatprep.mubr.bf16.mxu0 %v8453_v9 }
 0x2a7   : > { %4119 = vmatmul.mubr.bf16.gmra.mrb[112].mxu1 %v2779_v52  ;;  %v8537_v52 = vld [vmem:[#allocation3 + $0x308] sm:$0xff] }
 0x2a8   : > { %4126 = vmatprep.mubr.bf16.mxu1 %v2783_v53 }
 0x2a9   : > { %v8461_v12 = vpop.f32.mrb[8].mxu1 }
 0x2aa   : > { %v8465_v14 = vpop.f32.mrb[9].mxu1 }
 0x2ab   : > { %v8469_v16 = vpop.f32.mrb[10].mxu1 }
 0x2ac   : > { %v8472_v17 = vpop.f32.mrb[11].mxu1 }
 0x2ad   : > { %3243 = vmatmul.mubr.bf16.gmra.mrb[100].mxu0 %v8463_v13 }
 0x2ae   : > { %3250 = vmatprep.mubr.bf16.mxu0 %v8467_v15 }
 0x2af   : > { %4127 = vmatmul.mubr.bf16.gmra.mrb[116].mxu1 %v2782_v55 }
 0x2b0   : > { %4134 = vmatprep.mubr.bf16.mxu1 %v2786_v56 }
 0x2b1   : > { %v8475_v18 = vpop.f32.mrb[12].mxu1 }
 0x2b2   : > { %v8479_v20 = vpop.f32.mrb[13].mxu1 }
 0x2b3   : > { %v8483_v22 = vpop.f32.mrb[14].mxu1 }
 0x2b4   : > { %v8486_v23 = vpop.f32.mrb[15].mxu1 }
 0x2b5   : > { %3251 = vmatmul.mubr.bf16.gmra.mrb[104].mxu0 %v8477_v19 }
 0x2b6   : > { %3258 = vmatprep.mubr.bf16.mxu0 %v8481_v21 }
 0x2b7   : > { %4135 = vmatmul.mubr.bf16.gmra.mrb[120].mxu1 %v2785_v58 }
 0x2b8   : > { %v8489_v24 = vpop.f32.mrb[0].mxu0  ;;  %4142 = vmatprep.mubr.bf16.mxu1 %v2789_v59  ;;  %v8553_v59 = vld [vmem:[#allocation3 + $0x300] sm:$0xff] }
 0x2b9   : > { %11420 = vst [vmem:[#allocation13_spill] sm:$0xff] %v8489_v24  ;;  %v3046_v25 = vpop.f32.mrb[1].mxu0 }
 0x2ba   : > { %v8491_v26 = vpop.f32.mrb[2].mxu0  ;;  %v8493_v27 = vpop.f32.mrb[16].mxu1 }
 0x2bb   : > { %11421 = vst [vmem:[#allocation14_spill] sm:$0xff] %v8491_v26  ;;  %v3049_v29 = vpop.f32.mrb[3].mxu0  ;;  %v8497_v30 = vpop.f32.mrb[17].mxu1  ;;  %v8615_v26 = vld [vmem:[#allocation3 + $0x70] sm:$0xff] }
 0x2bc   : > { %v8501_v32 = vpop.f32.mrb[18].mxu1  ;;  %v8573_v29 = vld [vmem:[#allocation3 + $0x318] sm:$0xff] }
 0x2bd   : > { %3259 = vmatmul.mubr.bf16.gmra.mrb[108].mxu0 %v8495_v28  ;;  %v8504_v33 = vpop.f32.mrb[19].mxu1 }
 0x2be   : > { %3266 = vmatprep.mubr.bf16.mxu0 %v8499_v31 }
 0x2bf   : > { %4143 = vmatmul.mubr.bf16.gmra.mrb[124].mxu1 %v2788_v62  ;;  %v8557_v62 = vld [vmem:[#allocation3 + $0x320] sm:$0xff] }
 0x2c0   : > { %v8507_v34 = vpop.f32.mrb[4].mxu0  ;;  %4150 = vmatprep.mubr.bf16.mxu1 %v2792_v1 }
 0x2c1   : > { %11422 = vst [vmem:[#allocation15_spill] sm:$0xff] %v8507_v34  ;;  %v3054_v35 = vpop.f32.mrb[5].mxu0  ;;  %v4713_v34 = vld [vmem:[#allocation3 + $0x30] sm:$0xff] }
 0x2c2   : > { %v8509_v36 = vpop.f32.mrb[6].mxu0  ;;  %v8511_v37 = vpop.f32.mrb[20].mxu1 }
 0x2c3   : > { %11423 = vst [vmem:[#allocation16_spill] sm:$0xff] %v8509_v36  ;;  %v3057_v39 = vpop.f32.mrb[7].mxu0  ;;  %v8515_v40 = vpop.f32.mrb[21].mxu1 }
 0x2c4   : > { %v8519_v42 = vpop.f32.mrb[22].mxu1 }
 0x2c5   : > { %3267 = vmatmul.mubr.bf16.gmra.mrb[112].mxu0 %v8513_v38  ;;  %v8522_v43 = vpop.f32.mrb[23].mxu1 }
 0x2c6   : > { %3274 = vmatprep.mubr.bf16.mxu0 %v8517_v41 }
 0x2c7   : > { %4151 = vmatmul.mubr.bf16.gmra.mrb[128].mxu1 %v8435_v0 }
 0x2c8   : > { %v8526_v44 = vpop.f32.mrb[8].mxu0  ;;  %4158 = vmatprep.mubr.bf16.mxu1 %v8439_v3 }
 0x2c9   : > { %11424 = vst [vmem:[#allocation17_spill] sm:$0xff] %v8526_v44  ;;  %v3062_v45 = vpop.f32.mrb[9].mxu0  ;;  %v8613_v44 = vld [vmem:[#allocation3 + $0x58] sm:$0xff] }
 0x2ca   : > { %v8529_v47 = vpop.f32.mrb[10].mxu0  ;;  %v8531_v48 = vpop.f32.mrb[24].mxu1  ;;  %v2724_v45 = vld [vmem:[#allocation3 + $0x10] sm:$0xff] }
 0x2cb   : > { %11425 = vst [vmem:[#allocation18_spill] sm:$0xff] %v8529_v47  ;;  %v3065_v50 = vpop.f32.mrb[11].mxu0  ;;  %v8535_v51 = vpop.f32.mrb[25].mxu1  ;;  %v7468_v47 = vld [vmem:[%s7772_s5 + $0x148] sm:$0xff]  }
 0x2cc   : > { %v8539_v53 = vpop.f32.mrb[26].mxu1 }
 0x2cd   : > { %3275 = vmatmul.mubr.bf16.gmra.mrb[116].mxu0 %v8533_v49  ;;  %v8542_v54 = vpop.f32.mrb[27].mxu1 }
 0x2ce   : > { %3282 = vmatprep.mubr.bf16.mxu0 %v8537_v52 }
 0x2cf   : > { %4159 = vmatmul.mubr.bf16.gmra.mrb[132].mxu1 %v8449_v7 }
 0x2d0   : > { %v8546_v55 = vpop.f32.mrb[12].mxu0  ;;  %4166 = vmatprep.mubr.bf16.mxu1 %v8453_v9 }
 0x2d1   : > { %11426 = vst [vmem:[#allocation19_spill] sm:$0xff] %v8546_v55  ;;  %v3070_v56 = vpop.f32.mrb[13].mxu0 }
 0x2d2   : > { %v8549_v57 = vpop.f32.mrb[14].mxu0  ;;  %v8551_v58 = vpop.f32.mrb[28].mxu1 }
 0x2d3   : > { %11427 = vst [vmem:[#allocation20_spill] sm:$0xff] %v8549_v57  ;;  %v3073_v60 = vpop.f32.mrb[15].mxu0  ;;  %v8555_v61 = vpop.f32.mrb[29].mxu1  ;;  %v8595_v57 = vld [vmem:[#allocation3 + $0x40] sm:$0xff] }
 0x2d4   : > { %v8559_v1 = vpop.f32.mrb[30].mxu1 }
 0x2d5   : > { %3283 = vmatmul.mubr.bf16.gmra.mrb[120].mxu0 %v8553_v59  ;;  %v8562_v0 = vpop.f32.mrb[31].mxu1 }
 0x2d6   : > { %3290 = vmatprep.mubr.bf16.mxu0 %v8557_v62 }
 0x2d7   : > { %4167 = vmatmul.mubr.bf16.gmra.mrb[136].mxu1 %v8463_v13 }
 0x2d8   : > { %v8566_v3 = vpop.f32.mrb[16].mxu0  ;;  %4174 = vmatprep.mubr.bf16.mxu1 %v8467_v15 }
 0x2d9   : > { %11428 = vst [vmem:[#allocation21_spill] sm:$0xff] %v8566_v3  ;;  %v3078_v7 = vpop.f32.mrb[17].mxu0 }
 0x2da   : > { %v8569_v9 = vpop.f32.mrb[18].mxu0  ;;  %v8571_v25 = vpop.f32.mrb[32].mxu1 }
 0x2db   : > { %11429 = vst [vmem:[#allocation22_spill] sm:$0xff] %v8569_v9  ;;  %v3081_v35 = vpop.f32.mrb[19].mxu0  ;;  %v8575_v39 = vpop.f32.mrb[33].mxu1 }
 0x2dc   : > { %v8577_v50 = vpop.f32.mrb[34].mxu1  ;;  %v8590_v35 = vld [vmem:[#allocation3 + $0x28] sm:$0xff] }
 0x2dd   : > { %3291 = vmatmul.mubr.bf16.gmra.mrb[124].mxu0 %v8573_v29  ;;  %v8580_v13 = vpop.f32.mrb[35].mxu1 }
 0x2de   : > { %7107 = vmatprep.mubr.bf16.mxu0 %v2724_v45 }
 0x2df   : > { %4175 = vmatmul.mubr.bf16.gmra.mrb[140].mxu1 %v8477_v19 }
 0x2e0   : > { %v8583_v15 = vpop.f32.mrb[20].mxu0  ;;  %4182 = vmatprep.mubr.bf16.mxu1 %v8481_v21  ;;  %v7470_v21 = vld [vmem:[%s7772_s5 + $0x150] sm:$0xff]  }
 0x2e1   : > { %11430 = vst [vmem:[#allocation23_spill] sm:$0xff] %v8583_v15  ;;  %v3086_v56 = vpop.f32.mrb[21].mxu0 }
 0x2e2   : > { %v8586_v60 = vpop.f32.mrb[22].mxu0  ;;  %v8588_v7 = vpop.f32.mrb[36].mxu1 }
 0x2e3   : > { %11431 = vst [vmem:[#allocation24_spill] sm:$0xff] %v8586_v60  ;;  %v3089_v9 = vpop.f32.mrb[23].mxu0  ;;  %v8592_v3 = vpop.f32.mrb[37].mxu1 }
 0x2e4   : > { %v8597_v45 = vpop.f32.mrb[38].mxu1 }
 0x2e5   : > { %7108 = vmatmul.mubr.bf16.vlgmr.msra.gmra.mrb[128].mxu0 %v8590_v35  ;;  %v8600_v19 = vpop.f32.mrb[39].mxu1 }
 0x2e6   : > { %7172 = vmatpush3.bf16.msra.mxu0 %v8425_v46  ;;  %7111 = vmatprep.mubr.bf16.mxu0 %v8595_v57 }
 0x2e7   : > { %4183 = vmatmul.mubr.bf16.gmra.mrb[144].mxu1 %v8495_v28  ;;  %7173 = vmatprep.subr.bf16.mxu0 %v7468_v47  ;;  %v7471_v28 = vld [vmem:[%s7772_s5 + $0x158] sm:$0xff]  }
 0x2e8   : > { %v8606_v9 = vpop.f32.mrb[24].mxu0  ;;  %4190 = vmatprep.mubr.bf16.mxu1 %v8499_v31 }
 0x2e9   : > { %11432 = vst [vmem:[#allocation25_spill] sm:$0xff] %v8606_v9  ;;  %v3094_v56 = vpop.f32.mrb[25].mxu0 }
 0x2ea   : > { %v8609_v60 = vpop.f32.mrb[26].mxu0  ;;  %v8611_v15 = vpop.f32.mrb[40].mxu1  ;;  %7174 = vmatpush3.bf16.msra.mxu0 %v7468_v47  ;;  %v7473_v47 = vld [vmem:[%s7772_s5 + $0x160] sm:$0xff]  }
 0x2eb   : > { %11433 = vst [vmem:[#allocation26_spill] sm:$0xff] %v8609_v60  ;;  %11434 = vst [vmem:[#allocation27_spill] sm:$0xff] %v8611_v15  ;;  %v3097_v46 = vpop.f32.mrb[27].mxu0  ;;  %v3978_v55 = vpop.f32.mrb[41].mxu1  ;;  %7175 = vmatprep.subr.bf16.mxu0 %v7470_v21  ;;  %v8631_v15 = vld [vmem:[#allocation3 + $0x88] sm:$0xff]  ;;  %v8633_v60 = vld [vmem:[#allocation3 + $0xa0] sm:$0xff] }
 0x2ec   : > { %v8618_v36 = vpop.f32.mrb[42].mxu1 }
 0x2ed   : > { %11435 = vst [vmem:[#allocation28_spill] sm:$0xff] %v8618_v36  ;;  %7112 = vmatmul.mubr.bf16.gmra.mrb[132].mxu0 %v8613_v44  ;;  %v3981_v31 = vpop.f32.mrb[43].mxu1 }
 0x2ee   : > { %7176 = vmatpush3.bf16.msra.mxu0 %v7470_v21  ;;  %7115 = vmatprep.mubr.bf16.mxu0 %v8615_v26 }
 0x2ef   : > { %4191 = vmatmul.mubr.bf16.gmra.mrb[148].mxu1 %v8513_v38  ;;  %7177 = vmatprep.subr.bf16.mxu0 %v7471_v28  ;;  %v7474_v38 = vld [vmem:[%s7772_s5 + $0x168] sm:$0xff]  }
 0x2f0   : > { %v8624_v56 = vpop.f32.mrb[28].mxu0  ;;  %4198 = vmatprep.mubr.bf16.mxu1 %v8517_v41 }
 0x2f1   : > { %11436 = vst [vmem:[#allocation29_spill] sm:$0xff] %v8624_v56  ;;  %v3102_v55 = vpop.f32.mrb[29].mxu0 }
 0x2f2   : > { %v8627_v46 = vpop.f32.mrb[30].mxu0  ;;  %v8629_v36 = vpop.f32.mrb[44].mxu1  ;;  %7178 = vmatpush3.bf16.msra.mxu0 %v7471_v28  ;;  %v7475_v55 = vld [vmem:[%s7772_s5 + $0x170] sm:$0xff]  }
 0x2f3   : > { %11437 = vst [vmem:[#allocation30_spill] sm:$0xff] %v8627_v46  ;;  %11438 = vst [vmem:[#allocation31_spill] sm:$0xff] %v8629_v36  ;;  %v3105_v21 = vpop.f32.mrb[31].mxu0  ;;  %v3986_v31 = vpop.f32.mrb[45].mxu1  ;;  %7179 = vmatprep.subr.bf16.mxu0 %v7473_v47  ;;  %v8649_v36 = vld [vmem:[#allocation3 + $0xb8] sm:$0xff] }
 0x2f4   : > { %v8636_v9 = vpop.f32.mrb[46].mxu1 }
 0x2f5   : > { %11439 = vst [vmem:[#allocation32_spill] sm:$0xff] %v8636_v9  ;;  %7116 = vmatmul.mubr.bf16.gmra.mrb[136].mxu0 %v8631_v15  ;;  %v3989_v41 = vpop.f32.mrb[47].mxu1 }
 0x2f6   : > { %7119 = vmatprep.mubr.bf16.mxu0 %v8633_v60  ;;  %7180 = vmatpush3.bf16.msra.mxu0 %v7473_v47  ;;  %v8651_v47 = vld [vmem:[#allocation3 + $0xd0] sm:$0xff] }
 0x2f7   : > { %4199 = vmatmul.mubr.bf16.gmra.mrb[152].mxu1 %v8533_v49  ;;  %7181 = vmatprep.subr.bf16.mxu0 %v7474_v38  ;;  %v7477_v49 = vld [vmem:[%s7772_s5 + $0x178] sm:$0xff]  }
 0x2f8   : > { %v8642_v28 = vpop.f32.mrb[32].mxu0  ;;  %4206 = vmatprep.mubr.bf16.mxu1 %v8537_v52 }
 0x2f9   : > { %11440 = vst [vmem:[#allocation33_spill] sm:$0xff] %v8642_v28  ;;  %v3110_v21 = vpop.f32.mrb[33].mxu0  ;;  %v8669_v28 = vld [vmem:[#allocation3 + $0x100] sm:$0xff] }
 0x2fa   : > { %v8645_v31 = vpop.f32.mrb[34].mxu0  ;;  %v8647_v9 = vpop.f32.mrb[48].mxu1  ;;  %7182 = vmatpush3.bf16.msra.mxu0 %v7474_v38  ;;  %v7478_v21 = vld [vmem:[%s7772_s5 + $0x200] sm:$0xff]  }
 0x2fb   : > { %11441 = vst [vmem:[#allocation34_spill] sm:$0xff] %v8645_v31  ;;  %11442 = vst [vmem:[#allocation35_spill] sm:$0xff] %v8647_v9  ;;  %v3113_v41 = vpop.f32.mrb[35].mxu0  ;;  %v3994_v46 = vpop.f32.mrb[49].mxu1  ;;  %7183 = vmatprep.subr.bf16.mxu0 %v7475_v55 }
 0x2fc   : > { %v8654_v56 = vpop.f32.mrb[50].mxu1 }
 0x2fd   : > { %11443 = vst [vmem:[#allocation36_spill] sm:$0xff] %v8654_v56  ;;  %7120 = vmatmul.mubr.bf16.gmra.mrb[140].mxu0 %v8649_v36  ;;  %v3997_v52 = vpop.f32.mrb[51].mxu1  ;;  %v8667_v56 = vld [vmem:[#allocation3 + $0xe8] sm:$0xff] }
 0x2fe   : > { %7123 = vmatprep.mubr.bf16.mxu0 %v8651_v47  ;;  %7184 = vmatpush3.bf16.msra.mxu0 %v7475_v55 }
 0x2ff   : > { %4207 = vmatmul.mubr.bf16.gmra.mrb[156].mxu1 %v8553_v59  ;;  %7185 = vmatprep.subr.bf16.mxu0 %v7477_v49 }
 0x300   : > { %v8660_v9 = vpop.f32.mrb[36].mxu0  ;;  %4214 = vmatprep.mubr.bf16.mxu1 %v8557_v62 }
 0x301   : > { %11444 = vst [vmem:[#allocation37_spill] sm:$0xff] %v8660_v9  ;;  %v3118_v46 = vpop.f32.mrb[37].mxu0  ;;  %v3747_v9 = vld [vmem:[#allocation3 + $0x338] sm:$0xff] }
 0x302   : > { %v8663_v38 = vpop.f32.mrb[38].mxu0  ;;  %v8665_v41 = vpop.f32.mrb[52].mxu1  ;;  %7186 = vmatpush3.bf16.msra.mxu0 %v7477_v49 }
 0x303   : > { %11445 = vst [vmem:[#allocation38_spill] sm:$0xff] %v8663_v38  ;;  %11446 = vst [vmem:[#allocation39_spill] sm:$0xff] %v8665_v41  ;;  %v3121_v52 = vpop.f32.mrb[39].mxu0  ;;  %v4002_v31 = vpop.f32.mrb[53].mxu1  ;;  %7251 = vmatprep.subr.bf16.mxu0 %v7478_v21 }
 0x304   : > { %v8671_v59 = vpop.f32.mrb[54].mxu1  ;;  %v8682_v52 = vld [vmem:[#allocation3 + $0x118] sm:$0xff] }
 0x305   : > { %11447 = vst [vmem:[#allocation40_spill] sm:$0xff] %v8671_v59  ;;  %7124 = vmatmul.mubr.bf16.gmra.mrb[144].mxu0 %v8667_v56  ;;  %v4005_v55 = vpop.f32.mrb[55].mxu1 }
 0x306   : > { %7127 = vmatprep.mubr.bf16.mxu0 %v8669_v28  ;;  %v3746_v55 = vld [vmem:[#allocation3 + $0x330] sm:$0xff] }
 0x307   : > { %4215 = vmatmul.mubr.bf16.gmra.mrb[160].mxu1 %v8573_v29  ;;  %v4714_v29 = vld [vmem:[#allocation3 + $0x38] sm:$0xff] }
 0x308   : > { %v8676_v62 = vpop.f32.mrb[40].mxu0  ;;  %4222 = vmatprep.mubr.bf16.mxu1 %v3747_v9 }
 0x309   : > { %11448 = vst [vmem:[#allocation41_spill] sm:$0xff] %v8676_v62  ;;  %v3126_v46 = vpop.f32.mrb[41].mxu0 }
 0x30a   : > { %v8678_v49 = vpop.f32.mrb[42].mxu0  ;;  %v8680_v31 = vpop.f32.mrb[56].mxu1 }
 0x30b   : > { %11449 = vst [vmem:[#allocation42_spill] sm:$0xff] %v8678_v49  ;;  %11450 = vst [vmem:[#allocation43_spill] sm:$0xff] %v8680_v31  ;;  %v3129_v41 = vpop.f32.mrb[43].mxu0  ;;  %v4010_v59 = vpop.f32.mrb[57].mxu1 }
 0x30c   : > { %v8684_v38 = vpop.f32.mrb[58].mxu1 }
 0x30d   : > { %11451 = vst [vmem:[#allocation44_spill] sm:$0xff] %v8684_v38  ;;  %7128 = vmatmul.mubr.bf16.gmra.mrb[148].mxu0 %v8682_v52  ;;  %v4013_v24 = vpop.f32.mrb[59].mxu1  ;;  %v7479_v38 = vld [vmem:[%s7772_s5 + $0x208] sm:$0xff]  }
 0x30e   : > { %7187 = vmatprep.mubr.bf16.mxu0 %v8590_v35  ;;  %v4717_v35 = vld [vmem:[#allocation3 + $0x50] sm:$0xff] }
 0x30f   : > { %4223 = vmatmul.mubr.bf16.gmra.mrb[164].mxu1 %v3746_v55  ;;  %v7480_v55 = vld [vmem:[%s7772_s5 + $0x210] sm:$0xff]  }
 0x310   : > { %v8688_v9 = vpop.f32.mrb[44].mxu0  ;;  %5034 = vmatprep.mubr.bf16.mxu1 %v4714_v29 }
 0x311   : > { %11452 = vst [vmem:[#allocation45_spill] sm:$0xff] %v8688_v9  ;;  %v3134_v46 = vpop.f32.mrb[45].mxu0  ;;  %v4716_v9 = vld [vmem:[#allocation3 + $0x48] sm:$0xff] }
 0x312   : > { %v8690_v31 = vpop.f32.mrb[46].mxu0  ;;  %v8692_v41 = vpop.f32.mrb[60].mxu1 }
 0x313   : > { %11453 = vst [vmem:[#allocation46_spill] sm:$0xff] %v8690_v31  ;;  %11454 = vst [vmem:[#allocation47_spill] sm:$0xff] %v8692_v41  ;;  %v3137_v59 = vpop.f32.mrb[47].mxu0  ;;  %v4018_v49 = vpop.f32.mrb[61].mxu1  ;;  %v7481_v31 = vld [vmem:[%s7772_s5 + $0x218] sm:$0xff]  }
 0x314   : > { %v8695_v62 = vpop.f32.mrb[62].mxu1 }
 0x315   : > { %11455 = vst [vmem:[#allocation48_spill] sm:$0xff] %v8695_v62  ;;  %7188 = vmatmul.mubr.bf16.vlgmr.msra.gmra.mrb[152].mxu0 %v8595_v57  ;;  %v4021_v24 = vpop.f32.mrb[63].mxu1 }
 0x316   : > { %7252 = vmatpush3.bf16.msra.mxu0 %v7478_v21  ;;  %7191 = vmatprep.mubr.bf16.mxu0 %v8613_v44 }
 0x317   : > { %5035 = vmatmul.mubr.bf16.vlgmr.msra.gmra.mrb[168].mxu1 %v4713_v34  ;;  %7253 = vmatprep.subr.bf16.mxu0 %v7479_v38 }
 0x318   : > { %v3140_v29 = vpop.f32.mrb[48].mxu0  ;;  %5042 = vmatprep.mubr.bf16.mxu1 %v4717_v35  ;;  %v4720_v35 = vld [vmem:[#allocation3 + $0x68] sm:$0xff] }
 0x319   : > { %v3430_v46 = vadd.f32 %v8437_v2, %v3140_v29  ;;  %v3142_v49 = vpop.f32.mrb[49].mxu0 }
 0x31a   : > { %v3143_v59 = vpop.f32.mrb[50].mxu0  ;;  %v8701_v41 = vpop.f32.mrb[64].mxu1  ;;  %7254 = vmatpush3.bf16.msra.mxu0 %v7479_v38  ;;  %v7482_v38 = vld [vmem:[%s7772_s5 + $0x220] sm:$0xff]  }
 0x31b   : > { %3612 = vst [vmem:[#allocation2 + $0xc0] sm:$0xff] %v3430_v46  ;;  %v3433_v24 = vadd.f32 %v8444_v5, %v3143_v59  ;;  %v3145_v21 = vpop.f32.mrb[51].mxu0  ;;  %v4026_v62 = vpop.f32.mrb[65].mxu1  ;;  %7255 = vmatprep.subr.bf16.mxu0 %v7480_v55 }
 0x31c   : > { %v8705_v34 = vpop.f32.mrb[66].mxu1 }
 0x31d   : > { %3613 = vst [vmem:[#allocation2 + $0xc8] sm:$0xff] %v3433_v24  ;;  %7192 = vmatmul.mubr.bf16.gmra.mrb[156].mxu0 %v8615_v26  ;;  %v4029_v2 = vpop.f32.mrb[67].mxu1 }
 0x31e   : > { %7195 = vmatprep.mubr.bf16.mxu0 %v8631_v15  ;;  %7256 = vmatpush3.bf16.msra.mxu0 %v7480_v55  ;;  %v7483_v55 = vld [vmem:[%s7772_s5 + $0x228] sm:$0xff]   ;;  %v4719_v2 = vld [vmem:[#allocation3 + $0x60] sm:$0xff] }
 0x31f   : > { %5043 = vmatmul.mubr.bf16.gmra.mrb[172].mxu1 %v4716_v9  ;;  %7257 = vmatprep.subr.bf16.mxu0 %v7481_v31 }
 0x320   : > { %v3148_v5 = vpop.f32.mrb[52].mxu0  ;;  %5050 = vmatprep.mubr.bf16.mxu1 %v4720_v35  ;;  %v4723_v35 = vld [vmem:[#allocation3 + $0x80] sm:$0xff] }
 0x321   : > { %v3438_v62 = vadd.f32 %v8433_v63, %v3148_v5  ;;  %v3150_v29 = vpop.f32.mrb[53].mxu0 }
 0x322   : > { %v3151_v46 = vpop.f32.mrb[54].mxu0  ;;  %v8711_v49 = vpop.f32.mrb[68].mxu1  ;;  %7258 = vmatpush3.bf16.msra.mxu0 %v7481_v31  ;;  %v7484_v31 = vld [vmem:[%s7772_s5 + $0x230] sm:$0xff]  }
 0x323   : > { %3614 = vst [vmem:[#allocation2 + $0xd0] sm:$0xff] %v3438_v62  ;;  %v3441_v59 = vadd.f32 %v8441_v4, %v3151_v46  ;;  %v3153_v24 = vpop.f32.mrb[55].mxu0  ;;  %v4034_v21 = vpop.f32.mrb[69].mxu1  ;;  %7259 = vmatprep.subr.bf16.mxu0 %v7482_v38 }
 0x324   : > { %v8715_v9 = vpop.f32.mrb[70].mxu1 }
 0x325   : > { %3615 = vst [vmem:[#allocation2 + $0xd8] sm:$0xff] %v3441_v59  ;;  %7196 = vmatmul.mubr.bf16.gmra.mrb[160].mxu0 %v8633_v60  ;;  %v4037_v63 = vpop.f32.mrb[71].mxu1 }
 0x326   : > { %7199 = vmatprep.mubr.bf16.mxu0 %v8649_v36  ;;  %7260 = vmatpush3.bf16.msra.mxu0 %v7482_v38  ;;  %v7485_v38 = vld [vmem:[%s7772_s5 + $0x238] sm:$0xff]  }
 0x327   : > { %5051 = vmatmul.mubr.bf16.gmra.mrb[176].mxu1 %v4719_v2  ;;  %7261 = vmatprep.subr.bf16.mxu0 %v7483_v55  ;;  %v4722_v2 = vld [vmem:[#allocation3 + $0x78] sm:$0xff] }
 0x328   : > { %v3156_v4 = vpop.f32.mrb[56].mxu0  ;;  %5058 = vmatprep.mubr.bf16.mxu1 %v4723_v35 }
 0x329   : > { %v3446_v5 = vadd.f32 %v8451_v8, %v3156_v4  ;;  %v3158_v62 = vpop.f32.mrb[57].mxu0  ;;  %v4726_v8 = vld [vmem:[#allocation3 + $0x98] sm:$0xff] }
 0x32a   : > { %v3159_v29 = vpop.f32.mrb[58].mxu0  ;;  %v8721_v46 = vpop.f32.mrb[72].mxu1  ;;  %7262 = vmatpush3.bf16.msra.mxu0 %v7483_v55 }
 0x32b   : > { %3616 = vst [vmem:[#allocation2 + $0xe0] sm:$0xff] %v3446_v5  ;;  %v3449_v59 = vadd.f32 %v8458_v11, %v3159_v29  ;;  %v3161_v24 = vpop.f32.mrb[59].mxu0  ;;  %v4042_v21 = vpop.f32.mrb[73].mxu1  ;;  %7263 = vmatprep.subr.bf16.mxu0 %v7484_v31 }
 0x32c   : > { %v8725_v63 = vpop.f32.mrb[74].mxu1 }
 0x32d   : > { %3617 = vst [vmem:[#allocation2 + $0xe8] sm:$0xff] %v3449_v59  ;;  %7200 = vmatmul.mubr.bf16.gmra.mrb[164].mxu0 %v8651_v47  ;;  %v4045_v35 = vpop.f32.mrb[75].mxu1 }
 0x32e   : > { %7203 = vmatprep.mubr.bf16.mxu0 %v8667_v56  ;;  %7264 = vmatpush3.bf16.msra.mxu0 %v7484_v31  ;;  %v4725_v35 = vld [vmem:[#allocation3 + $0x90] sm:$0xff] }
 0x32f   : > { %5059 = vmatmul.mubr.bf16.gmra.mrb[180].mxu1 %v4722_v2  ;;  %7265 = vmatprep.subr.bf16.mxu0 %v7485_v38  ;;  %v4729_v2 = vld [vmem:[#allocation3 + $0xb0] sm:$0xff] }
 0x330   : > { %v3164_v55 = vpop.f32.mrb[60].mxu0  ;;  %5066 = vmatprep.mubr.bf16.mxu1 %v4726_v8 }
 0x331   : > { %v3454_v11 = vadd.f32 %v8447_v6, %v3164_v55  ;;  %v3166_v4 = vpop.f32.mrb[61].mxu0 }
 0x332   : > { %v3167_v5 = vpop.f32.mrb[62].mxu0  ;;  %v8730_v62 = vpop.f32.mrb[76].mxu1  ;;  %7266 = vmatpush3.bf16.msra.mxu0 %v7485_v38 }
 0x333   : > { %3618 = vst [vmem:[#allocation2 + $0xf0] sm:$0xff] %v3454_v11  ;;  %v3457_v29 = vadd.f32 %v8455_v10, %v3167_v5  ;;  %v3169_v59 = vpop.f32.mrb[63].mxu0  ;;  %v4050_v24 = vpop.f32.mrb[77].mxu1  ;;  %v8740_v11 = vld [vmem:[#allocation3 + $0x130] sm:$0xff] }
 0x334   : > { %v8733_v21 = vpop.f32.mrb[78].mxu1  ;;  %v8743_v59 = vld [vmem:[#allocation3 + $0x148] sm:$0xff] }
 0x335   : > { %3619 = vst [vmem:[#allocation2 + $0xf8] sm:$0xff] %v3457_v29  ;;  %7204 = vmatmul.mubr.bf16.gmra.mrb[168].mxu0 %v8669_v28  ;;  %v4053_v31 = vpop.f32.mrb[79].mxu1 }
 0x336   : > { %7207 = vmatprep.mubr.bf16.mxu0 %v8682_v52  ;;  %v4732_v31 = vld [vmem:[#allocation3 + $0xc8] sm:$0xff] }
 0x337   : > { %5067 = vmatmul.mubr.bf16.gmra.mrb[184].mxu1 %v4725_v35  ;;  %v4728_v35 = vld [vmem:[#allocation3 + $0xa8] sm:$0xff] }
 0x338   : > { %v3172_v6 = vpop.f32.mrb[64].mxu0  ;;  %5074 = vmatprep.mubr.bf16.mxu1 %v4729_v2 }
 0x339   : > { %v3462_v38 = vadd.f32 %v8465_v14, %v3172_v6  ;;  %v3174_v8 = vpop.f32.mrb[65].mxu0 }
 0x33a   : > { %v3175_v55 = vpop.f32.mrb[66].mxu0  ;;  %v8738_v10 = vpop.f32.mrb[80].mxu1 }
 0x33b   : > { %11456 = vst [vmem:[#allocation49_spill] sm:$0xff] %v8738_v10  ;;  %3620 = vst [vmem:[#allocation2 + $0x100] sm:$0xff] %v3462_v38  ;;  %v3465_v4 = vadd.f32 %v8472_v17, %v3175_v55  ;;  %v3177_v5 = vpop.f32.mrb[67].mxu0  ;;  %v4058_v29 = vpop.f32.mrb[81].mxu1  ;;  %v8752_v55 = vld [vmem:[#allocation3 + $0x160] sm:$0xff] }
 0x33c   : > { %v8745_v24 = vpop.f32.mrb[82].mxu1 }
 0x33d   : > { %11457 = vst [vmem:[#allocation50_spill] sm:$0xff] %v8745_v24  ;;  %3621 = vst [vmem:[#allocation2 + $0x108] sm:$0xff] %v3465_v4  ;;  %7208 = vmatmul.mubr.bf16.gmra.mrb[172].mxu0 %v8740_v11  ;;  %v4061_v14 = vpop.f32.mrb[83].mxu1 }
 0x33e   : > { %7211 = vmatprep.mubr.bf16.mxu0 %v8743_v59  ;;  %v8755_v14 = vld [vmem:[#allocation3 + $0x178] sm:$0xff] }
 0x33f   : > { %5075 = vmatmul.mubr.bf16.gmra.mrb[188].mxu1 %v4728_v35  ;;  %v4731_v35 = vld [vmem:[#allocation3 + $0xc0] sm:$0xff] }
 0x340   : > { %v3180_v2 = vpop.f32.mrb[68].mxu0  ;;  %5082 = vmatprep.mubr.bf16.mxu1 %v4732_v31  ;;  %v4735_v31 = vld [vmem:[#allocation3 + $0xe0] sm:$0xff] }
 0x341   : > { %v3470_v6 = vadd.f32 %v8461_v12, %v3180_v2  ;;  %v3182_v17 = vpop.f32.mrb[69].mxu0 }
 0x342   : > { %v3183_v38 = vpop.f32.mrb[70].mxu0  ;;  %v8750_v8 = vpop.f32.mrb[84].mxu1 }
 0x343   : > { %11458 = vst [vmem:[#allocation51_spill] sm:$0xff] %v8750_v8  ;;  %3622 = vst [vmem:[#allocation2 + $0x110] sm:$0xff] %v3470_v6  ;;  %v3473_v4 = vadd.f32 %v8469_v16, %v3183_v38  ;;  %v3185_v5 = vpop.f32.mrb[71].mxu0  ;;  %v4066_v29 = vpop.f32.mrb[85].mxu1  ;;  %v4734_v8 = vld [vmem:[#allocation3 + $0xd8] sm:$0xff] }
 0x344   : > { %v8757_v24 = vpop.f32.mrb[86].mxu1  ;;  %v8764_v5 = vld [vmem:[#allocation3 + $0x190] sm:$0xff] }
 0x345   : > { %11459 = vst [vmem:[#allocation52_spill] sm:$0xff] %v8757_v24  ;;  %3623 = vst [vmem:[#allocation2 + $0x118] sm:$0xff] %v3473_v4  ;;  %7212 = vmatmul.mubr.bf16.gmra.mrb[176].mxu0 %v8752_v55  ;;  %v4069_v12 = vpop.f32.mrb[87].mxu1 }
 0x346   : > { %7215 = vmatprep.mubr.bf16.mxu0 %v8755_v14  ;;  %v3703_v12 = vld [vmem:[#allocation3 + $0x1d8] sm:$0xff] }
 0x347   : > { %5083 = vmatmul.mubr.bf16.gmra.mrb[192].mxu1 %v4731_v35 }
 0x348   : > { %v3188_v2 = vpop.f32.mrb[72].mxu0  ;;  %5090 = vmatprep.mubr.bf16.mxu1 %v4735_v31 }
 0x349   : > { %v3478_v6 = vadd.f32 %v8479_v20, %v3188_v2  ;;  %v3190_v16 = vpop.f32.mrb[73].mxu0  ;;  %v4738_v20 = vld [vmem:[#allocation3 + $0xf8] sm:$0xff] }
 0x34a   : > { %v3191_v17 = vpop.f32.mrb[74].mxu0  ;;  %v8762_v38 = vpop.f32.mrb[88].mxu1 }
 0x34b   : > { %3624 = vst [vmem:[#allocation2 + $0x120] sm:$0xff] %v3478_v6  ;;  %v3481_v4 = vadd.f32 %v8486_v23, %v3191_v17  ;;  %v3193_v29 = vpop.f32.mrb[75].mxu0  ;;  %v4074_v24 = vpop.f32.mrb[89].mxu1 }
 0x34c   : > { %v8767_v10 = vpop.f32.mrb[90].mxu1  ;;  %v8773_v24 = vld [vmem:[#allocation3 + $0x1f0] sm:$0xff] }
 0x34d   : > { %11460 = vst [vmem:[#allocation53_spill] sm:$0xff] %v8767_v10  ;;  %3625 = vst [vmem:[#allocation2 + $0x128] sm:$0xff] %v3481_v4  ;;  %7216 = vmatmul.mubr.bf16.gmra.mrb[180].mxu0 %v8764_v5  ;;  %v4077_v35 = vpop.f32.mrb[91].mxu1  ;;  %v8776_v10 = vld [vmem:[#allocation3 + $0x208] sm:$0xff] }
 0x34e   : > { %7219 = vmatprep.mubr.bf16.mxu0 %v3703_v12  ;;  %v4741_v12 = vld [vmem:[#allocation3 + $0x110] sm:$0xff] }
 0x34f   : > { %5091 = vmatmul.mubr.bf16.gmra.mrb[196].mxu1 %v4734_v8  ;;  %v4737_v8 = vld [vmem:[#allocation3 + $0xf0] sm:$0xff] }
 0x350   : > { %v3196_v31 = vpop.f32.mrb[76].mxu0  ;;  %5098 = vmatprep.mubr.bf16.mxu1 %v4738_v20 }
 0x351   : > { %v3486_v2 = vadd.f32 %v8475_v18, %v3196_v31  ;;  %v3198_v6 = vpop.f32.mrb[77].mxu0 }
 0x352   : > { %v3199_v16 = vpop.f32.mrb[78].mxu0  ;;  %v8771_v23 = vpop.f32.mrb[92].mxu1 }
 0x353   : > { %3626 = vst [vmem:[#allocation2 + $0x130] sm:$0xff] %v3486_v2  ;;  %v3489_v17 = vadd.f32 %v8483_v22, %v3199_v16  ;;  %v3201_v4 = vpop.f32.mrb[79].mxu0  ;;  %v4082_v29 = vpop.f32.mrb[93].mxu1  ;;  %v8785_v16 = vld [vmem:[#allocation3 + $0x220] sm:$0xff] }
 0x354   : > { %v8778_v35 = vpop.f32.mrb[94].mxu1 }
 0x355   : > { %11461 = vst [vmem:[#allocation54_spill] sm:$0xff] %v8778_v35  ;;  %3627 = vst [vmem:[#allocation2 + $0x138] sm:$0xff] %v3489_v17  ;;  %7220 = vmatmul.mubr.bf16.gmra.mrb[184].mxu0 %v8773_v24  ;;  %v4085_v18 = vpop.f32.mrb[95].mxu1 }
 0x356   : > { %7223 = vmatprep.mubr.bf16.mxu0 %v8776_v10  ;;  %v8788_v18 = vld [vmem:[#allocation3 + $0x238] sm:$0xff] }
 0x357   : > { %5099 = vmatmul.mubr.bf16.gmra.mrb[200].mxu1 %v4737_v8  ;;  %v4740_v8 = vld [vmem:[#allocation3 + $0x108] sm:$0xff] }
 0x358   : > { %v3204_v20 = vpop.f32.mrb[80].mxu0  ;;  %5106 = vmatprep.mubr.bf16.mxu1 %v4741_v12  ;;  %v4744_v12 = vld [vmem:[#allocation3 + $0x128] sm:$0xff] }
 0x359   : > { %v3494_v31 = vadd.f32 %v8497_v30, %v3204_v20  ;;  %v3206_v22 = vpop.f32.mrb[81].mxu0 }
 0x35a   : > { %v3207_v2 = vpop.f32.mrb[82].mxu0  ;;  %v8783_v6 = vpop.f32.mrb[96].mxu1 }
 0x35b   : > { %11462 = vst [vmem:[#allocation55_spill] sm:$0xff] %v8783_v6  ;;  %3628 = vst [vmem:[#allocation2 + $0x140] sm:$0xff] %v3494_v31  ;;  %v3497_v17 = vadd.f32 %v8504_v33, %v3207_v2  ;;  %v3209_v4 = vpop.f32.mrb[83].mxu0  ;;  %v4090_v29 = vpop.f32.mrb[97].mxu1 }
 0x35c   : > { %v8790_v35 = vpop.f32.mrb[98].mxu1  ;;  %v8797_v4 = vld [vmem:[#allocation3 + $0x250] sm:$0xff] }
 0x35d   : > { %11463 = vst [vmem:[#allocation56_spill] sm:$0xff] %v8790_v35  ;;  %3629 = vst [vmem:[#allocation2 + $0x148] sm:$0xff] %v3497_v17  ;;  %7224 = vmatmul.mubr.bf16.gmra.mrb[188].mxu0 %v8785_v16  ;;  %v4093_v30 = vpop.f32.mrb[99].mxu1 }
 0x35e   : > { %7227 = vmatprep.mubr.bf16.mxu0 %v8788_v18  ;;  %v8800_v30 = vld [vmem:[#allocation3 + $0x268] sm:$0xff] }
 0x35f   : > { %5107 = vmatmul.mubr.bf16.gmra.mrb[204].mxu1 %v4740_v8  ;;  %v4743_v8 = vld [vmem:[#allocation3 + $0x120] sm:$0xff] }
 0x360   : > { %v3212_v20 = vpop.f32.mrb[84].mxu0  ;;  %5114 = vmatprep.mubr.bf16.mxu1 %v4744_v12  ;;  %v4747_v12 = vld [vmem:[#allocation3 + $0x140] sm:$0xff] }
 0x361   : > { %v3502_v31 = vadd.f32 %v8493_v27, %v3212_v20  ;;  %v3214_v33 = vpop.f32.mrb[85].mxu0 }
 0x362   : > { %v3215_v22 = vpop.f32.mrb[86].mxu0  ;;  %v8795_v2 = vpop.f32.mrb[100].mxu1 }
 0x363   : > { %11464 = vst [vmem:[#allocation57_spill] sm:$0xff] %v8795_v2  ;;  %3630 = vst [vmem:[#allocation2 + $0x150] sm:$0xff] %v3502_v31  ;;  %v3505_v17 = vadd.f32 %v8501_v32, %v3215_v22  ;;  %v3217_v29 = vpop.f32.mrb[87].mxu0  ;;  %v4098_v35 = vpop.f32.mrb[101].mxu1  ;;  %v8809_v22 = vld [vmem:[#allocation3 + $0x280] sm:$0xff] }
 0x364   : > { %v8802_v6 = vpop.f32.mrb[102].mxu1 }
 0x365   : > { %11465 = vst [vmem:[#allocation58_spill] sm:$0xff] %v8802_v6  ;;  %3631 = vst [vmem:[#allocation2 + $0x158] sm:$0xff] %v3505_v17  ;;  %7228 = vmatmul.mubr.bf16.gmra.mrb[192].mxu0 %v8797_v4  ;;  %v4101_v27 = vpop.f32.mrb[103].mxu1 }
 0x366   : > { %7231 = vmatprep.mubr.bf16.mxu0 %v8800_v30  ;;  %v8812_v27 = vld [vmem:[#allocation3 + $0x298] sm:$0xff] }
 0x367   : > { %5115 = vmatmul.mubr.bf16.gmra.mrb[208].mxu1 %v4743_v8  ;;  %v4746_v8 = vld [vmem:[#allocation3 + $0x138] sm:$0xff] }
 0x368   : > { %v3220_v20 = vpop.f32.mrb[88].mxu0  ;;  %5122 = vmatprep.mubr.bf16.mxu1 %v4747_v12  ;;  %v4750_v12 = vld [vmem:[#allocation3 + $0x158] sm:$0xff] }
 0x369   : > { %v3510_v31 = vadd.f32 %v8515_v40, %v3220_v20  ;;  %v3222_v32 = vpop.f32.mrb[89].mxu0 }
 0x36a   : > { %v3223_v33 = vpop.f32.mrb[90].mxu0  ;;  %v8807_v35 = vpop.f32.mrb[104].mxu1 }
 0x36b   : > { %11466 = vst [vmem:[#allocation59_spill] sm:$0xff] %v8807_v35  ;;  %3632 = vst [vmem:[#allocation2 + $0x160] sm:$0xff] %v3510_v31  ;;  %v3513_v17 = vadd.f32 %v8522_v43, %v3223_v33  ;;  %v3225_v29 = vpop.f32.mrb[91].mxu0  ;;  %v4106_v6 = vpop.f32.mrb[105].mxu1  ;;  %v8821_v33 = vld [vmem:[#allocation3 + $0x2b0] sm:$0xff] }
 0x36c   : > { %v8814_v2 = vpop.f32.mrb[106].mxu1 }
 0x36d   : > { %11467 = vst [vmem:[#allocation60_spill] sm:$0xff] %v8814_v2  ;;  %3633 = vst [vmem:[#allocation2 + $0x168] sm:$0xff] %v3513_v17  ;;  %7232 = vmatmul.mubr.bf16.gmra.mrb[196].mxu0 %v8809_v22  ;;  %v4109_v40 = vpop.f32.mrb[107].mxu1 }
 0x36e   : > { %7235 = vmatprep.mubr.bf16.mxu0 %v8812_v27  ;;  %v8824_v40 = vld [vmem:[#allocation3 + $0x2c8] sm:$0xff] }
 0x36f   : > { %5123 = vmatmul.mubr.bf16.gmra.mrb[212].mxu1 %v4746_v8  ;;  %v4749_v8 = vld [vmem:[#allocation3 + $0x150] sm:$0xff] }
 0x370   : > { %v3228_v20 = vpop.f32.mrb[92].mxu0  ;;  %5130 = vmatprep.mubr.bf16.mxu1 %v4750_v12  ;;  %v4753_v12 = vld [vmem:[#allocation3 + $0x170] sm:$0xff] }
 0x371   : > { %v3518_v31 = vadd.f32 %v8511_v37, %v3228_v20  ;;  %v3230_v43 = vpop.f32.mrb[93].mxu0 }
 0x372   : > { %v3231_v32 = vpop.f32.mrb[94].mxu0  ;;  %v8819_v6 = vpop.f32.mrb[108].mxu1 }
 0x373   : > { %11468 = vst [vmem:[#allocation61_spill] sm:$0xff] %v8819_v6  ;;  %3634 = vst [vmem:[#allocation2 + $0x170] sm:$0xff] %v3518_v31  ;;  %v3521_v17 = vadd.f32 %v8519_v42, %v3231_v32  ;;  %v3233_v29 = vpop.f32.mrb[95].mxu0  ;;  %v4114_v2 = vpop.f32.mrb[109].mxu1  ;;  %v8833_v32 = vld [vmem:[#allocation3 + $0x2e0] sm:$0xff] }
 0x374   : > { %v8826_v35 = vpop.f32.mrb[110].mxu1 }
 0x375   : > { %11469 = vst [vmem:[#allocation62_spill] sm:$0xff] %v8826_v35  ;;  %3635 = vst [vmem:[#allocation2 + $0x178] sm:$0xff] %v3521_v17  ;;  %7236 = vmatmul.mubr.bf16.gmra.mrb[200].mxu0 %v8821_v33  ;;  %v4117_v37 = vpop.f32.mrb[111].mxu1 }
 0x376   : > { %7239 = vmatprep.mubr.bf16.mxu0 %v8824_v40  ;;  %v8836_v37 = vld [vmem:[#allocation3 + $0x2f8] sm:$0xff] }
 0x377   : > { %5131 = vmatmul.mubr.bf16.gmra.mrb[216].mxu1 %v4749_v8  ;;  %v4752_v8 = vld [vmem:[#allocation3 + $0x168] sm:$0xff] }
 0x378   : > { %v3236_v20 = vpop.f32.mrb[96].mxu0  ;;  %5138 = vmatprep.mubr.bf16.mxu1 %v4753_v12  ;;  %v4756_v12 = vld [vmem:[#allocation3 + $0x188] sm:$0xff] }
 0x379   : > { %v3526_v31 = vadd.f32 %v8535_v51, %v3236_v20  ;;  %v3238_v42 = vpop.f32.mrb[97].mxu0 }
 0x37a   : > { %v3239_v43 = vpop.f32.mrb[98].mxu0  ;;  %v8831_v2 = vpop.f32.mrb[112].mxu1 }
 0x37b   : > { %11470 = vst [vmem:[#allocation63_spill] sm:$0xff] %v8831_v2  ;;  %3636 = vst [vmem:[#allocation2 + $0x180] sm:$0xff] %v3526_v31  ;;  %v3529_v17 = vadd.f32 %v8542_v54, %v3239_v43  ;;  %v3241_v29 = vpop.f32.mrb[99].mxu0  ;;  %v4122_v35 = vpop.f32.mrb[113].mxu1  ;;  %v8845_v43 = vld [vmem:[#allocation3 + $0x310] sm:$0xff] }
 0x37c   : > { %v8838_v6 = vpop.f32.mrb[114].mxu1 }
 0x37d   : > { %11471 = vst [vmem:[#allocation64_spill] sm:$0xff] %v8838_v6  ;;  %3637 = vst [vmem:[#allocation2 + $0x188] sm:$0xff] %v3529_v17  ;;  %7240 = vmatmul.mubr.bf16.gmra.mrb[204].mxu0 %v8833_v32  ;;  %v4125_v51 = vpop.f32.mrb[115].mxu1 }
 0x37e   : > { %7243 = vmatprep.mubr.bf16.mxu0 %v8836_v37  ;;  %v8848_v51 = vld [vmem:[#allocation3 + $0x328] sm:$0xff] }
 0x37f   : > { %5139 = vmatmul.mubr.bf16.gmra.mrb[220].mxu1 %v4752_v8  ;;  %v4755_v8 = vld [vmem:[#allocation3 + $0x180] sm:$0xff] }
 0x380   : > { %v3244_v20 = vpop.f32.mrb[100].mxu0  ;;  %5146 = vmatprep.mubr.bf16.mxu1 %v4756_v12  ;;  %v4759_v12 = vld [vmem:[#allocation3 + $0x1a0] sm:$0xff] }
 0x381   : > { %v3534_v31 = vadd.f32 %v8531_v48, %v3244_v20  ;;  %v3246_v54 = vpop.f32.mrb[101].mxu0 }
 0x382   : > { %v3247_v42 = vpop.f32.mrb[102].mxu0  ;;  %v8843_v35 = vpop.f32.mrb[116].mxu1 }
 0x383   : > { %11472 = vst [vmem:[#allocation65_spill] sm:$0xff] %v8843_v35  ;;  %3638 = vst [vmem:[#allocation2 + $0x190] sm:$0xff] %v3534_v31  ;;  %v3537_v17 = vadd.f32 %v8539_v53, %v3247_v42  ;;  %v3249_v29 = vpop.f32.mrb[103].mxu0  ;;  %v4130_v6 = vpop.f32.mrb[117].mxu1  ;;  %v8857_v42 = vld [vmem:[#allocation3 + $0x340] sm:$0xff]  ;;  %v4758_v35 = vld [vmem:[#allocation3 + $0x198] sm:$0xff] }
 0x384   : > { %v8850_v2 = vpop.f32.mrb[118].mxu1 }
 0x385   : > { %11473 = vst [vmem:[#allocation66_spill] sm:$0xff] %v8850_v2  ;;  %3639 = vst [vmem:[#allocation2 + $0x198] sm:$0xff] %v3537_v17  ;;  %7244 = vmatmul.mubr.bf16.gmra.mrb[208].mxu0 %v8845_v43  ;;  %v4133_v48 = vpop.f32.mrb[119].mxu1 }
 0x386   : > { %7247 = vmatprep.mubr.bf16.mxu0 %v8848_v51 }
 0x387   : > { %5147 = vmatmul.mubr.bf16.gmra.mrb[224].mxu1 %v4755_v8 }
 0x388   : > { %v3252_v20 = vpop.f32.mrb[104].mxu0  ;;  %5154 = vmatprep.mubr.bf16.mxu1 %v4759_v12  ;;  %v4762_v12 = vld [vmem:[#allocation3 + $0x1e8] sm:$0xff] }
 0x389   : > { %v3542_v31 = vadd.f32 %v8555_v61, %v3252_v20  ;;  %v3254_v53 = vpop.f32.mrb[105].mxu0 }
 0x38a   : > { %v3255_v54 = vpop.f32.mrb[106].mxu0  ;;  %v8855_v6 = vpop.f32.mrb[120].mxu1 }
 0x38b   : > { %3640 = vst [vmem:[#allocation2 + $0x1a0] sm:$0xff] %v3542_v31  ;;  %v3545_v17 = vadd.f32 %v8562_v0, %v3255_v54  ;;  %v3257_v29 = vpop.f32.mrb[107].mxu0  ;;  %v4138_v2 = vpop.f32.mrb[121].mxu1 }
 0x38c   : > { %v8860_v48 = vpop.f32.mrb[122].mxu1 }
 0x38d   : > { %3641 = vst [vmem:[#allocation2 + $0x1a8] sm:$0xff] %v3545_v17  ;;  %7248 = vmatmul.mubr.bf16.gmra.mrb[212].mxu0 %v8857_v42  ;;  %v4141_v8 = vpop.f32.mrb[123].mxu1 }
 0x38e   : > { %7267 = vmatprep.mubr.bf16.mxu0 %v8595_v57  ;;  %v4761_v8 = vld [vmem:[#allocation3 + $0x1e0] sm:$0xff] }
 0x38f   : > { %5155 = vmatmul.mubr.bf16.gmra.mrb[228].mxu1 %v4758_v35  ;;  %v4765_v35 = vld [vmem:[#allocation3 + $0x200] sm:$0xff] }
 0x390   : > { %v3260_v61 = vpop.f32.mrb[108].mxu0  ;;  %5162 = vmatprep.mubr.bf16.mxu1 %v4762_v12 }
 0x391   : > { %v3550_v20 = vadd.f32 %v8551_v58, %v3260_v61  ;;  %v3262_v31 = vpop.f32.mrb[109].mxu0 }
 0x392   : > { %v3263_v53 = vpop.f32.mrb[110].mxu0  ;;  %v8865_v0 = vpop.f32.mrb[124].mxu1 }
 0x393   : > { %3642 = vst [vmem:[#allocation2 + $0x1b0] sm:$0xff] %v3550_v20  ;;  %v3553_v2 = vadd.f32 %v8559_v1, %v3263_v53  ;;  %v3265_v54 = vpop.f32.mrb[111].mxu0  ;;  %v4146_v17 = vpop.f32.mrb[125].mxu1 }
 0x394   : > { %v8868_v29 = vpop.f32.mrb[126].mxu1  ;;  %v4768_v17 = vld [vmem:[#allocation3 + $0x218] sm:$0xff] }
 0x395   : > { %3643 = vst [vmem:[#allocation2 + $0x1b8] sm:$0xff] %v3553_v2  ;;  %7268 = vmatmul.mubr.bf16.vlgmr.msra.gmra.mrb[216].mxu0 %v8613_v44  ;;  %v4149_v57 = vpop.f32.mrb[127].mxu1  ;;  %v4764_v44 = vld [vmem:[#allocation3 + $0x1f8] sm:$0xff] }
 0x396   : > { %7271 = vmatprep.mubr.bf16.mxu0 %v8615_v26 }
 0x397   : > { %5163 = vmatmul.mubr.bf16.gmra.mrb[232].mxu1 %v4761_v8 }
 0x398   : > { %v3268_v58 = vpop.f32.mrb[112].mxu0  ;;  %5170 = vmatprep.mubr.bf16.mxu1 %v4765_v35 }
 0x399   : > { %v3558_v12 = vadd.f32 %v8575_v39, %v3268_v58  ;;  %v3270_v61 = vpop.f32.mrb[113].mxu0 }
 0x39a   : > { %v3271_v20 = vpop.f32.mrb[114].mxu0  ;;  %v8873_v1 = vpop.f32.mrb[128].mxu1 }
 0x39b   : > { %11474 = vst [vmem:[#allocation67_spill] sm:$0xff] %v8873_v1  ;;  %3644 = vst [vmem:[#allocation2 + $0x1c0] sm:$0xff] %v3558_v12  ;;  %v3561_v31 = vadd.f32 %v8580_v13, %v3271_v20  ;;  %v3273_v53 = vpop.f32.mrb[115].mxu0  ;;  %v4154_v2 = vpop.f32.mrb[129].mxu1 }
 0x39c   : > { %v8876_v54 = vpop.f32.mrb[130].mxu1 }
 0x39d   : > { %11475 = vst [vmem:[#allocation68_spill] sm:$0xff] %v8876_v54  ;;  %3645 = vst [vmem:[#allocation2 + $0x1c8] sm:$0xff] %v3561_v31  ;;  %7272 = vmatmul.mubr.bf16.gmra.mrb[220].mxu0 %v8631_v15  ;;  %v4157_v26 = vpop.f32.mrb[131].mxu1  ;;  %v4767_v15 = vld [vmem:[#allocation3 + $0x210] sm:$0xff] }
 0x39e   : > { %7275 = vmatprep.mubr.bf16.mxu0 %v8633_v60  ;;  %v4771_v31 = vld [vmem:[#allocation3 + $0x230] sm:$0xff] }
 0x39f   : > { %5171 = vmatmul.mubr.bf16.gmra.mrb[236].mxu1 %v4764_v44 }
 0x3a0   : > { %v3276_v39 = vpop.f32.mrb[116].mxu0  ;;  %5178 = vmatprep.mubr.bf16.mxu1 %v4768_v17 }
 0x3a1   : > { %v3566_v8 = vadd.f32 %v8571_v25, %v3276_v39  ;;  %v3278_v57 = vpop.f32.mrb[117].mxu0 }
 0x3a2   : > { %v3279_v35 = vpop.f32.mrb[118].mxu0  ;;  %v8881_v13 = vpop.f32.mrb[132].mxu1  ;;  %v4774_v57 = vld [vmem:[#allocation3 + $0x248] sm:$0xff] }
 0x3a3   : > { %3646 = vst [vmem:[#allocation2 + $0x1d0] sm:$0xff] %v3566_v8  ;;  %v3569_v58 = vadd.f32 %v8577_v50, %v3279_v35  ;;  %v3281_v12 = vpop.f32.mrb[119].mxu0  ;;  %v4162_v61 = vpop.f32.mrb[133].mxu1 }
 0x3a4   : > { %v8884_v20 = vpop.f32.mrb[134].mxu1 }
 0x3a5   : > { %11476 = vst [vmem:[#allocation69_spill] sm:$0xff] %v8884_v20  ;;  %3647 = vst [vmem:[#allocation2 + $0x1d8] sm:$0xff] %v3569_v58  ;;  %7276 = vmatmul.mubr.bf16.gmra.mrb[224].mxu0 %v8649_v36  ;;  %v4165_v60 = vpop.f32.mrb[135].mxu1  ;;  %v4770_v36 = vld [vmem:[#allocation3 + $0x228] sm:$0xff] }
 0x3a6   : > { %7279 = vmatprep.mubr.bf16.mxu0 %v8651_v47 }
 0x3a7   : > { %5179 = vmatmul.mubr.bf16.gmra.mrb[240].mxu1 %v4767_v15 }
 0x3a8   : > { %v3284_v25 = vpop.f32.mrb[120].mxu0  ;;  %5186 = vmatprep.mubr.bf16.mxu1 %v4771_v31 }
 0x3a9   : > { %v3574_v53 = vadd.f32 %v8592_v3, %v3284_v25  ;;  %v3286_v2 = vpop.f32.mrb[121].mxu0  ;;  %v4777_v25 = vld [vmem:[#allocation3 + $0x260] sm:$0xff] }
 0x3aa   : > { %v3287_v44 = vpop.f32.mrb[122].mxu0  ;;  %v8889_v50 = vpop.f32.mrb[136].mxu1 }
 0x3ab   : > { %11477 = vst [vmem:[#allocation70_spill] sm:$0xff] %v8889_v50  ;;  %3648 = vst [vmem:[#allocation2 + $0x1e0] sm:$0xff] %v3574_v53  ;;  %v3577_v26 = vadd.f32 %v8600_v19, %v3287_v44  ;;  %v3289_v17 = vpop.f32.mrb[123].mxu0  ;;  %v4170_v39 = vpop.f32.mrb[137].mxu1  ;;  %v11481_v53 = vld [vmem:[#allocation15_spill] sm:$0xff] }
 0x3ac   : > { %v8892_v8 = vpop.f32.mrb[138].mxu1 }
 0x3ad   : > { %11478 = vst [vmem:[#allocation71_spill] sm:$0xff] %v8892_v8  ;;  %3649 = vst [vmem:[#allocation2 + $0x1e8] sm:$0xff] %v3577_v26  ;;  %7280 = vmatmul.mubr.bf16.gmra.mrb[228].mxu0 %v8667_v56  ;;  %v4173_v47 = vpop.f32.mrb[139].mxu1  ;;  %v4773_v56 = vld [vmem:[#allocation3 + $0x240] sm:$0xff] }
 0x3ae   : > { %7283 = vmatprep.mubr.bf16.mxu0 %v8669_v28 }
 0x3af   : > { %5187 = vmatmul.mubr.bf16.gmra.mrb[244].mxu1 %v4770_v36  ;;  %v11484_v36 = vld [vmem:[#allocation16_spill] sm:$0xff] }
 0x3b0   : > { %v3292_v3 = vpop.f32.mrb[124].mxu0  ;;  %5194 = vmatprep.mubr.bf16.mxu1 %v4774_v57 }
 0x3b1   : > { %v3582_v35 = vadd.f32 %v8588_v7, %v3292_v3  ;;  %v3294_v58 = vpop.f32.mrb[125].mxu0  ;;  %v11485_v3 = vld [vmem:[#allocation14_spill] sm:$0xff] }
 0x3b2   : > { %v3295_v12 = vpop.f32.mrb[126].mxu0  ;;  %v8897_v19 = vpop.f32.mrb[140].mxu1  ;;  %v4776_v58 = vld [vmem:[#allocation3 + $0x258] sm:$0xff] }
 0x3b3   : > { %11479 = vst [vmem:[#allocation72_spill] sm:$0xff] %v8897_v19  ;;  %3650 = vst [vmem:[#allocation2 + $0x1f0] sm:$0xff] %v3582_v35  ;;  %v3585_v61 = vadd.f32 %v8597_v45, %v3295_v12  ;;  %v3297_v15 = vpop.f32.mrb[127].mxu0  ;;  %v4178_v60 = vpop.f32.mrb[141].mxu1  ;;  %v11482_v45 = vld [vmem:[#allocation13_spill] sm:$0xff]  ;;  %v11515_v19 = vld [vmem:[#allocation42_spill] sm:$0xff] }
 0x3b4   : > { %v8900_v31 = vpop.f32.mrb[142].mxu1  ;;  %v11487_v60 = vld [vmem:[#allocation19_spill] sm:$0xff] }
 0x3b5   : > { %11480 = vst [vmem:[#allocation73_spill] sm:$0xff] %v8900_v31  ;;  %3651 = vst [vmem:[#allocation2 + $0x1f8] sm:$0xff] %v3585_v61  ;;  %7284 = vmatmul.mubr.bf16.gmra.mrb[232].mxu0 %v8682_v52  ;;  %v4181_v28 = vpop.f32.mrb[143].mxu1  ;;  %v4780_v61 = vld [vmem:[#allocation3 + $0x278] sm:$0xff]  ;;  %v11509_v31 = vld [vmem:[#allocation34_spill] sm:$0xff] }
 0x3b6   : > { %7287 = vmatprep.mubr.bf16.mxu0 %v8740_v11 }
 0x3b7   : > { %5195 = vmatmul.mubr.bf16.gmra.mrb[248].mxu1 %v4773_v56 }
 0x3b8   : > { %v7109_v7 = vpop.f32.mrb[128].mxu0  ;;  %5202 = vmatprep.mubr.bf16.mxu1 %v4777_v25  ;;  %v11488_v25 = vld [vmem:[#allocation17_spill] sm:$0xff] }
 0x3b9   : > { %v8905_v2 = vadd.f32 %v7109_v7, %v11481_v53  ;;  %v3333_v44 = vpop.f32.mrb[129].mxu0 }
 0x3ba   : > { %v8908_v26 = vadd.f32 %v3333_v44, %v11482_v45  ;;  %v7110_v17 = vpop.f32.mrb[130].mxu0  ;;  %v8910_v39 = vpop.f32.mrb[144].mxu1  ;;  %v11490_v45 = vld [vmem:[#allocation20_spill] sm:$0xff] }
 0x3bb   : > { %11483 = vst [vmem:[#allocation15_spill] sm:$0xff] %v8910_v39  ;;  %v8913_v47 = vadd.f32 %v7110_v17, %v11484_v36  ;;  %v3336_v52 = vpop.f32.mrb[131].mxu0  ;;  %v4186_v57 = vpop.f32.mrb[145].mxu1 }
 0x3bc   : > { %v8916_v11 = vadd.f32 %v3336_v52, %v11485_v3  ;;  %v8918_v35 = vpop.f32.mrb[146].mxu1  ;;  %v11491_v52 = vld [vmem:[#allocation18_spill] sm:$0xff]  ;;  %v4779_v3 = vld [vmem:[#allocation3 + $0x270] sm:$0xff] }
 0x3bd   : > { %11486 = vst [vmem:[#allocation13_spill] sm:$0xff] %v8918_v35  ;;  %7288 = vmatmul.mubr.bf16.gmra.mrb[236].mxu0 %v8743_v59  ;;  %v4189_v12 = vpop.f32.mrb[147].mxu1 }
 0x3be   : > { %7291 = vmatprep.mubr.bf16.mxu0 %v8752_v55  ;;  %v4783_v12 = vld [vmem:[#allocation3 + $0x290] sm:$0xff] }
 0x3bf   : > { %5203 = vmatmul.mubr.bf16.gmra.mrb[252].mxu1 %v4776_v58 }
 0x3c0   : > { %v7113_v15 = vpop.f32.mrb[132].mxu0  ;;  %5210 = vmatprep.mubr.bf16.mxu1 %v4780_v61 }
 0x3c1   : > { %v8923_v56 = vadd.f32 %v7113_v15, %v11487_v60  ;;  %v3349_v28 = vpop.f32.mrb[133].mxu0  ;;  %v11493_v15 = vld [vmem:[#allocation23_spill] sm:$0xff] }
 0x3c2   : > { %v8926_v7 = vadd.f32 %v3349_v28, %v11488_v25  ;;  %v7114_v53 = vpop.f32.mrb[134].mxu0  ;;  %v8928_v44 = vpop.f32.mrb[148].mxu1  ;;  %v11494_v25 = vld [vmem:[#allocation21_spill] sm:$0xff] }
 0x3c3   : > { %11489 = vst [vmem:[#allocation16_spill] sm:$0xff] %v8928_v44  ;;  %v8931_v17 = vadd.f32 %v7114_v53, %v11490_v45  ;;  %v3352_v59 = vpop.f32.mrb[135].mxu0  ;;  %v4194_v36 = vpop.f32.mrb[149].mxu1  ;;  %v11503_v44 = vld [vmem:[#allocation26_spill] sm:$0xff] }
 0x3c4   : > { %v8934_v55 = vadd.f32 %v3352_v59, %v11491_v52  ;;  %v8936_v57 = vpop.f32.mrb[150].mxu1  ;;  %v4760_v36 = vld [vmem:[#allocation3 + $0x1a8] sm:$0xff]  ;;  %v11496_v52 = vld [vmem:[#allocation24_spill] sm:$0xff] }
 0x3c5   : > { %11492 = vst [vmem:[#allocation14_spill] sm:$0xff] %v8936_v57  ;;  %7292 = vmatmul.mubr.bf16.gmra.mrb[240].mxu0 %v8755_v14  ;;  %v4197_v58 = vpop.f32.mrb[151].mxu1  ;;  %v4786_v57 = vld [vmem:[#allocation3 + $0x2a8] sm:$0xff] }
 0x3c6   : > { %7295 = vmatprep.mubr.bf16.mxu0 %v8764_v5  ;;  %v11497_v5 = vld [vmem:[#allocation22_spill] sm:$0xff] }
 0x3c7   : > { %5211 = vmatmul.mubr.bf16.gmra.mrb[0].mxu1 %v4779_v3 }
 0x3c8   : > { %v7117_v61 = vpop.f32.mrb[136].mxu0  ;;  %5218 = vmatprep.mubr.bf16.mxu1 %v4783_v12 }
 0x3c9   : > { %v8941_v60 = vadd.f32 %v7117_v61, %v11493_v15  ;;  %v3365_v28 = vpop.f32.mrb[137].mxu0  ;;  %v4782_v61 = vld [vmem:[#allocation3 + $0x288] sm:$0xff] }
 0x3ca   : > { %v8944_v53 = vadd.f32 %v3365_v28, %v11494_v25  ;;  %v7118_v45 = vpop.f32.mrb[138].mxu0  ;;  %v8946_v59 = vpop.f32.mrb[152].mxu1  ;;  %v11499_v25 = vld [vmem:[#allocation29_spill] sm:$0xff] }
 0x3cb   : > { %11495 = vst [vmem:[#allocation19_spill] sm:$0xff] %v8946_v59  ;;  %v8949_v14 = vadd.f32 %v7118_v45, %v11496_v52  ;;  %v3368_v58 = vpop.f32.mrb[139].mxu0  ;;  %v4202_v35 = vpop.f32.mrb[153].mxu1  ;;  %v11500_v52 = vld [vmem:[#allocation25_spill] sm:$0xff] }
 0x3cc   : > { %v8952_v3 = vadd.f32 %v3368_v58, %v11497_v5  ;;  %v8954_v12 = vpop.f32.mrb[154].mxu1 }
 0x3cd   : > { %11498 = vst [vmem:[#allocation17_spill] sm:$0xff] %v8954_v12  ;;  %7296 = vmatmul.mubr.bf16.gmra.mrb[244].mxu0 %v4760_v36  ;;  %v4205_v15 = vpop.f32.mrb[155].mxu1  ;;  %v11502_v12 = vld [vmem:[#allocation30_spill] sm:$0xff] }
 0x3ce   : > { %7299 = vmatprep.mubr.bf16.mxu0 %v8773_v24 }
 0x3cf   : > { %5219 = vmatmul.mubr.bf16.gmra.mrb[4].mxu1 %v4782_v61 }
 0x3d0   : > { %v7121_v28 = vpop.f32.mrb[140].mxu0  ;;  %5226 = vmatprep.mubr.bf16.mxu1 %v4786_v57  ;;  %v4785_v57 = vld [vmem:[#allocation3 + $0x2a0] sm:$0xff] }
 0x3d1   : > { %v8958_v59 = vadd.f32 %v7121_v28, %v11499_v25  ;;  %v3381_v45 = vpop.f32.mrb[141].mxu0  ;;  %v4789_v25 = vld [vmem:[#allocation3 + $0x2c0] sm:$0xff] }
 0x3d2   : > { %v8961_v35 = vadd.f32 %v3381_v45, %v11500_v52  ;;  %v7122_v58 = vpop.f32.mrb[142].mxu0  ;;  %v8963_v5 = vpop.f32.mrb[156].mxu1  ;;  %v11505_v52 = vld [vmem:[#allocation37_spill] sm:$0xff] }
 0x3d3   : > { %11501 = vst [vmem:[#allocation20_spill] sm:$0xff] %v8963_v5  ;;  %v8966_v39 = vadd.f32 %v7122_v58, %v11502_v12  ;;  %v3384_v36 = vpop.f32.mrb[143].mxu0  ;;  %v4210_v15 = vpop.f32.mrb[157].mxu1 }
 0x3d4   : > { %v8969_v24 = vadd.f32 %v3384_v36, %v11503_v44  ;;  %v8971_v61 = vpop.f32.mrb[158].mxu1  ;;  %v11506_v15 = vld [vmem:[#allocation33_spill] sm:$0xff] }
 0x3d5   : > { %11504 = vst [vmem:[#allocation18_spill] sm:$0xff] %v8971_v61  ;;  %7300 = vmatmul.mubr.bf16.gmra.mrb[248].mxu0 %v8776_v10  ;;  %v4213_v28 = vpop.f32.mrb[159].mxu1  ;;  %v11508_v61 = vld [vmem:[#allocation38_spill] sm:$0xff] }
 0x3d6   : > { %7303 = vmatprep.mubr.bf16.mxu0 %v8785_v16 }
 0x3d7   : > { %5227 = vmatmul.mubr.bf16.gmra.mrb[8].mxu1 %v4785_v57 }
 0x3d8   : > { %v7125_v45 = vpop.f32.mrb[144].mxu0  ;;  %5234 = vmatprep.mubr.bf16.mxu1 %v4789_v25  ;;  %v4788_v25 = vld [vmem:[#allocation3 + $0x2b8] sm:$0xff] }
 0x3d9   : > { %v8976_v12 = vadd.f32 %v7125_v45, %v11505_v52  ;;  %v3397_v58 = vpop.f32.mrb[145].mxu0  ;;  %v4792_v52 = vld [vmem:[#allocation3 + $0x2d8] sm:$0xff] }
 0x3da   : > { %v8979_v5 = vadd.f32 %v3397_v58, %v11506_v15  ;;  %v7126_v44 = vpop.f32.mrb[146].mxu0  ;;  %v8981_v36 = vpop.f32.mrb[160].mxu1  ;;  %v11511_v15 = vld [vmem:[#allocation45_spill] sm:$0xff] }
 0x3db   : > { %11507 = vst [vmem:[#allocation23_spill] sm:$0xff] %v8981_v36  ;;  %v8984_v8 = vadd.f32 %v7126_v44, %v11508_v61  ;;  %v3400_v10 = vpop.f32.mrb[147].mxu0  ;;  %v4218_v28 = vpop.f32.mrb[161].mxu1 }
 0x3dc   : > { %v8987_v16 = vadd.f32 %v3400_v10, %v11509_v31  ;;  %v8989_v57 = vpop.f32.mrb[162].mxu1  ;;  %v11512_v28 = vld [vmem:[#allocation41_spill] sm:$0xff] }
 0x3dd   : > { %11510 = vst [vmem:[#allocation21_spill] sm:$0xff] %v8989_v57  ;;  %7304 = vmatmul.mubr.bf16.gmra.mrb[252].mxu0 %v8788_v18  ;;  %v4221_v45 = vpop.f32.mrb[163].mxu1  ;;  %v11514_v57 = vld [vmem:[#allocation46_spill] sm:$0xff] }
 0x3de   : > { %7307 = vmatprep.mubr.bf16.mxu0 %v8797_v4 }
 0x3df   : > { %5235 = vmatmul.mubr.bf16.gmra.mrb[12].mxu1 %v4788_v25 }
 0x3e0   : > { %v7129_v58 = vpop.f32.mrb[148].mxu0  ;;  %5242 = vmatprep.mubr.bf16.mxu1 %v4792_v52  ;;  %v4791_v52 = vld [vmem:[#allocation3 + $0x2d0] sm:$0xff] }
 0x3e1   : > { %v8994_v61 = vadd.f32 %v7129_v58, %v11511_v15  ;;  %v3413_v44 = vpop.f32.mrb[149].mxu0  ;;  %v4795_v15 = vld [vmem:[#allocation3 + $0x2f0] sm:$0xff] }
 0x3e2   : > { %v8997_v36 = vadd.f32 %v3413_v44, %v11512_v28  ;;  %v7130_v31 = vpop.f32.mrb[150].mxu0  ;;  %v8999_v10 = vpop.f32.mrb[164].mxu1  ;;  %v11517_v28 = vld [vmem:[#allocation31_spill] sm:$0xff] }
 0x3e3   : > { %11513 = vst [vmem:[#allocation24_spill] sm:$0xff] %v8999_v10  ;;  %v9002_v50 = vadd.f32 %v7130_v31, %v11514_v57  ;;  %v3416_v18 = vpop.f32.mrb[151].mxu0  ;;  %v4226_v45 = vpop.f32.mrb[165].mxu1  ;;  %v11518_v10 = vld [vmem:[#allocation27_spill] sm:$0xff] }
 0x3e4   : > { %v9005_v4 = vadd.f32 %v3416_v18, %v11515_v19  ;;  %v9007_v25 = vpop.f32.mrb[166].mxu1 }
 0x3e5   : > { %11516 = vst [vmem:[#allocation22_spill] sm:$0xff] %v9007_v25  ;;  %7308 = vmatmul.mubr.bf16.gmra.mrb[0].mxu0 %v8800_v30  ;;  %v4229_v58 = vpop.f32.mrb[167].mxu1  ;;  %v11519_v25 = vld [vmem:[#allocation32_spill] sm:$0xff] }
 0x3e6   : > { %7311 = vmatprep.mubr.bf16.mxu0 %v8809_v22 }
 0x3e7   : > { %5243 = vmatmul.mubr.bf16.gmra.mrb[16].mxu1 %v4791_v52  ;;  %v11520_v52 = vld [vmem:[#allocation28_spill] sm:$0xff] }
 0x3e8   : > { %v7189_v44 = vpop.f32.mrb[152].mxu0  ;;  %5250 = vmatprep.mubr.bf16.mxu1 %v4795_v15 }
 0x3e9   : > { %v4274_v57 = vadd.f32 %v7189_v44, %v11517_v28  ;;  %v4265_v31 = vpop.f32.mrb[153].mxu0  ;;  %v4794_v44 = vld [vmem:[#allocation3 + $0x2e8] sm:$0xff] }
 0x3ea   : > { %v4266_v45 = vadd.f32 %v4265_v31, %v11518_v10  ;;  %v7190_v54 = vpop.f32.mrb[154].mxu0  ;;  %v9013_v19 = vpop.f32.mrb[168].mxu1  ;;  %v11522_v31 = vld [vmem:[#allocation35_spill] sm:$0xff] }
 0x3eb   : > { %v9016_v18 = vadd.f32 %v4274_v57, %v8905_v2  ;;  %v4277_v30 = vadd.f32 %v7190_v54, %v11519_v25  ;;  %v4268_v58 = vpop.f32.mrb[155].mxu0  ;;  %v5038_v20 = vpop.f32.mrb[169].mxu1  ;;  %v4798_v2 = vld [vmem:[#allocation3 + $0x308] sm:$0xff] }
 0x3ec   : > { %v9020_v22 = vadd.f32 %v4266_v45, %v8908_v26  ;;  %v4269_v15 = vadd.f32 %v4268_v58, %v11520_v52  ;;  %v9023_v1 = vpop.f32.mrb[170].mxu1  ;;  %v11521_v20 = vld [vmem:[#allocation39_spill] sm:$0xff] }
 0x3ed   : > { %v9026_v10 = vadd.f32 %v4277_v30, %v8913_v47  ;;  %7312 = vmatmul.mubr.bf16.gmra.mrb[4].mxu0 %v8812_v27  ;;  %v5041_v28 = vpop.f32.mrb[171].mxu1  ;;  %v11523_v30 = vld [vmem:[#allocation40_spill] sm:$0xff] }
 0x3ee   : > { %v9030_v57 = vadd.f32 %v4269_v15, %v8916_v11  ;;  %7315 = vmatprep.mubr.bf16.mxu0 %v8821_v33 }
 0x3ef   : > { %5251 = vmatmul.mubr.bf16.gmra.mrb[20].mxu1 %v4794_v44  ;;  %v11524_v44 = vld [vmem:[#allocation36_spill] sm:$0xff] }
 0x3f0   : > { %v7193_v54 = vpop.f32.mrb[156].mxu0  ;;  %5258 = vmatprep.mubr.bf16.mxu1 %v4798_v2 }
 0x3f1   : > { %v4290_v26 = vadd.f32 %v7193_v54, %v11521_v20  ;;  %v4281_v25 = vpop.f32.mrb[157].mxu0  ;;  %v4797_v54 = vld [vmem:[#allocation3 + $0x300] sm:$0xff] }
 0x3f2   : > { %v4282_v45 = vadd.f32 %v4281_v25, %v11522_v31  ;;  %v7194_v58 = vpop.f32.mrb[158].mxu0  ;;  %v9035_v47 = vpop.f32.mrb[172].mxu1  ;;  %v11525_v31 = vld [vmem:[#allocation47_spill] sm:$0xff] }
 0x3f3   : > { %v9038_v27 = vadd.f32 %v4290_v26, %v8923_v56  ;;  %v4293_v52 = vadd.f32 %v7194_v58, %v11523_v30  ;;  %v4284_v11 = vpop.f32.mrb[159].mxu0  ;;  %v5046_v15 = vpop.f32.mrb[173].mxu1  ;;  %v4801_v56 = vld [vmem:[#allocation3 + $0x320] sm:$0xff]  ;;  %v11526_v30 = vld [vmem:[#allocation43_spill] sm:$0xff] }
 0x3f4   : > { %v9042_v33 = vadd.f32 %v4282_v45, %v8926_v7  ;;  %v4285_v28 = vadd.f32 %v4284_v11, %v11524_v44  ;;  %v9045_v2 = vpop.f32.mrb[174].mxu1 }
 0x3f5   : > { %v9048_v20 = vadd.f32 %v4293_v52, %v8931_v17  ;;  %7316 = vmatmul.mubr.bf16.gmra.mrb[8].mxu0 %v8824_v40  ;;  %v5049_v25 = vpop.f32.mrb[175].mxu1  ;;  %v11527_v52 = vld [vmem:[#allocation48_spill] sm:$0xff] }
 0x3f6   : > { %v9052_v26 = vadd.f32 %v4285_v28, %v8934_v55  ;;  %7319 = vmatprep.mubr.bf16.mxu0 %v8833_v32 }
 0x3f7   : > { %5259 = vmatmul.mubr.bf16.gmra.mrb[24].mxu1 %v4797_v54  ;;  %v11528_v54 = vld [vmem:[#allocation44_spill] sm:$0xff] }
 0x3f8   : > { %v7197_v7 = vpop.f32.mrb[160].mxu0  ;;  %5266 = vmatprep.mubr.bf16.mxu1 %v4801_v56 }
 0x3f9   : > { %v4306_v45 = vadd.f32 %v7197_v7, %v11525_v31  ;;  %v4297_v58 = vpop.f32.mrb[161].mxu0  ;;  %v4800_v7 = vld [vmem:[#allocation3 + $0x318] sm:$0xff] }
 0x3fa   : > { %v4298_v11 = vadd.f32 %v4297_v58, %v11526_v30  ;;  %v7198_v15 = vpop.f32.mrb[162].mxu0  ;;  %v9057_v17 = vpop.f32.mrb[176].mxu1 }
 0x3fb   : > { %v9060_v40 = vadd.f32 %v4306_v45, %v8941_v60  ;;  %v4309_v44 = vadd.f32 %v7198_v15, %v11527_v52  ;;  %v4300_v55 = vpop.f32.mrb[163].mxu0  ;;  %v5054_v28 = vpop.f32.mrb[177].mxu1  ;;  %v4804_v60 = vld [vmem:[#allocation3 + $0x338] sm:$0xff] }
 0x3fc   : > { %v9064_v32 = vadd.f32 %v4298_v11, %v8944_v53  ;;  %v4301_v25 = vadd.f32 %v4300_v55, %v11528_v54  ;;  %v9067_v56 = vpop.f32.mrb[178].mxu1 }
 0x3fd   : > { %v9070_v31 = vadd.f32 %v4309_v44, %v8949_v14  ;;  %7320 = vmatmul.mubr.bf16.gmra.mrb[12].mxu0 %v8836_v37  ;;  %v5057_v58 = vpop.f32.mrb[179].mxu1 }
 0x3fe   : > { %v9074_v45 = vadd.f32 %v4301_v25, %v8952_v3  ;;  %7323 = vmatprep.mubr.bf16.mxu0 %v8845_v43 }
 0x3ff   : > { %5267 = vmatmul.mubr.bf16.gmra.mrb[28].mxu1 %v4800_v7 }
 0x400   : > { %v7201_v53 = vpop.f32.mrb[164].mxu0  ;;  %5274 = vmatprep.mubr.bf16.mxu1 %v4804_v60 }
 0x401   : > { %v4322_v30 = vadd.f32 %v7201_v53, %v8711_v49  ;;  %v4313_v11 = vpop.f32.mrb[165].mxu0  ;;  %v4803_v49 = vld [vmem:[#allocation3 + $0x330] sm:$0xff]  ;;  %v4808_v53 = vld [vmem:[#allocation3 + $0x358] sm:$0xff] }
 0x402   : > { %v4314_v15 = vadd.f32 %v4313_v11, %v8701_v41  ;;  %v7202_v52 = vpop.f32.mrb[166].mxu0  ;;  %v9079_v14 = vpop.f32.mrb[180].mxu1 }
 0x403   : > { %v9082_v37 = vadd.f32 %v4322_v30, %v8958_v59  ;;  %v4325_v44 = vadd.f32 %v7202_v52, %v8715_v9  ;;  %v4316_v3 = vpop.f32.mrb[167].mxu0  ;;  %v5062_v55 = vpop.f32.mrb[181].mxu1  ;;  %v4807_v59 = vld [vmem:[#allocation3 + $0x350] sm:$0xff]  ;;  %v4806_v52 = vld [vmem:[#allocation3 + $0x348] sm:$0xff] }
 0x404   : > { %v9086_v43 = vadd.f32 %v4314_v15, %v8961_v35  ;;  %v4317_v28 = vadd.f32 %v4316_v3, %v8705_v34  ;;  %v9089_v54 = vpop.f32.mrb[182].mxu1  ;;  %v11529_v3 = vld [vmem:[#allocation51_spill] sm:$0xff] }
 0x405   : > { %v9092_v41 = vadd.f32 %v4325_v44, %v8966_v39  ;;  %7324 = vmatmul.mubr.bf16.gmra.mrb[16].mxu0 %v8848_v51  ;;  %v5065_v25 = vpop.f32.mrb[183].mxu1 }
 0x406   : > { %v9096_v7 = vadd.f32 %v4317_v28, %v8969_v24  ;;  %7327 = vmatprep.mubr.bf16.mxu0 %v8857_v42 }
 0x407   : > { %5275 = vmatmul.mubr.bf16.gmra.mrb[32].mxu1 %v4803_v49 }
 0x408   : > { %v7205_v9 = vpop.f32.mrb[168].mxu0  ;;  %5282 = vmatprep.mubr.bf16.mxu1 %v4807_v59 }
 0x409   : > { %v4338_v34 = vadd.f32 %v7205_v9, %v8730_v62  ;;  %v4329_v35 = vpop.f32.mrb[169].mxu0 }
 0x40a   : > { %v4330_v58 = vadd.f32 %v4329_v35, %v8721_v46  ;;  %v7206_v60 = vpop.f32.mrb[170].mxu0  ;;  %v9101_v39 = vpop.f32.mrb[184].mxu1 }
 0x40b   : > { %v9104_v51 = vadd.f32 %v4338_v34, %v8976_v12  ;;  %v4341_v24 = vadd.f32 %v7206_v60, %v8733_v21  ;;  %v4332_v30 = vpop.f32.mrb[171].mxu0  ;;  %v5070_v11 = vpop.f32.mrb[185].mxu1 }
 0x40c   : > { %v9108_v42 = vadd.f32 %v4330_v58, %v8979_v5  ;;  %v4333_v15 = vadd.f32 %v4332_v30, %v8725_v63  ;;  %v9111_v62 = vpop.f32.mrb[186].mxu1  ;;  %v11530_v5 = vld [vmem:[#allocation49_spill] sm:$0xff]  ;;  %v11532_v58 = vld [vmem:[#allocation50_spill] sm:$0xff] }
 0x40d   : > { %v9114_v46 = vadd.f32 %v4341_v24, %v8984_v8  ;;  %7328 = vmatmul.mubr.bf16.gmra.mrb[20].mxu0 %v4808_v53  ;;  %v5073_v44 = vpop.f32.mrb[187].mxu1  ;;  %v11531_v8 = vld [vmem:[#allocation52_spill] sm:$0xff] }
 0x40e   : > { %v9117_v12 = vadd.f32 %v4333_v15, %v8987_v16 }
 0x40f   : > { %5283 = vmatmul.mubr.bf16.gmra.mrb[36].mxu1 %v4806_v52 }
 0x410   : > { %v7209_v21 = vpop.f32.mrb[172].mxu0 }
 0x411   : > { %v4354_v55 = vadd.f32 %v7209_v21, %v11529_v3  ;;  %v4345_v28 = vpop.f32.mrb[173].mxu0  ;;  %v11536_v3 = vld [vmem:[#allocation54_spill] sm:$0xff] }
 0x412   : > { %v4346_v49 = vadd.f32 %v4345_v28, %v11530_v5  ;;  %v7210_v25 = vpop.f32.mrb[174].mxu0  ;;  %v9121_v63 = vpop.f32.mrb[188].mxu1  ;;  %v11538_v5 = vld [vmem:[#allocation53_spill] sm:$0xff] }
 0x413   : > { %v9124_v59 = vadd.f32 %v4354_v55, %v8994_v61  ;;  %v4357_v9 = vadd.f32 %v7210_v25, %v11531_v8  ;;  %v4348_v34 = vpop.f32.mrb[175].mxu0  ;;  %v5078_v35 = vpop.f32.mrb[189].mxu1  ;;  %v11540_v8 = vld [vmem:[#allocation57_spill] sm:$0xff] }
 0x414   : > { %v9128_v16 = vadd.f32 %v4346_v49, %v8997_v36  ;;  %v4349_v60 = vadd.f32 %v4348_v34, %v11532_v58  ;;  %v9131_v53 = vpop.f32.mrb[190].mxu1  ;;  %v11542_v34 = vld [vmem:[#allocation55_spill] sm:$0xff] }
 0x415   : > { %v9134_v24 = vadd.f32 %v4357_v9, %v9002_v50  ;;  %v5081_v30 = vpop.f32.mrb[191].mxu1 }
 0x416   : > { %v9137_v11 = vadd.f32 %v4349_v60, %v9005_v4  ;;  %v11544_v30 = vld [vmem:[#allocation58_spill] sm:$0xff] }
 0x418   : > { %11533 = vst [vmem:[#allocation29_spill] sm:$0xff] %v9137_v11  ;;  %v7213_v61 = vpop.f32.mrb[176].mxu0 }
 0x419   : > { %v9140_v15 = vadd.f32 %v7213_v61, %v8771_v23  ;;  %v4361_v52 = vpop.f32.mrb[177].mxu0 }
 0x41a   : > { %v9143_v44 = vadd.f32 %v4361_v52, %v8762_v38  ;;  %v7214_v36 = vpop.f32.mrb[178].mxu0  ;;  %v9145_v21 = vpop.f32.mrb[192].mxu1 }
 0x41b   : > { %11534 = vst [vmem:[#allocation25_spill] sm:$0xff] %v9140_v15  ;;  %v9148_v55 = vadd.f32 %v7214_v36, %v11536_v3  ;;  %v4364_v50 = vpop.f32.mrb[179].mxu0  ;;  %v5086_v28 = vpop.f32.mrb[193].mxu1  ;;  %v11546_v3 = vld [vmem:[#allocation56_spill] sm:$0xff] }
 0x41c   : > { %11535 = vst [vmem:[#allocation30_spill] sm:$0xff] %v9143_v44  ;;  %v9151_v49 = vadd.f32 %v4364_v50, %v11538_v5  ;;  %v9153_v4 = vpop.f32.mrb[194].mxu1 }
 0x41d   : > { %11537 = vst [vmem:[#allocation26_spill] sm:$0xff] %v9148_v55  ;;  %v5089_v25 = vpop.f32.mrb[195].mxu1 }
 0x41e   : > { %11539 = vst [vmem:[#allocation37_spill] sm:$0xff] %v9151_v49 }
 0x420   : > { %v7217_v23 = vpop.f32.mrb[180].mxu0 }
 0x421   : > { %v9156_v9 = vadd.f32 %v7217_v23, %v11540_v8  ;;  %v4377_v38 = vpop.f32.mrb[181].mxu0  ;;  %v11548_v23 = vld [vmem:[#allocation61_spill] sm:$0xff] }
 0x422   : > { %v9159_v35 = vadd.f32 %v4377_v38, %v11542_v34  ;;  %v7218_v58 = vpop.f32.mrb[182].mxu0  ;;  %v9161_v60 = vpop.f32.mrb[196].mxu1  ;;  %v11550_v34 = vld [vmem:[#allocation59_spill] sm:$0xff] }
 0x423   : > { %11541 = vst [vmem:[#allocation33_spill] sm:$0xff] %v9156_v9  ;;  %v9164_v61 = vadd.f32 %v7218_v58, %v11544_v30  ;;  %v4380_v52 = vpop.f32.mrb[183].mxu0  ;;  %v5094_v36 = vpop.f32.mrb[197].mxu1  ;;  %v11552_v58 = vld [vmem:[#allocation62_spill] sm:$0xff] }
 0x424   : > { %11543 = vst [vmem:[#allocation38_spill] sm:$0xff] %v9159_v35  ;;  %v9167_v50 = vadd.f32 %v4380_v52, %v11546_v3  ;;  %v9169_v28 = vpop.f32.mrb[198].mxu1  ;;  %v11554_v3 = vld [vmem:[#allocation60_spill] sm:$0xff] }
 0x425   : > { %11545 = vst [vmem:[#allocation34_spill] sm:$0xff] %v9164_v61  ;;  %v5097_v5 = vpop.f32.mrb[199].mxu1 }
 0x426   : > { %11547 = vst [vmem:[#allocation45_spill] sm:$0xff] %v9167_v50 }
 0x428   : > { %v7221_v25 = vpop.f32.mrb[184].mxu0 }
 0x429   : > { %v9172_v8 = vadd.f32 %v7221_v25, %v11548_v23  ;;  %v4393_v38 = vpop.f32.mrb[185].mxu0  ;;  %v11556_v23 = vld [vmem:[#allocation65_spill] sm:$0xff] }
 0x42a   : > { %v9175_v35 = vadd.f32 %v4393_v38, %v11550_v34  ;;  %v7222_v9 = vpop.f32.mrb[186].mxu0  ;;  %v9177_v49 = vpop.f32.mrb[200].mxu1  ;;  %v11558_v34 = vld [vmem:[#allocation63_spill] sm:$0xff] }
 0x42b   : > { %11549 = vst [vmem:[#allocation41_spill] sm:$0xff] %v9172_v8  ;;  %v9180_v30 = vadd.f32 %v7222_v9, %v11552_v58  ;;  %v4396_v36 = vpop.f32.mrb[187].mxu0  ;;  %v5102_v52 = vpop.f32.mrb[201].mxu1  ;;  %v11560_v9 = vld [vmem:[#allocation66_spill] sm:$0xff] }
 0x42c   : > { %11551 = vst [vmem:[#allocation46_spill] sm:$0xff] %v9175_v35  ;;  %v9183_v50 = vadd.f32 %v4396_v36, %v11554_v3  ;;  %v9185_v5 = vpop.f32.mrb[202].mxu1  ;;  %v11562_v3 = vld [vmem:[#allocation64_spill] sm:$0xff] }
 0x42d   : > { %11553 = vst [vmem:[#allocation42_spill] sm:$0xff] %v9180_v30  ;;  %v5105_v61 = vpop.f32.mrb[203].mxu1 }
 0x42e   : > { %11555 = vst [vmem:[#allocation31_spill] sm:$0xff] %v9183_v50 }
 0x430   : > { %v7225_v25 = vpop.f32.mrb[188].mxu0 }
 0x431   : > { %v9188_v8 = vadd.f32 %v7225_v25, %v11556_v23  ;;  %v4409_v38 = vpop.f32.mrb[189].mxu0 }
 0x432   : > { %v9191_v35 = vadd.f32 %v4409_v38, %v11558_v34  ;;  %v7226_v55 = vpop.f32.mrb[190].mxu0  ;;  %v9193_v44 = vpop.f32.mrb[204].mxu1 }
 0x433   : > { %11557 = vst [vmem:[#allocation27_spill] sm:$0xff] %v9188_v8  ;;  %v9196_v58 = vadd.f32 %v7226_v55, %v11560_v9  ;;  %v4412_v52 = vpop.f32.mrb[191].mxu0  ;;  %v5110_v36 = vpop.f32.mrb[205].mxu1 }
 0x434   : > { %11559 = vst [vmem:[#allocation32_spill] sm:$0xff] %v9191_v35  ;;  %v9199_v50 = vadd.f32 %v4412_v52, %v11562_v3  ;;  %v9201_v61 = vpop.f32.mrb[206].mxu1 }
 0x435   : > { %11561 = vst [vmem:[#allocation28_spill] sm:$0xff] %v9196_v58  ;;  %v5113_v30 = vpop.f32.mrb[207].mxu1 }
 0x436   : > { %11563 = vst [vmem:[#allocation39_spill] sm:$0xff] %v9199_v50 }
 0x438   : > { %v7229_v25 = vpop.f32.mrb[192].mxu0 }
 0x439   : > { %v9204_v23 = vadd.f32 %v7229_v25, %v8865_v0  ;;  %v4425_v38 = vpop.f32.mrb[193].mxu0 }
 0x43a   : > { %v9207_v34 = vadd.f32 %v4425_v38, %v8855_v6  ;;  %v7230_v35 = vpop.f32.mrb[194].mxu0  ;;  %v9209_v8 = vpop.f32.mrb[208].mxu1  ;;  %v11569_v38 = vld [vmem:[#allocation67_spill] sm:$0xff] }
 0x43b   : > { %11564 = vst [vmem:[#allocation35_spill] sm:$0xff] %v9204_v23  ;;  %v9212_v55 = vadd.f32 %v7230_v35, %v8868_v29  ;;  %v4428_v9 = vpop.f32.mrb[195].mxu0  ;;  %v5118_v52 = vpop.f32.mrb[209].mxu1  ;;  %v11571_v29 = vld [vmem:[#allocation69_spill] sm:$0xff] }
 0x43c   : > { %11565 = vst [vmem:[#allocation40_spill] sm:$0xff] %v9207_v34  ;;  %v9215_v36 = vadd.f32 %v4428_v9, %v8860_v48  ;;  %v9217_v30 = vpop.f32.mrb[210].mxu1  ;;  %v11573_v9 = vld [vmem:[#allocation68_spill] sm:$0xff] }
 0x43d   : > { %11566 = vst [vmem:[#allocation36_spill] sm:$0xff] %v9212_v55  ;;  %v5121_v3 = vpop.f32.mrb[211].mxu1 }
 0x43e   : > { %11567 = vst [vmem:[#allocation47_spill] sm:$0xff] %v9215_v36 }
 0x440   : > { %v7233_v0 = vpop.f32.mrb[196].mxu0 }
 0x441   : > { %v9220_v25 = vadd.f32 %v7233_v0, %v8881_v13  ;;  %v4441_v6 = vpop.f32.mrb[197].mxu0  ;;  %v11575_v0 = vld [vmem:[#allocation72_spill] sm:$0xff] }
 0x442   : > { %v9223_v34 = vadd.f32 %v4441_v6, %v11569_v38  ;;  %v7234_v23 = vpop.f32.mrb[198].mxu0  ;;  %v9225_v50 = vpop.f32.mrb[212].mxu1  ;;  %v11577_v38 = vld [vmem:[#allocation70_spill] sm:$0xff] }
 0x443   : > { %11568 = vst [vmem:[#allocation43_spill] sm:$0xff] %v9220_v25  ;;  %v9228_v35 = vadd.f32 %v7234_v23, %v11571_v29  ;;  %v4444_v52 = vpop.f32.mrb[199].mxu0  ;;  %v5126_v48 = vpop.f32.mrb[213].mxu1  ;;  %v11580_v23 = vld [vmem:[#allocation73_spill] sm:$0xff] }
 0x444   : > { %11570 = vst [vmem:[#allocation48_spill] sm:$0xff] %v9223_v34  ;;  %v9231_v36 = vadd.f32 %v4444_v52, %v11573_v9  ;;  %v9233_v3 = vpop.f32.mrb[214].mxu1  ;;  %v11582_v9 = vld [vmem:[#allocation71_spill] sm:$0xff] }
 0x445   : > { %11572 = vst [vmem:[#allocation44_spill] sm:$0xff] %v9228_v35  ;;  %v5129_v55 = vpop.f32.mrb[215].mxu1 }
 0x446   : > { %11574 = vst [vmem:[#allocation51_spill] sm:$0xff] %v9231_v36 }
 0x448   : > { %v7237_v13 = vpop.f32.mrb[200].mxu0 }
 0x449   : > { %v9236_v25 = vadd.f32 %v7237_v13, %v11575_v0  ;;  %v4457_v6 = vpop.f32.mrb[201].mxu0  ;;  %v11585_v0 = vld [vmem:[#allocation16_spill] sm:$0xff] }
 0x44a   : > { %v9239_v34 = vadd.f32 %v4457_v6, %v11577_v38  ;;  %v7238_v58 = vpop.f32.mrb[202].mxu0  ;;  %v9241_v15 = vpop.f32.mrb[216].mxu1  ;;  %v11587_v38 = vld [vmem:[#allocation15_spill] sm:$0xff] }
 0x44b   : > { %11576 = vst [vmem:[#allocation49_spill] sm:$0xff] %v9236_v25  ;;  %11579 = vst [vmem:[#allocation50_spill] sm:$0xff] %v9241_v15  ;;  %v9244_v29 = vadd.f32 %v7238_v58, %v11580_v23  ;;  %v4460_v48 = vpop.f32.mrb[203].mxu0  ;;  %v5134_v52 = vpop.f32.mrb[217].mxu1  ;;  %v11590_v58 = vld [vmem:[#allocation14_spill] sm:$0xff] }
 0x44c   : > { %11578 = vst [vmem:[#allocation52_spill] sm:$0xff] %v9239_v34  ;;  %v9247_v36 = vadd.f32 %v4460_v48, %v11582_v9  ;;  %v9249_v55 = vpop.f32.mrb[218].mxu1  ;;  %v11592_v9 = vld [vmem:[#allocation13_spill] sm:$0xff] }
 0x44d   : > { %11581 = vst [vmem:[#allocation54_spill] sm:$0xff] %v9244_v29  ;;  %11584 = vst [vmem:[#allocation57_spill] sm:$0xff] %v9249_v55  ;;  %v5137_v35 = vpop.f32.mrb[219].mxu1 }
 0x44e   : > { %11583 = vst [vmem:[#allocation53_spill] sm:$0xff] %v9247_v36 }
 0x450   : > { %v7241_v13 = vpop.f32.mrb[204].mxu0 }
 0x451   : > { %v9252_v25 = vadd.f32 %v7241_v13, %v11585_v0  ;;  %v4473_v6 = vpop.f32.mrb[205].mxu0  ;;  %v11595_v0 = vld [vmem:[#allocation20_spill] sm:$0xff] }
 0x452   : > { %v9255_v34 = vadd.f32 %v4473_v6, %v11587_v38  ;;  %v7242_v15 = vpop.f32.mrb[206].mxu0  ;;  %v9257_v11 = vpop.f32.mrb[220].mxu1  ;;  %v11597_v38 = vld [vmem:[#allocation19_spill] sm:$0xff] }
 0x453   : > { %11586 = vst [vmem:[#allocation55_spill] sm:$0xff] %v9252_v25  ;;  %11589 = vst [vmem:[#allocation56_spill] sm:$0xff] %v9257_v11  ;;  %v9260_v23 = vadd.f32 %v7242_v15, %v11590_v58  ;;  %v4476_v52 = vpop.f32.mrb[207].mxu0  ;;  %v5142_v48 = vpop.f32.mrb[221].mxu1  ;;  %v11600_v15 = vld [vmem:[#allocation18_spill] sm:$0xff] }
 0x454   : > { %11588 = vst [vmem:[#allocation58_spill] sm:$0xff] %v9255_v34  ;;  %v9263_v36 = vadd.f32 %v4476_v52, %v11592_v9  ;;  %v9265_v35 = vpop.f32.mrb[222].mxu1  ;;  %v11602_v9 = vld [vmem:[#allocation17_spill] sm:$0xff] }
 0x455   : > { %11591 = vst [vmem:[#allocation61_spill] sm:$0xff] %v9260_v23  ;;  %11594 = vst [vmem:[#allocation62_spill] sm:$0xff] %v9265_v35  ;;  %v5145_v29 = vpop.f32.mrb[223].mxu1 }
 0x456   : > { %11593 = vst [vmem:[#allocation59_spill] sm:$0xff] %v9263_v36 }
 0x458   : > { %v7245_v13 = vpop.f32.mrb[208].mxu0 }
 0x459   : > { %v9268_v25 = vadd.f32 %v7245_v13, %v11595_v0  ;;  %v4489_v6 = vpop.f32.mrb[209].mxu0  ;;  %v11604_v0 = vld [vmem:[#allocation24_spill] sm:$0xff] }
 0x45a   : > { %v9271_v34 = vadd.f32 %v4489_v6, %v11597_v38  ;;  %v7246_v55 = vpop.f32.mrb[210].mxu0  ;;  %v9273_v11 = vpop.f32.mrb[224].mxu1  ;;  %v11606_v38 = vld [vmem:[#allocation23_spill] sm:$0xff] }
 0x45b   : > { %11596 = vst [vmem:[#allocation60_spill] sm:$0xff] %v9268_v25  ;;  %11599 = vst [vmem:[#allocation63_spill] sm:$0xff] %v9273_v11  ;;  %v9276_v58 = vadd.f32 %v7246_v55, %v11600_v15  ;;  %v4492_v48 = vpop.f32.mrb[211].mxu0  ;;  %v5150_v52 = vpop.f32.mrb[225].mxu1  ;;  %v11608_v55 = vld [vmem:[#allocation22_spill] sm:$0xff] }
 0x45c   : > { %11598 = vst [vmem:[#allocation65_spill] sm:$0xff] %v9271_v34  ;;  %v9279_v36 = vadd.f32 %v4492_v48, %v11602_v9  ;;  %v9281_v29 = vpop.f32.mrb[226].mxu1  ;;  %v11610_v9 = vld [vmem:[#allocation21_spill] sm:$0xff] }
 0x45d   : > { %11601 = vst [vmem:[#allocation66_spill] sm:$0xff] %v9276_v58  ;;  %v5153_v23 = vpop.f32.mrb[227].mxu1 }
 0x45e   : > { %11603 = vst [vmem:[#allocation64_spill] sm:$0xff] %v9279_v36 }
 0x460   : > { %v7249_v13 = vpop.f32.mrb[212].mxu0 }
 0x461   : > { %v9284_v25 = vadd.f32 %v7249_v13, %v11604_v0  ;;  %v4505_v6 = vpop.f32.mrb[213].mxu0 }
 0x462   : > { %v9287_v34 = vadd.f32 %v4505_v6, %v11606_v38  ;;  %v7250_v11 = vpop.f32.mrb[214].mxu0  ;;  %v9289_v35 = vpop.f32.mrb[228].mxu1 }
 0x463   : > { %11605 = vst [vmem:[#allocation67_spill] sm:$0xff] %v9284_v25  ;;  %v9292_v15 = vadd.f32 %v7250_v11, %v11608_v55  ;;  %v4508_v52 = vpop.f32.mrb[215].mxu0  ;;  %v5158_v48 = vpop.f32.mrb[229].mxu1 }
 0x464   : > { %11607 = vst [vmem:[#allocation69_spill] sm:$0xff] %v9287_v34  ;;  %v9295_v36 = vadd.f32 %v4508_v52, %v11610_v9  ;;  %v9297_v23 = vpop.f32.mrb[230].mxu1 }
 0x465   : > { %11609 = vst [vmem:[#allocation68_spill] sm:$0xff] %v9292_v15  ;;  %v5161_v58 = vpop.f32.mrb[231].mxu1 }
 0x468   : > { %v7269_v13 = vpop.f32.mrb[216].mxu0 }
 0x469   : > { %v5334_v0 = vadd.f32 %v7269_v13, %v9035_v47  ;;  %v5325_v25 = vpop.f32.mrb[217].mxu0 }
 0x46a   : > { %v5326_v6 = vadd.f32 %v5325_v25, %v9013_v19  ;;  %v7270_v38 = vpop.f32.mrb[218].mxu0  ;;  %v9301_v34 = vpop.f32.mrb[232].mxu1 }
 0x46b   : > { %v9304_v11 = vadd.f32 %v5334_v0, %v9016_v18  ;;  %v5337_v55 = vadd.f32 %v7270_v38, %v9045_v2  ;;  %v5328_v48 = vpop.f32.mrb[219].mxu0  ;;  %v5166_v52 = vpop.f32.mrb[233].mxu1 }
 0x46c   : > { %v9308_v9 = vadd.f32 %v5326_v6, %v9020_v22  ;;  %v5329_v58 = vadd.f32 %v5328_v48, %v9023_v1  ;;  %v9311_v15 = vpop.f32.mrb[234].mxu1 }
 0x46d   : > { %v9314_v47 = vadd.f32 %v5337_v55, %v9026_v10  ;;  %v5169_v19 = vpop.f32.mrb[235].mxu1 }
 0x46e   : > { %v9317_v25 = vadd.f32 %v5329_v58, %v9030_v57 }
 0x470   : > { %v5836_v18 = vadd.f32 %v9317_v25, %v9308_v9  ;;  %v7273_v2 = vpop.f32.mrb[220].mxu0 }
 0x471   : > { %v5350_v13 = vadd.f32 %v7273_v2, %v9079_v14  ;;  %v5341_v0 = vpop.f32.mrb[221].mxu0 }
 0x472   : > { %v5837_v22 = vadd.f32 %v5836_v18, %v9304_v11  ;;  %v5342_v1 = vadd.f32 %v5341_v0, %v9057_v17  ;;  %v7274_v6 = vpop.f32.mrb[222].mxu0  ;;  %v9324_v38 = vpop.f32.mrb[236].mxu1 }
 0x473   : > { %v9327_v10 = vadd.f32 %v5350_v13, %v9038_v27  ;;  %v5353_v57 = vadd.f32 %v7274_v6, %v9089_v54  ;;  %v5344_v55 = vpop.f32.mrb[223].mxu0  ;;  %v5174_v48 = vpop.f32.mrb[237].mxu1 }
 0x474   : > { %v9331_v52 = vadd.f32 %v5342_v1, %v9042_v33  ;;  %v5838_v14 = vadd.f32 %v5837_v22, %v9314_v47  ;;  %v5345_v58 = vadd.f32 %v5344_v55, %v9067_v56  ;;  %v9335_v19 = vpop.f32.mrb[238].mxu1 }
 0x475   : > { %v9338_v17 = vadd.f32 %v5353_v57, %v9048_v20  ;;  %v5177_v18 = vpop.f32.mrb[239].mxu1 }
 0x476   : > { %v5839_v27 = vadd.f32 %v5838_v14, %v9331_v52  ;;  %v9342_v2 = vadd.f32 %v5345_v58, %v9052_v26 }
 0x478   : > { %v5840_v54 = vadd.f32 %v5839_v27, %v9342_v2  ;;  %v7277_v13 = vpop.f32.mrb[224].mxu0 }
 0x479   : > { %v5366_v33 = vadd.f32 %v7277_v13, %v9121_v63  ;;  %v5357_v0 = vpop.f32.mrb[225].mxu0 }
 0x47a   : > { %v5841_v22 = vadd.f32 %v5840_v54, %v9327_v10  ;;  %v5358_v56 = vadd.f32 %v5357_v0, %v9101_v39  ;;  %v7278_v1 = vpop.f32.mrb[226].mxu0  ;;  %v9348_v6 = vpop.f32.mrb[240].mxu1 }
 0x47b   : > { %v9351_v20 = vadd.f32 %v5366_v33, %v9060_v40  ;;  %v5369_v57 = vadd.f32 %v7278_v1, %v9131_v53  ;;  %v5360_v26 = vpop.f32.mrb[227].mxu0  ;;  %v5182_v55 = vpop.f32.mrb[241].mxu1 }
 0x47c   : > { %v9355_v48 = vadd.f32 %v5358_v56, %v9064_v32  ;;  %v5842_v63 = vadd.f32 %v5841_v22, %v9338_v17  ;;  %v5361_v14 = vadd.f32 %v5360_v26, %v9111_v62  ;;  %v9359_v58 = vpop.f32.mrb[242].mxu1 }
 0x47d   : > { %v9362_v39 = vadd.f32 %v5369_v57, %v9070_v31  ;;  %v5185_v18 = vpop.f32.mrb[243].mxu1 }
 0x47e   : > { %v5843_v40 = vadd.f32 %v5842_v63, %v9355_v48  ;;  %v9366_v27 = vadd.f32 %v5361_v14, %v9074_v45 }
 0x480   : > { %v5844_v53 = vadd.f32 %v5843_v40, %v9366_v27  ;;  %v7281_v54 = vpop.f32.mrb[228].mxu0 }
 0x481   : > { %v5382_v32 = vadd.f32 %v7281_v54, %v9161_v60  ;;  %v5373_v13 = vpop.f32.mrb[229].mxu0 }
 0x482   : > { %v5845_v33 = vadd.f32 %v5844_v53, %v9351_v20  ;;  %v5374_v62 = vadd.f32 %v5373_v13, %v9145_v21  ;;  %v7282_v0 = vpop.f32.mrb[230].mxu0  ;;  %v9372_v22 = vpop.f32.mrb[244].mxu1 }
 0x483   : > { %v9375_v31 = vadd.f32 %v5382_v32, %v9082_v37  ;;  %v5385_v56 = vadd.f32 %v7282_v0, %v9169_v28  ;;  %v5376_v45 = vpop.f32.mrb[231].mxu0  ;;  %v5190_v1 = vpop.f32.mrb[245].mxu1 }
 0x484   : > { %v9379_v57 = vadd.f32 %v5374_v62, %v9086_v43  ;;  %v5846_v60 = vadd.f32 %v5845_v33, %v9362_v39  ;;  %v5377_v26 = vadd.f32 %v5376_v45, %v9153_v4  ;;  %v9383_v55 = vpop.f32.mrb[246].mxu1 }
 0x485   : > { %v9386_v21 = vadd.f32 %v5385_v56, %v9092_v41  ;;  %v5193_v63 = vpop.f32.mrb[247].mxu1 }
 0x486   : > { %v5847_v37 = vadd.f32 %v5846_v60, %v9379_v57  ;;  %v9390_v14 = vadd.f32 %v5377_v26, %v9096_v7 }
 0x488   : > { %v5848_v28 = vadd.f32 %v5847_v37, %v9390_v14  ;;  %v7285_v18 = vpop.f32.mrb[232].mxu0 }
 0x489   : > { %v5398_v43 = vadd.f32 %v7285_v18, %v9193_v44  ;;  %v5389_v40 = vpop.f32.mrb[233].mxu0 }
 0x48a   : > { %v5849_v53 = vadd.f32 %v5848_v28, %v9375_v31  ;;  %v5390_v4 = vadd.f32 %v5389_v40, %v9177_v49  ;;  %v7286_v54 = vpop.f32.mrb[234].mxu0  ;;  %v9396_v32 = vpop.f32.mrb[248].mxu1 }
 0x48b   : > { %v9399_v41 = vadd.f32 %v5398_v43, %v9104_v51  ;;  %v5401_v13 = vadd.f32 %v7286_v54, %v9201_v61  ;;  %v5392_v7 = vpop.f32.mrb[235].mxu0  ;;  %v5198_v33 = vpop.f32.mrb[249].mxu1 }
 0x48c   : > { %v9403_v62 = vadd.f32 %v5390_v4, %v9108_v42  ;;  %v5850_v44 = vadd.f32 %v5849_v53, %v9386_v21  ;;  %v5393_v0 = vadd.f32 %v5392_v7, %v9185_v5  ;;  %v9407_v56 = vpop.f32.mrb[250].mxu1 }
 0x48d   : > { %11611 = vst [vmem:[#allocation72_spill] sm:$0xff] %v9399_v41  ;;  %v9410_v49 = vadd.f32 %v5401_v13, %v9114_v46  ;;  %v5201_v45 = vpop.f32.mrb[251].mxu1  ;;  %v11616_v13 = vld [vmem:[#allocation29_spill] sm:$0xff] }
 0x48e   : > { %v5851_v51 = vadd.f32 %v5850_v44, %v9403_v62  ;;  %v9414_v1 = vadd.f32 %v5393_v0, %v9117_v12  ;;  %v11618_v44 = vld [vmem:[#allocation25_spill] sm:$0xff] }
 0x48f   : > { %11612 = vst [vmem:[#allocation70_spill] sm:$0xff] %v9410_v49  ;;  %v4544_v45 = vld [vmem:[#allocation2 + $0xc0] sm:$0xff] }
 0x490   : > { %v5852_v61 = vadd.f32 %v5851_v51, %v9414_v1  ;;  %v7289_v60 = vpop.f32.mrb[236].mxu0  ;;  %v11619_v51 = vld [vmem:[#allocation56_spill] sm:$0xff] }
 0x491   : > { %v5414_v42 = vadd.f32 %v7289_v60, %v9225_v50  ;;  %v5405_v26 = vpop.f32.mrb[237].mxu0  ;;  %v11620_v60 = vld [vmem:[#allocation30_spill] sm:$0xff] }
 0x492   : > { %v5853_v63 = vadd.f32 %v5852_v61, %v9399_v41  ;;  %v5406_v5 = vadd.f32 %v5405_v26, %v9209_v8  ;;  %v7290_v37 = vpop.f32.mrb[238].mxu0  ;;  %v9420_v28 = vpop.f32.mrb[252].mxu1 }
 0x493   : > { %v9423_v46 = vadd.f32 %v5414_v42, %v9124_v59  ;;  %v5417_v18 = vadd.f32 %v7290_v37, %v9233_v3  ;;  %v5408_v12 = vpop.f32.mrb[239].mxu0  ;;  %v5206_v43 = vpop.f32.mrb[253].mxu1  ;;  %v4546_v3 = vld [vmem:[#allocation2 + $0xd0] sm:$0xff]  ;;  %v4608_v42 = vadd.f32 %v4544_v45, %v11620_v60 }
 0x494   : > { %v9427_v40 = vadd.f32 %v5406_v5, %v9128_v16  ;;  %v5854_v50 = vadd.f32 %v5853_v63, %v9410_v49  ;;  %v5409_v53 = vadd.f32 %v5408_v12, %v9217_v30  ;;  %v9431_v4 = vpop.f32.mrb[254].mxu1  ;;  %v4610_v0 = vadd.f32 %v4546_v3, %v11618_v44  ;;  %v11621_v63 = vld [vmem:[#allocation50_spill] sm:$0xff] }
 0x495   : > { %11613 = vst [vmem:[#allocation73_spill] sm:$0xff] %v9423_v46  ;;  %v9434_v8 = vadd.f32 %v5417_v18, %v9134_v24  ;;  %v5209_v54 = vpop.f32.mrb[255].mxu1  ;;  %v4547_v24 = vld [vmem:[#allocation2 + $0xd8] sm:$0xff]  ;;  %v11622_v12 = vld [vmem:[#allocation26_spill] sm:$0xff] }
 0x496   : > { %11614 = vst [vmem:[#allocation71_spill] sm:$0xff] %v9427_v40  ;;  %v5855_v59 = vadd.f32 %v5854_v50, %v9427_v40  ;;  %v9438_v7 = vadd.f32 %v5409_v53, %v11616_v13  ;;  %v4611_v43 = vadd.f32 %v4547_v24, %v11622_v12  ;;  %v4545_v50 = vld [vmem:[#allocation2 + $0xc8] sm:$0xff] }
 0x497   : > { %11615 = vst [vmem:[#allocation16_spill] sm:$0xff] %v9434_v8  ;;  %v11624_v54 = vld [vmem:[#allocation62_spill] sm:$0xff] }
 0x498   : > { %11617 = vst [vmem:[#allocation15_spill] sm:$0xff] %v9438_v7  ;;  %v5856_v33 = vadd.f32 %v5855_v59, %v9438_v7  ;;  %v7293_v16 = vpop.f32.mrb[240].mxu0 }
 0x499   : > { %v5430_v30 = vadd.f32 %v7293_v16, %v11619_v51  ;;  %v5421_v61 = vpop.f32.mrb[241].mxu0  ;;  %v11625_v16 = vld [vmem:[#allocation37_spill] sm:$0xff] }
 0x49a   : > { %v5857_v26 = vadd.f32 %v5856_v33, %v9423_v46  ;;  %v5422_v5 = vadd.f32 %v5421_v61, %v11621_v63  ;;  %v7294_v37 = vpop.f32.mrb[242].mxu0  ;;  %v9446_v18 = vpop.f32.mrb[0].mxu1  ;;  %v4609_v44 = vadd.f32 %v4545_v50, %v11625_v16  ;;  %v11627_v51 = vld [vmem:[#allocation57_spill] sm:$0xff] }
 0x49b   : > { %v9449_v53 = vadd.f32 %v5430_v30, %v4610_v0  ;;  %v5433_v59 = vadd.f32 %v7294_v37, %v11624_v54  ;;  %v5424_v13 = vpop.f32.mrb[243].mxu0  ;;  %v5214_v3 = vpop.f32.mrb[1].mxu1  ;;  %v4550_v37 = vld [vmem:[#allocation2 + $0xf0] sm:$0xff]  ;;  %v11630_v50 = vld [vmem:[#allocation33_spill] sm:$0xff] }
 0x49c   : > { %v9453_v45 = vadd.f32 %v5422_v5, %v4608_v42  ;;  %v5858_v33 = vadd.f32 %v5857_v26, %v9434_v8  ;;  %v5425_v61 = vadd.f32 %v5424_v13, %v11627_v51  ;;  %v9457_v60 = vpop.f32.mrb[2].mxu1  ;;  %v4614_v42 = vadd.f32 %v4550_v37, %v11630_v50  ;;  %v4548_v5 = vld [vmem:[#allocation2 + $0xe0] sm:$0xff]  ;;  %v11631_v13 = vld [vmem:[#allocation38_spill] sm:$0xff]  ;;  %v4551_v51 = vld [vmem:[#allocation2 + $0xf8] sm:$0xff] }
 0x49d   : > { %11623 = vst [vmem:[#allocation14_spill] sm:$0xff] %v9449_v53  ;;  %v9459_v63 = vadd.f32 %v5433_v59, %v4611_v43  ;;  %v5217_v24 = vpop.f32.mrb[3].mxu1  ;;  %v4612_v16 = vadd.f32 %v4548_v5, %v11631_v13  ;;  %v11632_v59 = vld [vmem:[#allocation63_spill] sm:$0xff] }
 0x49e   : > { %11626 = vst [vmem:[#allocation13_spill] sm:$0xff] %v9453_v45  ;;  %v5859_v0 = vadd.f32 %v5858_v33, %v9453_v45  ;;  %v9462_v30 = vadd.f32 %v5425_v61, %v4609_v44  ;;  %v11633_v61 = vld [vmem:[#allocation34_spill] sm:$0xff] }
 0x49f   : > { %11628 = vst [vmem:[#allocation20_spill] sm:$0xff] %v9459_v63  ;;  %v4615_v45 = vadd.f32 %v4551_v51, %v11633_v61 }
 0x4a0   : > { %11629 = vst [vmem:[#allocation19_spill] sm:$0xff] %v9462_v30  ;;  %v5860_v12 = vadd.f32 %v5859_v0, %v9462_v30  ;;  %v7297_v54 = vpop.f32.mrb[244].mxu0  ;;  %v4549_v0 = vld [vmem:[#allocation2 + $0xe8] sm:$0xff] }
 0x4a1   : > { %v5446_v26 = vadd.f32 %v7297_v54, %v9289_v35  ;;  %v5437_v3 = vpop.f32.mrb[245].mxu0  ;;  %v11635_v54 = vld [vmem:[#allocation45_spill] sm:$0xff] }
 0x4a2   : > { %v5861_v43 = vadd.f32 %v5860_v12, %v9449_v53  ;;  %v5438_v24 = vadd.f32 %v5437_v3, %v11632_v59  ;;  %v7298_v33 = vpop.f32.mrb[246].mxu0  ;;  %v9470_v44 = vpop.f32.mrb[4].mxu1  ;;  %v4613_v8 = vadd.f32 %v4549_v0, %v11635_v54  ;;  %v11639_v0 = vld [vmem:[#allocation41_spill] sm:$0xff]  ;;  %v4555_v54 = vld [vmem:[#allocation2 + $0x118] sm:$0xff] }
 0x4a3   : > { %v9473_v30 = vadd.f32 %v5446_v26, %v4614_v42  ;;  %v5449_v37 = vadd.f32 %v7298_v33, %v9297_v23  ;;  %v5440_v50 = vpop.f32.mrb[247].mxu0  ;;  %v5222_v35 = vpop.f32.mrb[5].mxu1  ;;  %v4554_v23 = vld [vmem:[#allocation2 + $0x110] sm:$0xff] }
 0x4a4   : > { %v9477_v5 = vadd.f32 %v5438_v24, %v4612_v16  ;;  %v5862_v12 = vadd.f32 %v5861_v43, %v9459_v63  ;;  %v5441_v3 = vadd.f32 %v5440_v50, %v9281_v29  ;;  %v9481_v13 = vpop.f32.mrb[6].mxu1  ;;  %v4618_v16 = vadd.f32 %v4554_v23, %v11639_v0  ;;  %v4552_v24 = vld [vmem:[#allocation2 + $0x100] sm:$0xff]  ;;  %v11640_v29 = vld [vmem:[#allocation46_spill] sm:$0xff] }
 0x4a5   : > { %11634 = vst [vmem:[#allocation18_spill] sm:$0xff] %v9473_v30  ;;  %v9483_v59 = vadd.f32 %v5449_v37, %v4615_v45  ;;  %v5225_v51 = vpop.f32.mrb[7].mxu1  ;;  %v4616_v50 = vadd.f32 %v4552_v24, %v11640_v29 }
 0x4a6   : > { %11636 = vst [vmem:[#allocation17_spill] sm:$0xff] %v9477_v5  ;;  %v5863_v42 = vadd.f32 %v5862_v12, %v9477_v5  ;;  %v9486_v26 = vadd.f32 %v5441_v3, %v4613_v8  ;;  %v11641_v3 = vld [vmem:[#allocation42_spill] sm:$0xff] }
 0x4a7   : > { %11637 = vst [vmem:[#allocation24_spill] sm:$0xff] %v9483_v59  ;;  %v4619_v51 = vadd.f32 %v4555_v54, %v11641_v3 }
 0x4a8   : > { %11638 = vst [vmem:[#allocation23_spill] sm:$0xff] %v9486_v26  ;;  %v5864_v33 = vadd.f32 %v5863_v42, %v9486_v26  ;;  %v7301_v61 = vpop.f32.mrb[248].mxu0  ;;  %v4553_v42 = vld [vmem:[#allocation2 + $0x108] sm:$0xff] }
 0x4a9   : > { %v5462_v43 = vadd.f32 %v7301_v61, %v9324_v38  ;;  %v5453_v35 = vpop.f32.mrb[249].mxu0  ;;  %v11643_v61 = vld [vmem:[#allocation31_spill] sm:$0xff] }
 0x4aa   : > { %v5865_v45 = vadd.f32 %v5864_v33, %v9473_v30  ;;  %v5454_v37 = vadd.f32 %v5453_v35, %v9301_v34  ;;  %v7302_v12 = vpop.f32.mrb[250].mxu0  ;;  %v9494_v8 = vpop.f32.mrb[8].mxu1  ;;  %v4617_v5 = vadd.f32 %v4553_v42, %v11643_v61  ;;  %v11647_v42 = vld [vmem:[#allocation27_spill] sm:$0xff]  ;;  %v4559_v61 = vld [vmem:[#allocation2 + $0x138] sm:$0xff] }
 0x4ab   : > { %v9497_v26 = vadd.f32 %v5462_v43, %v4618_v16  ;;  %v5465_v23 = vadd.f32 %v7302_v12, %v9335_v19  ;;  %v5456_v0 = vpop.f32.mrb[251].mxu0  ;;  %v5230_v38 = vpop.f32.mrb[9].mxu1  ;;  %v4558_v19 = vld [vmem:[#allocation2 + $0x130] sm:$0xff] }
 0x4ac   : > { %v9501_v24 = vadd.f32 %v5454_v37, %v4616_v50  ;;  %v5866_v33 = vadd.f32 %v5865_v45, %v9483_v59  ;;  %v5457_v34 = vadd.f32 %v5456_v0, %v9311_v15  ;;  %v9505_v35 = vpop.f32.mrb[10].mxu1  ;;  %v4622_v50 = vadd.f32 %v4558_v19, %v11647_v42  ;;  %v4556_v37 = vld [vmem:[#allocation2 + $0x120] sm:$0xff]  ;;  %v11648_v15 = vld [vmem:[#allocation32_spill] sm:$0xff] }
 0x4ad   : > { %11642 = vst [vmem:[#allocation22_spill] sm:$0xff] %v9497_v26  ;;  %v9507_v29 = vadd.f32 %v5465_v23, %v4619_v51  ;;  %v5233_v54 = vpop.f32.mrb[11].mxu1  ;;  %v4620_v0 = vadd.f32 %v4556_v37, %v11648_v15 }
 0x4ae   : > { %11644 = vst [vmem:[#allocation21_spill] sm:$0xff] %v9501_v24  ;;  %v5867_v16 = vadd.f32 %v5866_v33, %v9501_v24  ;;  %v9510_v43 = vadd.f32 %v5457_v34, %v4617_v5  ;;  %v11649_v34 = vld [vmem:[#allocation28_spill] sm:$0xff] }
 0x4af   : > { %11645 = vst [vmem:[#allocation29_spill] sm:$0xff] %v9507_v29  ;;  %v4623_v54 = vadd.f32 %v4559_v61, %v11649_v34 }
 0x4b0   : > { %11646 = vst [vmem:[#allocation25_spill] sm:$0xff] %v9510_v43  ;;  %v5868_v12 = vadd.f32 %v5867_v16, %v9510_v43  ;;  %v7305_v3 = vpop.f32.mrb[252].mxu0  ;;  %v4557_v16 = vld [vmem:[#allocation2 + $0x128] sm:$0xff] }
 0x4b1   : > { %v5478_v45 = vadd.f32 %v7305_v3, %v9372_v22  ;;  %v5469_v38 = vpop.f32.mrb[253].mxu0  ;;  %v11651_v3 = vld [vmem:[#allocation39_spill] sm:$0xff] }
 0x4b2   : > { %v5869_v51 = vadd.f32 %v5868_v12, %v9497_v26  ;;  %v5470_v23 = vadd.f32 %v5469_v38, %v9348_v6  ;;  %v7306_v33 = vpop.f32.mrb[254].mxu0  ;;  %v9518_v5 = vpop.f32.mrb[12].mxu1  ;;  %v4621_v24 = vadd.f32 %v4557_v16, %v11651_v3  ;;  %v11655_v16 = vld [vmem:[#allocation35_spill] sm:$0xff]  ;;  %v4563_v3 = vld [vmem:[#allocation2 + $0x158] sm:$0xff] }
 0x4b3   : > { %v9521_v43 = vadd.f32 %v5478_v45, %v4622_v50  ;;  %v5481_v19 = vadd.f32 %v7306_v33, %v9383_v55  ;;  %v5472_v42 = vpop.f32.mrb[255].mxu0  ;;  %v5238_v22 = vpop.f32.mrb[13].mxu1  ;;  %v4562_v55 = vld [vmem:[#allocation2 + $0x150] sm:$0xff] }
 0x4b4   : > { %v9525_v37 = vadd.f32 %v5470_v23, %v4620_v0  ;;  %v5870_v12 = vadd.f32 %v5869_v51, %v9507_v29  ;;  %v5473_v6 = vadd.f32 %v5472_v42, %v9359_v58  ;;  %v9529_v38 = vpop.f32.mrb[14].mxu1  ;;  %v4626_v0 = vadd.f32 %v4562_v55, %v11655_v16  ;;  %v4560_v23 = vld [vmem:[#allocation2 + $0x140] sm:$0xff]  ;;  %v11656_v58 = vld [vmem:[#allocation40_spill] sm:$0xff] }
 0x4b5   : > { %11650 = vst [vmem:[#allocation56_spill] sm:$0xff] %v9521_v43  ;;  %v9531_v15 = vadd.f32 %v5481_v19, %v4623_v54  ;;  %v5241_v61 = vpop.f32.mrb[15].mxu1  ;;  %v4624_v42 = vadd.f32 %v4560_v23, %v11656_v58 }
 0x4b6   : > { %11652 = vst [vmem:[#allocation30_spill] sm:$0xff] %v9525_v37  ;;  %v5871_v50 = vadd.f32 %v5870_v12, %v9525_v37  ;;  %v9534_v45 = vadd.f32 %v5473_v6, %v4621_v24  ;;  %v11657_v6 = vld [vmem:[#allocation36_spill] sm:$0xff] }
 0x4b7   : > { %11653 = vst [vmem:[#allocation50_spill] sm:$0xff] %v9531_v15  ;;  %v4627_v61 = vadd.f32 %v4563_v3, %v11657_v6 }
 0x4b8   : > { %11654 = vst [vmem:[#allocation26_spill] sm:$0xff] %v9534_v45  ;;  %v5872_v33 = vadd.f32 %v5871_v50, %v9534_v45  ;;  %v7309_v34 = vpop.f32.mrb[0].mxu0  ;;  %v4561_v50 = vld [vmem:[#allocation2 + $0x148] sm:$0xff] }
 0x4b9   : > { %v5494_v51 = vadd.f32 %v7309_v34, %v9420_v28  ;;  %v5485_v22 = vpop.f32.mrb[1].mxu0  ;;  %v11659_v34 = vld [vmem:[#allocation47_spill] sm:$0xff] }
 0x4ba   : > { %v5873_v54 = vadd.f32 %v5872_v33, %v9521_v43  ;;  %v5486_v19 = vadd.f32 %v5485_v22, %v9396_v32  ;;  %v7310_v12 = vpop.f32.mrb[2].mxu0  ;;  %v9542_v24 = vpop.f32.mrb[16].mxu1  ;;  %v4625_v37 = vadd.f32 %v4561_v50, %v11659_v34  ;;  %v11663_v50 = vld [vmem:[#allocation43_spill] sm:$0xff]  ;;  %v4567_v34 = vld [vmem:[#allocation2 + $0x178] sm:$0xff] }
 0x4bb   : > { %v9545_v45 = vadd.f32 %v5494_v51, %v4626_v0  ;;  %v5497_v55 = vadd.f32 %v7310_v12, %v9431_v4  ;;  %v5488_v16 = vpop.f32.mrb[3].mxu0  ;;  %v5246_v28 = vpop.f32.mrb[17].mxu1  ;;  %v4566_v4 = vld [vmem:[#allocation2 + $0x170] sm:$0xff] }
 0x4bc   : > { %v9549_v23 = vadd.f32 %v5486_v19, %v4624_v42  ;;  %v5874_v33 = vadd.f32 %v5873_v54, %v9531_v15  ;;  %v5489_v32 = vadd.f32 %v5488_v16, %v9407_v56  ;;  %v9553_v22 = vpop.f32.mrb[18].mxu1  ;;  %v4630_v42 = vadd.f32 %v4566_v4, %v11663_v50  ;;  %v4564_v19 = vld [vmem:[#allocation2 + $0x160] sm:$0xff]  ;;  %v11664_v56 = vld [vmem:[#allocation48_spill] sm:$0xff] }
 0x4bd   : > { %11658 = vst [vmem:[#allocation62_spill] sm:$0xff] %v9545_v45  ;;  %v9555_v58 = vadd.f32 %v5497_v55, %v4627_v61  ;;  %v5249_v3 = vpop.f32.mrb[19].mxu1  ;;  %v4628_v16 = vadd.f32 %v4564_v19, %v11664_v56 }
 0x4be   : > { %11660 = vst [vmem:[#allocation37_spill] sm:$0xff] %v9549_v23  ;;  %v5875_v0 = vadd.f32 %v5874_v33, %v9549_v23  ;;  %v9558_v51 = vadd.f32 %v5489_v32, %v4625_v37  ;;  %v11665_v32 = vld [vmem:[#allocation44_spill] sm:$0xff]  ;;  %v4565_v23 = vld [vmem:[#allocation2 + $0x168] sm:$0xff] }
 0x4bf   : > { %11661 = vst [vmem:[#allocation57_spill] sm:$0xff] %v9555_v58  ;;  %v4631_v3 = vadd.f32 %v4567_v34, %v11665_v32  ;;  %v11669_v32 = vld [vmem:[#allocation52_spill] sm:$0xff] }
 0x4c0   : > { %11662 = vst [vmem:[#allocation33_spill] sm:$0xff] %v9558_v51  ;;  %v5876_v12 = vadd.f32 %v5875_v0, %v9558_v51  ;;  %v7313_v6 = vpop.f32.mrb[4].mxu0 }
 0x4c1   : > { %v5510_v54 = vadd.f32 %v7313_v6, %v9470_v44  ;;  %v5501_v28 = vpop.f32.mrb[5].mxu0  ;;  %v11666_v44 = vld [vmem:[#allocation51_spill] sm:$0xff] }
 0x4c2   : > { %v5877_v61 = vadd.f32 %v5876_v12, %v9545_v45  ;;  %v5502_v55 = vadd.f32 %v5501_v28, %v9446_v18  ;;  %v7314_v33 = vpop.f32.mrb[6].mxu0  ;;  %v5252_v37 = vpop.f32.mrb[20].mxu1  ;;  %v4629_v6 = vadd.f32 %v4565_v23, %v11666_v44 }
 0x4c3   : > { %v9567_v0 = vadd.f32 %v5510_v54, %v4630_v42  ;;  %v5513_v4 = vadd.f32 %v7314_v33, %v9481_v13  ;;  %v5504_v50 = vpop.f32.mrb[7].mxu0  ;;  %v5254_v51 = vpop.f32.mrb[21].mxu1  ;;  %v4570_v54 = vld [vmem:[#allocation2 + $0x190] sm:$0xff]  ;;  %v11668_v33 = vld [vmem:[#allocation49_spill] sm:$0xff] }
 0x4c4   : > { %v9571_v15 = vadd.f32 %v5502_v55, %v4628_v16  ;;  %v5878_v19 = vadd.f32 %v5877_v61, %v9555_v58  ;;  %v5505_v12 = vadd.f32 %v5504_v50, %v9457_v60  ;;  %v5255_v18 = vpop.f32.mrb[22].mxu1  ;;  %v4634_v23 = vadd.f32 %v4570_v54, %v11668_v33  ;;  %v4568_v16 = vld [vmem:[#allocation2 + $0x180] sm:$0xff]  ;;  %v4571_v50 = vld [vmem:[#allocation2 + $0x198] sm:$0xff] }
 0x4c5   : > { %v9575_v28 = vadd.f32 %v5513_v4, %v4631_v3  ;;  %v5257_v56 = vpop.f32.mrb[23].mxu1  ;;  %v4632_v60 = vadd.f32 %v4568_v16, %v11669_v32 }
 0x4c6   : > { %11667 = vst [vmem:[#allocation38_spill] sm:$0xff] %v9571_v15  ;;  %v5879_v34 = vadd.f32 %v5878_v19, %v9571_v15  ;;  %v9578_v42 = vadd.f32 %v5505_v12, %v4629_v6  ;;  %v11670_v19 = vld [vmem:[#allocation54_spill] sm:$0xff] }
 0x4c7   : > { %v4635_v12 = vadd.f32 %v4571_v50, %v11670_v19  ;;  %v4569_v56 = vld [vmem:[#allocation2 + $0x188] sm:$0xff] }
 0x4c8   : > { %v5880_v13 = vadd.f32 %v5879_v34, %v9578_v42  ;;  %v7317_v51 = vpop.f32.mrb[8].mxu0 }
 0x4c9   : > { %v5526_v55 = vadd.f32 %v7317_v51, %v9518_v5  ;;  %v5517_v61 = vpop.f32.mrb[9].mxu0  ;;  %v11671_v5 = vld [vmem:[#allocation53_spill] sm:$0xff] }
 0x4ca   : > { %v5881_v3 = vadd.f32 %v5880_v13, %v9567_v0  ;;  %v5518_v4 = vadd.f32 %v5517_v61, %v9494_v8  ;;  %v7318_v44 = vpop.f32.mrb[10].mxu0  ;;  %v5260_v6 = vpop.f32.mrb[24].mxu1  ;;  %v4633_v51 = vadd.f32 %v4569_v56, %v11671_v5  ;;  %v4575_v5 = vld [vmem:[#allocation2 + $0x1b8] sm:$0xff] }
 0x4cb   : > { %v9587_v34 = vadd.f32 %v5526_v55, %v4634_v23  ;;  %v5529_v54 = vadd.f32 %v7318_v44, %v9529_v38  ;;  %v5520_v33 = vpop.f32.mrb[11].mxu0  ;;  %v5262_v15 = vpop.f32.mrb[25].mxu1  ;;  %v4574_v55 = vld [vmem:[#allocation2 + $0x1b0] sm:$0xff] }
 0x4cc   : > { %v9591_v58 = vadd.f32 %v5518_v4, %v4632_v60  ;;  %v5521_v16 = vadd.f32 %v5520_v33, %v9505_v35  ;;  %v5263_v13 = vpop.f32.mrb[26].mxu1  ;;  %v5882_v8 = vadd.f32 %v5881_v3, %v9575_v28  ;;  %v11672_v44 = vld [vmem:[#allocation55_spill] sm:$0xff]  ;;  %v4572_v60 = vld [vmem:[#allocation2 + $0x1a0] sm:$0xff]  ;;  %v11673_v35 = vld [vmem:[#allocation58_spill] sm:$0xff] }
 0x4cd   : > { %v9595_v61 = vadd.f32 %v5529_v54, %v4635_v12  ;;  %v5265_v32 = vpop.f32.mrb[27].mxu1  ;;  %v4638_v19 = vadd.f32 %v4574_v55, %v11672_v44  ;;  %v4636_v33 = vadd.f32 %v4572_v60, %v11673_v35  ;;  %v11675_v44 = vld [vmem:[#allocation59_spill] sm:$0xff] }
 0x4ce   : > { %v9597_v50 = vadd.f32 %v5521_v16, %v4633_v51  ;;  %v5883_v23 = vadd.f32 %v5882_v8, %v9591_v58  ;;  %v11674_v16 = vld [vmem:[#allocation61_spill] sm:$0xff]  ;;  %v4573_v32 = vld [vmem:[#allocation2 + $0x1a8] sm:$0xff] }
 0x4cf   : > { %v4639_v8 = vadd.f32 %v4575_v5, %v11674_v16 }
 0x4d0   : > { %v7321_v38 = vpop.f32.mrb[12].mxu0  ;;  %v5884_v15 = vadd.f32 %v5883_v23, %v9597_v50 }
 0x4d1   : > { %v5542_v4 = vadd.f32 %v7321_v38, %v5252_v37  ;;  %v5533_v56 = vpop.f32.mrb[13].mxu0  ;;  %v4637_v37 = vadd.f32 %v4573_v32, %v11675_v44 }
 0x4d2   : > { %v5534_v3 = vadd.f32 %v5533_v56, %v9542_v24  ;;  %v7322_v12 = vpop.f32.mrb[14].mxu0  ;;  %v5268_v54 = vpop.f32.mrb[28].mxu1  ;;  %v5885_v51 = vadd.f32 %v5884_v15, %v9587_v34 }
 0x4d3   : > { %v9606_v45 = vadd.f32 %v5542_v4, %v4638_v19  ;;  %v5545_v23 = vadd.f32 %v7322_v12, %v5255_v18  ;;  %v5536_v43 = vpop.f32.mrb[15].mxu0  ;;  %v5270_v55 = vpop.f32.mrb[29].mxu1  ;;  %v4578_v4 = vld [vmem:[#allocation2 + $0x1d0] sm:$0xff]  ;;  %v11676_v12 = vld [vmem:[#allocation60_spill] sm:$0xff] }
 0x4d4   : > { %v9609_v38 = vadd.f32 %v5534_v3, %v4636_v33  ;;  %v5537_v60 = vadd.f32 %v5536_v43, %v9553_v22  ;;  %v5271_v35 = vpop.f32.mrb[30].mxu1  ;;  %v5886_v24 = vadd.f32 %v5885_v51, %v9595_v61  ;;  %v4642_v16 = vadd.f32 %v4578_v4, %v11676_v12  ;;  %v4576_v33 = vld [vmem:[#allocation2 + $0x1c0] sm:$0xff]  ;;  %v4579_v55 = vld [vmem:[#allocation2 + $0x1d8] sm:$0xff] }
 0x4d5   : > { %v9613_v56 = vadd.f32 %v5545_v23, %v4639_v8  ;;  %v5273_v15 = vpop.f32.mrb[31].mxu1  ;;  %v11677_v43 = vld [vmem:[#allocation65_spill] sm:$0xff]  ;;  %v11679_v4 = vld [vmem:[#allocation64_spill] sm:$0xff] }
 0x4d6   : > { %v9615_v29 = vadd.f32 %v5537_v60, %v4637_v37  ;;  %v5887_v19 = vadd.f32 %v5886_v24, %v9609_v38  ;;  %v4640_v22 = vadd.f32 %v4576_v33, %v11677_v43  ;;  %v11678_v37 = vld [vmem:[#allocation66_spill] sm:$0xff] }
 0x4d7   : > { %v4643_v60 = vadd.f32 %v4579_v55, %v11678_v37  ;;  %v4577_v24 = vld [vmem:[#allocation2 + $0x1c8] sm:$0xff]  ;;  %v4580_v55 = vld [vmem:[#allocation2 + $0x1e0] sm:$0xff] }
 0x4d8   : > { %v7325_v18 = vpop.f32.mrb[16].mxu0  ;;  %v5888_v5 = vadd.f32 %v5887_v19, %v9615_v29  ;;  %v4641_v12 = vadd.f32 %v4577_v24, %v11679_v4  ;;  %v4581_v24 = vld [vmem:[#allocation2 + $0x1e8] sm:$0xff] }
 0x4d9   : > { %v5558_v3 = vadd.f32 %v7325_v18, %v5268_v54  ;;  %v5549_v32 = vpop.f32.mrb[17].mxu0  ;;  %v4645_v4 = vadd.f32 %v4581_v24, %v9295_v36 }
 0x4da   : > { %v5550_v51 = vadd.f32 %v5549_v32, %v5260_v6  ;;  %v7326_v8 = vpop.f32.mrb[18].mxu0  ;;  %v5276_v23 = vpop.f32.mrb[32].mxu1  ;;  %v5889_v44 = vadd.f32 %v5888_v5, %v9606_v45 }
 0x4db   : > { %v9623_v15 = vadd.f32 %v5558_v3, %v4642_v16  ;;  %v5561_v26 = vadd.f32 %v7326_v8, %v5271_v35  ;;  %v5552_v19 = vpop.f32.mrb[19].mxu0  ;;  %v5278_v59 = vpop.f32.mrb[33].mxu1  ;;  %v4582_v16 = vld [vmem:[#allocation2 + $0x1f0] sm:$0xff]  ;;  %v11680_v3 = vld [vmem:[#allocation69_spill] sm:$0xff] }
 0x4dc   : > { %v5700_v54 = vadd.f32 %v5550_v51, %v4640_v22  ;;  %v5553_v18 = vadd.f32 %v5552_v19, %v5263_v13  ;;  %v5279_v30 = vpop.f32.mrb[34].mxu1  ;;  %v5890_v33 = vadd.f32 %v5889_v44, %v9613_v56  ;;  %v4644_v35 = vadd.f32 %v4580_v55, %v11680_v3  ;;  %v11681_v13 = vld [vmem:[#allocation67_spill] sm:$0xff]  ;;  %v4583_v19 = vld [vmem:[#allocation2 + $0x1f8] sm:$0xff] }
 0x4dd   : > { %v5703_v6 = vadd.f32 %v5561_v26, %v4643_v60  ;;  %v5281_v32 = vpop.f32.mrb[35].mxu1  ;;  %v4646_v51 = vadd.f32 %v4582_v16, %v11681_v13 }
 0x4de   : > { %v5701_v43 = vadd.f32 %v5553_v18, %v4641_v12  ;;  %v5891_v63 = vadd.f32 %v5890_v33, %v5700_v54  ;;  %v11682_v32 = vld [vmem:[#allocation68_spill] sm:$0xff] }
 0x4df   : > { %v4647_v55 = vadd.f32 %v4583_v19, %v11682_v32 }
 0x4e0   : > { %v7329_v5 = vpop.f32.mrb[20].mxu0  ;;  %v5892_v53 = vadd.f32 %v5891_v63, %v5701_v43 }
 0x4e1   : > { %v5565_v37 = vpop.f32.mrb[21].mxu0 }
 0x4e2   : > { %v5284_v8 = vpop.f32.mrb[36].mxu1  ;;  %v5566_v59 = vadd.f32 %v5565_v37, %v5276_v23  ;;  %v7330_v46 = vpop.f32.mrb[22].mxu0  ;;  %v5893_v22 = vadd.f32 %v5892_v53, %v9623_v15 }
 0x4e3   : > { %v5574_v44 = vadd.f32 %v7329_v5, %v5284_v8  ;;  %v5286_v26 = vpop.f32.mrb[37].mxu1  ;;  %v5568_v60 = vpop.f32.mrb[23].mxu0 }
 0x4e4   : > { %v5704_v63 = vadd.f32 %v5566_v59, %v4644_v35  ;;  %v5287_v12 = vpop.f32.mrb[38].mxu1  ;;  %v5569_v18 = vadd.f32 %v5568_v60, %v5279_v30  ;;  %v5894_v33 = vadd.f32 %v5893_v22, %v5703_v6 }
 0x4e5   : > { %v5706_v3 = vadd.f32 %v5574_v44, %v4646_v51  ;;  %v5577_v23 = vadd.f32 %v7330_v46, %v5287_v12  ;;  %v5289_v37 = vpop.f32.mrb[39].mxu1 }
 0x4e6   : > { %v5705_v7 = vadd.f32 %v5569_v18, %v4645_v4  ;;  %v5895_v53 = vadd.f32 %v5894_v33, %v5704_v63 }
 0x4e7   : > { %v5707_v40 = vadd.f32 %v5577_v23, %v4647_v55 }
 0x4e8   : > { %v5896_v16 = vadd.f32 %v5895_v53, %v5705_v7 }
 0x4ea   : > { %v5897_v13 = vadd.f32 %v5896_v16, %v5706_v3 }
 0x4ec   : > { %v5898_v5 = vadd.f32 %v5897_v13, %v5707_v40 }
 0x4ee   : > { %v5899_v8 = vrot.slane %v5898_v5, 4 }
 0x4f0   : > { %v5900_v26 = vadd.f32 %v5899_v8, %v5898_v5 }
 0x4f2   : > { %v5901_v49 = vrot.slane %v5900_v26, 2 }
 0x4f4   : > { %v5902_v41 = vadd.f32 %v5901_v49, %v5900_v26 }
 0x4f6   : > { %v5903_v36 = vrot.slane %v5902_v41, 1 }
 0x4f8   : > { %v5904_v35 = vadd.f32 %v5903_v36, %v5902_v41 }
 0x4fa   : > { %v9632_v59 = vmul.f32 0.001953125, %v5904_v35 }
 0x4fc   : > { %v9636_v30 = vsub.f32 %v9578_v42, %v9632_v59  ;;  %v9640_v46 = vsub.f32 %v9567_v0, %v9632_v59  ;;  %v9644_v22 = vsub.f32 %v9575_v28, %v9632_v59  ;;  %v9648_v51 = vsub.f32 %v9591_v58, %v9632_v59 }
 0x4fd   : > { %v9652_v41 = vsub.f32 %v9597_v50, %v9632_v59  ;;  %v9656_v49 = vsub.f32 %v9587_v34, %v9632_v59  ;;  %v9660_v0 = vsub.f32 %v9595_v61, %v9632_v59  ;;  %v9664_v28 = vsub.f32 %v9609_v38, %v9632_v59 }
 0x4fe   : > { %v9668_v58 = vsub.f32 %v9615_v29, %v9632_v59  ;;  %v9672_v42 = vsub.f32 %v9606_v45, %v9632_v59  ;;  %v9676_v34 = vsub.f32 %v9613_v56, %v9632_v59  ;;  %v9679_v50 = vsub.f32 %v5700_v54, %v9632_v59 }
 0x4ff   : > { %v9682_v61 = vsub.f32 %v5701_v43, %v9632_v59  ;;  %v9686_v38 = vsub.f32 %v9623_v15, %v9632_v59  ;;  %v9689_v29 = vsub.f32 %v5703_v6, %v9632_v59  ;;  %v9692_v45 = vsub.f32 %v5704_v63, %v9632_v59 }
 0x500   : > { %v9695_v24 = vsub.f32 %v5705_v7, %v9632_v59  ;;  %v9698_v56 = vsub.f32 %v5706_v3, %v9632_v59  ;;  %v9701_v54 = vsub.f32 %v5707_v40, %v9632_v59  ;;  %v9705_v43 = vsub.f32 %v9308_v9, %v9632_v59 }
 0x501   : > { %11683 = vst [vmem:[#allocation63_spill] sm:$0xff] %v9682_v61  ;;  %11684 = vst [vmem:[#allocation34_spill] sm:$0xff] %v9686_v38  ;;  %v9709_v15 = vsub.f32 %v9317_v25, %v9632_v59  ;;  %v9713_v6 = vsub.f32 %v9304_v11, %v9632_v59  ;;  %v9721_v40 = vsub.f32 %v9314_v47, %v9632_v59 }
 0x502   : > { %11685 = vst [vmem:[#allocation45_spill] sm:$0xff] %v9689_v29  ;;  %11686 = vst [vmem:[#allocation41_spill] sm:$0xff] %v9692_v45  ;;  %v5970_v7 = vmul.f32 %v9705_v43, %v9705_v43  ;;  %v9725_v9 = vsub.f32 %v9331_v52, %v9632_v59  ;;  %v9731_v11 = vsub.f32 %v9342_v2, %v9632_v59 }
 0x503   : > { %11687 = vst [vmem:[#allocation46_spill] sm:$0xff] %v9695_v24  ;;  %v5971_v44 = vmul.f32 %v9709_v15, %v9709_v15  ;;  %v5972_v25 = vmul.f32 %v9713_v6, %v9713_v6  ;;  %v5973_v19 = vmul.f32 %v9721_v40, %v9721_v40  ;;  %v9737_v47 = vsub.f32 %v9327_v10, %v9632_v59 }
 0x504   : > { %v5974_v52 = vmul.f32 %v9725_v9, %v9725_v9  ;;  %v9743_v12 = vsub.f32 %v9338_v17, %v9632_v59  ;;  %v5975_v2 = vmul.f32 %v9731_v11, %v9731_v11  ;;  %v9749_v33 = vsub.f32 %v9355_v48, %v9632_v59 }
 0x505   : > { %v6034_v60 = vadd.f32 %v5971_v44, %v5970_v7  ;;  %v5976_v10 = vmul.f32 %v9737_v47, %v9737_v47  ;;  %v9755_v55 = vsub.f32 %v9366_v27, %v9632_v59  ;;  %v9761_v23 = vsub.f32 %v9351_v20, %v9632_v59 }
 0x506   : > { %v5977_v17 = vmul.f32 %v9743_v12, %v9743_v12  ;;  %v5978_v48 = vmul.f32 %v9749_v33, %v9749_v33  ;;  %v9767_v53 = vsub.f32 %v9362_v39, %v9632_v59  ;;  %v9773_v13 = vsub.f32 %v9379_v57, %v9632_v59 }
 0x507   : > { %v6035_v4 = vadd.f32 %v6034_v60, %v5972_v25  ;;  %v5979_v27 = vmul.f32 %v9755_v55, %v9755_v55  ;;  %v5980_v20 = vmul.f32 %v9761_v23, %v9761_v23  ;;  %v9779_v8 = vsub.f32 %v9390_v14, %v9632_v59 }
 0x508   : > { %v5981_v39 = vmul.f32 %v9767_v53, %v9767_v53  ;;  %v9785_v36 = vsub.f32 %v9375_v31, %v9632_v59  ;;  %v5982_v57 = vmul.f32 %v9773_v13, %v9773_v13  ;;  %v9791_v7 = vsub.f32 %v9386_v21, %v9632_v59 }
 0x509   : > { %v6036_v63 = vadd.f32 %v6035_v4, %v5973_v19  ;;  %v5983_v14 = vmul.f32 %v9779_v8, %v9779_v8  ;;  %v9797_v25 = vsub.f32 %v9403_v62, %v9632_v59  ;;  %v9803_v19 = vsub.f32 %v9414_v1, %v9632_v59 }
 0x50a   : > { %v5984_v31 = vmul.f32 %v9785_v36, %v9785_v36  ;;  %v5985_v21 = vmul.f32 %v9791_v7, %v9791_v7 }
 0x50b   : > { %v6037_v18 = vadd.f32 %v6036_v63, %v5974_v52  ;;  %v11688_v52 = vld [vmem:[#allocation72_spill] sm:$0xff]  ;;  %v5986_v62 = vmul.f32 %v9797_v25, %v9797_v25  ;;  %v5987_v1 = vmul.f32 %v9803_v19, %v9803_v19 }
 0x50c   : > { %v9809_v63 = vsub.f32 %v11688_v52, %v9632_v59 }
 0x50d   : > { %v6038_v32 = vadd.f32 %v6037_v18, %v5975_v2  ;;  %v11689_v18 = vld [vmem:[#allocation70_spill] sm:$0xff] }
 0x50f   : > { %v6039_v3 = vadd.f32 %v6038_v32, %v5976_v10  ;;  %v9815_v10 = vsub.f32 %v11689_v18, %v9632_v59 }
 0x511   : > { %v6040_v37 = vadd.f32 %v6039_v3, %v5977_v17  ;;  %v11690_v17 = vld [vmem:[#allocation71_spill] sm:$0xff] }
 0x512   : > { %v9821_v3 = vsub.f32 %v11690_v17, %v9632_v59  ;;  %v11696_v17 = vld [vmem:[#allocation14_spill] sm:$0xff] }
 0x513   : > { %v6041_v16 = vadd.f32 %v6040_v37, %v5978_v48  ;;  %v5988_v48 = vmul.f32 %v9809_v63, %v9809_v63 }
 0x515   : > { %v6042_v5 = vadd.f32 %v6041_v16, %v5979_v27  ;;  %v11691_v27 = vld [vmem:[#allocation15_spill] sm:$0xff] }
 0x516   : > { %v9827_v16 = vsub.f32 %v11691_v27, %v9632_v59 }
 0x517   : > { %v6043_v26 = vadd.f32 %v6042_v5, %v5980_v20  ;;  %v5989_v20 = vmul.f32 %v9815_v10, %v9815_v10 }
 0x519   : > { %v6044_v35 = vadd.f32 %v6043_v26, %v5981_v39  ;;  %v11692_v39 = vld [vmem:[#allocation73_spill] sm:$0xff] }
 0x51a   : > { %v9833_v26 = vsub.f32 %v11692_v39, %v9632_v59 }
 0x51b   : > { %v6045_v44 = vadd.f32 %v6044_v35, %v5982_v57  ;;  %v5990_v57 = vmul.f32 %v9821_v3, %v9821_v3 }
 0x51c   : > { %v5992_v52 = vmul.f32 %v9833_v26, %v9833_v26 }
 0x51d   : > { %v6046_v60 = vadd.f32 %v6045_v44, %v5983_v14  ;;  %v11693_v14 = vld [vmem:[#allocation16_spill] sm:$0xff] }
 0x51e   : > { %v9839_v44 = vsub.f32 %v11693_v14, %v9632_v59 }
 0x51f   : > { %v6047_v4 = vadd.f32 %v6046_v60, %v5984_v31  ;;  %v5991_v31 = vmul.f32 %v9827_v16, %v9827_v16 }
 0x521   : > { %v6048_v2 = vadd.f32 %v6047_v4, %v5985_v21  ;;  %v11694_v21 = vld [vmem:[#allocation13_spill] sm:$0xff] }
 0x522   : > { %v9845_v4 = vsub.f32 %v11694_v21, %v9632_v59  ;;  %v11700_v21 = vld [vmem:[#allocation23_spill] sm:$0xff] }
 0x523   : > { %v6049_v32 = vadd.f32 %v6048_v2, %v5986_v62  ;;  %v11695_v2 = vld [vmem:[#allocation19_spill] sm:$0xff] }
 0x524   : > { %v9851_v18 = vsub.f32 %v11695_v2, %v9632_v59 }
 0x525   : > { %v6050_v37 = vadd.f32 %v6049_v32, %v5987_v1  ;;  %v5993_v1 = vmul.f32 %v9839_v44, %v9839_v44 }
 0x526   : > { %v5995_v39 = vmul.f32 %v9851_v18, %v9851_v18 }
 0x527   : > { %v6051_v5 = vadd.f32 %v6050_v37, %v5988_v48  ;;  %v9857_v48 = vsub.f32 %v11696_v17, %v9632_v59  ;;  %v5994_v37 = vmul.f32 %v9845_v4, %v9845_v4 }
 0x529   : > { %v6052_v35 = vadd.f32 %v6051_v5, %v5989_v20  ;;  %v11697_v20 = vld [vmem:[#allocation20_spill] sm:$0xff] }
 0x52a   : > { %v9863_v5 = vsub.f32 %v11697_v20, %v9632_v59 }
 0x52b   : > { %v6053_v60 = vadd.f32 %v6052_v35, %v5990_v57  ;;  %v11698_v35 = vld [vmem:[#allocation17_spill] sm:$0xff] }
 0x52c   : > { %v9869_v14 = vsub.f32 %v11698_v35, %v9632_v59  ;;  %v11706_v35 = vld [vmem:[#allocation21_spill] sm:$0xff] }
 0x52d   : > { %v6054_v62 = vadd.f32 %v6053_v60, %v5991_v31  ;;  %v5996_v31 = vmul.f32 %v9857_v48, %v9857_v48 }
 0x52e   : > { %11699 = vst [vmem:[#allocation42_spill] sm:$0xff] %v9869_v14  ;;  %v5998_v17 = vmul.f32 %v9869_v14, %v9869_v14 }
 0x52f   : > { %v6055_v32 = vadd.f32 %v6054_v62, %v5992_v52  ;;  %v9875_v52 = vsub.f32 %v11700_v21, %v9632_v59  ;;  %v5997_v62 = vmul.f32 %v9863_v5, %v9863_v5  ;;  %v9893_v21 = vsub.f32 %v11706_v35, %v9632_v59  ;;  %v11712_v35 = vld [vmem:[#allocation29_spill] sm:$0xff] }
 0x531   : > { %v6056_v27 = vadd.f32 %v6055_v32, %v5993_v1  ;;  %11701 = vst [vmem:[#allocation31_spill] sm:$0xff] %v9875_v52  ;;  %v11702_v1 = vld [vmem:[#allocation18_spill] sm:$0xff]  ;;  %11707 = vst [vmem:[#allocation28_spill] sm:$0xff] %v9893_v21 }
 0x532   : > { %v9881_v32 = vsub.f32 %v11702_v1, %v9632_v59  ;;  %v11708_v1 = vld [vmem:[#allocation25_spill] sm:$0xff] }
 0x533   : > { %v6057_v57 = vadd.f32 %v6056_v27, %v5994_v37  ;;  %v11704_v27 = vld [vmem:[#allocation24_spill] sm:$0xff]  ;;  %v9899_v14 = vsub.f32 %v11708_v1, %v9632_v59  ;;  %v11714_v1 = vld [vmem:[#allocation30_spill] sm:$0xff] }
 0x534   : > { %11703 = vst [vmem:[#allocation27_spill] sm:$0xff] %v9881_v32  ;;  %v9887_v20 = vsub.f32 %v11704_v27, %v9632_v59  ;;  %v11710_v27 = vld [vmem:[#allocation22_spill] sm:$0xff] }
 0x535   : > { %v6058_v60 = vadd.f32 %v6057_v57, %v5995_v39  ;;  %v5999_v39 = vmul.f32 %v9875_v52, %v9875_v52  ;;  %11709 = vst [vmem:[#allocation39_spill] sm:$0xff] %v9899_v14  ;;  %v9905_v52 = vsub.f32 %v11710_v27, %v9632_v59  ;;  %v11716_v27 = vld [vmem:[#allocation26_spill] sm:$0xff] }
 0x536   : > { %11705 = vst [vmem:[#allocation32_spill] sm:$0xff] %v9887_v20 }
 0x537   : > { %v6059_v2 = vadd.f32 %v6058_v60, %v5996_v31  ;;  %v6000_v31 = vmul.f32 %v9881_v32, %v9881_v32  ;;  %11711 = vst [vmem:[#allocation35_spill] sm:$0xff] %v9905_v52  ;;  %v9911_v32 = vsub.f32 %v11712_v35, %v9632_v59  ;;  %v11718_v35 = vld [vmem:[#allocation56_spill] sm:$0xff] }
 0x539   : > { %v6060_v37 = vadd.f32 %v6059_v2, %v5997_v62  ;;  %v6001_v62 = vmul.f32 %v9887_v20, %v9887_v20  ;;  %11713 = vst [vmem:[#allocation40_spill] sm:$0xff] %v9911_v32  ;;  %v9917_v20 = vsub.f32 %v11714_v1, %v9632_v59  ;;  %v11720_v1 = vld [vmem:[#allocation50_spill] sm:$0xff] }
 0x53b   : > { %v6061_v57 = vadd.f32 %v6060_v37, %v5998_v17  ;;  %v6002_v17 = vmul.f32 %v9893_v21, %v9893_v21  ;;  %11715 = vst [vmem:[#allocation36_spill] sm:$0xff] %v9917_v20  ;;  %v9923_v21 = vsub.f32 %v11716_v27, %v9632_v59  ;;  %v11722_v27 = vld [vmem:[#allocation37_spill] sm:$0xff] }
 0x53d   : > { %v6062_v60 = vadd.f32 %v6061_v57, %v5999_v39  ;;  %v6003_v39 = vmul.f32 %v9899_v14, %v9899_v14  ;;  %11717 = vst [vmem:[#allocation47_spill] sm:$0xff] %v9923_v21  ;;  %v9929_v14 = vsub.f32 %v11718_v35, %v9632_v59  ;;  %v11723_v35 = vld [vmem:[#allocation33_spill] sm:$0xff] }
 0x53f   : > { %v6063_v2 = vadd.f32 %v6062_v60, %v6000_v31  ;;  %v6004_v31 = vmul.f32 %v9905_v52, %v9905_v52  ;;  %11719 = vst [vmem:[#allocation43_spill] sm:$0xff] %v9929_v14  ;;  %v9935_v52 = vsub.f32 %v11720_v1, %v9632_v59  ;;  %v11725_v1 = vld [vmem:[#allocation62_spill] sm:$0xff] }
 0x541   : > { %v6064_v37 = vadd.f32 %v6063_v2, %v6001_v62  ;;  %v6005_v62 = vmul.f32 %v9911_v32, %v9911_v32  ;;  %11721 = vst [vmem:[#allocation48_spill] sm:$0xff] %v9935_v52  ;;  %v9941_v32 = vsub.f32 %v11722_v27, %v9632_v59  ;;  %v11726_v27 = vld [vmem:[#allocation57_spill] sm:$0xff] }
 0x543   : > { %v6065_v57 = vadd.f32 %v6064_v37, %v6002_v17  ;;  %v6006_v17 = vmul.f32 %v9917_v20, %v9917_v20  ;;  %v9947_v20 = vsub.f32 %v11723_v35, %v9632_v59  ;;  %v11727_v35 = vld [vmem:[#allocation38_spill] sm:$0xff] }
 0x545   : > { %v6066_v60 = vadd.f32 %v6065_v57, %v6003_v39  ;;  %v6007_v39 = vmul.f32 %v9923_v21, %v9923_v21  ;;  %11724 = vst [vmem:[#allocation44_spill] sm:$0xff] %v9947_v20  ;;  %v9953_v21 = vsub.f32 %v11725_v1, %v9632_v59 }
 0x547   : > { %v6067_v2 = vadd.f32 %v6066_v60, %v6004_v31  ;;  %v6008_v31 = vmul.f32 %v9929_v14, %v9929_v14  ;;  %v9959_v14 = vsub.f32 %v11726_v27, %v9632_v59 }
 0x549   : > { %v6068_v37 = vadd.f32 %v6067_v2, %v6005_v62  ;;  %v6009_v62 = vmul.f32 %v9935_v52, %v9935_v52  ;;  %v9965_v52 = vsub.f32 %v11727_v35, %v9632_v59  ;;  %v6013_v1 = vmul.f32 %v9959_v14, %v9959_v14 }
 0x54a   : > { %v6016_v59 = vmul.f32 %v9640_v46, %v9640_v46  ;;  %v6017_v35 = vmul.f32 %v9644_v22, %v9644_v22 }
 0x54b   : > { %v6069_v57 = vadd.f32 %v6068_v37, %v6006_v17  ;;  %v6010_v17 = vmul.f32 %v9941_v32, %v9941_v32 }
 0x54d   : > { %v6070_v60 = vadd.f32 %v6069_v57, %v6007_v39  ;;  %v6011_v39 = vmul.f32 %v9947_v20, %v9947_v20  ;;  %v6015_v20 = vmul.f32 %v9636_v30, %v9636_v30 }
 0x54f   : > { %v6071_v2 = vadd.f32 %v6070_v60, %v6008_v31  ;;  %v6012_v31 = vmul.f32 %v9953_v21, %v9953_v21 }
 0x551   : > { %v6072_v37 = vadd.f32 %v6071_v2, %v6009_v62  ;;  %v6014_v2 = vmul.f32 %v9965_v52, %v9965_v52 }
 0x553   : > { %v6073_v57 = vadd.f32 %v6072_v37, %v6010_v17 }
 0x555   : > { %v6074_v60 = vadd.f32 %v6073_v57, %v6011_v39  ;;  %v6018_v57 = vmul.f32 %v9648_v51, %v9648_v51 }
 0x557   : > { %v6075_v62 = vadd.f32 %v6074_v60, %v6012_v31  ;;  %v6019_v60 = vmul.f32 %v9652_v41, %v9652_v41 }
 0x559   : > { %v6076_v27 = vadd.f32 %v6075_v62, %v6013_v1  ;;  %v6020_v62 = vmul.f32 %v9656_v49, %v9656_v49 }
 0x55b   : > { %v6077_v17 = vadd.f32 %v6076_v27, %v6014_v2  ;;  %v6021_v27 = vmul.f32 %v9660_v0, %v9660_v0 }
 0x55d   : > { %v6078_v37 = vadd.f32 %v6077_v17, %v6015_v20  ;;  %v6022_v17 = vmul.f32 %v9664_v28, %v9664_v28 }
 0x55f   : > { %v6079_v39 = vadd.f32 %v6078_v37, %v6016_v59  ;;  %v6023_v37 = vmul.f32 %v9668_v58, %v9668_v58 }
 0x561   : > { %v6080_v31 = vadd.f32 %v6079_v39, %v6017_v35  ;;  %v6024_v39 = vmul.f32 %v9672_v42, %v9672_v42 }
 0x563   : > { %v6081_v1 = vadd.f32 %v6080_v31, %v6018_v57  ;;  %v6025_v31 = vmul.f32 %v9676_v34, %v9676_v34 }
 0x565   : > { %v6082_v2 = vadd.f32 %v6081_v1, %v6019_v60  ;;  %v6026_v1 = vmul.f32 %v9679_v50, %v9679_v50 }
 0x567   : > { %v6083_v20 = vadd.f32 %v6082_v2, %v6020_v62  ;;  %v6027_v2 = vmul.f32 %v9682_v61, %v9682_v61 }
 0x569   : > { %v6084_v59 = vadd.f32 %v6083_v20, %v6021_v27  ;;  %v6028_v20 = vmul.f32 %v9686_v38, %v9686_v38 }
 0x56b   : > { %v6085_v35 = vadd.f32 %v6084_v59, %v6022_v17  ;;  %v6029_v59 = vmul.f32 %v9689_v29, %v9689_v29 }
 0x56d   : > { %v6086_v57 = vadd.f32 %v6085_v35, %v6023_v37  ;;  %v6030_v35 = vmul.f32 %v9692_v45, %v9692_v45 }
 0x56f   : > { %v6087_v60 = vadd.f32 %v6086_v57, %v6024_v39  ;;  %v6031_v57 = vmul.f32 %v9695_v24, %v9695_v24 }
 0x571   : > { %v6088_v62 = vadd.f32 %v6087_v60, %v6025_v31  ;;  %v6032_v60 = vmul.f32 %v9698_v56, %v9698_v56 }
 0x573   : > { %v6089_v27 = vadd.f32 %v6088_v62, %v6026_v1  ;;  %v6033_v62 = vmul.f32 %v9701_v54, %v9701_v54 }
 0x575   : > { %v6090_v17 = vadd.f32 %v6089_v27, %v6027_v2 }
 0x577   : > { %v6091_v37 = vadd.f32 %v6090_v17, %v6028_v20 }
 0x579   : > { %v6092_v39 = vadd.f32 %v6091_v37, %v6029_v59 }
 0x57b   : > { %v6093_v31 = vadd.f32 %v6092_v39, %v6030_v35  ;;  %v6108_v35 = vlaneseq }
 0x57d   : > { %v6094_v1 = vadd.f32 %v6093_v31, %v6031_v57  ;;  %v6109_v39 = vshrl.u32 %v6108_v35, 7  ;;  %v6106_v57 = vld [vmem:[%s243_s27] sm:$0x1]  ;;  %v11734_v35 = vld [vmem:[#allocation35_spill] sm:$0xff] }
 0x57f   : > { %v6095_v2 = vadd.f32 %v6094_v1, %v6032_v60  ;;  %v6110_v60 = vsub.s32 0, %v6109_v39 }
 0x581   : > { %v6096_v27 = vadd.f32 %v6095_v2, %v6033_v62  ;;  %v11728_v62 = vld [vmem:[#allocation42_spill] sm:$0xff]  ;;  %v11729_v2 = vld [vmem:[#allocation31_spill] sm:$0xff] }
 0x583   : > { %v6097_v29 = vrot.slane %v6096_v27, 4 }
 0x585   : > { %v6098_v20 = vadd.f32 %v6097_v29, %v6096_v27  ;;  %v11730_v27 = vld [vmem:[#allocation27_spill] sm:$0xff] }
 0x587   : > { %v6099_v17 = vrot.slane %v6098_v20, 2 }
 0x589   : > { %v6100_v38 = vadd.f32 %v6099_v17, %v6098_v20  ;;  %v11731_v20 = vld [vmem:[#allocation32_spill] sm:$0xff] }
 0x58a   : > { %v11732_v17 = vld [vmem:[#allocation28_spill] sm:$0xff] }
 0x58b   : > { %v6101_v45 = vrot.slane %v6100_v38, 1 }
 0x58d   : > { %v6102_v59 = vadd.f32 %v6101_v45, %v6100_v38 }
 0x58f   : > { %v6103_v37 = vmul.f32 0.001953125, %v6102_v59  ;;  %v11733_v59 = vld [vmem:[#allocation39_spill] sm:$0xff] }
 0x591   : > { %v6104_v61 = vadd.f32 1e-05, %v6103_v37 }
 0x593   : > { %7486 = vrsqrt.f32 %v6104_v61 }
 0x59d   : > { %v7487_v24 = vpop.eup %7486 }
 0x59e   : > { %v6107_v31 = vmul.f32 %v7487_v24, %v6106_v57  ;;  %v11735_v57 = vld [vmem:[#allocation40_spill] sm:$0xff] }
 0x5a0   : > { %v10016_v1 = vrot.slane %v6107_v31, %v6110_v60  ;;  %v11737_v60 = vld [vmem:[#allocation36_spill] sm:$0xff] }
 0x5a2   : > { %v10020_v29 = vmul.f32 %v10016_v1, %v9705_v43  ;;  %v10024_v38 = vmul.f32 %v10016_v1, %v9709_v15  ;;  %v10028_v61 = vmul.f32 %v10016_v1, %v9713_v6  ;;  %v10032_v45 = vmul.f32 %v10016_v1, %v9721_v40 }
 0x5a3   : > { %v10036_v24 = vmul.f32 %v10016_v1, %v9725_v9  ;;  %v10040_v43 = vmul.f32 %v10016_v1, %v9731_v11  ;;  %v10044_v15 = vmul.f32 %v10016_v1, %v9737_v47  ;;  %v10048_v6 = vmul.f32 %v10016_v1, %v9743_v12 }
 0x5a4   : > { %v10052_v40 = vmul.f32 %v10016_v1, %v9749_v33  ;;  %v10056_v9 = vmul.f32 %v10016_v1, %v9755_v55  ;;  %v10060_v11 = vmul.f32 %v10016_v1, %v9761_v23  ;;  %v10064_v47 = vmul.f32 %v10016_v1, %v9767_v53 }
 0x5a5   : > { %v10068_v12 = vmul.f32 %v10016_v1, %v9773_v13  ;;  %v10072_v33 = vmul.f32 %v10016_v1, %v9779_v8  ;;  %v10076_v55 = vmul.f32 %v10016_v1, %v9785_v36  ;;  %v10080_v23 = vmul.f32 %v10016_v1, %v9791_v7 }
 0x5a6   : > { %v10084_v53 = vmul.f32 %v10016_v1, %v9797_v25  ;;  %v10088_v13 = vmul.f32 %v10016_v1, %v9803_v19  ;;  %v10092_v8 = vmul.f32 %v10016_v1, %v9809_v63  ;;  %v10096_v36 = vmul.f32 %v10016_v1, %v9815_v10 }
 0x5a7   : > { %v10100_v7 = vmul.f32 %v10016_v1, %v9821_v3  ;;  %v10104_v25 = vmul.f32 %v10016_v1, %v9827_v16  ;;  %v10108_v19 = vmul.f32 %v10016_v1, %v9833_v26  ;;  %v10112_v63 = vmul.f32 %v10016_v1, %v9839_v44 }
 0x5a8   : > { %v10116_v10 = vmul.f32 %v10016_v1, %v9845_v4  ;;  %v10120_v3 = vmul.f32 %v10016_v1, %v9851_v18  ;;  %v10124_v16 = vmul.f32 %v10016_v1, %v9857_v48  ;;  %v10128_v26 = vmul.f32 %v10016_v1, %v9863_v5 }
 0x5a9   : > { %v10132_v44 = vmul.f32 %v10016_v1, %v11728_v62  ;;  %v10136_v4 = vmul.f32 %v10016_v1, %v11729_v2  ;;  %v10140_v18 = vmul.f32 %v10016_v1, %v11730_v27  ;;  %v10144_v48 = vmul.f32 %v10016_v1, %v11731_v20  ;;  %v11738_v2 = vld [vmem:[#allocation47_spill] sm:$0xff] }
 0x5aa   : > { %v10148_v5 = vmul.f32 %v10016_v1, %v11732_v17  ;;  %v10152_v37 = vmul.f32 %v10016_v1, %v11733_v59  ;;  %v10156_v39 = vmul.f32 %v10016_v1, %v11734_v35  ;;  %v10160_v31 = vmul.f32 %v10016_v1, %v11735_v57  ;;  %v11739_v20 = vld [vmem:[#allocation43_spill] sm:$0xff]  ;;  %v11740_v59 = vld [vmem:[#allocation48_spill] sm:$0xff] }
 0x5ab   : > { %v10164_v62 = vmul.f32 %v10016_v1, %v11737_v60  ;;  %v10168_v27 = vmul.f32 %v10016_v1, %v11738_v2  ;;  %v10172_v17 = vmul.f32 %v10016_v1, %v11739_v20  ;;  %v10176_v35 = vmul.f32 %v10016_v1, %v11740_v59 }
 0x5ac   : > { %11736 = vst [vmem:[#allocation51_spill] sm:$0xff] %v10160_v31  ;;  %v10180_v57 = vmul.f32 %v10016_v1, %v9941_v32  ;;  %v11741_v31 = vld [vmem:[#allocation44_spill] sm:$0xff]  ;;  %v10188_v2 = vmul.f32 %v10016_v1, %v9953_v21  ;;  %v10192_v20 = vmul.f32 %v10016_v1, %v9959_v14  ;;  %v10196_v59 = vmul.f32 %v10016_v1, %v9965_v52 }
 0x5ad   : > { %v10184_v60 = vmul.f32 %v10016_v1, %v11741_v31  ;;  %v10200_v32 = vmul.f32 %v10016_v1, %v9636_v30  ;;  %v10204_v31 = vmul.f32 %v10016_v1, %v9640_v46  ;;  %v10208_v21 = vmul.f32 %v10016_v1, %v9644_v22 }
 0x5ae   : > { %v10212_v14 = vmul.f32 %v10016_v1, %v9648_v51  ;;  %v10216_v52 = vmul.f32 %v10016_v1, %v9652_v41  ;;  %v10220_v30 = vmul.f32 %v10016_v1, %v9656_v49  ;;  %v10224_v46 = vmul.f32 %v10016_v1, %v9660_v0  ;;  %v10243_v49 = vld [vmem:[%s246_s7] ss:$0 sm:$0xff] }
 0x5af   : > { %v10228_v22 = vmul.f32 %v10016_v1, %v9664_v28  ;;  %v10232_v51 = vmul.f32 %v10016_v1, %v9668_v58  ;;  %v10236_v41 = vmul.f32 %v10016_v1, %v9672_v42  ;;  %v10247_v0 = vmul.f32 %v10016_v1, %v9676_v34  ;;  %v11748_v58 = vld [vmem:[#allocation63_spill] sm:$0xff]  ;;  %v11749_v42 = vld [vmem:[#allocation34_spill] sm:$0xff] }
 0x5b0   : > { %11742 = vst [vmem:[#allocation49_spill] sm:$0xff] %v10220_v30  ;;  %11743 = vst [vmem:[#allocation52_spill] sm:$0xff] %v10224_v46  ;;  %v10251_v28 = vmul.f32 %v10016_v1, %v9679_v50  ;;  %v11751_v30 = vld [vmem:[#allocation41_spill] sm:$0xff] }
 0x5b1   : > { %11744 = vst [vmem:[#allocation54_spill] sm:$0xff] %v10228_v22  ;;  %11745 = vst [vmem:[#allocation53_spill] sm:$0xff] %v10232_v51  ;;  %v10255_v51 = vmul.f32 %v10016_v1, %v11748_v58  ;;  %v11750_v22 = vld [vmem:[#allocation45_spill] sm:$0xff]  ;;  %v10267_v34 = vmul.f32 %v10016_v1, %v11751_v30  ;;  %v10275_v58 = vmul.f32 %v10016_v1, %v9698_v56 }
 0x5b2   : > { %11746 = vst [vmem:[#allocation55_spill] sm:$0xff] %v10236_v41  ;;  %11747 = vst [vmem:[#allocation58_spill] sm:$0xff] %v10247_v0  ;;  %v10259_v41 = vmul.f32 %v10016_v1, %v11749_v42  ;;  %v10263_v46 = vmul.f32 %v10016_v1, %v11750_v22  ;;  %v11752_v0 = vld [vmem:[#allocation46_spill] sm:$0xff]  ;;  %v10279_v42 = vmul.f32 %v10016_v1, %v9701_v54 }
 0x5b3   : > { %v10271_v50 = vmul.f32 %v10016_v1, %v11752_v0  ;;  %v10283_v22 = vadd.f32 %v10243_v49, %v10020_v29  ;;  %v10287_v30 = vadd.f32 %v10243_v49, %v10024_v38  ;;  %v10291_v0 = vadd.f32 %v10243_v49, %v10028_v61 }
 0x5b4   : > { %v10295_v56 = vadd.f32 %v10243_v49, %v10032_v45  ;;  %v10299_v54 = vadd.f32 %v10243_v49, %v10036_v24  ;;  %v10303_v1 = vadd.f32 %v10243_v49, %v10040_v43  ;;  %v10307_v29 = vadd.f32 %v10243_v49, %v10044_v15 }
 0x5b5   : > { %v10311_v38 = vadd.f32 %v10243_v49, %v10048_v6  ;;  %v10315_v61 = vadd.f32 %v10243_v49, %v10052_v40  ;;  %v10319_v45 = vadd.f32 %v10243_v49, %v10056_v9  ;;  %v10323_v24 = vadd.f32 %v10243_v49, %v10060_v11 }
 0x5b6   : > { %v10327_v43 = vadd.f32 %v10243_v49, %v10064_v47  ;;  %v10331_v15 = vadd.f32 %v10243_v49, %v10068_v12  ;;  %v10335_v6 = vadd.f32 %v10243_v49, %v10072_v33  ;;  %v10339_v40 = vadd.f32 %v10243_v49, %v10076_v55 }
 0x5b7   : > { %v10343_v9 = vadd.f32 %v10243_v49, %v10080_v23  ;;  %v10347_v11 = vadd.f32 %v10243_v49, %v10084_v53  ;;  %v10351_v47 = vadd.f32 %v10243_v49, %v10088_v13  ;;  %v10355_v12 = vadd.f32 %v10243_v49, %v10092_v8 }
 0x5b8   : > { %v10359_v33 = vadd.f32 %v10243_v49, %v10096_v36  ;;  %v10363_v55 = vadd.f32 %v10243_v49, %v10100_v7  ;;  %v10367_v23 = vadd.f32 %v10243_v49, %v10104_v25  ;;  %v10371_v53 = vadd.f32 %v10243_v49, %v10108_v19 }
 0x5b9   : > { %v10375_v13 = vadd.f32 %v10243_v49, %v10112_v63  ;;  %v10379_v8 = vadd.f32 %v10243_v49, %v10116_v10  ;;  %v10383_v36 = vadd.f32 %v10243_v49, %v10120_v3  ;;  %v10387_v7 = vadd.f32 %v10243_v49, %v10124_v16 }
 0x5ba   : > { %v10391_v25 = vadd.f32 %v10243_v49, %v10128_v26  ;;  %v10395_v19 = vadd.f32 %v10243_v49, %v10132_v44  ;;  %v10399_v63 = vadd.f32 %v10243_v49, %v10136_v4  ;;  %v10403_v10 = vadd.f32 %v10243_v49, %v10140_v18  ;;  %v11753_v4 = vld [vmem:[#allocation51_spill] sm:$0xff] }
 0x5bb   : > { %v10407_v3 = vadd.f32 %v10243_v49, %v10144_v48  ;;  %v10411_v16 = vadd.f32 %v10243_v49, %v10148_v5  ;;  %v10415_v26 = vadd.f32 %v10243_v49, %v10152_v37  ;;  %v10419_v44 = vadd.f32 %v10243_v49, %v10156_v39 }
 0x5bc   : > { %v10423_v18 = vadd.f32 %v10243_v49, %v11753_v4  ;;  %v10427_v48 = vadd.f32 %v10243_v49, %v10164_v62  ;;  %v10431_v5 = vadd.f32 %v10243_v49, %v10168_v27  ;;  %v10435_v37 = vadd.f32 %v10243_v49, %v10172_v17 }
 0x5bd   : > { %v10439_v39 = vadd.f32 %v10243_v49, %v10176_v35  ;;  %v10443_v4 = vadd.f32 %v10243_v49, %v10180_v57  ;;  %v10447_v62 = vadd.f32 %v10243_v49, %v10184_v60  ;;  %v10451_v27 = vadd.f32 %v10243_v49, %v10188_v2 }
 0x5be   : > { %v10455_v17 = vadd.f32 %v10243_v49, %v10192_v20  ;;  %v10459_v35 = vadd.f32 %v10243_v49, %v10196_v59  ;;  %v10463_v57 = vadd.f32 %v10243_v49, %v10200_v32  ;;  %v10467_v60 = vadd.f32 %v10243_v49, %v10204_v31 }
 0x5bf   : > { %v10471_v2 = vadd.f32 %v10243_v49, %v10208_v21  ;;  %v10475_v20 = vadd.f32 %v10243_v49, %v10212_v14  ;;  %v10479_v59 = vadd.f32 %v10243_v49, %v10216_v52  ;;  %vm6247_vm6 = vcmp.gt.f32.partialorder %v10283_v22, 0.0 }
 0x5c0   : > { %11754 = vst [vmem:[#allocation61_spill] sm:$0xff] %v10459_v35  ;;  %11755 = vst [vmem:[#allocation59_spill] sm:$0xff] %v10463_v57  ;;  %v11760_v35 = vld [vmem:[#allocation49_spill] sm:$0xff]  ;;  %v11761_v57 = vld [vmem:[#allocation52_spill] sm:$0xff]  ;;  %vm6248_vm7 = vcmp.gt.f32.partialorder %v10287_v30, 0.0  ;;  %vm6249_vm8 = vcmp.gt.f32.partialorder %v10291_v0, 0.0 }
 0x5c1   : > { %11756 = vst [vmem:[#allocation60_spill] sm:$0xff] %v10467_v60  ;;  %11757 = vst [vmem:[#allocation65_spill] sm:$0xff] %v10471_v2  ;;  %v10483_v32 = vadd.f32 %v10243_v49, %v11760_v35  ;;  %v10487_v31 = vadd.f32 %v10243_v49, %v11761_v57  ;;  %v11762_v60 = vld [vmem:[#allocation54_spill] sm:$0xff]  ;;  %v11763_v2 = vld [vmem:[#allocation53_spill] sm:$0xff]  ;;  %v10507_v57 = vadd.f32 %v10243_v49, %v10251_v28  ;;  %vm6250_vm9 = vcmp.gt.f32.partialorder %v10295_v56, 0.0 }
 0x5c2   : > { %11758 = vst [vmem:[#allocation66_spill] sm:$0xff] %v10475_v20  ;;  %11759 = vst [vmem:[#allocation64_spill] sm:$0xff] %v10479_v59  ;;  %v10491_v21 = vadd.f32 %v10243_v49, %v11762_v60  ;;  %v10495_v14 = vadd.f32 %v10243_v49, %v11763_v2  ;;  %v11765_v20 = vld [vmem:[#allocation55_spill] sm:$0xff]  ;;  %v11767_v59 = vld [vmem:[#allocation58_spill] sm:$0xff]  ;;  %v10511_v60 = vadd.f32 %v10243_v49, %v10255_v51  ;;  %vm6251_vm10 = vcmp.gt.f32.partialorder %v10299_v54, 0.0 }
 0x5c3   : > { %v10499_v52 = vadd.f32 %v10243_v49, %v11765_v20  ;;  %v10503_v35 = vadd.f32 %v10243_v49, %v11767_v59  ;;  %11769 = vst [vmem:[#allocation72_spill] sm:$0xff] %v10507_v57  ;;  %v10515_v2 = vadd.f32 %v10243_v49, %v10259_v41  ;;  %v10519_v20 = vadd.f32 %v10243_v49, %v10263_v46 }
 0x5c4   : > { %11764 = vst [vmem:[#allocation69_spill] sm:$0xff] %v10495_v14  ;;  %11770 = vst [vmem:[#allocation70_spill] sm:$0xff] %v10511_v60  ;;  %v10523_v59 = vadd.f32 %v10243_v49, %v10267_v34  ;;  %v10527_v28 = vadd.f32 %v10243_v49, %v10271_v50  ;;  %vm6252_vm11 = vcmp.gt.f32.partialorder %v10303_v1, 0.0  ;;  %vm6253_vm12 = vcmp.gt.f32.partialorder %v10307_v29, 0.0 }
 0x5c5   : > { %11766 = vst [vmem:[#allocation67_spill] sm:$0xff] %v10499_v52  ;;  %11768 = vst [vmem:[#allocation68_spill] sm:$0xff] %v10503_v35  ;;  %vm6254_vm13 = vcmp.gt.f32.partialorder %v10311_v38, 0.0  ;;  %vm6255_vm14 = vcmp.gt.f32.partialorder %v10315_v61, 0.0  ;;  %v10540_v46 = vadd.f32 %v10243_v49, %v10275_v58  ;;  %vm6256_vm15 = vcmp.gt.f32.partialorder %v10319_v45, 0.0 }
 0x5c6   : > { %11771 = vst [vmem:[#allocation71_spill] sm:$0xff] %v10515_v2  ;;  %11772 = vst [vmem:[#allocation15_spill] sm:$0xff] %v10519_v20  ;;  %v6311_v51 = vmul.f32 0.2, %v10283_v22  ;;  %v6312_v41 = vmul.f32 0.2, %v10287_v30  ;;  %v10548_v50 = vadd.f32 %v10243_v49, %v10279_v42 }
 0x5c7   : > { %11773 = vst [vmem:[#allocation73_spill] sm:$0xff] %v10523_v59  ;;  %11774 = vst [vmem:[#allocation16_spill] sm:$0xff] %v10527_v28  ;;  %v6313_v34 = vmul.f32 0.2, %v10291_v0  ;;  %vm6257_vm0 = vcmp.gt.f32.partialorder %v10323_v24, 0.0  ;;  %vm6258_vm1 = vcmp.gt.f32.partialorder %v10327_v43, 0.0 }
 0x5c8   : > { %11775 = vst [vmem:[#allocation13_spill] sm:$0xff] %v10540_v46  ;;  %11776 = vst [vmem:[#allocation19_spill] sm:$0xff] %v10548_v50  ;;  %v6314_v28 = vmul.f32 0.2, %v10295_v56  ;;  %v6315_v59 = vmul.f32 0.2, %v10299_v54  ;;  %v10561_v49 = vsel %vm6247_vm6, %v10283_v22, %v6311_v51  ;;  %v10574_v57 = vsel %vm6248_vm7, %v10287_v30, %v6312_v41 }
 0x5c9   : > { %v6316_v58 = vmul.f32 0.2, %v10303_v1  ;;  %v6317_v46 = vmul.f32 0.2, %v10307_v29  ;;  %v6318_v20 = vmul.f32 0.2, %v10311_v38  ;;  %v10590_v52 = vsel %vm6249_vm8, %v10291_v0, %v6313_v34 }
 0x5ca   : > { %v6319_v2 = vmul.f32 0.2, %v10315_v61  ;;  %11777 = vst [vmem:[#allocation14_spill] sm:$0xff] %v10561_v49  ;;  %vm6259_vm2 = vcmp.gt.f32.partialorder %v10331_v15, 0.0  ;;  %v6320_v42 = vmul.f32 0.2, %v10319_v45  ;;  %v10606_v14 = vsel %vm6250_vm9, %v10295_v56, %v6314_v28 }
 0x5cb   : > { %v10566_v50 = vmul.f32 0.2, %v10323_v24  ;;  %v10569_v60 = vmul.f32 0.2, %v10327_v43  ;;  %11778 = vst [vmem:[#allocation20_spill] sm:$0xff] %v10574_v57  ;;  %6439 = vst [vmem:[#allocation2] sm:$0xff] %v10561_v49 }
 0x5cc   : > { %vm6260_vm3 = vcmp.gt.f32.partialorder %v10335_v6, 0.0  ;;  %v10579_v22 = vmul.f32 0.2, %v10331_v15  ;;  %v10582_v51 = vmul.f32 0.2, %v10335_v6  ;;  %11779 = vst [vmem:[#allocation17_spill] sm:$0xff] %v10590_v52 }
 0x5cd   : > { %v10585_v35 = vmul.f32 0.2, %v10339_v40  ;;  %6440 = vst [vmem:[#allocation2 + $0x8] sm:$0xff] %v10574_v57  ;;  %vm6261_vm4 = vcmp.gt.f32.partialorder %v10339_v40, 0.0  ;;  %v10595_v30 = vmul.f32 0.2, %v10343_v9 }
 0x5ce   : > { %v10598_v41 = vmul.f32 0.2, %v10347_v11  ;;  %v10601_v49 = vmul.f32 0.2, %v10351_v47  ;;  %11781 = vst [vmem:[#allocation18_spill] sm:$0xff] %v10606_v14  ;;  %6441 = vst [vmem:[#allocation2 + $0x10] sm:$0xff] %v10590_v52 }
 0x5cf   : > { %vm6262_vm5 = vcmp.gt.f32.partialorder %v10343_v9, 0.0  ;;  %v10611_v0 = vmul.f32 0.2, %v10355_v12  ;;  %v10614_v34 = vmul.f32 0.2, %v10359_v33  ;;  %6442 = vst [vmem:[#allocation2 + $0x18] sm:$0xff] %v10606_v14 }
 0x5d0   : > { %11780 = vst [vmem:[#allocation23_spill] sm:$0xff] %v10601_v49  ;;  %v10617_v57 = vmul.f32 0.2, %v10363_v55  ;;  %v10622_v49 = vsel %vm6251_vm10, %v10299_v54, %v6315_v59  ;;  %vm6263_vm6 = vcmp.gt.f32.partialorder %v10347_v11, 0.0  ;;  %v10627_v56 = vmul.f32 0.2, %v10367_v23 }
 0x5d1   : > { %11783 = vst [vmem:[#allocation21_spill] sm:$0xff] %v10622_v49  ;;  %v10630_v28 = vmul.f32 0.2, %v10371_v53  ;;  %v10633_v52 = vmul.f32 0.2, %v10375_v13  ;;  %6443 = vst [vmem:[#allocation2 + $0x20] sm:$0xff] %v10622_v49 }
 0x5d2   : > { %11782 = vst [vmem:[#allocation24_spill] sm:$0xff] %v10617_v57  ;;  %v10638_v57 = vsel %vm6252_vm11, %v10303_v1, %v6316_v58  ;;  %vm6264_vm7 = vcmp.gt.f32.partialorder %v10351_v47, 0.0  ;;  %v10643_v54 = vmul.f32 0.2, %v10379_v8  ;;  %v10646_v59 = vmul.f32 0.2, %v10383_v36 }
 0x5d3   : > { %11784 = vst [vmem:[#allocation25_spill] sm:$0xff] %v10633_v52  ;;  %11785 = vst [vmem:[#allocation22_spill] sm:$0xff] %v10638_v57  ;;  %v10649_v14 = vmul.f32 0.2, %v10387_v7  ;;  %v10654_v52 = vsel %vm6253_vm12, %v10307_v29, %v6317_v46  ;;  %vm6265_vm8 = vcmp.gt.f32.partialorder %v10355_v12, 0.0  ;;  %vm6266_vm9 = vcmp.gt.f32.partialorder %v10359_v33, 0.0 }
 0x5d4   : > { %11787 = vst [vmem:[#allocation30_spill] sm:$0xff] %v10654_v52  ;;  %6444 = vst [vmem:[#allocation2 + $0x28] sm:$0xff] %v10638_v57  ;;  %v10659_v1 = vmul.f32 0.2, %v10391_v25  ;;  %v10662_v58 = vmul.f32 0.2, %v10395_v19 }
 0x5d5   : > { %11786 = vst [vmem:[#allocation29_spill] sm:$0xff] %v10649_v14  ;;  %v10665_v49 = vmul.f32 0.2, %v10399_v63  ;;  %v10670_v14 = vsel %vm6254_vm13, %v10311_v38, %v6318_v20  ;;  %6445 = vst [vmem:[#allocation2 + $0x30] sm:$0xff] %v10654_v52  ;;  %v10677_v29 = vmul.f32 0.2, %v10403_v10  ;;  %v10688_v38 = vsel %vm6255_vm14, %v10315_v61, %v6319_v2 }
 0x5d6   : > { %11788 = vst [vmem:[#allocation26_spill] sm:$0xff] %v10670_v14  ;;  %v10680_v46 = vmul.f32 0.2, %v10407_v3  ;;  %v10683_v57 = vmul.f32 0.2, %v10411_v16  ;;  %11790 = vst [vmem:[#allocation50_spill] sm:$0xff] %v10688_v38  ;;  %v10707_v61 = vsel %vm6256_vm15, %v10319_v45, %v6320_v42  ;;  %v10727_v45 = vsel %vm6257_vm0, %v10323_v24, %v10566_v50 }
 0x5d7   : > { %6446 = vst [vmem:[#allocation2 + $0x38] sm:$0xff] %v10670_v14  ;;  %vm6269_vm12 = vcmp.gt.f32.partialorder %v10371_v53, 0.0  ;;  %v10696_v20 = vmul.f32 0.2, %v10415_v26  ;;  %v10699_v52 = vmul.f32 0.2, %v10419_v44  ;;  %v10747_v24 = vsel %vm6258_vm1, %v10327_v43, %v10569_v60 }
 0x5d8   : > { %11789 = vst [vmem:[#allocation56_spill] sm:$0xff] %v10683_v57  ;;  %v10702_v57 = vmul.f32 0.2, %v10423_v18  ;;  %11792 = vst [vmem:[#allocation33_spill] sm:$0xff] %v10707_v61  ;;  %vm6273_vm14 = vcmp.gt.f32.partialorder %v10387_v7, 0.0  ;;  %vm6277_vm15 = vcmp.gt.f32.partialorder %v10403_v10, 0.0  ;;  %v10767_v43 = vsel %vm6259_vm2, %v10331_v15, %v10579_v22 }
 0x5d9   : > { %6447 = vst [vmem:[#allocation2 + $0x40] sm:$0xff] %v10688_v38  ;;  %v10715_v2 = vmul.f32 0.2, %v10427_v48  ;;  %v10718_v14 = vmul.f32 0.2, %v10431_v5  ;;  %11794 = vst [vmem:[#allocation57_spill] sm:$0xff] %v10727_v45  ;;  %v10787_v15 = vsel %vm6260_vm3, %v10335_v6, %v10582_v51  ;;  %v10807_v6 = vsel %vm6261_vm4, %v10339_v40, %v10585_v35 }
 0x5da   : > { %11791 = vst [vmem:[#allocation37_spill] sm:$0xff] %v10702_v57  ;;  %v10721_v57 = vmul.f32 0.2, %v10435_v37  ;;  %6448 = vst [vmem:[#allocation2 + $0x48] sm:$0xff] %v10707_v61  ;;  %v10735_v42 = vmul.f32 0.2, %v10439_v39  ;;  %v10827_v40 = vsel %vm6262_vm5, %v10343_v9, %v10595_v30  ;;  %v10847_v9 = vsel %vm6263_vm6, %v10347_v11, %v10598_v41 }
 0x5db   : > { %v10738_v38 = vmul.f32 0.2, %v10443_v4  ;;  %11798 = vst [vmem:[#allocation27_spill] sm:$0xff] %v10747_v24  ;;  %6449 = vst [vmem:[#allocation2 + $0x50] sm:$0xff] %v10727_v45  ;;  %vm6281_vm0 = vcmp.gt.f32.partialorder %v10419_v44, 0.0  ;;  %vm6285_vm1 = vcmp.gt.f32.partialorder %v10435_v37, 0.0 }
 0x5dc   : > { %11793 = vst [vmem:[#allocation62_spill] sm:$0xff] %v10721_v57  ;;  %11795 = vst [vmem:[#allocation38_spill] sm:$0xff] %v10735_v42  ;;  %v10741_v57 = vmul.f32 0.2, %v10447_v62  ;;  %v10755_v50 = vmul.f32 0.2, %v10451_v27 }
 0x5dd   : > { %11796 = vst [vmem:[#allocation42_spill] sm:$0xff] %v10738_v38  ;;  %v10758_v61 = vmul.f32 0.2, %v10455_v17  ;;  %11803 = vst [vmem:[#allocation35_spill] sm:$0xff] %v10767_v43  ;;  %v11804_v60 = vld [vmem:[#allocation59_spill] sm:$0xff]  ;;  %vm6289_vm2 = vcmp.gt.f32.partialorder %v10451_v27, 0.0 }
 0x5de   : > { %11797 = vst [vmem:[#allocation31_spill] sm:$0xff] %v10741_v57  ;;  %11799 = vst [vmem:[#allocation32_spill] sm:$0xff] %v10755_v50  ;;  %v11801_v57 = vld [vmem:[#allocation61_spill] sm:$0xff]  ;;  %v10775_v45 = vmul.f32 0.2, %v11804_v60  ;;  %v11811_v22 = vld [vmem:[#allocation66_spill] sm:$0xff] }
 0x5df   : > { %11800 = vst [vmem:[#allocation28_spill] sm:$0xff] %v10758_v61  ;;  %v10761_v38 = vmul.f32 0.2, %v11801_v57  ;;  %6450 = vst [vmem:[#allocation2 + $0x58] sm:$0xff] %v10747_v24  ;;  %v11808_v50 = vld [vmem:[#allocation65_spill] sm:$0xff]  ;;  %vm6297_vm4 = vcmp.gt.f32.partialorder %v10483_v32, 0.0 }
 0x5e0   : > { %11805 = vst [vmem:[#allocation40_spill] sm:$0xff] %v10775_v45  ;;  %v10781_v42 = vmul.f32 0.2, %v11808_v50  ;;  %11810 = vst [vmem:[#allocation43_spill] sm:$0xff] %v10787_v15  ;;  %v10795_v24 = vmul.f32 0.2, %v11811_v22 }
 0x5e1   : > { %11802 = vst [vmem:[#allocation39_spill] sm:$0xff] %v10761_v38  ;;  %v11806_v38 = vld [vmem:[#allocation60_spill] sm:$0xff]  ;;  %6451 = vst [vmem:[#allocation2 + $0x60] sm:$0xff] %v10767_v43  ;;  %v10801_v45 = vmul.f32 0.2, %v10483_v32  ;;  %v11821_v35 = vld [vmem:[#allocation67_spill] sm:$0xff] }
 0x5e2   : > { %v10778_v61 = vmul.f32 0.2, %v11806_v38  ;;  %11809 = vst [vmem:[#allocation47_spill] sm:$0xff] %v10781_v42  ;;  %v11812_v42 = vld [vmem:[#allocation64_spill] sm:$0xff]  ;;  %11815 = vst [vmem:[#allocation63_spill] sm:$0xff] %v10807_v6  ;;  %vm6293_vm3 = vcmp.gt.f32.partialorder %v11806_v38, 0.0 }
 0x5e3   : > { %11814 = vst [vmem:[#allocation44_spill] sm:$0xff] %v10801_v45  ;;  %6452 = vst [vmem:[#allocation2 + $0x68] sm:$0xff] %v10787_v15  ;;  %v10815_v51 = vmul.f32 0.2, %v10487_v31  ;;  %v10818_v43 = vmul.f32 0.2, %v10491_v21 }
 0x5e4   : > { %11807 = vst [vmem:[#allocation36_spill] sm:$0xff] %v10778_v61  ;;  %v10798_v61 = vmul.f32 0.2, %v11812_v42  ;;  %v11818_v45 = vld [vmem:[#allocation69_spill] sm:$0xff]  ;;  %11820 = vst [vmem:[#allocation46_spill] sm:$0xff] %v10827_v40  ;;  %vm6301_vm5 = vcmp.gt.f32.partialorder %v11821_v35, 0.0 }
 0x5e5   : > { %11816 = vst [vmem:[#allocation34_spill] sm:$0xff] %v10815_v51  ;;  %11817 = vst [vmem:[#allocation45_spill] sm:$0xff] %v10818_v43  ;;  %v10835_v15 = vmul.f32 0.2, %v11821_v35  ;;  %v11825_v51 = vld [vmem:[#allocation72_spill] sm:$0xff]  ;;  %v11828_v30 = vld [vmem:[#allocation70_spill] sm:$0xff] }
 0x5e6   : > { %11813 = vst [vmem:[#allocation48_spill] sm:$0xff] %v10798_v61  ;;  %v10821_v61 = vmul.f32 0.2, %v11818_v45  ;;  %6453 = vst [vmem:[#allocation2 + $0x70] sm:$0xff] %v10807_v6  ;;  %v10841_v42 = vmul.f32 0.2, %v11825_v51 }
 0x5e7   : > { %11822 = vst [vmem:[#allocation51_spill] sm:$0xff] %v10835_v15  ;;  %11827 = vst [vmem:[#allocation54_spill] sm:$0xff] %v10847_v9  ;;  %v10855_v6 = vmul.f32 0.2, %v11828_v30  ;;  %v11832_v15 = vld [vmem:[#allocation15_spill] sm:$0xff]  ;;  %v11836_v30 = vld [vmem:[#allocation16_spill] sm:$0xff] }
 0x5e8   : > { %11819 = vst [vmem:[#allocation41_spill] sm:$0xff] %v10821_v61  ;;  %v11823_v61 = vld [vmem:[#allocation68_spill] sm:$0xff]  ;;  %11826 = vst [vmem:[#allocation52_spill] sm:$0xff] %v10841_v42  ;;  %v11830_v42 = vld [vmem:[#allocation71_spill] sm:$0xff]  ;;  %v10861_v45 = vmul.f32 0.2, %v11832_v15 }
 0x5e9   : > { %v10838_v43 = vmul.f32 0.2, %v11823_v61  ;;  %6454 = vst [vmem:[#allocation2 + $0x78] sm:$0xff] %v10827_v40  ;;  %11829 = vst [vmem:[#allocation53_spill] sm:$0xff] %v10855_v6  ;;  %v11834_v11 = vld [vmem:[#allocation23_spill] sm:$0xff]  ;;  %vm6305_vm6 = vcmp.gt.f32.partialorder %v11830_v42, 0.0 }
 0x5ea   : > { %11833 = vst [vmem:[#allocation58_spill] sm:$0xff] %v10861_v45  ;;  %v10867_v41 = vsel %vm6264_vm7, %v10351_v47, %v11834_v11  ;;  %6455 = vst [vmem:[#allocation2 + $0x80] sm:$0xff] %v10847_v9  ;;  %vm6306_vm10 = vcmp.gt.f32.partialorder %v11832_v15, 0.0  ;;  %v11835_v40 = vld [vmem:[#allocation73_spill] sm:$0xff]  ;;  %v10878_v45 = vmul.f32 0.2, %v11836_v30  ;;  %v10887_v47 = vsel %vm6265_vm8, %v10355_v12, %v10611_v0 }
 0x5eb   : > { %11824 = vst [vmem:[#allocation49_spill] sm:$0xff] %v10838_v43  ;;  %v10858_v43 = vmul.f32 0.2, %v11830_v42  ;;  %vm6307_vm11 = vcmp.gt.f32.partialorder %v11835_v40, 0.0  ;;  %v11837_v6 = vld [vmem:[#allocation13_spill] sm:$0xff]  ;;  %6456 = vst [vmem:[#allocation2 + $0x88] sm:$0xff] %v10867_v41 }
 0x5ec   : > { %v10881_v51 = vmul.f32 0.2, %v11837_v6  ;;  %v11839_v11 = vld [vmem:[#allocation19_spill] sm:$0xff]  ;;  %v11840_v30 = vld [vmem:[#allocation24_spill] sm:$0xff]  ;;  %vm11841_vm8 = vcmp.gt.f32.partialorder %v10363_v55, 0.0  ;;  %vm11842_vm7 = vcmp.gt.f32.partialorder %v10367_v23, 0.0 }
 0x5ed   : > { %11831 = vst [vmem:[#allocation55_spill] sm:$0xff] %v10858_v43  ;;  %v10875_v43 = vmul.f32 0.2, %v11835_v40  ;;  %vm6310_vm13 = vcmp.gt.f32.partialorder %v11839_v11, 0.0  ;;  %v10893_v9 = vmul.f32 0.2, %v11839_v11  ;;  %v10905_v12 = vsel %vm11841_vm8, %v10363_v55, %v11840_v30 }
 0x5ee   : > { %11838 = vst [vmem:[#allocation61_spill] sm:$0xff] %v10881_v51  ;;  %v10899_v51 = vsel %vm6266_vm9, %v10359_v33, %v10614_v34  ;;  %v10911_v0 = vsel %vm11842_vm7, %v10367_v23, %v10627_v56  ;;  %6457 = vst [vmem:[#allocation2 + $0x90] sm:$0xff] %v10887_v47  ;;  %v10918_v33 = vsel %vm6269_vm12, %v10371_v53, %v10630_v28  ;;  %v11843_v34 = vld [vmem:[#allocation25_spill] sm:$0xff]  ;;  %vm11844_vm9 = vcmp.gt.f32.partialorder %v10375_v13, 0.0  ;;  %v11877_v30 = vld [vmem:[#allocation48_spill] sm:$0xff] }
 0x5ef   : > { %v10924_v55 = vsel %vm11844_vm9, %v10375_v13, %v11843_v34  ;;  %vm11845_vm8 = vcmp.gt.f32.partialorder %v10379_v8, 0.0  ;;  %vm11846_vm7 = vcmp.gt.f32.partialorder %v10383_v36, 0.0  ;;  %6458 = vst [vmem:[#allocation2 + $0x98] sm:$0xff] %v10899_v51  ;;  %6459 = vst [vmem:[#allocation2 + $0xa0] sm:$0xff] %v10905_v12  ;;  %v11847_v53 = vld [vmem:[#allocation29_spill] sm:$0xff]  ;;  %vm11848_vm12 = vcmp.gt.f32.partialorder %v10391_v25, 0.0 }
 0x5f0   : > { %v10930_v23 = vsel %vm11845_vm8, %v10379_v8, %v10643_v54  ;;  %v10936_v56 = vsel %vm11846_vm7, %v10383_v36, %v10646_v59  ;;  %6460 = vst [vmem:[#allocation2 + $0xa8] sm:$0xff] %v10911_v0  ;;  %v10945_v13 = vsel %vm6273_vm14, %v10387_v7, %v11847_v53  ;;  %v10951_v8 = vsel %vm11848_vm12, %v10391_v25, %v10659_v1  ;;  %v11864_v59 = vld [vmem:[#allocation31_spill] sm:$0xff]  ;;  %v11878_v34 = vld [vmem:[#allocation64_spill] sm:$0xff] }
 0x5f1   : > { %vm11849_vm9 = vcmp.gt.f32.partialorder %v10395_v19, 0.0  ;;  %vm11850_vm8 = vcmp.gt.f32.partialorder %v10399_v63, 0.0  ;;  %6461 = vst [vmem:[#allocation2 + $0xb0] sm:$0xff] %v10918_v33  ;;  %6462 = vst [vmem:[#allocation2 + $0xb8] sm:$0xff] %v10924_v55  ;;  %v10973_v7 = vsel %vm6277_vm15, %v10403_v10, %v10677_v29  ;;  %vm11851_vm14 = vcmp.gt.f32.partialorder %v10407_v3, 0.0 }
 0x5f2   : > { %v10957_v36 = vsel %vm11849_vm9, %v10395_v19, %v10662_v58  ;;  %v10963_v28 = vsel %vm11850_vm8, %v10399_v63, %v10665_v49  ;;  %6463 = vst [vmem:[#allocation2 + $0xc0] sm:$0xff] %v10930_v23  ;;  %6464 = vst [vmem:[#allocation2 + $0xc8] sm:$0xff] %v10936_v56  ;;  %v10979_v25 = vsel %vm11851_vm14, %v10407_v3, %v10680_v46  ;;  %v11852_v19 = vld [vmem:[#allocation56_spill] sm:$0xff]  ;;  %vm11853_vm7 = vcmp.gt.f32.partialorder %v10411_v16, 0.0  ;;  %v11855_v3 = vld [vmem:[#allocation37_spill] sm:$0xff] }
 0x5f3   : > { %v10985_v63 = vsel %vm11853_vm7, %v10411_v16, %v11852_v19  ;;  %vm11854_vm12 = vcmp.gt.f32.partialorder %v10415_v26, 0.0  ;;  %6465 = vst [vmem:[#allocation2 + $0xd0] sm:$0xff] %v10945_v13  ;;  %6466 = vst [vmem:[#allocation2 + $0xd8] sm:$0xff] %v10951_v8  ;;  %v11001_v10 = vsel %vm6281_vm0, %v10419_v44, %v10699_v52  ;;  %vm11856_vm15 = vcmp.gt.f32.partialorder %v10423_v18, 0.0  ;;  %v11859_v44 = vld [vmem:[#allocation62_spill] sm:$0xff]  ;;  %v11869_v58 = vld [vmem:[#allocation39_spill] sm:$0xff] }
 0x5f4   : > { %v10991_v49 = vsel %vm11854_vm12, %v10415_v26, %v10696_v20  ;;  %6467 = vst [vmem:[#allocation2 + $0xe0] sm:$0xff] %v10957_v36  ;;  %6468 = vst [vmem:[#allocation2 + $0xe8] sm:$0xff] %v10963_v28  ;;  %v11007_v16 = vsel %vm11856_vm15, %v10423_v18, %v11855_v3  ;;  %vm11857_vm9 = vcmp.gt.f32.partialorder %v10427_v48, 0.0  ;;  %vm11858_vm8 = vcmp.gt.f32.partialorder %v10431_v5, 0.0  ;;  %v11871_v46 = vld [vmem:[#allocation40_spill] sm:$0xff]  ;;  %v11883_v19 = vld [vmem:[#allocation45_spill] sm:$0xff] }
 0x5f5   : > { %v11013_v26 = vsel %vm11857_vm9, %v10427_v48, %v10715_v2  ;;  %v11019_v54 = vsel %vm11858_vm8, %v10431_v5, %v10718_v14  ;;  %6469 = vst [vmem:[#allocation2 + $0xf0] sm:$0xff] %v10973_v7  ;;  %6470 = vst [vmem:[#allocation2 + $0xf8] sm:$0xff] %v10979_v25  ;;  %v11029_v18 = vsel %vm6285_vm1, %v10435_v37, %v11859_v44  ;;  %v11860_v48 = vld [vmem:[#allocation38_spill] sm:$0xff]  ;;  %vm11861_vm0 = vcmp.gt.f32.partialorder %v10439_v39, 0.0  ;;  %v11866_v37 = vld [vmem:[#allocation32_spill] sm:$0xff] }
 0x5f6   : > { %6471 = vst [vmem:[#allocation2 + $0x100] sm:$0xff] %v10985_v63  ;;  %6472 = vst [vmem:[#allocation2 + $0x108] sm:$0xff] %v10991_v49  ;;  %v11035_v5 = vsel %vm11861_vm0, %v10439_v39, %v11860_v48  ;;  %v11862_v14 = vld [vmem:[#allocation42_spill] sm:$0xff]  ;;  %vm11863_vm14 = vcmp.gt.f32.partialorder %v10443_v4, 0.0  ;;  %vm11865_vm7 = vcmp.gt.f32.partialorder %v10447_v62, 0.0  ;;  %v11057_v39 = vsel %vm6289_vm2, %v10451_v27, %v11866_v37  ;;  %v11873_v27 = vld [vmem:[#allocation36_spill] sm:$0xff] }
 0x5f7   : > { %v11041_v52 = vsel %vm11863_vm14, %v10443_v4, %v11862_v14  ;;  %v11047_v1 = vsel %vm11865_vm7, %v10447_v62, %v11864_v59  ;;  %6473 = vst [vmem:[#allocation2 + $0x110] sm:$0xff] %v11001_v10  ;;  %6474 = vst [vmem:[#allocation2 + $0x118] sm:$0xff] %v11007_v16  ;;  %v11867_v4 = vld [vmem:[#allocation28_spill] sm:$0xff]  ;;  %vm11868_vm1 = vcmp.gt.f32.partialorder %v10455_v17, 0.0  ;;  %vm11870_vm12 = vcmp.gt.f32.partialorder %v11801_v57, 0.0  ;;  %v11885_v44 = vld [vmem:[#allocation41_spill] sm:$0xff] }
 0x5f8   : > { %6475 = vst [vmem:[#allocation2 + $0x120] sm:$0xff] %v11013_v26  ;;  %6476 = vst [vmem:[#allocation2 + $0x128] sm:$0xff] %v11019_v54  ;;  %v11063_v62 = vsel %vm11868_vm1, %v10455_v17, %v11867_v4  ;;  %v11069_v29 = vsel %vm11870_vm12, %v11801_v57, %v11869_v58  ;;  %vm11872_vm15 = vcmp.gt.f32.partialorder %v11804_v60, 0.0  ;;  %v11085_v17 = vsel %vm6293_vm3, %v11806_v38, %v11873_v27  ;;  %v11874_v57 = vld [vmem:[#allocation47_spill] sm:$0xff]  ;;  %v11880_v38 = vld [vmem:[#allocation44_spill] sm:$0xff] }
 0x5f9   : > { %v11075_v20 = vsel %vm11872_vm15, %v11804_v60, %v11871_v46  ;;  %6477 = vst [vmem:[#allocation2 + $0x130] sm:$0xff] %v11029_v18  ;;  %6478 = vst [vmem:[#allocation2 + $0x138] sm:$0xff] %v11035_v5  ;;  %vm11875_vm2 = vcmp.gt.f32.partialorder %v11808_v50, 0.0  ;;  %vm11876_vm9 = vcmp.gt.f32.partialorder %v11811_v22, 0.0  ;;  %vm11879_vm8 = vcmp.gt.f32.partialorder %v11878_v34, 0.0  ;;  %v11886_v48 = vld [vmem:[#allocation69_spill] sm:$0xff] }
 0x5fa   : > { %6479 = vst [vmem:[#allocation2 + $0x140] sm:$0xff] %v11041_v52  ;;  %6480 = vst [vmem:[#allocation2 + $0x148] sm:$0xff] %v11047_v1  ;;  %v11091_v2 = vsel %vm11875_vm2, %v11808_v50, %v11874_v57  ;;  %v11097_v60 = vsel %vm11876_vm9, %v11811_v22, %v10795_v24  ;;  %v11103_v53 = vsel %vm11879_vm8, %v11878_v34, %v11877_v30  ;;  %v11881_v50 = vld [vmem:[#allocation34_spill] sm:$0xff]  ;;  %vm11882_vm3 = vcmp.gt.f32.partialorder %v10487_v31, 0.0  ;;  %v11891_v37 = vld [vmem:[#allocation52_spill] sm:$0xff] }
 0x5fb   : > { %6481 = vst [vmem:[#allocation2 + $0x150] sm:$0xff] %v11057_v39  ;;  %6482 = vst [vmem:[#allocation2 + $0x158] sm:$0xff] %v11063_v62  ;;  %v11113_v24 = vsel %vm6297_vm4, %v10483_v32, %v11880_v38  ;;  %v11119_v22 = vsel %vm11882_vm3, %v10487_v31, %v11881_v50  ;;  %vm11884_vm0 = vcmp.gt.f32.partialorder %v10491_v21, 0.0  ;;  %vm11887_vm14 = vcmp.gt.f32.partialorder %v11886_v48, 0.0  ;;  %v11888_v32 = vld [vmem:[#allocation51_spill] sm:$0xff]  ;;  %v11892_v4 = vld [vmem:[#allocation72_spill] sm:$0xff] }
 0x5fc   : > { %6483 = vst [vmem:[#allocation2 + $0x160] sm:$0xff] %v11069_v29  ;;  %6484 = vst [vmem:[#allocation2 + $0x168] sm:$0xff] %v11075_v20  ;;  %v11125_v3 = vsel %vm11884_vm0, %v10491_v21, %v11883_v19  ;;  %v11131_v14 = vsel %vm11887_vm14, %v11886_v48, %v11885_v44  ;;  %v11141_v31 = vsel %vm6301_vm5, %v11821_v35, %v11888_v32  ;;  %v11889_v21 = vld [vmem:[#allocation49_spill] sm:$0xff]  ;;  %vm11890_vm4 = vcmp.gt.f32.partialorder %v11823_v61, 0.0  ;;  %v11895_v27 = vld [vmem:[#allocation70_spill] sm:$0xff] }
 0x5fd   : > { %6485 = vst [vmem:[#allocation2 + $0x170] sm:$0xff] %v11085_v17  ;;  %6486 = vst [vmem:[#allocation2 + $0x178] sm:$0xff] %v11091_v2  ;;  %v11147_v59 = vsel %vm11890_vm4, %v11823_v61, %v11889_v21  ;;  %vm11893_vm7 = vcmp.gt.f32.partialorder %v11892_v4, 0.0  ;;  %v11894_v46 = vld [vmem:[#allocation53_spill] sm:$0xff]  ;;  %vm11896_vm1 = vcmp.gt.f32.partialorder %v11895_v27, 0.0  ;;  %v11898_v61 = vld [vmem:[#allocation55_spill] sm:$0xff]  ;;  %v11181_v38 = vsel %vm6307_vm11, %v11835_v40, %v10875_v43 }
 0x5fe   : > { %6487 = vst [vmem:[#allocation2 + $0x180] sm:$0xff] %v11097_v60  ;;  %6488 = vst [vmem:[#allocation2 + $0x188] sm:$0xff] %v11103_v53  ;;  %v11153_v58 = vsel %vm11893_vm7, %v11892_v4, %v11891_v37  ;;  %v11159_v57 = vsel %vm11896_vm1, %v11895_v27, %v11894_v46  ;;  %v11169_v35 = vsel %vm6305_vm6, %v11830_v42, %v11898_v61  ;;  %v11900_v30 = vld [vmem:[#allocation58_spill] sm:$0xff]  ;;  %v11903_v50 = vld [vmem:[#allocation16_spill] sm:$0xff] }
 0x5ff   : > { %11897 = vst [vmem:[#allocation59_spill] sm:$0xff] %v11159_v57  ;;  %6489 = vst [vmem:[#allocation2 + $0x190] sm:$0xff] %v11113_v24  ;;  %v11175_v34 = vsel %vm6306_vm10, %v11832_v15, %v11900_v30  ;;  %vm11904_vm5 = vcmp.gt.f32.partialorder %v11903_v50, 0.0  ;;  %v11906_v42 = vld [vmem:[#allocation61_spill] sm:$0xff]  ;;  %vm11907_vm10 = vcmp.gt.f32.partialorder %v11837_v6, 0.0  ;;  %v6509_v40 = vld [vmem:[#allocation4 + $0x10] sm:$0xff] (!%p6966_p1) }
 0x600   : > { %6490 = vst [vmem:[#allocation2 + $0x198] sm:$0xff] %v11119_v22  ;;  %6491 = vst [vmem:[#allocation2 + $0x1a0] sm:$0xff] %v11125_v3  ;;  %v11187_v19 = vsel %vm11904_vm5, %v11903_v50, %v10878_v45  ;;  %v11197_v43 = vsel %vm11907_vm10, %v11837_v6, %v11906_v42  ;;  %v11203_v45 = vsel %vm6310_vm13, %v11839_v11, %v10893_v9  ;;  %v6507_v15 = vld [vmem:[#allocation4] sm:$0xff] (!%p6966_p1)  ;;  %v6508_v6 = vld [vmem:[#allocation4 + $0x8] sm:$0xff] (!%p6966_p1) }
 0x601   : > { %6492 = vst [vmem:[#allocation2 + $0x1a8] sm:$0xff] %v11131_v14  ;;  %11899 = vst [vmem:[#allocation60_spill] sm:$0xff] %v11169_v35  ;;  %v11910_v9 = vld [vmem:[#allocation14_spill] sm:$0xff] (!%p6966_p1)  ;;  %v11911_v44 = vld [vmem:[#allocation20_spill] sm:$0xff] (!%p6966_p1) }
 0x602   : > { %11901 = vst [vmem:[#allocation65_spill] sm:$0xff] %v11175_v34  ;;  %11902 = vst [vmem:[#allocation66_spill] sm:$0xff] %v11181_v38  ;;  %v6571_v11 = vadd.f32 (!%p6966_p1), %v6507_v15, %v11910_v9  ;;  %v6572_v48 = vadd.f32 (!%p6966_p1), %v6508_v6, %v11911_v44  ;;  %v11912_v32 = vld [vmem:[#allocation17_spill] sm:$0xff] (!%p6966_p1)  ;;  %v6510_v37 = vld [vmem:[#allocation4 + $0x18] sm:$0xff] (!%p6966_p1) }
 0x603   : > { %11905 = vst [vmem:[#allocation67_spill] sm:$0xff] %v11187_v19  ;;  %6493 = vst [vmem:[#allocation2 + $0x1b0] sm:$0xff] %v11141_v31  ;;  %6506 = sbr.rel (%p6966_p1) target bundleno = 1581 (0x62d), region = 56  ;;  %v6573_v21 = vadd.f32 (!%p6966_p1), %v6509_v40, %v11912_v32  ;;  %v6511_v4 = vld [vmem:[#allocation4 + $0x20] sm:$0xff] (!%p6966_p1)  ;;  %v6512_v46 = vld [vmem:[#allocation4 + $0x28] sm:$0xff] (!%p6966_p1) }
 0x604   : > { %6494 = vst [vmem:[#allocation2 + $0x1b8] sm:$0xff] %v11147_v59  ;;  %6495 = vst [vmem:[#allocation2 + $0x1c0] sm:$0xff] %v11153_v58  ;;  %v11913_v27 = vld [vmem:[#allocation18_spill] sm:$0xff] (!%p6966_p1)  ;;  %v11914_v30 = vld [vmem:[#allocation21_spill] sm:$0xff] (!%p6966_p1) }
 0x605   : > { %6496 = vst [vmem:[#allocation2 + $0x1c8] sm:$0xff] %v11159_v57  ;;  %11908 = vst [vmem:[#allocation68_spill] sm:$0xff] %v11197_v43  ;;  %v6574_v61 = vadd.f32 (!%p6966_p1), %v6510_v37, %v11913_v27  ;;  %v6575_v50 = vadd.f32 (!%p6966_p1), %v6511_v4, %v11914_v30  ;;  %v11915_v42 = vld [vmem:[#allocation22_spill] sm:$0xff] (!%p6966_p1)  ;;  %v6518_v57 = vld [vmem:[#allocation4 + $0x58] sm:$0xff] (!%p6966_p1) }
 0x606   : > { %11909 = vst [vmem:[#allocation71_spill] sm:$0xff] %v11203_v45  ;;  %6497 = vst [vmem:[#allocation2 + $0x1d0] sm:$0xff] %v11169_v35  ;;  %v11916_v15 = vld [vmem:[#allocation30_spill] sm:$0xff] (!%p6966_p1)  ;;  %v6517_v35 = vld [vmem:[#allocation4 + $0x50] sm:$0xff] (!%p6966_p1) }
 0x607   : > { %6498 = vst [vmem:[#allocation2 + $0x1d8] sm:$0xff] %v11175_v34  ;;  %6499 = vst [vmem:[#allocation2 + $0x1e0] sm:$0xff] %v11181_v38  ;;  %v6515_v38 = vld [vmem:[#allocation4 + $0x40] sm:$0xff] (!%p6966_p1)  ;;  %v11917_v6 = vld [vmem:[#allocation26_spill] sm:$0xff] (!%p6966_p1) }
 0x608   : > { %6500 = vst [vmem:[#allocation2 + $0x1e8] sm:$0xff] %v11187_v19  ;;  %6501 = vst [vmem:[#allocation2 + $0x1f0] sm:$0xff] %v11197_v43  ;;  %v6513_v43 = vld [vmem:[#allocation4 + $0x30] sm:$0xff] (!%p6966_p1)  ;;  %v6514_v19 = vld [vmem:[#allocation4 + $0x38] sm:$0xff] (!%p6966_p1) }
 0x609   : > { %6502 = vst [vmem:[#allocation2 + $0x1f8] sm:$0xff] %v11203_v45  ;;  %v6576_v45 = vadd.f32 (!%p6966_p1), %v6512_v46, %v11915_v42  ;;  %6635 = vst [vmem:[#allocation9] sm:$0xff] (!%p6966_p1), %v6571_v11  ;;  %v6577_v9 = vadd.f32 (!%p6966_p1), %v6513_v43, %v11916_v15  ;;  %v6578_v44 = vadd.f32 (!%p6966_p1), %v6514_v19, %v11917_v6  ;;  %v11918_v40 = vld [vmem:[#allocation50_spill] sm:$0xff] (!%p6966_p1)  ;;  %v11919_v37 = vld [vmem:[#allocation33_spill] sm:$0xff] (!%p6966_p1) }
 0x60a   : > { %6636 = vst [vmem:[#allocation9 + $0x8] sm:$0xff] %v6572_v48  ;;  %6637 = vst [vmem:[#allocation9 + $0x10] sm:$0xff] %v6573_v21  ;;  %v6579_v32 = vadd.f32 %v6515_v38, %v11918_v40  ;;  %v6516_v34 = vld [vmem:[#allocation4 + $0x48] sm:$0xff]  ;;  %v11920_v46 = vld [vmem:[#allocation57_spill] sm:$0xff] }
 0x60b   : > { %6638 = vst [vmem:[#allocation9 + $0x18] sm:$0xff] %v6574_v61  ;;  %6639 = vst [vmem:[#allocation9 + $0x20] sm:$0xff] %v6575_v50  ;;  %v6580_v4 = vadd.f32 %v6516_v34, %v11919_v37  ;;  %v6581_v27 = vadd.f32 %v6517_v35, %v11920_v46  ;;  %v11921_v30 = vld [vmem:[#allocation27_spill] sm:$0xff]  ;;  %v6519_v48 = vld [vmem:[#allocation4 + $0x60] sm:$0xff] }
 0x60c   : > { %6640 = vst [vmem:[#allocation9 + $0x28] sm:$0xff] %v6576_v45  ;;  %v6582_v11 = vadd.f32 %v6518_v57, %v11921_v30  ;;  %v6520_v21 = vld [vmem:[#allocation4 + $0x68] sm:$0xff]  ;;  %v6521_v42 = vld [vmem:[#allocation4 + $0x70] sm:$0xff]  ;;  %6641 = vst [vmem:[#allocation9 + $0x30] sm:$0xff] %v6577_v9 }
 0x60d   : > { %6642 = vst [vmem:[#allocation9 + $0x38] sm:$0xff] %v6578_v44  ;;  %6643 = vst [vmem:[#allocation9 + $0x40] sm:$0xff] %v6579_v32  ;;  %v11922_v19 = vld [vmem:[#allocation35_spill] sm:$0xff]  ;;  %v6522_v50 = vld [vmem:[#allocation4 + $0x78] sm:$0xff] }
 0x60e   : > { %v6583_v38 = vadd.f32 %v6519_v48, %v11922_v19  ;;  %v11923_v43 = vld [vmem:[#allocation43_spill] sm:$0xff]  ;;  %v6523_v45 = vld [vmem:[#allocation4 + $0x80] sm:$0xff]  ;;  %v6524_v40 = vld [vmem:[#allocation4 + $0x88] sm:$0xff]  ;;  %6644 = vst [vmem:[#allocation9 + $0x48] sm:$0xff] %v6580_v4 }
 0x60f   : > { %v6584_v15 = vadd.f32 %v6520_v21, %v11923_v43  ;;  %v11924_v6 = vld [vmem:[#allocation63_spill] sm:$0xff]  ;;  %6645 = vst [vmem:[#allocation9 + $0x50] sm:$0xff] %v6581_v27  ;;  %6646 = vst [vmem:[#allocation9 + $0x58] sm:$0xff] %v6582_v11  ;;  %v11925_v35 = vld [vmem:[#allocation46_spill] sm:$0xff]  ;;  %v6588_v9 = vadd.f32 %v6524_v40, %v10867_v41 }
 0x610   : > { %v6585_v61 = vadd.f32 %v6521_v42, %v11924_v6  ;;  %v6586_v57 = vadd.f32 %v6522_v50, %v11925_v35  ;;  %v11926_v34 = vld [vmem:[#allocation54_spill] sm:$0xff]  ;;  %v6525_v44 = vld [vmem:[#allocation4 + $0x90] sm:$0xff]  ;;  %v6526_v32 = vld [vmem:[#allocation4 + $0x98] sm:$0xff]  ;;  %6647 = vst [vmem:[#allocation9 + $0x60] sm:$0xff] %v6583_v38 }
 0x611   : > { %v6587_v37 = vadd.f32 %v6523_v45, %v11926_v34  ;;  %v6527_v46 = vld [vmem:[#allocation4 + $0xa0] sm:$0xff]  ;;  %6648 = vst [vmem:[#allocation9 + $0x68] sm:$0xff] %v6584_v15  ;;  %v6589_v30 = vadd.f32 %v6525_v44, %v10887_v47  ;;  %v6590_v48 = vadd.f32 %v6526_v32, %v10899_v51  ;;  %v6528_v27 = vld [vmem:[#allocation4 + $0xa8] sm:$0xff]  ;;  %v6529_v11 = vld [vmem:[#allocation4 + $0xb0] sm:$0xff] }
 0x612   : > { %6649 = vst [vmem:[#allocation9 + $0x70] sm:$0xff] %v6585_v61  ;;  %v6591_v4 = vadd.f32 %v6527_v46, %v10905_v12  ;;  %v6530_v21 = vld [vmem:[#allocation4 + $0xb8] sm:$0xff]  ;;  %6650 = vst [vmem:[#allocation9 + $0x78] sm:$0xff] %v6586_v57  ;;  %v6592_v41 = vadd.f32 %v6528_v27, %v10911_v0  ;;  %v6593_v42 = vadd.f32 %v6529_v11, %v10918_v33  ;;  %v6531_v38 = vld [vmem:[#allocation4 + $0xc0] sm:$0xff] }
 0x613   : > { %6651 = vst [vmem:[#allocation9 + $0x80] sm:$0xff] %v6587_v37  ;;  %6652 = vst [vmem:[#allocation9 + $0x88] sm:$0xff] %v6588_v9  ;;  %v6594_v19 = vadd.f32 %v6530_v21, %v10924_v55  ;;  %v6532_v43 = vld [vmem:[#allocation4 + $0xc8] sm:$0xff]  ;;  %v6533_v15 = vld [vmem:[#allocation4 + $0xd0] sm:$0xff]  ;;  %v6595_v51 = vadd.f32 %v6531_v38, %v10930_v23 }
 0x614   : > { %6653 = vst [vmem:[#allocation9 + $0x90] sm:$0xff] %v6589_v30  ;;  %6654 = vst [vmem:[#allocation9 + $0x98] sm:$0xff] %v6590_v48  ;;  %v6596_v47 = vadd.f32 %v6532_v43, %v10936_v56  ;;  %v6597_v12 = vadd.f32 %v6533_v15, %v10945_v13  ;;  %v6534_v6 = vld [vmem:[#allocation4 + $0xd8] sm:$0xff]  ;;  %v6535_v61 = vld [vmem:[#allocation4 + $0xe0] sm:$0xff] }
 0x615   : > { %6655 = vst [vmem:[#allocation9 + $0xa0] sm:$0xff] %v6591_v4  ;;  %v6536_v50 = vld [vmem:[#allocation4 + $0xe8] sm:$0xff]  ;;  %6656 = vst [vmem:[#allocation9 + $0xa8] sm:$0xff] %v6592_v41  ;;  %v6598_v0 = vadd.f32 %v6534_v6, %v10951_v8  ;;  %v6599_v33 = vadd.f32 %v6535_v61, %v10957_v36  ;;  %v6537_v45 = vld [vmem:[#allocation4 + $0xf0] sm:$0xff] }
 0x616   : > { %6657 = vst [vmem:[#allocation9 + $0xb0] sm:$0xff] %v6593_v42  ;;  %6658 = vst [vmem:[#allocation9 + $0xb8] sm:$0xff] %v6594_v19  ;;  %v6600_v55 = vadd.f32 %v6536_v50, %v10963_v28  ;;  %v6538_v40 = vld [vmem:[#allocation4 + $0xf8] sm:$0xff]  ;;  %v6539_v35 = vld [vmem:[#allocation4 + $0x100] sm:$0xff]  ;;  %v6601_v23 = vadd.f32 %v6537_v45, %v10973_v7 }
 0x617   : > { %6659 = vst [vmem:[#allocation9 + $0xc0] sm:$0xff] %v6595_v51  ;;  %6660 = vst [vmem:[#allocation9 + $0xc8] sm:$0xff] %v6596_v47  ;;  %v6602_v56 = vadd.f32 %v6538_v40, %v10979_v25  ;;  %v6603_v13 = vadd.f32 %v6539_v35, %v10985_v63  ;;  %v6540_v57 = vld [vmem:[#allocation4 + $0x108] sm:$0xff]  ;;  %v6541_v34 = vld [vmem:[#allocation4 + $0x110] sm:$0xff] }
 0x618   : > { %6661 = vst [vmem:[#allocation9 + $0xd0] sm:$0xff] %v6597_v12  ;;  %v6542_v37 = vld [vmem:[#allocation4 + $0x118] sm:$0xff]  ;;  %6662 = vst [vmem:[#allocation9 + $0xd8] sm:$0xff] %v6598_v0  ;;  %v6604_v8 = vadd.f32 %v6540_v57, %v10991_v49  ;;  %v6605_v36 = vadd.f32 %v6541_v34, %v11001_v10  ;;  %v6543_v9 = vld [vmem:[#allocation4 + $0x120] sm:$0xff] }
 0x619   : > { %6663 = vst [vmem:[#allocation9 + $0xe0] sm:$0xff] %v6599_v33  ;;  %6664 = vst [vmem:[#allocation9 + $0xe8] sm:$0xff] %v6600_v55  ;;  %v6606_v28 = vadd.f32 %v6542_v37, %v11007_v16  ;;  %v6544_v44 = vld [vmem:[#allocation4 + $0x128] sm:$0xff]  ;;  %v6545_v32 = vld [vmem:[#allocation4 + $0x130] sm:$0xff]  ;;  %v6607_v7 = vadd.f32 %v6543_v9, %v11013_v26 }
 0x61a   : > { %6665 = vst [vmem:[#allocation9 + $0xf0] sm:$0xff] %v6601_v23  ;;  %6666 = vst [vmem:[#allocation9 + $0xf8] sm:$0xff] %v6602_v56  ;;  %v6608_v25 = vadd.f32 %v6544_v44, %v11019_v54  ;;  %v6609_v63 = vadd.f32 %v6545_v32, %v11029_v18  ;;  %v6546_v46 = vld [vmem:[#allocation4 + $0x138] sm:$0xff]  ;;  %v6547_v30 = vld [vmem:[#allocation4 + $0x140] sm:$0xff] }
 0x61b   : > { %6667 = vst [vmem:[#allocation9 + $0x100] sm:$0xff] %v6603_v13  ;;  %v6548_v48 = vld [vmem:[#allocation4 + $0x148] sm:$0xff]  ;;  %6668 = vst [vmem:[#allocation9 + $0x108] sm:$0xff] %v6604_v8  ;;  %v6610_v49 = vadd.f32 %v6546_v46, %v11035_v5  ;;  %v6611_v10 = vadd.f32 %v6547_v30, %v11041_v52  ;;  %v6549_v4 = vld [vmem:[#allocation4 + $0x150] sm:$0xff] }
 0x61c   : > { %6669 = vst [vmem:[#allocation9 + $0x110] sm:$0xff] %v6605_v36  ;;  %6670 = vst [vmem:[#allocation9 + $0x118] sm:$0xff] %v6606_v28  ;;  %v6612_v16 = vadd.f32 %v6548_v48, %v11047_v1  ;;  %v6550_v27 = vld [vmem:[#allocation4 + $0x158] sm:$0xff]  ;;  %v6551_v11 = vld [vmem:[#allocation4 + $0x160] sm:$0xff]  ;;  %v6613_v26 = vadd.f32 %v6549_v4, %v11057_v39 }
 0x61d   : > { %6671 = vst [vmem:[#allocation9 + $0x120] sm:$0xff] %v6607_v7  ;;  %6672 = vst [vmem:[#allocation9 + $0x128] sm:$0xff] %v6608_v25  ;;  %v6614_v54 = vadd.f32 %v6550_v27, %v11063_v62  ;;  %v6615_v18 = vadd.f32 %v6551_v11, %v11069_v29  ;;  %v6552_v21 = vld [vmem:[#allocation4 + $0x168] sm:$0xff]  ;;  %v6553_v41 = vld [vmem:[#allocation4 + $0x170] sm:$0xff] }
 0x61e   : > { %6673 = vst [vmem:[#allocation9 + $0x130] sm:$0xff] %v6609_v63  ;;  %v6554_v42 = vld [vmem:[#allocation4 + $0x178] sm:$0xff]  ;;  %6674 = vst [vmem:[#allocation9 + $0x138] sm:$0xff] %v6610_v49  ;;  %v6616_v5 = vadd.f32 %v6552_v21, %v11075_v20  ;;  %v6617_v52 = vadd.f32 %v6553_v41, %v11085_v17  ;;  %v6555_v19 = vld [vmem:[#allocation4 + $0x180] sm:$0xff] }
 0x61f   : > { %6675 = vst [vmem:[#allocation9 + $0x140] sm:$0xff] %v6611_v10  ;;  %6676 = vst [vmem:[#allocation9 + $0x148] sm:$0xff] %v6612_v16  ;;  %v6618_v1 = vadd.f32 %v6554_v42, %v11091_v2  ;;  %v6556_v38 = vld [vmem:[#allocation4 + $0x188] sm:$0xff]  ;;  %v6557_v43 = vld [vmem:[#allocation4 + $0x190] sm:$0xff]  ;;  %v6619_v39 = vadd.f32 %v6555_v19, %v11097_v60 }
 0x620   : > { %6677 = vst [vmem:[#allocation9 + $0x150] sm:$0xff] %v6613_v26  ;;  %6678 = vst [vmem:[#allocation9 + $0x158] sm:$0xff] %v6614_v54  ;;  %v6620_v62 = vadd.f32 %v6556_v38, %v11103_v53  ;;  %v6621_v29 = vadd.f32 %v6557_v43, %v11113_v24  ;;  %v6558_v15 = vld [vmem:[#allocation4 + $0x198] sm:$0xff]  ;;  %v6559_v51 = vld [vmem:[#allocation4 + $0x1a0] sm:$0xff] }
 0x621   : > { %6679 = vst [vmem:[#allocation9 + $0x160] sm:$0xff] %v6615_v18  ;;  %v6560_v47 = vld [vmem:[#allocation4 + $0x1a8] sm:$0xff]  ;;  %6680 = vst [vmem:[#allocation9 + $0x168] sm:$0xff] %v6616_v5  ;;  %v6622_v20 = vadd.f32 %v6558_v15, %v11119_v22  ;;  %v6623_v17 = vadd.f32 %v6559_v51, %v11125_v3  ;;  %v6561_v12 = vld [vmem:[#allocation4 + $0x1b0] sm:$0xff] }
 0x622   : > { %6681 = vst [vmem:[#allocation9 + $0x170] sm:$0xff] %v6617_v52  ;;  %6682 = vst [vmem:[#allocation9 + $0x178] sm:$0xff] %v6618_v1  ;;  %v6624_v2 = vadd.f32 %v6560_v47, %v11131_v14  ;;  %v6562_v6 = vld [vmem:[#allocation4 + $0x1b8] sm:$0xff]  ;;  %v6563_v61 = vld [vmem:[#allocation4 + $0x1c0] sm:$0xff]  ;;  %v6625_v60 = vadd.f32 %v6561_v12, %v11141_v31 }
 0x623   : > { %6683 = vst [vmem:[#allocation9 + $0x180] sm:$0xff] %v6619_v39  ;;  %6684 = vst [vmem:[#allocation9 + $0x188] sm:$0xff] %v6620_v62  ;;  %v6626_v53 = vadd.f32 %v6562_v6, %v11147_v59  ;;  %v6627_v24 = vadd.f32 %v6563_v61, %v11153_v58  ;;  %v6564_v50 = vld [vmem:[#allocation4 + $0x1c8] sm:$0xff]  ;;  %v6565_v0 = vld [vmem:[#allocation4 + $0x1d0] sm:$0xff] }
 0x624   : > { %6685 = vst [vmem:[#allocation9 + $0x190] sm:$0xff] %v6621_v29  ;;  %v6566_v33 = vld [vmem:[#allocation4 + $0x1d8] sm:$0xff]  ;;  %6686 = vst [vmem:[#allocation9 + $0x198] sm:$0xff] %v6622_v20  ;;  %v11927_v22 = vld [vmem:[#allocation59_spill] sm:$0xff] }
 0x625   : > { %6687 = vst [vmem:[#allocation9 + $0x1a0] sm:$0xff] %v6623_v17  ;;  %6688 = vst [vmem:[#allocation9 + $0x1a8] sm:$0xff] %v6624_v2  ;;  %v6628_v3 = vadd.f32 %v6564_v50, %v11927_v22  ;;  %v11928_v14 = vld [vmem:[#allocation60_spill] sm:$0xff]  ;;  %v11929_v45 = vld [vmem:[#allocation65_spill] sm:$0xff] }
 0x626   : > { %v6629_v55 = vadd.f32 %v6565_v0, %v11928_v14  ;;  %v6630_v40 = vadd.f32 %v6566_v33, %v11929_v45  ;;  %v6567_v35 = vld [vmem:[#allocation4 + $0x1e0] sm:$0xff]  ;;  %v6568_v23 = vld [vmem:[#allocation4 + $0x1e8] sm:$0xff]  ;;  %v6569_v56 = vld [vmem:[#allocation4 + $0x1f0] sm:$0xff]  ;;  %6689 = vst [vmem:[#allocation9 + $0x1b0] sm:$0xff] %v6625_v60 }
 0x627   : > { %6690 = vst [vmem:[#allocation9 + $0x1b8] sm:$0xff] %v6626_v53  ;;  %6691 = vst [vmem:[#allocation9 + $0x1c0] sm:$0xff] %v6627_v24  ;;  %v11930_v31 = vld [vmem:[#allocation66_spill] sm:$0xff]  ;;  %v11931_v58 = vld [vmem:[#allocation67_spill] sm:$0xff] }
 0x628   : > { %v6631_v59 = vadd.f32 %v6567_v35, %v11930_v31  ;;  %v6632_v13 = vadd.f32 %v6568_v23, %v11931_v58  ;;  %v11932_v57 = vld [vmem:[#allocation68_spill] sm:$0xff]  ;;  %6692 = vst [vmem:[#allocation9 + $0x1c8] sm:$0xff] %v6628_v3  ;;  %6693 = vst [vmem:[#allocation9 + $0x1d0] sm:$0xff] %v6629_v55  ;;  %v11933_v8 = vld [vmem:[#allocation71_spill] sm:$0xff] }
 0x629   : > { %v6633_v34 = vadd.f32 %v6569_v56, %v11932_v57  ;;  %v6570_v37 = vld [vmem:[#allocation4 + $0x1f8] sm:$0xff]  ;;  %6694 = vst [vmem:[#allocation9 + $0x1d8] sm:$0xff] %v6630_v40 }
 0x62a   : > { %v6634_v36 = vadd.f32 %v6570_v37, %v11933_v8  ;;  %6695 = vst [vmem:[#allocation9 + $0x1e0] sm:$0xff] %v6631_v59  ;;  %6696 = vst [vmem:[#allocation9 + $0x1e8] sm:$0xff] %v6632_v13 }
 0x62b   : > { %6697 = vst [vmem:[#allocation9 + $0x1f0] sm:$0xff] %v6633_v34 }
 0x62c   : > { %6698 = vst [vmem:[#allocation9 + $0x1f8] sm:$0xff] %v6634_v36 }
 0x62d PF: > { %p7371_p4 = scmp.eq.s32.totalorder %s7670_s19, 1  ;;  %s7623_s11 = smov [#allocation9]  }
 0x62e   : > { %s6705_s12 = sshll.u32 %s7623_s11, 4  ;;  %s6706_s12 = int_to_ptr.vmem [resolvable:$true] %s6705_s12 }
 0x62f   : > { %s7546_s13 = scalar_lea.vmem %s6706_s12, 8192  ;;  %p7553_p0 = scmp.lt.s32.totalorder %s6706_s12, %s6706_s12 }
 0x630   : > { %p7547_p5 = scmp.ne.s32.totalorder %s6706_s12, %s7546_s13  ;;  %p7554_p2 = scmp.lt.s32.totalorder %s7546_s13, %s7546_s13 }
 0x632   : > { %p7548_p8 = pnand %p7547_p5, %p7371_p4  ;;  %p7555_p11 = por %p7554_p2, %p7553_p0 }
 0x634   : > { %p7549_p12 = pneg %p7548_p8 }
 0x636   : > { %p7556_p13 = pnand %p7555_p11, %p7549_p12 }
 0x638   : > { %7559 = shalt.err (!%p7556_p13)
}
 0x639   : > { %s7560_s28 = scalar_lea.hbm %s11316_s4, 8192 }
 0x63a   : > { %p7561_p3 = scmp.ne.s32.totalorder %s11316_s4, %s7560_s28  ;;  %p7566_p9 = scmp.lt.u32.totalorder %s7560_s28, %s11316_s4 }
 0x63c   : > { %p7562_p7 = pnand %p7561_p3, %p7371_p4 }
 0x63e   : > { %p7563_p6 = pneg %p7562_p7 }
 0x640   : > { %p7568_p10 = pnand %p7566_p9, %p7563_p6 }
 0x642   : > { %7571 = shalt.err (!%p7568_p10)
}
 0x643   : > { %s7624_s21 = smov 128   ;;  %s7625_s29 = smov 8  }
 0x644   : > { %7357 = dma.vmem_to_hbm [thread:$0]  (%p7371_p4), %s6706_s12, 8192, %s11316_s4, [#allocation6], %s7624_s21, %s7624_s21, %s7625_s29  }
 0x645   : > { %7597 = dma.done.wait (%p7371_p4), [#allocation6], 8192  }
 0x646   : > { %7599 = vsyncadd (%p7371_p4), [#allocation6], 4294959104 }
 0x647 PF: > { %p16_p1 = scmp.ge.s32.totalorder %s7696_s25, 4   ;;  %s11934_s15 = smov %s7606_s16 }
 0x648   : > { %s11935_s16 = smov %s7610_s17  ;;  %s11936_s17 = smov %s7722_s14 }
 0x649   : > { %s11937_s18 = smov %s7696_s25  ;;  %18 = sbr.rel (!%p16_p1) target bundleno = 5 (0x5), region = 104 }
 0x650   :  { %6721 = vsyncpa [#allocation5], 1 }
 0x651   :  { %6723 = vsyncpa [#allocation5 + $0x1], 1 }
 0x652   :  { %6724 = vsyncpa [#allocation8], 1 }
 0x653   :  { %6726 = vsyncpa [#allocation8 + $0x1], 1 }
 0x654   :  { %6727 = vsyncpa [#allocation6], 1 }
 0x655   :  { %6729 = vsyncpa [#allocation6 + $0x1], 1 }

</bundles_post_ra>
